<compile_context>
chip_gen: v5e
topology: v5e:2x2
jax: 0.10.0
libtpu: 0.0.40
codegen_flags: <defaults>
</compile_context>

<pallas_src>
import functools

import jax
import jax.numpy as jnp
from jax.experimental import pallas as pl
from jax.experimental.pallas import tpu as pltpu


VMEM_LIMIT_BYTES = 32 * 1024 * 1024   # fits v5e/v6e/v7x scoped-VMEM budgets


# ----------------------------------------------------------------------------
# Pallas kernels
# ----------------------------------------------------------------------------
def _bn_relu_mm_bn_relu_kernel(x_ref, s1_ref, t1_ref, w1_ref, b1_ref,
                               s2_ref, t2_ref, o_ref):
    # BN1 -> ReLU -> 1x1 conv -> BN2 -> ReLU  (residual-unit "head")
    #   x: (TM, Cin) f32, w1: (Cin, Cout) bf16, o: (TM, Cout) f32
    h = jnp.maximum(x_ref[...] * s1_ref[...] + t1_ref[...], 0.0)
    y = jnp.dot(h.astype(jnp.bfloat16), w1_ref[...],
                preferred_element_type=jnp.float32) + b1_ref[...]
    o_ref[...] = jnp.maximum(y * s2_ref[...] + t2_ref[...], 0.0)


def _conv3x3_tail_kernel(xp_ref, w9_ref, b2_ref, s3_ref, t3_ref, w3_ref, b3_ref,
                         res_ref, o_ref, *, th, ww):
    # 3x3 conv (taps read in-kernel from padded image) -> BN3 -> ReLU -> 1x1 conv
    # -> + residual.   (residual-unit "tail")
    #   xp : (1, H+2, W+2, ci) f32  -- whole padded image, resident across row tiles
    #   w9 : (9, ci, ci) bf16, w3: (ci, C) bf16
    #   res: (TH*W, C) f32,  o: (TH*W, C) f32
    j = pl.program_id(1)
    ci = xp_ref.shape[-1]
    m = th * ww
    r0 = j * th
    acc = jnp.zeros((m, ci), jnp.float32)
    for dy in range(3):
        for dx in range(3):
            tap = xp_ref[0, pl.ds(r0 + dy, th), pl.ds(dx, ww), :]      # (th, ww, ci)
            acc = acc + jnp.dot(tap.reshape(m, ci).astype(jnp.bfloat16),
                                w9_ref[3 * dy + dx],
                                preferred_element_type=jnp.float32)
    acc = acc + b2_ref[...]
    h3 = jnp.maximum(acc * s3_ref[...] + t3_ref[...], 0.0)
    y = jnp.dot(h3.astype(jnp.bfloat16), w3_ref[...],
                preferred_element_type=jnp.float32) + b3_ref[...]
    o_ref[...] = y + res_ref[...]


def _sigmoid_branch_merge_kernel(x_ref, s1_ref, t1_ref, w1_ref, b1_ref,
                                 s2_ref, t2_ref, w2_ref, b2_ref, trunk_ref, o_ref):
    # Full sigmoid branch + merge, fully fused:
    #   BN1 -> ReLU -> 1x1 conv -> BN2 -> ReLU -> 1x1 conv -> sigmoid
    #   -> (1 + mask) * trunk
    h1 = jnp.maximum(x_ref[...] * s1_ref[...] + t1_ref[...], 0.0)
    y1 = jnp.dot(h1.astype(jnp.bfloat16), w1_ref[...],
                 preferred_element_type=jnp.float32) + b1_ref[...]
    h2 = jnp.maximum(y1 * s2_ref[...] + t2_ref[...], 0.0)
    y2 = jnp.dot(h2.astype(jnp.bfloat16), w2_ref[...],
                 preferred_element_type=jnp.float32) + b2_ref[...]
    sig = 1.0 / (1.0 + jnp.exp(-y2))
    o_ref[...] = (1.0 + sig) * trunk_ref[...]


# ----------------------------------------------------------------------------
# Tiling / spec helpers
# ----------------------------------------------------------------------------
def _cparams(dims):
    return pltpu.CompilerParams(dimension_semantics=dims,
                                vmem_limit_bytes=VMEM_LIMIT_BYTES)


def _const_spec(shape, grid_ndim):
    zero = (0,) * len(shape)
    if grid_ndim == 1:
        return pl.BlockSpec(shape, lambda i: zero)
    return pl.BlockSpec(shape, lambda i, j: zero)


def _tile_rows(m, target=1024):
    # largest sublane-aligned divisor of m not exceeding `target`
    if m <= target:
        return m
    for t in range(target, 7, -1):
        if m % t == 0 and t % 8 == 0:
            return t
    return m


def _tile_rowblocks(h, w, target_rows=2048):
    th = max(1, min(h, target_rows // max(w, 1)))
    while h % th:
        th -= 1
    return th


# ----------------------------------------------------------------------------
# Fused pallas_call wrappers
# ----------------------------------------------------------------------------
def bn_relu_conv1x1_bn_relu(x2d, s1, t1, w1, b1, s2, t2):
    """BN->ReLU->1x1 conv->BN->ReLU, gridded over the flattened N*H*W axis."""
    m, cin = x2d.shape
    cout = w1.shape[1]
    tm = _tile_rows(m)
    grid = (m // tm,)
    row_in = pl.BlockSpec((tm, cin), lambda i: (i, 0))
    row_out = pl.BlockSpec((tm, cout), lambda i: (i, 0))
    specs = [row_in,
             _const_spec((1, cin), 1), _const_spec((1, cin), 1),
             _const_spec(w1.shape, 1), _const_spec((1, cout), 1),
             _const_spec((1, cout), 1), _const_spec((1, cout), 1)]
    return pl.pallas_call(
        _bn_relu_mm_bn_relu_kernel,
        out_shape=jax.ShapeDtypeStruct((m, cout), jnp.float32),
        grid_spec=pltpu.PrefetchScalarGridSpec(
            num_scalar_prefetch=0, grid=grid, in_specs=specs, out_specs=row_out),
        compiler_params=_cparams(("parallel",)),
    )(x2d, s1.reshape(1, -1), t1.reshape(1, -1), w1, b1.reshape(1, -1),
      s2.reshape(1, -1), t2.reshape(1, -1))


def conv3x3_tail(h_nhwc, p, res2d):
    """3x3 conv -> BN3 -> ReLU -> 1x1 conv -> + residual, gridded over (N, row-blocks)."""
    n, hh, ww, ci = h_nhwc.shape
    m, c = res2d.shape
    # TODO(synk): W assumed multiple of 8 (sublane alignment for the in-kernel row
    #             flattening); add an im2col fallback for odd widths.
    assert ww % 8 == 0
    xp = jnp.pad(h_nhwc, ((0, 0), (1, 1), (1, 1), (0, 0)))      # zero pad, post-ReLU
    th = _tile_rowblocks(hh, ww)
    nrb = hh // th
    tmw = th * ww
    w9 = p['w2'].reshape(9, ci, ci)
    in_specs = [
        pl.BlockSpec((1, hh + 2, ww + 2, ci), lambda i, j: (i, 0, 0, 0)),
        _const_spec(w9.shape, 2),
        _const_spec((1, ci), 2),
        _const_spec((1, ci), 2),
        _const_spec((1, ci), 2),
        _const_spec(p['w3'].shape, 2),
        _const_spec((1, c), 2),
        pl.BlockSpec((tmw, c), lambda i, j: (i * nrb + j, 0)),
    ]
    out_spec = pl.BlockSpec((tmw, c), lambda i, j: (i * nrb + j, 0))
    kern = functools.partial(_conv3x3_tail_kernel, th=th, ww=ww)
    return pl.pallas_call(
        kern,
        out_shape=jax.ShapeDtypeStruct((m, c), jnp.float32),
        grid_spec=pltpu.PrefetchScalarGridSpec(
            num_scalar_prefetch=0, grid=(n, nrb),
            in_specs=in_specs, out_specs=out_spec),
        compiler_params=_cparams(("parallel", "arbitrary")),
    )(xp, w9, p['b2'].reshape(1, -1), p['bn3_s'].reshape(1, -1),
      p['bn3_t'].reshape(1, -1), p['w3'], p['b3'].reshape(1, -1), res2d)


def sigmoid_merge(mask_nhwc, trunk_nhwc, sp):
    """Fully fused sigmoid branch + (1 + sigmoid) * trunk (single kernel)."""
    n, h, w, c = trunk_nhwc.shape
    m = n * h * w
    x2 = mask_nhwc.reshape(m, c)
    trunk2 = trunk_nhwc.reshape(m, c)
    tm = _tile_rows(m)
    grid = (m // tm,)
    row_spec = pl.BlockSpec((tm, c), lambda i: (i, 0))
    specs = [row_spec,
             _const_spec((1, c), 1), _const_spec((1, c), 1),
             _const_spec(sp['w1'].shape, 1), _const_spec((1, c), 1),
             _const_spec((1, c), 1), _const_spec((1, c), 1),
             _const_spec(sp['w2'].shape, 1), _const_spec((1, c), 1),
             row_spec]
    out = pl.pallas_call(
        _sigmoid_branch_merge_kernel,
        out_shape=jax.ShapeDtypeStruct((m, c), jnp.float32),
        grid_spec=pltpu.PrefetchScalarGridSpec(
            num_scalar_prefetch=0, grid=grid, in_specs=specs, out_specs=row_spec),
        compiler_params=_cparams(("parallel",)),
    )(x2, sp['bn1_s'].reshape(1, -1), sp['bn1_t'].reshape(1, -1),
      sp['w1'], sp['b1'].reshape(1, -1),
      sp['bn2_s'].reshape(1, -1), sp['bn2_t'].reshape(1, -1),
      sp['w2'], sp['b2'].reshape(1, -1), trunk2)
    return out.reshape(n, h, w, c)


# ----------------------------------------------------------------------------
# XLA glue (pure data movement, per perf review)
# ----------------------------------------------------------------------------
def max_pool_3x3_s2_p1(x_nhwc):
    # TODO(synk): pooling is pure data movement + max; left to XLA's reduce_window
    #             (fuses the 9 taps) instead of materializing a (9, M, C) stack.
    return jax.lax.reduce_window(
        x_nhwc, jnp.array(-jnp.inf, x_nhwc.dtype), jax.lax.max,
        window_dimensions=(1, 3, 3, 1),
        window_strides=(1, 2, 2, 1),
        padding=((0, 0), (1, 1), (1, 1), (0, 0)))


def interpolate_nearest(x_nhwc, size):
    # F.interpolate(mode='nearest'): pure index gather (glue).
    n, h, w, c = x_nhwc.shape
    ho, wo = size
    ridx = (jnp.arange(ho) * h) // ho
    cidx = (jnp.arange(wo) * w) // wo
    return x_nhwc[:, ridx][:, :, cidx]


# ----------------------------------------------------------------------------
# Module forward (NHWC)
# ----------------------------------------------------------------------------
def residual_unit(x_nhwc, p):
    # ResidualUnit, stride=1, in==out channels (identity shortcut): 2 fused kernels.
    n, h, w, c = x_nhwc.shape
    m = n * h * w
    x2 = x_nhwc.reshape(m, c)
    hmid = bn_relu_conv1x1_bn_relu(x2, p['bn1_s'], p['bn1_t'], p['w1'], p['b1'],
                                   p['bn2_s'], p['bn2_t'])    # (M, C/4), post BN2-ReLU
    out2 = conv3x3_tail(hmid.reshape(n, h, w, -1), p, x2)     # conv3x3..1x1 + residual
    return out2.reshape(n, h, w, c)


def residual_seq(x_nhwc, plist):
    for p in plist:
        x_nhwc = residual_unit(x_nhwc, p)
    return x_nhwc


def attention_module2(x_nhwc, params):
    x = residual_seq(x_nhwc, params['pre'])                    # p = 1
    input_size = (x.shape[1], x.shape[2])

    x_t = residual_seq(x, params['trunk'])                     # t = 2

    x_s = max_pool_3x3_s2_p1(x)
    x_s = residual_seq(x_s, params['soft_down1'])
    shape1 = (x_s.shape[1], x_s.shape[2])
    shortcut = residual_unit(x_s, params['shortcut'])

    x_s = max_pool_3x3_s2_p1(x)                                # pools full-res x again (as in reference)
    x_s = residual_seq(x_s, params['soft_down2'])
    x_s = residual_seq(x_s, params['soft_down3'])
    x_s = residual_seq(x_s, params['soft_up1'])
    x_s = residual_seq(x_s, params['soft_up2'])
    x_s = interpolate_nearest(x_s, shape1)
    x_s = x_s + shortcut                                       # tiny add; XLA fuses it with the gather
    x_s = residual_seq(x_s, params['soft_up3'])
    x_s = interpolate_nearest(x_s, input_size)

    x = sigmoid_merge(x_s, x_t, params['sigmoid'])             # sigmoid branch + (1+m)*trunk, one kernel
    x = residual_seq(x, params['last'])
    return x


# ----------------------------------------------------------------------------
# Deterministic parameter initialization (inference-mode BN folded into affine)
# ----------------------------------------------------------------------------
def _init_bn(key, c):
    k1, k2, k3, k4 = jax.random.split(key, 4)
    gamma = 1.0 + 0.1 * jax.random.normal(k1, (c,))
    beta = 0.1 * jax.random.normal(k2, (c,))
    mean = 0.1 * jax.random.normal(k3, (c,))
    var = 1.0 + 0.1 * jnp.abs(jax.random.normal(k4, (c,)))
    scale = gamma / jnp.sqrt(var + 1e-5)
    shift = beta - mean * scale
    return scale.astype(jnp.float32), shift.astype(jnp.float32)


def _init_conv(key, cin, cout, k=1):
    kw, kb = jax.random.split(key)
    fan_in = cin * k * k
    w = (jax.random.normal(kw, (k, k, cin, cout)) / jnp.sqrt(fan_in)).astype(jnp.bfloat16)
    b = (0.01 * jax.random.normal(kb, (cout,))).astype(jnp.float32)
    if k == 1:
        w = w.reshape(cin, cout)
    return w, b


def _init_residual_unit(key, c):
    inner = c // 4
    keys = jax.random.split(key, 6)
    p = {}
    p['bn1_s'], p['bn1_t'] = _init_bn(keys[0], c)
    p['w1'], p['b1'] = _init_conv(keys[1], c, inner, 1)
    p['bn2_s'], p['bn2_t'] = _init_bn(keys[2], inner)
    p['w2'], p['b2'] = _init_conv(keys[3], inner, inner, 3)
    p['bn3_s'], p['bn3_t'] = _init_bn(keys[4], inner)
    p['w3'], p['b3'] = _init_conv(keys[5], inner, c, 1)
    return p


def _init_residual_seq(key, c, count):
    keys = jax.random.split(key, count)
    return [_init_residual_unit(k, c) for k in keys]


def init_attention_module2(key, c, p=1, t=2, r=1):
    names_counts = [('pre', p), ('trunk', t), ('soft_down1', r), ('soft_down2', r),
                    ('soft_down3', r), ('soft_up1', r), ('soft_up2', r), ('soft_up3', r),
                    ('last', p)]
    keys = jax.random.split(key, len(names_counts) + 2)
    params = {}
    for (name, cnt), k in zip(names_counts, keys[:len(names_counts)]):
        params[name] = _init_residual_seq(k, c, cnt)
    params['shortcut'] = _init_residual_unit(keys[-2], c)
    sk = jax.random.split(keys[-1], 4)
    sig = {}
    sig['bn1_s'], sig['bn1_t'] = _init_bn(sk[0], c)
    sig['w1'], sig['b1'] = _init_conv(sk[1], c, c, 1)
    sig['bn2_s'], sig['bn2_t'] = _init_bn(sk[2], c)
    sig['w2'], sig['b2'] = _init_conv(sk[3], c, c, 1)
    params['sigmoid'] = sig
    return params


# ----------------------------------------------------------------------------
# Entry point
# ----------------------------------------------------------------------------
@jax.jit
def forward_nchw(x_nchw, params):
    x_nhwc = jnp.transpose(x_nchw, (0, 2, 3, 1))
    y_nhwc = attention_module2(x_nhwc, params)
    return jnp.transpose(y_nhwc, (0, 3, 1, 2))


if __name__ == "__main__":
    key = jax.random.PRNGKey(0)
    kx, kp = jax.random.split(key)

    N, C, H, W = 2, 16, 16, 16          # small shapes; C divisible by 4 (bottleneck width 4)
    x = jax.random.normal(kx, (N, C, H, W), dtype=jnp.float32)   # PyTorch-style NCHW input
    params = init_attention_module2(kp, C)

    out = jax.block_until_ready(forward_nchw(x, params))
    assert out.shape == (N, C, H, W)
    assert bool(jnp.all(jnp.isfinite(out)))
    print("KERNEL_OK")
</pallas_src>

<mosaic_0001>
module attributes {stable_mosaic.version = 11 : i64} {
  func.func @_bn_relu_mm_bn_relu_kernel(%arg0: i32, %arg1: memref<512x16xf32, #tpu.memory_space<vmem>>, %arg2: memref<1x16xf32, #tpu.memory_space<vmem>>, %arg3: memref<1x16xf32, #tpu.memory_space<vmem>>, %arg4: memref<16x4xbf16, #tpu.memory_space<vmem>>, %arg5: memref<1x4xf32, #tpu.memory_space<vmem>>, %arg6: memref<1x4xf32, #tpu.memory_space<vmem>>, %arg7: memref<1x4xf32, #tpu.memory_space<vmem>>, %arg8: memref<512x4xf32, #tpu.memory_space<vmem>>) attributes {dimension_semantics = [#tpu.dimension_semantics<parallel>], iteration_bounds = array<i64: 1>, scalar_prefetch = 0 : i64, scratch_operands = 0 : i64, tpu.core_type = #tpu.core_type<tc>, window_params = [{transform_indices = @transform_0, window_bounds = array<i64: 512, 16>}, {pipeline_mode = #tpu.pipeline_mode<synchronous>, transform_indices = @transform_1, window_bounds = array<i64: 1, 16>}, {pipeline_mode = #tpu.pipeline_mode<synchronous>, transform_indices = @transform_2, window_bounds = array<i64: 1, 16>}, {pipeline_mode = #tpu.pipeline_mode<synchronous>, transform_indices = @transform_3, window_bounds = array<i64: 16, 4>}, {pipeline_mode = #tpu.pipeline_mode<synchronous>, transform_indices = @transform_4, window_bounds = array<i64: 1, 4>}, {pipeline_mode = #tpu.pipeline_mode<synchronous>, transform_indices = @transform_5, window_bounds = array<i64: 1, 4>}, {pipeline_mode = #tpu.pipeline_mode<synchronous>, transform_indices = @transform_6, window_bounds = array<i64: 1, 4>}, {transform_indices = @transform_7, window_bounds = array<i64: 512, 4>}]} {
    %c0 = arith.constant 0 : index
    %c0_0 = arith.constant 0 : index
    %0 = vector.load %arg1[%c0, %c0_0] : memref<512x16xf32, #tpu.memory_space<vmem>>, vector<512x16xf32>
    %c0_1 = arith.constant 0 : index
    %c0_2 = arith.constant 0 : index
    %1 = vector.load %arg2[%c0_1, %c0_2] : memref<1x16xf32, #tpu.memory_space<vmem>>, vector<1x16xf32>
    %2 = vector.broadcast %1 : vector<1x16xf32> to vector<512x16xf32>
    %3 = arith.mulf %0, %2 : vector<512x16xf32>
    %c0_3 = arith.constant 0 : index
    %c0_4 = arith.constant 0 : index
    %4 = vector.load %arg3[%c0_3, %c0_4] : memref<1x16xf32, #tpu.memory_space<vmem>>, vector<1x16xf32>
    %5 = vector.broadcast %4 : vector<1x16xf32> to vector<512x16xf32>
    %6 = arith.addf %3, %5 : vector<512x16xf32>
    %cst = arith.constant 0.000000e+00 : f32
    %7 = vector.broadcast %cst : f32 to vector<512x16xf32>
    %8 = arith.maximumf %6, %7 : vector<512x16xf32>
    %9 = arith.truncf %8 : vector<512x16xf32> to vector<512x16xbf16>
    %c0_5 = arith.constant 0 : index
    %c0_6 = arith.constant 0 : index
    %10 = vector.load %arg4[%c0_5, %c0_6] : memref<16x4xbf16, #tpu.memory_space<vmem>>, vector<16x4xbf16>
    %cst_7 = arith.constant dense<0.000000e+00> : vector<512x4xf32>
    %11 = tpu.matmul %9, %10, %cst_7 {dimension_numbers = #tpu.dot_dimension_numbers<[1], [0], [0], [1], [0, 0, 1, 1], [], []>} : vector<512x16xbf16>, vector<16x4xbf16>, vector<512x4xf32> -> vector<512x4xf32>
    %c0_8 = arith.constant 0 : index
    %c0_9 = arith.constant 0 : index
    %12 = vector.load %arg5[%c0_8, %c0_9] : memref<1x4xf32, #tpu.memory_space<vmem>>, vector<1x4xf32>
    %13 = vector.broadcast %12 : vector<1x4xf32> to vector<512x4xf32>
    %14 = arith.addf %11, %13 : vector<512x4xf32>
    %c0_10 = arith.constant 0 : index
    %c0_11 = arith.constant 0 : index
    %15 = vector.load %arg6[%c0_10, %c0_11] : memref<1x4xf32, #tpu.memory_space<vmem>>, vector<1x4xf32>
    %16 = vector.broadcast %15 : vector<1x4xf32> to vector<512x4xf32>
    %17 = arith.mulf %14, %16 : vector<512x4xf32>
    %c0_12 = arith.constant 0 : index
    %c0_13 = arith.constant 0 : index
    %18 = vector.load %arg7[%c0_12, %c0_13] : memref<1x4xf32, #tpu.memory_space<vmem>>, vector<1x4xf32>
    %19 = vector.broadcast %18 : vector<1x4xf32> to vector<512x4xf32>
    %20 = arith.addf %17, %19 : vector<512x4xf32>
    %cst_14 = arith.constant 0.000000e+00 : f32
    %21 = vector.broadcast %cst_14 : f32 to vector<512x4xf32>
    %22 = arith.maximumf %20, %21 : vector<512x4xf32>
    %c0_15 = arith.constant 0 : index
    %c0_16 = arith.constant 0 : index
    %23 = vector.load %arg8[%c0_15, %c0_16] : memref<512x4xf32, #tpu.memory_space<vmem>>, vector<512x4xf32>
    tpu.vector_store %arg8[%c0_15, %c0_16], %22 {strides = array<i32>} : memref<512x4xf32, #tpu.memory_space<vmem>>, vector<512x4xf32>,
    return
  }
  func.func @transform_0(%arg0: i32) -> (i32, i32) {
    %c0_i32 = arith.constant 0 : i32
    %c0_i32_0 = arith.constant 0 : i32
    return %arg0, %c0_i32 : i32, i32
  }
  func.func @transform_1(%arg0: i32) -> (i32, i32) {
    %c0_i32 = arith.constant 0 : i32
    %c0_i32_0 = arith.constant 0 : i32
    %c0_i32_1 = arith.constant 0 : i32
    return %c0_i32, %c0_i32_0 : i32, i32
  }
  func.func @transform_2(%arg0: i32) -> (i32, i32) {
    %c0_i32 = arith.constant 0 : i32
    %c0_i32_0 = arith.constant 0 : i32
    %c0_i32_1 = arith.constant 0 : i32
    return %c0_i32, %c0_i32_0 : i32, i32
  }
  func.func @transform_3(%arg0: i32) -> (i32, i32) {
    %c0_i32 = arith.constant 0 : i32
    %c0_i32_0 = arith.constant 0 : i32
    %c0_i32_1 = arith.constant 0 : i32
    return %c0_i32, %c0_i32_0 : i32, i32
  }
  func.func @transform_4(%arg0: i32) -> (i32, i32) {
    %c0_i32 = arith.constant 0 : i32
    %c0_i32_0 = arith.constant 0 : i32
    %c0_i32_1 = arith.constant 0 : i32
    return %c0_i32, %c0_i32_0 : i32, i32
  }
  func.func @transform_5(%arg0: i32) -> (i32, i32) {
    %c0_i32 = arith.constant 0 : i32
    %c0_i32_0 = arith.constant 0 : i32
    %c0_i32_1 = arith.constant 0 : i32
    return %c0_i32, %c0_i32_0 : i32, i32
  }
  func.func @transform_6(%arg0: i32) -> (i32, i32) {
    %c0_i32 = arith.constant 0 : i32
    %c0_i32_0 = arith.constant 0 : i32
    %c0_i32_1 = arith.constant 0 : i32
    return %c0_i32, %c0_i32_0 : i32, i32
  }
  func.func @transform_7(%arg0: i32) -> (i32, i32) {
    %c0_i32 = arith.constant 0 : i32
    %c0_i32_0 = arith.constant 0 : i32
    return %arg0, %c0_i32 : i32, i32
  }
}

module attributes {stable_mosaic.version = 11 : i64} {
  func.func @_conv3x3_tail_kernel(%arg0: i32, %arg1: i32, %arg2: memref<1x18x18x4xf32, #tpu.memory_space<vmem>>, %arg3: memref<9x4x4xbf16, #tpu.memory_space<vmem>>, %arg4: memref<1x4xf32, #tpu.memory_space<vmem>>, %arg5: memref<1x4xf32, #tpu.memory_space<vmem>>, %arg6: memref<1x4xf32, #tpu.memory_space<vmem>>, %arg7: memref<4x16xbf16, #tpu.memory_space<vmem>>, %arg8: memref<1x16xf32, #tpu.memory_space<vmem>>, %arg9: memref<256x16xf32, #tpu.memory_space<vmem>>, %arg10: memref<256x16xf32, #tpu.memory_space<vmem>>) attributes {dimension_semantics = [#tpu.dimension_semantics<parallel>, #tpu.dimension_semantics<arbitrary>], iteration_bounds = array<i64: 2, 1>, scalar_prefetch = 0 : i64, scratch_operands = 0 : i64, tpu.core_type = #tpu.core_type<tc>, window_params = [{transform_indices = @transform_0, window_bounds = array<i64: 1, 18, 18, 4>}, {pipeline_mode = #tpu.pipeline_mode<synchronous>, transform_indices = @transform_1, window_bounds = array<i64: 9, 4, 4>}, {pipeline_mode = #tpu.pipeline_mode<synchronous>, transform_indices = @transform_2, window_bounds = array<i64: 1, 4>}, {pipeline_mode = #tpu.pipeline_mode<synchronous>, transform_indices = @transform_3, window_bounds = array<i64: 1, 4>}, {pipeline_mode = #tpu.pipeline_mode<synchronous>, transform_indices = @transform_4, window_bounds = array<i64: 1, 4>}, {pipeline_mode = #tpu.pipeline_mode<synchronous>, transform_indices = @transform_5, window_bounds = array<i64: 4, 16>}, {pipeline_mode = #tpu.pipeline_mode<synchronous>, transform_indices = @transform_6, window_bounds = array<i64: 1, 16>}, {transform_indices = @transform_7, window_bounds = array<i64: 256, 16>}, {transform_indices = @transform_8, window_bounds = array<i64: 256, 16>}]} {
    %c16_i32 = arith.constant 16 : i32
    %0 = arith.muli %arg1, %c16_i32 : i32
    %cst = arith.constant 0.000000e+00 : f32
    %1 = vector.broadcast %cst : f32 to vector<256x4xf32>
    %c0_i32 = arith.constant 0 : i32
    %2 = arith.addi %0, %c0_i32 : i32
    %c0 = arith.constant 0 : index
    %3 = arith.index_cast %2 : i32 to index
    %c0_0 = arith.constant 0 : index
    %c0_1 = arith.constant 0 : index
    %4 = vector.load %arg2[%c0, %3, %c0_0, %c0_1] : memref<1x18x18x4xf32, #tpu.memory_space<vmem>>, vector<1x16x16x4xf32>
    %5 = vector.shape_cast %4 : vector<1x16x16x4xf32> to vector<16x16x4xf32>
    %6 = vector.shape_cast %5 : vector<16x16x4xf32> to vector<256x4xf32>
    %7 = arith.truncf %6 : vector<256x4xf32> to vector<256x4xbf16>
    %c0_2 = arith.constant 0 : index
    %c0_3 = arith.constant 0 : index
    %c0_4 = arith.constant 0 : index
    %8 = vector.load %arg3[%c0_2, %c0_3, %c0_4] : memref<9x4x4xbf16, #tpu.memory_space<vmem>>, vector<1x4x4xbf16>
    %9 = vector.shape_cast %8 : vector<1x4x4xbf16> to vector<4x4xbf16>
    %cst_5 = arith.constant dense<0.000000e+00> : vector<256x4xf32>
    %10 = tpu.matmul %7, %9, %cst_5 {dimension_numbers = #tpu.dot_dimension_numbers<[1], [0], [0], [1], [0, 0, 1, 1], [], []>} : vector<256x4xbf16>, vector<4x4xbf16>, vector<256x4xf32> -> vector<256x4xf32>
    %11 = arith.addf %1, %10 : vector<256x4xf32>
    %c0_i32_6 = arith.constant 0 : i32
    %12 = arith.addi %0, %c0_i32_6 : i32
    %c0_7 = arith.constant 0 : index
    %13 = arith.index_cast %12 : i32 to index
    %c1 = arith.constant 1 : index
    %c0_8 = arith.constant 0 : index
    %14 = vector.load %arg2[%c0_7, %13, %c1, %c0_8] : memref<1x18x18x4xf32, #tpu.memory_space<vmem>>, vector<1x16x16x4xf32>
    %15 = vector.shape_cast %14 : vector<1x16x16x4xf32> to vector<16x16x4xf32>
    %16 = vector.shape_cast %15 : vector<16x16x4xf32> to vector<256x4xf32>
    %17 = arith.truncf %16 : vector<256x4xf32> to vector<256x4xbf16>
    %c1_9 = arith.constant 1 : index
    %c0_10 = arith.constant 0 : index
    %c0_11 = arith.constant 0 : index
    %18 = vector.load %arg3[%c1_9, %c0_10, %c0_11] : memref<9x4x4xbf16, #tpu.memory_space<vmem>>, vector<1x4x4xbf16>
    %19 = vector.shape_cast %18 : vector<1x4x4xbf16> to vector<4x4xbf16>
    %cst_12 = arith.constant dense<0.000000e+00> : vector<256x4xf32>
    %20 = tpu.matmul %17, %19, %cst_12 {dimension_numbers = #tpu.dot_dimension_numbers<[1], [0], [0], [1], [0, 0, 1, 1], [], []>} : vector<256x4xbf16>, vector<4x4xbf16>, vector<256x4xf32> -> vector<256x4xf32>
    %21 = arith.addf %11, %20 : vector<256x4xf32>
    %c0_i32_13 = arith.constant 0 : i32
    %22 = arith.addi %0, %c0_i32_13 : i32
    %c0_14 = arith.constant 0 : index
    %23 = arith.index_cast %22 : i32 to index
    %c2 = arith.constant 2 : index
    %c0_15 = arith.constant 0 : index
    %24 = vector.load %arg2[%c0_14, %23, %c2, %c0_15] : memref<1x18x18x4xf32, #tpu.memory_space<vmem>>, vector<1x16x16x4xf32>
    %25 = vector.shape_cast %24 : vector<1x16x16x4xf32> to vector<16x16x4xf32>
    %26 = vector.shape_cast %25 : vector<16x16x4xf32> to vector<256x4xf32>
    %27 = arith.truncf %26 : vector<256x4xf32> to vector<256x4xbf16>
    %c2_16 = arith.constant 2 : index
    %c0_17 = arith.constant 0 : index
    %c0_18 = arith.constant 0 : index
    %28 = vector.load %arg3[%c2_16, %c0_17, %c0_18] : memref<9x4x4xbf16, #tpu.memory_space<vmem>>, vector<1x4x4xbf16>
    %29 = vector.shape_cast %28 : vector<1x4x4xbf16> to vector<4x4xbf16>
    %cst_19 = arith.constant dense<0.000000e+00> : vector<256x4xf32>
    %30 = tpu.matmul %27, %29, %cst_19 {dimension_numbers = #tpu.dot_dimension_numbers<[1], [0], [0], [1], [0, 0, 1, 1], [], []>} : vector<256x4xbf16>, vector<4x4xbf16>, vector<256x4xf32> -> vector<256x4xf32>
    %31 = arith.addf %21, %30 : vector<256x4xf32>
    %c1_i32 = arith.constant 1 : i32
    %32 = arith.addi %0, %c1_i32 : i32
    %c0_20 = arith.constant 0 : index
    %33 = arith.index_cast %32 : i32 to index
    %c0_21 = arith.constant 0 : index
    %c0_22 = arith.constant 0 : index
    %34 = vector.load %arg2[%c0_20, %33, %c0_21, %c0_22] : memref<1x18x18x4xf32, #tpu.memory_space<vmem>>, vector<1x16x16x4xf32>
    %35 = vector.shape_cast %34 : vector<1x16x16x4xf32> to vector<16x16x4xf32>
    %36 = vector.shape_cast %35 : vector<16x16x4xf32> to vector<256x4xf32>
    %37 = arith.truncf %36 : vector<256x4xf32> to vector<256x4xbf16>
    %c3 = arith.constant 3 : index
    %c0_23 = arith.constant 0 : index
    %c0_24 = arith.constant 0 : index
    %38 = vector.load %arg3[%c3, %c0_23, %c0_24] : memref<9x4x4xbf16, #tpu.memory_space<vmem>>, vector<1x4x4xbf16>
    %39 = vector.shape_cast %38 : vector<1x4x4xbf16> to vector<4x4xbf16>
    %cst_25 = arith.constant dense<0.000000e+00> : vector<256x4xf32>
    %40 = tpu.matmul %37, %39, %cst_25 {dimension_numbers = #tpu.dot_dimension_numbers<[1], [0], [0], [1], [0, 0, 1, 1], [], []>} : vector<256x4xbf16>, vector<4x4xbf16>, vector<256x4xf32> -> vector<256x4xf32>
    %41 = arith.addf %31, %40 : vector<256x4xf32>
    %c1_i32_26 = arith.constant 1 : i32
    %42 = arith.addi %0, %c1_i32_26 : i32
    %c0_27 = arith.constant 0 : index
    %43 = arith.index_cast %42 : i32 to index
    %c1_28 = arith.constant 1 : index
    %c0_29 = arith.constant 0 : index
    %44 = vector.load %arg2[%c0_27, %43, %c1_28, %c0_29] : memref<1x18x18x4xf32, #tpu.memory_space<vmem>>, vector<1x16x16x4xf32>
    %45 = vector.shape_cast %44 : vector<1x16x16x4xf32> to vector<16x16x4xf32>
    %46 = vector.shape_cast %45 : vector<16x16x4xf32> to vector<256x4xf32>
    %47 = arith.truncf %46 : vector<256x4xf32> to vector<256x4xbf16>
    %c4 = arith.constant 4 : index
    %c0_30 = arith.constant 0 : index
    %c0_31 = arith.constant 0 : index
    %48 = vector.load %arg3[%c4, %c0_30, %c0_31] : memref<9x4x4xbf16, #tpu.memory_space<vmem>>, vector<1x4x4xbf16>
    %49 = vector.shape_cast %48 : vector<1x4x4xbf16> to vector<4x4xbf16>
    %cst_32 = arith.constant dense<0.000000e+00> : vector<256x4xf32>
    %50 = tpu.matmul %47, %49, %cst_32 {dimension_numbers = #tpu.dot_dimension_numbers<[1], [0], [0], [1], [0, 0, 1, 1], [], []>} : vector<256x4xbf16>, vector<4x4xbf16>, vector<256x4xf32> -> vector<256x4xf32>
    %51 = arith.addf %41, %50 : vector<256x4xf32>
    %c1_i32_33 = arith.constant 1 : i32
    %52 = arith.addi %0, %c1_i32_33 : i32
    %c0_34 = arith.constant 0 : index
    %53 = arith.index_cast %52 : i32 to index
    %c2_35 = arith.constant 2 : index
    %c0_36 = arith.constant 0 : index
    %54 = vector.load %arg2[%c0_34, %53, %c2_35, %c0_36] : memref<1x18x18x4xf32, #tpu.memory_space<vmem>>, vector<1x16x16x4xf32>
    %55 = vector.shape_cast %54 : vector<1x16x16x4xf32> to vector<16x16x4xf32>
    %56 = vector.shape_cast %55 : vector<16x16x4xf32> to vector<256x4xf32>
    %57 = arith.truncf %56 : vector<256x4xf32> to vector<256x4xbf16>
    %c5 = arith.constant 5 : index
    %c0_37 = arith.constant 0 : index
    %c0_38 = arith.constant 0 : index
    %58 = vector.load %arg3[%c5, %c0_37, %c0_38] : memref<9x4x4xbf16, #tpu.memory_space<vmem>>, vector<1x4x4xbf16>
    %59 = vector.shape_cast %58 : vector<1x4x4xbf16> to vector<4x4xbf16>
    %cst_39 = arith.constant dense<0.000000e+00> : vector<256x4xf32>
    %60 = tpu.matmul %57, %59, %cst_39 {dimension_numbers = #tpu.dot_dimension_numbers<[1], [0], [0], [1], [0, 0, 1, 1], [], []>} : vector<256x4xbf16>, vector<4x4xbf16>, vector<256x4xf32> -> vector<256x4xf32>
    %61 = arith.addf %51, %60 : vector<256x4xf32>
    %c2_i32 = arith.constant 2 : i32
    %62 = arith.addi %0, %c2_i32 : i32
    %c0_40 = arith.constant 0 : index
    %63 = arith.index_cast %62 : i32 to index
    %c0_41 = arith.constant 0 : index
    %c0_42 = arith.constant 0 : index
    %64 = vector.load %arg2[%c0_40, %63, %c0_41, %c0_42] : memref<1x18x18x4xf32, #tpu.memory_space<vmem>>, vector<1x16x16x4xf32>
    %65 = vector.shape_cast %64 : vector<1x16x16x4xf32> to vector<16x16x4xf32>
    %66 = vector.shape_cast %65 : vector<16x16x4xf32> to vector<256x4xf32>
    %67 = arith.truncf %66 : vector<256x4xf32> to vector<256x4xbf16>
    %c6 = arith.constant 6 : index
    %c0_43 = arith.constant 0 : index
    %c0_44 = arith.constant 0 : index
    %68 = vector.load %arg3[%c6, %c0_43, %c0_44] : memref<9x4x4xbf16, #tpu.memory_space<vmem>>, vector<1x4x4xbf16>
    %69 = vector.shape_cast %68 : vector<1x4x4xbf16> to vector<4x4xbf16>
    %cst_45 = arith.constant dense<0.000000e+00> : vector<256x4xf32>
    %70 = tpu.matmul %67, %69, %cst_45 {dimension_numbers = #tpu.dot_dimension_numbers<[1], [0], [0], [1], [0, 0, 1, 1], [], []>} : vector<256x4xbf16>, vector<4x4xbf16>, vector<256x4xf32> -> vector<256x4xf32>
    %71 = arith.addf %61, %70 : vector<256x4xf32>
    %c2_i32_46 = arith.constant 2 : i32
    %72 = arith.addi %0, %c2_i32_46 : i32
    %c0_47 = arith.constant 0 : index
    %73 = arith.index_cast %72 : i32 to index
    %c1_48 = arith.constant 1 : index
    %c0_49 = arith.constant 0 : index
    %74 = vector.load %arg2[%c0_47, %73, %c1_48, %c0_49] : memref<1x18x18x4xf32, #tpu.memory_space<vmem>>, vector<1x16x16x4xf32>
    %75 = vector.shape_cast %74 : vector<1x16x16x4xf32> to vector<16x16x4xf32>
    %76 = vector.shape_cast %75 : vector<16x16x4xf32> to vector<256x4xf32>
    %77 = arith.truncf %76 : vector<256x4xf32> to vector<256x4xbf16>
    %c7 = arith.constant 7 : index
    %c0_50 = arith.constant 0 : index
    %c0_51 = arith.constant 0 : index
    %78 = vector.load %arg3[%c7, %c0_50, %c0_51] : memref<9x4x4xbf16, #tpu.memory_space<vmem>>, vector<1x4x4xbf16>
    %79 = vector.shape_cast %78 : vector<1x4x4xbf16> to vector<4x4xbf16>
    %cst_52 = arith.constant dense<0.000000e+00> : vector<256x4xf32>
    %80 = tpu.matmul %77, %79, %cst_52 {dimension_numbers = #tpu.dot_dimension_numbers<[1], [0], [0], [1], [0, 0, 1, 1], [], []>} : vector<256x4xbf16>, vector<4x4xbf16>, vector<256x4xf32> -> vector<256x4xf32>
    %81 = arith.addf %71, %80 : vector<256x4xf32>
    %c2_i32_53 = arith.constant 2 : i32
    %82 = arith.addi %0, %c2_i32_53 : i32
    %c0_54 = arith.constant 0 : index
    %83 = arith.index_cast %82 : i32 to index
    %c2_55 = arith.constant 2 : index
    %c0_56 = arith.constant 0 : index
    %84 = vector.load %arg2[%c0_54, %83, %c2_55, %c0_56] : memref<1x18x18x4xf32, #tpu.memory_space<vmem>>, vector<1x16x16x4xf32>
    %85 = vector.shape_cast %84 : vector<1x16x16x4xf32> to vector<16x16x4xf32>
    %86 = vector.shape_cast %85 : vector<16x16x4xf32> to vector<256x4xf32>
    %87 = arith.truncf %86 : vector<256x4xf32> to vector<256x4xbf16>
    %c8 = arith.constant 8 : index
    %c0_57 = arith.constant 0 : index
    %c0_58 = arith.constant 0 : index
    %88 = vector.load %arg3[%c8, %c0_57, %c0_58] : memref<9x4x4xbf16, #tpu.memory_space<vmem>>, vector<1x4x4xbf16>
    %89 = vector.shape_cast %88 : vector<1x4x4xbf16> to vector<4x4xbf16>
    %cst_59 = arith.constant dense<0.000000e+00> : vector<256x4xf32>
    %90 = tpu.matmul %87, %89, %cst_59 {dimension_numbers = #tpu.dot_dimension_numbers<[1], [0], [0], [1], [0, 0, 1, 1], [], []>} : vector<256x4xbf16>, vector<4x4xbf16>, vector<256x4xf32> -> vector<256x4xf32>
    %91 = arith.addf %81, %90 : vector<256x4xf32>
    %c0_60 = arith.constant 0 : index
    %c0_61 = arith.constant 0 : index
    %92 = vector.load %arg4[%c0_60, %c0_61] : memref<1x4xf32, #tpu.memory_space<vmem>>, vector<1x4xf32>
    %93 = vector.broadcast %92 : vector<1x4xf32> to vector<256x4xf32>
    %94 = arith.addf %91, %93 : vector<256x4xf32>
    %c0_62 = arith.constant 0 : index
    %c0_63 = arith.constant 0 : index
    %95 = vector.load %arg5[%c0_62, %c0_63] : memref<1x4xf32, #tpu.memory_space<vmem>>, vector<1x4xf32>
    %96 = vector.broadcast %95 : vector<1x4xf32> to vector<256x4xf32>
    %97 = arith.mulf %94, %96 : vector<256x4xf32>
    %c0_64 = arith.constant 0 : index
    %c0_65 = arith.constant 0 : index
    %98 = vector.load %arg6[%c0_64, %c0_65] : memref<1x4xf32, #tpu.memory_space<vmem>>, vector<1x4xf32>
    %99 = vector.broadcast %98 : vector<1x4xf32> to vector<256x4xf32>
    %100 = arith.addf %97, %99 : vector<256x4xf32>
    %cst_66 = arith.constant 0.000000e+00 : f32
    %101 = vector.broadcast %cst_66 : f32 to vector<256x4xf32>
    %102 = arith.maximumf %100, %101 : vector<256x4xf32>
    %103 = arith.truncf %102 : vector<256x4xf32> to vector<256x4xbf16>
    %c0_67 = arith.constant 0 : index
    %c0_68 = arith.constant 0 : index
    %104 = vector.load %arg7[%c0_67, %c0_68] : memref<4x16xbf16, #tpu.memory_space<vmem>>, vector<4x16xbf16>
    %cst_69 = arith.constant dense<0.000000e+00> : vector<256x16xf32>
    %105 = tpu.matmul %103, %104, %cst_69 {dimension_numbers = #tpu.dot_dimension_numbers<[1], [0], [0], [1], [0, 0, 1, 1], [], []>} : vector<256x4xbf16>, vector<4x16xbf16>, vector<256x16xf32> -> vector<256x16xf32>
    %c0_70 = arith.constant 0 : index
    %c0_71 = arith.constant 0 : index
    %106 = vector.load %arg8[%c0_70, %c0_71] : memref<1x16xf32, #tpu.memory_space<vmem>>, vector<1x16xf32>
    %107 = vector.broadcast %106 : vector<1x16xf32> to vector<256x16xf32>
    %108 = arith.addf %105, %107 : vector<256x16xf32>
    %c0_72 = arith.constant 0 : index
    %c0_73 = arith.constant 0 : index
    %109 = vector.load %arg9[%c0_72, %c0_73] : memref<256x16xf32, #tpu.memory_space<vmem>>, vector<256x16xf32>
    %110 = arith.addf %108, %109 : vector<256x16xf32>
    %c0_74 = arith.constant 0 : index
    %c0_75 = arith.constant 0 : index
    %111 = vector.load %arg10[%c0_74, %c0_75] : memref<256x16xf32, #tpu.memory_space<vmem>>, vector<256x16xf32>
    tpu.vector_store %arg10[%c0_74, %c0_75], %110 {strides = array<i32>} : memref<256x16xf32, #tpu.memory_space<vmem>>, vector<256x16xf32>,
    return
  }
  func.func @transform_0(%arg0: i32, %arg1: i32) -> (i32, i32, i32, i32) {
    %c0_i32 = arith.constant 0 : i32
    %c0_i32_0 = arith.constant 0 : i32
    %c0_i32_1 = arith.constant 0 : i32
    %c0_i32_2 = arith.constant 0 : i32
    return %arg0, %c0_i32, %c0_i32_0, %c0_i32_1 : i32, i32, i32, i32
  }
  func.func @transform_1(%arg0: i32, %arg1: i32) -> (i32, i32, i32) {
    %c0_i32 = arith.constant 0 : i32
    %c0_i32_0 = arith.constant 0 : i32
    %c0_i32_1 = arith.constant 0 : i32
    %c0_i32_2 = arith.constant 0 : i32
    return %c0_i32, %c0_i32_0, %c0_i32_1 : i32, i32, i32
  }
  func.func @transform_2(%arg0: i32, %arg1: i32) -> (i32, i32) {
    %c0_i32 = arith.constant 0 : i32
    %c0_i32_0 = arith.constant 0 : i32
    %c0_i32_1 = arith.constant 0 : i32
    return %c0_i32, %c0_i32_0 : i32, i32
  }
  func.func @transform_3(%arg0: i32, %arg1: i32) -> (i32, i32) {
    %c0_i32 = arith.constant 0 : i32
    %c0_i32_0 = arith.constant 0 : i32
    %c0_i32_1 = arith.constant 0 : i32
    return %c0_i32, %c0_i32_0 : i32, i32
  }
  func.func @transform_4(%arg0: i32, %arg1: i32) -> (i32, i32) {
    %c0_i32 = arith.constant 0 : i32
    %c0_i32_0 = arith.constant 0 : i32
    %c0_i32_1 = arith.constant 0 : i32
    return %c0_i32, %c0_i32_0 : i32, i32
  }
  func.func @transform_5(%arg0: i32, %arg1: i32) -> (i32, i32) {
    %c0_i32 = arith.constant 0 : i32
    %c0_i32_0 = arith.constant 0 : i32
    %c0_i32_1 = arith.constant 0 : i32
    return %c0_i32, %c0_i32_0 : i32, i32
  }
  func.func @transform_6(%arg0: i32, %arg1: i32) -> (i32, i32) {
    %c0_i32 = arith.constant 0 : i32
    %c0_i32_0 = arith.constant 0 : i32
    %c0_i32_1 = arith.constant 0 : i32
    return %c0_i32, %c0_i32_0 : i32, i32
  }
  func.func @transform_7(%arg0: i32, %arg1: i32) -> (i32, i32) {
    %c1_i32 = arith.constant 1 : i32
    %0 = arith.muli %arg0, %c1_i32 : i32
    %1 = arith.addi %0, %arg1 : i32
    %c0_i32 = arith.constant 0 : i32
    %c0_i32_0 = arith.constant 0 : i32
    return %1, %c0_i32 : i32, i32
  }
  func.func @transform_8(%arg0: i32, %arg1: i32) -> (i32, i32) {
    %c1_i32 = arith.constant 1 : i32
    %0 = arith.muli %arg0, %c1_i32 : i32
    %1 = arith.addi %0, %arg1 : i32
    %c0_i32 = arith.constant 0 : i32
    %c0_i32_0 = arith.constant 0 : i32
    return %1, %c0_i32 : i32, i32
  }
}

module attributes {stable_mosaic.version = 11 : i64} {
  func.func @_bn_relu_mm_bn_relu_kernel(%arg0: i32, %arg1: memref<128x16xf32, #tpu.memory_space<vmem>>, %arg2: memref<1x16xf32, #tpu.memory_space<vmem>>, %arg3: memref<1x16xf32, #tpu.memory_space<vmem>>, %arg4: memref<16x4xbf16, #tpu.memory_space<vmem>>, %arg5: memref<1x4xf32, #tpu.memory_space<vmem>>, %arg6: memref<1x4xf32, #tpu.memory_space<vmem>>, %arg7: memref<1x4xf32, #tpu.memory_space<vmem>>, %arg8: memref<128x4xf32, #tpu.memory_space<vmem>>) attributes {dimension_semantics = [#tpu.dimension_semantics<parallel>], iteration_bounds = array<i64: 1>, scalar_prefetch = 0 : i64, scratch_operands = 0 : i64, tpu.core_type = #tpu.core_type<tc>, window_params = [{transform_indices = @transform_0, window_bounds = array<i64: 128, 16>}, {pipeline_mode = #tpu.pipeline_mode<synchronous>, transform_indices = @transform_1, window_bounds = array<i64: 1, 16>}, {pipeline_mode = #tpu.pipeline_mode<synchronous>, transform_indices = @transform_2, window_bounds = array<i64: 1, 16>}, {pipeline_mode = #tpu.pipeline_mode<synchronous>, transform_indices = @transform_3, window_bounds = array<i64: 16, 4>}, {pipeline_mode = #tpu.pipeline_mode<synchronous>, transform_indices = @transform_4, window_bounds = array<i64: 1, 4>}, {pipeline_mode = #tpu.pipeline_mode<synchronous>, transform_indices = @transform_5, window_bounds = array<i64: 1, 4>}, {pipeline_mode = #tpu.pipeline_mode<synchronous>, transform_indices = @transform_6, window_bounds = array<i64: 1, 4>}, {transform_indices = @transform_7, window_bounds = array<i64: 128, 4>}]} {
    %c0 = arith.constant 0 : index
    %c0_0 = arith.constant 0 : index
    %0 = vector.load %arg1[%c0, %c0_0] : memref<128x16xf32, #tpu.memory_space<vmem>>, vector<128x16xf32>
    %c0_1 = arith.constant 0 : index
    %c0_2 = arith.constant 0 : index
    %1 = vector.load %arg2[%c0_1, %c0_2] : memref<1x16xf32, #tpu.memory_space<vmem>>, vector<1x16xf32>
    %2 = vector.broadcast %1 : vector<1x16xf32> to vector<128x16xf32>
    %3 = arith.mulf %0, %2 : vector<128x16xf32>
    %c0_3 = arith.constant 0 : index
    %c0_4 = arith.constant 0 : index
    %4 = vector.load %arg3[%c0_3, %c0_4] : memref<1x16xf32, #tpu.memory_space<vmem>>, vector<1x16xf32>
    %5 = vector.broadcast %4 : vector<1x16xf32> to vector<128x16xf32>
    %6 = arith.addf %3, %5 : vector<128x16xf32>
    %cst = arith.constant 0.000000e+00 : f32
    %7 = vector.broadcast %cst : f32 to vector<128x16xf32>
    %8 = arith.maximumf %6, %7 : vector<128x16xf32>
    %9 = arith.truncf %8 : vector<128x16xf32> to vector<128x16xbf16>
    %c0_5 = arith.constant 0 : index
    %c0_6 = arith.constant 0 : index
    %10 = vector.load %arg4[%c0_5, %c0_6] : memref<16x4xbf16, #tpu.memory_space<vmem>>, vector<16x4xbf16>
    %cst_7 = arith.constant dense<0.000000e+00> : vector<128x4xf32>
    %11 = tpu.matmul %9, %10, %cst_7 {dimension_numbers = #tpu.dot_dimension_numbers<[1], [0], [0], [1], [0, 0, 1, 1], [], []>} : vector<128x16xbf16>, vector<16x4xbf16>, vector<128x4xf32> -> vector<128x4xf32>
    %c0_8 = arith.constant 0 : index
    %c0_9 = arith.constant 0 : index
    %12 = vector.load %arg5[%c0_8, %c0_9] : memref<1x4xf32, #tpu.memory_space<vmem>>, vector<1x4xf32>
    %13 = vector.broadcast %12 : vector<1x4xf32> to vector<128x4xf32>
    %14 = arith.addf %11, %13 : vector<128x4xf32>
    %c0_10 = arith.constant 0 : index
    %c0_11 = arith.constant 0 : index
    %15 = vector.load %arg6[%c0_10, %c0_11] : memref<1x4xf32, #tpu.memory_space<vmem>>, vector<1x4xf32>
    %16 = vector.broadcast %15 : vector<1x4xf32> to vector<128x4xf32>
    %17 = arith.mulf %14, %16 : vector<128x4xf32>
    %c0_12 = arith.constant 0 : index
    %c0_13 = arith.constant 0 : index
    %18 = vector.load %arg7[%c0_12, %c0_13] : memref<1x4xf32, #tpu.memory_space<vmem>>, vector<1x4xf32>
    %19 = vector.broadcast %18 : vector<1x4xf32> to vector<128x4xf32>
    %20 = arith.addf %17, %19 : vector<128x4xf32>
    %cst_14 = arith.constant 0.000000e+00 : f32
    %21 = vector.broadcast %cst_14 : f32 to vector<128x4xf32>
    %22 = arith.maximumf %20, %21 : vector<128x4xf32>
    %c0_15 = arith.constant 0 : index
    %c0_16 = arith.constant 0 : index
    %23 = vector.load %arg8[%c0_15, %c0_16] : memref<128x4xf32, #tpu.memory_space<vmem>>, vector<128x4xf32>
    tpu.vector_store %arg8[%c0_15, %c0_16], %22 {strides = array<i32>} : memref<128x4xf32, #tpu.memory_space<vmem>>, vector<128x4xf32>,
    return
  }
  func.func @transform_0(%arg0: i32) -> (i32, i32) {
    %c0_i32 = arith.constant 0 : i32
    %c0_i32_0 = arith.constant 0 : i32
    return %arg0, %c0_i32 : i32, i32
  }
  func.func @transform_1(%arg0: i32) -> (i32, i32) {
    %c0_i32 = arith.constant 0 : i32
    %c0_i32_0 = arith.constant 0 : i32
    %c0_i32_1 = arith.constant 0 : i32
    return %c0_i32, %c0_i32_0 : i32, i32
  }
  func.func @transform_2(%arg0: i32) -> (i32, i32) {
    %c0_i32 = arith.constant 0 : i32
    %c0_i32_0 = arith.constant 0 : i32
    %c0_i32_1 = arith.constant 0 : i32
    return %c0_i32, %c0_i32_0 : i32, i32
  }
  func.func @transform_3(%arg0: i32) -> (i32, i32) {
    %c0_i32 = arith.constant 0 : i32
    %c0_i32_0 = arith.constant 0 : i32
    %c0_i32_1 = arith.constant 0 : i32
    return %c0_i32, %c0_i32_0 : i32, i32
  }
  func.func @transform_4(%arg0: i32) -> (i32, i32) {
    %c0_i32 = arith.constant 0 : i32
    %c0_i32_0 = arith.constant 0 : i32
    %c0_i32_1 = arith.constant 0 : i32
    return %c0_i32, %c0_i32_0 : i32, i32
  }
  func.func @transform_5(%arg0: i32) -> (i32, i32) {
    %c0_i32 = arith.constant 0 : i32
    %c0_i32_0 = arith.constant 0 : i32
    %c0_i32_1 = arith.constant 0 : i32
    return %c0_i32, %c0_i32_0 : i32, i32
  }
  func.func @transform_6(%arg0: i32) -> (i32, i32) {
    %c0_i32 = arith.constant 0 : i32
    %c0_i32_0 = arith.constant 0 : i32
    %c0_i32_1 = arith.constant 0 : i32
    return %c0_i32, %c0_i32_0 : i32, i32
  }
  func.func @transform_7(%arg0: i32) -> (i32, i32) {
    %c0_i32 = arith.constant 0 : i32
    %c0_i32_0 = arith.constant 0 : i32
    return %arg0, %c0_i32 : i32, i32
  }
}

module attributes {stable_mosaic.version = 11 : i64} {
  func.func @_conv3x3_tail_kernel(%arg0: i32, %arg1: i32, %arg2: memref<1x10x10x4xf32, #tpu.memory_space<vmem>>, %arg3: memref<9x4x4xbf16, #tpu.memory_space<vmem>>, %arg4: memref<1x4xf32, #tpu.memory_space<vmem>>, %arg5: memref<1x4xf32, #tpu.memory_space<vmem>>, %arg6: memref<1x4xf32, #tpu.memory_space<vmem>>, %arg7: memref<4x16xbf16, #tpu.memory_space<vmem>>, %arg8: memref<1x16xf32, #tpu.memory_space<vmem>>, %arg9: memref<64x16xf32, #tpu.memory_space<vmem>>, %arg10: memref<64x16xf32, #tpu.memory_space<vmem>>) attributes {dimension_semantics = [#tpu.dimension_semantics<parallel>, #tpu.dimension_semantics<arbitrary>], iteration_bounds = array<i64: 2, 1>, scalar_prefetch = 0 : i64, scratch_operands = 0 : i64, tpu.core_type = #tpu.core_type<tc>, window_params = [{transform_indices = @transform_0, window_bounds = array<i64: 1, 10, 10, 4>}, {pipeline_mode = #tpu.pipeline_mode<synchronous>, transform_indices = @transform_1, window_bounds = array<i64: 9, 4, 4>}, {pipeline_mode = #tpu.pipeline_mode<synchronous>, transform_indices = @transform_2, window_bounds = array<i64: 1, 4>}, {pipeline_mode = #tpu.pipeline_mode<synchronous>, transform_indices = @transform_3, window_bounds = array<i64: 1, 4>}, {pipeline_mode = #tpu.pipeline_mode<synchronous>, transform_indices = @transform_4, window_bounds = array<i64: 1, 4>}, {pipeline_mode = #tpu.pipeline_mode<synchronous>, transform_indices = @transform_5, window_bounds = array<i64: 4, 16>}, {pipeline_mode = #tpu.pipeline_mode<synchronous>, transform_indices = @transform_6, window_bounds = array<i64: 1, 16>}, {transform_indices = @transform_7, window_bounds = array<i64: 64, 16>}, {transform_indices = @transform_8, window_bounds = array<i64: 64, 16>}]} {
    %c8_i32 = arith.constant 8 : i32
    %0 = arith.muli %arg1, %c8_i32 : i32
    %cst = arith.constant 0.000000e+00 : f32
    %1 = vector.broadcast %cst : f32 to vector<64x4xf32>
    %c0_i32 = arith.constant 0 : i32
    %2 = arith.addi %0, %c0_i32 : i32
    %c0 = arith.constant 0 : index
    %3 = arith.index_cast %2 : i32 to index
    %c0_0 = arith.constant 0 : index
    %c0_1 = arith.constant 0 : index
    %4 = vector.load %arg2[%c0, %3, %c0_0, %c0_1] : memref<1x10x10x4xf32, #tpu.memory_space<vmem>>, vector<1x8x8x4xf32>
    %5 = vector.shape_cast %4 : vector<1x8x8x4xf32> to vector<8x8x4xf32>
    %6 = vector.shape_cast %5 : vector<8x8x4xf32> to vector<64x4xf32>
    %7 = arith.truncf %6 : vector<64x4xf32> to vector<64x4xbf16>
    %c0_2 = arith.constant 0 : index
    %c0_3 = arith.constant 0 : index
    %c0_4 = arith.constant 0 : index
    %8 = vector.load %arg3[%c0_2, %c0_3, %c0_4] : memref<9x4x4xbf16, #tpu.memory_space<vmem>>, vector<1x4x4xbf16>
    %9 = vector.shape_cast %8 : vector<1x4x4xbf16> to vector<4x4xbf16>
    %cst_5 = arith.constant dense<0.000000e+00> : vector<64x4xf32>
    %10 = tpu.matmul %7, %9, %cst_5 {dimension_numbers = #tpu.dot_dimension_numbers<[1], [0], [0], [1], [0, 0, 1, 1], [], []>} : vector<64x4xbf16>, vector<4x4xbf16>, vector<64x4xf32> -> vector<64x4xf32>
    %11 = arith.addf %1, %10 : vector<64x4xf32>
    %c0_i32_6 = arith.constant 0 : i32
    %12 = arith.addi %0, %c0_i32_6 : i32
    %c0_7 = arith.constant 0 : index
    %13 = arith.index_cast %12 : i32 to index
    %c1 = arith.constant 1 : index
    %c0_8 = arith.constant 0 : index
    %14 = vector.load %arg2[%c0_7, %13, %c1, %c0_8] : memref<1x10x10x4xf32, #tpu.memory_space<vmem>>, vector<1x8x8x4xf32>
    %15 = vector.shape_cast %14 : vector<1x8x8x4xf32> to vector<8x8x4xf32>
    %16 = vector.shape_cast %15 : vector<8x8x4xf32> to vector<64x4xf32>
    %17 = arith.truncf %16 : vector<64x4xf32> to vector<64x4xbf16>
    %c1_9 = arith.constant 1 : index
    %c0_10 = arith.constant 0 : index
    %c0_11 = arith.constant 0 : index
    %18 = vector.load %arg3[%c1_9, %c0_10, %c0_11] : memref<9x4x4xbf16, #tpu.memory_space<vmem>>, vector<1x4x4xbf16>
    %19 = vector.shape_cast %18 : vector<1x4x4xbf16> to vector<4x4xbf16>
    %cst_12 = arith.constant dense<0.000000e+00> : vector<64x4xf32>
    %20 = tpu.matmul %17, %19, %cst_12 {dimension_numbers = #tpu.dot_dimension_numbers<[1], [0], [0], [1], [0, 0, 1, 1], [], []>} : vector<64x4xbf16>, vector<4x4xbf16>, vector<64x4xf32> -> vector<64x4xf32>
    %21 = arith.addf %11, %20 : vector<64x4xf32>
    %c0_i32_13 = arith.constant 0 : i32
    %22 = arith.addi %0, %c0_i32_13 : i32
    %c0_14 = arith.constant 0 : index
    %23 = arith.index_cast %22 : i32 to index
    %c2 = arith.constant 2 : index
    %c0_15 = arith.constant 0 : index
    %24 = vector.load %arg2[%c0_14, %23, %c2, %c0_15] : memref<1x10x10x4xf32, #tpu.memory_space<vmem>>, vector<1x8x8x4xf32>
    %25 = vector.shape_cast %24 : vector<1x8x8x4xf32> to vector<8x8x4xf32>
    %26 = vector.shape_cast %25 : vector<8x8x4xf32> to vector<64x4xf32>
    %27 = arith.truncf %26 : vector<64x4xf32> to vector<64x4xbf16>
    %c2_16 = arith.constant 2 : index
    %c0_17 = arith.constant 0 : index
    %c0_18 = arith.constant 0 : index
    %28 = vector.load %arg3[%c2_16, %c0_17, %c0_18] : memref<9x4x4xbf16, #tpu.memory_space<vmem>>, vector<1x4x4xbf16>
    %29 = vector.shape_cast %28 : vector<1x4x4xbf16> to vector<4x4xbf16>
    %cst_19 = arith.constant dense<0.000000e+00> : vector<64x4xf32>
    %30 = tpu.matmul %27, %29, %cst_19 {dimension_numbers = #tpu.dot_dimension_numbers<[1], [0], [0], [1], [0, 0, 1, 1], [], []>} : vector<64x4xbf16>, vector<4x4xbf16>, vector<64x4xf32> -> vector<64x4xf32>
    %31 = arith.addf %21, %30 : vector<64x4xf32>
    %c1_i32 = arith.constant 1 : i32
    %32 = arith.addi %0, %c1_i32 : i32
    %c0_20 = arith.constant 0 : index
    %33 = arith.index_cast %32 : i32 to index
    %c0_21 = arith.constant 0 : index
    %c0_22 = arith.constant 0 : index
    %34 = vector.load %arg2[%c0_20, %33, %c0_21, %c0_22] : memref<1x10x10x4xf32, #tpu.memory_space<vmem>>, vector<1x8x8x4xf32>
    %35 = vector.shape_cast %34 : vector<1x8x8x4xf32> to vector<8x8x4xf32>
    %36 = vector.shape_cast %35 : vector<8x8x4xf32> to vector<64x4xf32>
    %37 = arith.truncf %36 : vector<64x4xf32> to vector<64x4xbf16>
    %c3 = arith.constant 3 : index
    %c0_23 = arith.constant 0 : index
    %c0_24 = arith.constant 0 : index
    %38 = vector.load %arg3[%c3, %c0_23, %c0_24] : memref<9x4x4xbf16, #tpu.memory_space<vmem>>, vector<1x4x4xbf16>
    %39 = vector.shape_cast %38 : vector<1x4x4xbf16> to vector<4x4xbf16>
    %cst_25 = arith.constant dense<0.000000e+00> : vector<64x4xf32>
    %40 = tpu.matmul %37, %39, %cst_25 {dimension_numbers = #tpu.dot_dimension_numbers<[1], [0], [0], [1], [0, 0, 1, 1], [], []>} : vector<64x4xbf16>, vector<4x4xbf16>, vector<64x4xf32> -> vector<64x4xf32>
    %41 = arith.addf %31, %40 : vector<64x4xf32>
    %c1_i32_26 = arith.constant 1 : i32
    %42 = arith.addi %0, %c1_i32_26 : i32
    %c0_27 = arith.constant 0 : index
    %43 = arith.index_cast %42 : i32 to index
    %c1_28 = arith.constant 1 : index
    %c0_29 = arith.constant 0 : index
    %44 = vector.load %arg2[%c0_27, %43, %c1_28, %c0_29] : memref<1x10x10x4xf32, #tpu.memory_space<vmem>>, vector<1x8x8x4xf32>
    %45 = vector.shape_cast %44 : vector<1x8x8x4xf32> to vector<8x8x4xf32>
    %46 = vector.shape_cast %45 : vector<8x8x4xf32> to vector<64x4xf32>
    %47 = arith.truncf %46 : vector<64x4xf32> to vector<64x4xbf16>
    %c4 = arith.constant 4 : index
    %c0_30 = arith.constant 0 : index
    %c0_31 = arith.constant 0 : index
    %48 = vector.load %arg3[%c4, %c0_30, %c0_31] : memref<9x4x4xbf16, #tpu.memory_space<vmem>>, vector<1x4x4xbf16>
    %49 = vector.shape_cast %48 : vector<1x4x4xbf16> to vector<4x4xbf16>
    %cst_32 = arith.constant dense<0.000000e+00> : vector<64x4xf32>
    %50 = tpu.matmul %47, %49, %cst_32 {dimension_numbers = #tpu.dot_dimension_numbers<[1], [0], [0], [1], [0, 0, 1, 1], [], []>} : vector<64x4xbf16>, vector<4x4xbf16>, vector<64x4xf32> -> vector<64x4xf32>
    %51 = arith.addf %41, %50 : vector<64x4xf32>
    %c1_i32_33 = arith.constant 1 : i32
    %52 = arith.addi %0, %c1_i32_33 : i32
    %c0_34 = arith.constant 0 : index
    %53 = arith.index_cast %52 : i32 to index
    %c2_35 = arith.constant 2 : index
    %c0_36 = arith.constant 0 : index
    %54 = vector.load %arg2[%c0_34, %53, %c2_35, %c0_36] : memref<1x10x10x4xf32, #tpu.memory_space<vmem>>, vector<1x8x8x4xf32>
    %55 = vector.shape_cast %54 : vector<1x8x8x4xf32> to vector<8x8x4xf32>
    %56 = vector.shape_cast %55 : vector<8x8x4xf32> to vector<64x4xf32>
    %57 = arith.truncf %56 : vector<64x4xf32> to vector<64x4xbf16>
    %c5 = arith.constant 5 : index
    %c0_37 = arith.constant 0 : index
    %c0_38 = arith.constant 0 : index
    %58 = vector.load %arg3[%c5, %c0_37, %c0_38] : memref<9x4x4xbf16, #tpu.memory_space<vmem>>, vector<1x4x4xbf16>
    %59 = vector.shape_cast %58 : vector<1x4x4xbf16> to vector<4x4xbf16>
    %cst_39 = arith.constant dense<0.000000e+00> : vector<64x4xf32>
    %60 = tpu.matmul %57, %59, %cst_39 {dimension_numbers = #tpu.dot_dimension_numbers<[1], [0], [0], [1], [0, 0, 1, 1], [], []>} : vector<64x4xbf16>, vector<4x4xbf16>, vector<64x4xf32> -> vector<64x4xf32>
    %61 = arith.addf %51, %60 : vector<64x4xf32>
    %c2_i32 = arith.constant 2 : i32
    %62 = arith.addi %0, %c2_i32 : i32
    %c0_40 = arith.constant 0 : index
    %63 = arith.index_cast %62 : i32 to index
    %c0_41 = arith.constant 0 : index
    %c0_42 = arith.constant 0 : index
    %64 = vector.load %arg2[%c0_40, %63, %c0_41, %c0_42] : memref<1x10x10x4xf32, #tpu.memory_space<vmem>>, vector<1x8x8x4xf32>
    %65 = vector.shape_cast %64 : vector<1x8x8x4xf32> to vector<8x8x4xf32>
    %66 = vector.shape_cast %65 : vector<8x8x4xf32> to vector<64x4xf32>
    %67 = arith.truncf %66 : vector<64x4xf32> to vector<64x4xbf16>
    %c6 = arith.constant 6 : index
    %c0_43 = arith.constant 0 : index
    %c0_44 = arith.constant 0 : index
    %68 = vector.load %arg3[%c6, %c0_43, %c0_44] : memref<9x4x4xbf16, #tpu.memory_space<vmem>>, vector<1x4x4xbf16>
    %69 = vector.shape_cast %68 : vector<1x4x4xbf16> to vector<4x4xbf16>
    %cst_45 = arith.constant dense<0.000000e+00> : vector<64x4xf32>
    %70 = tpu.matmul %67, %69, %cst_45 {dimension_numbers = #tpu.dot_dimension_numbers<[1], [0], [0], [1], [0, 0, 1, 1], [], []>} : vector<64x4xbf16>, vector<4x4xbf16>, vector<64x4xf32> -> vector<64x4xf32>
    %71 = arith.addf %61, %70 : vector<64x4xf32>
    %c2_i32_46 = arith.constant 2 : i32
    %72 = arith.addi %0, %c2_i32_46 : i32
    %c0_47 = arith.constant 0 : index
    %73 = arith.index_cast %72 : i32 to index
    %c1_48 = arith.constant 1 : index
    %c0_49 = arith.constant 0 : index
    %74 = vector.load %arg2[%c0_47, %73, %c1_48, %c0_49] : memref<1x10x10x4xf32, #tpu.memory_space<vmem>>, vector<1x8x8x4xf32>
    %75 = vector.shape_cast %74 : vector<1x8x8x4xf32> to vector<8x8x4xf32>
    %76 = vector.shape_cast %75 : vector<8x8x4xf32> to vector<64x4xf32>
    %77 = arith.truncf %76 : vector<64x4xf32> to vector<64x4xbf16>
    %c7 = arith.constant 7 : index
    %c0_50 = arith.constant 0 : index
    %c0_51 = arith.constant 0 : index
    %78 = vector.load %arg3[%c7, %c0_50, %c0_51] : memref<9x4x4xbf16, #tpu.memory_space<vmem>>, vector<1x4x4xbf16>
    %79 = vector.shape_cast %78 : vector<1x4x4xbf16> to vector<4x4xbf16>
    %cst_52 = arith.constant dense<0.000000e+00> : vector<64x4xf32>
    %80 = tpu.matmul %77, %79, %cst_52 {dimension_numbers = #tpu.dot_dimension_numbers<[1], [0], [0], [1], [0, 0, 1, 1], [], []>} : vector<64x4xbf16>, vector<4x4xbf16>, vector<64x4xf32> -> vector<64x4xf32>
    %81 = arith.addf %71, %80 : vector<64x4xf32>
    %c2_i32_53 = arith.constant 2 : i32
    %82 = arith.addi %0, %c2_i32_53 : i32
    %c0_54 = arith.constant 0 : index
    %83 = arith.index_cast %82 : i32 to index
    %c2_55 = arith.constant 2 : index
    %c0_56 = arith.constant 0 : index
    %84 = vector.load %arg2[%c0_54, %83, %c2_55, %c0_56] : memref<1x10x10x4xf32, #tpu.memory_space<vmem>>, vector<1x8x8x4xf32>
    %85 = vector.shape_cast %84 : vector<1x8x8x4xf32> to vector<8x8x4xf32>
    %86 = vector.shape_cast %85 : vector<8x8x4xf32> to vector<64x4xf32>
    %87 = arith.truncf %86 : vector<64x4xf32> to vector<64x4xbf16>
    %c8 = arith.constant 8 : index
    %c0_57 = arith.constant 0 : index
    %c0_58 = arith.constant 0 : index
    %88 = vector.load %arg3[%c8, %c0_57, %c0_58] : memref<9x4x4xbf16, #tpu.memory_space<vmem>>, vector<1x4x4xbf16>
    %89 = vector.shape_cast %88 : vector<1x4x4xbf16> to vector<4x4xbf16>
    %cst_59 = arith.constant dense<0.000000e+00> : vector<64x4xf32>
    %90 = tpu.matmul %87, %89, %cst_59 {dimension_numbers = #tpu.dot_dimension_numbers<[1], [0], [0], [1], [0, 0, 1, 1], [], []>} : vector<64x4xbf16>, vector<4x4xbf16>, vector<64x4xf32> -> vector<64x4xf32>
    %91 = arith.addf %81, %90 : vector<64x4xf32>
    %c0_60 = arith.constant 0 : index
    %c0_61 = arith.constant 0 : index
    %92 = vector.load %arg4[%c0_60, %c0_61] : memref<1x4xf32, #tpu.memory_space<vmem>>, vector<1x4xf32>
    %93 = vector.broadcast %92 : vector<1x4xf32> to vector<64x4xf32>
    %94 = arith.addf %91, %93 : vector<64x4xf32>
    %c0_62 = arith.constant 0 : index
    %c0_63 = arith.constant 0 : index
    %95 = vector.load %arg5[%c0_62, %c0_63] : memref<1x4xf32, #tpu.memory_space<vmem>>, vector<1x4xf32>
    %96 = vector.broadcast %95 : vector<1x4xf32> to vector<64x4xf32>
    %97 = arith.mulf %94, %96 : vector<64x4xf32>
    %c0_64 = arith.constant 0 : index
    %c0_65 = arith.constant 0 : index
    %98 = vector.load %arg6[%c0_64, %c0_65] : memref<1x4xf32, #tpu.memory_space<vmem>>, vector<1x4xf32>
    %99 = vector.broadcast %98 : vector<1x4xf32> to vector<64x4xf32>
    %100 = arith.addf %97, %99 : vector<64x4xf32>
    %cst_66 = arith.constant 0.000000e+00 : f32
    %101 = vector.broadcast %cst_66 : f32 to vector<64x4xf32>
    %102 = arith.maximumf %100, %101 : vector<64x4xf32>
    %103 = arith.truncf %102 : vector<64x4xf32> to vector<64x4xbf16>
    %c0_67 = arith.constant 0 : index
    %c0_68 = arith.constant 0 : index
    %104 = vector.load %arg7[%c0_67, %c0_68] : memref<4x16xbf16, #tpu.memory_space<vmem>>, vector<4x16xbf16>
    %cst_69 = arith.constant dense<0.000000e+00> : vector<64x16xf32>
    %105 = tpu.matmul %103, %104, %cst_69 {dimension_numbers = #tpu.dot_dimension_numbers<[1], [0], [0], [1], [0, 0, 1, 1], [], []>} : vector<64x4xbf16>, vector<4x16xbf16>, vector<64x16xf32> -> vector<64x16xf32>
    %c0_70 = arith.constant 0 : index
    %c0_71 = arith.constant 0 : index
    %106 = vector.load %arg8[%c0_70, %c0_71] : memref<1x16xf32, #tpu.memory_space<vmem>>, vector<1x16xf32>
    %107 = vector.broadcast %106 : vector<1x16xf32> to vector<64x16xf32>
    %108 = arith.addf %105, %107 : vector<64x16xf32>
    %c0_72 = arith.constant 0 : index
    %c0_73 = arith.constant 0 : index
    %109 = vector.load %arg9[%c0_72, %c0_73] : memref<64x16xf32, #tpu.memory_space<vmem>>, vector<64x16xf32>
    %110 = arith.addf %108, %109 : vector<64x16xf32>
    %c0_74 = arith.constant 0 : index
    %c0_75 = arith.constant 0 : index
    %111 = vector.load %arg10[%c0_74, %c0_75] : memref<64x16xf32, #tpu.memory_space<vmem>>, vector<64x16xf32>
    tpu.vector_store %arg10[%c0_74, %c0_75], %110 {strides = array<i32>} : memref<64x16xf32, #tpu.memory_space<vmem>>, vector<64x16xf32>,
    return
  }
  func.func @transform_0(%arg0: i32, %arg1: i32) -> (i32, i32, i32, i32) {
    %c0_i32 = arith.constant 0 : i32
    %c0_i32_0 = arith.constant 0 : i32
    %c0_i32_1 = arith.constant 0 : i32
    %c0_i32_2 = arith.constant 0 : i32
    return %arg0, %c0_i32, %c0_i32_0, %c0_i32_1 : i32, i32, i32, i32
  }
  func.func @transform_1(%arg0: i32, %arg1: i32) -> (i32, i32, i32) {
    %c0_i32 = arith.constant 0 : i32
    %c0_i32_0 = arith.constant 0 : i32
    %c0_i32_1 = arith.constant 0 : i32
    %c0_i32_2 = arith.constant 0 : i32
    return %c0_i32, %c0_i32_0, %c0_i32_1 : i32, i32, i32
  }
  func.func @transform_2(%arg0: i32, %arg1: i32) -> (i32, i32) {
    %c0_i32 = arith.constant 0 : i32
    %c0_i32_0 = arith.constant 0 : i32
    %c0_i32_1 = arith.constant 0 : i32
    return %c0_i32, %c0_i32_0 : i32, i32
  }
  func.func @transform_3(%arg0: i32, %arg1: i32) -> (i32, i32) {
    %c0_i32 = arith.constant 0 : i32
    %c0_i32_0 = arith.constant 0 : i32
    %c0_i32_1 = arith.constant 0 : i32
    return %c0_i32, %c0_i32_0 : i32, i32
  }
  func.func @transform_4(%arg0: i32, %arg1: i32) -> (i32, i32) {
    %c0_i32 = arith.constant 0 : i32
    %c0_i32_0 = arith.constant 0 : i32
    %c0_i32_1 = arith.constant 0 : i32
    return %c0_i32, %c0_i32_0 : i32, i32
  }
  func.func @transform_5(%arg0: i32, %arg1: i32) -> (i32, i32) {
    %c0_i32 = arith.constant 0 : i32
    %c0_i32_0 = arith.constant 0 : i32
    %c0_i32_1 = arith.constant 0 : i32
    return %c0_i32, %c0_i32_0 : i32, i32
  }
  func.func @transform_6(%arg0: i32, %arg1: i32) -> (i32, i32) {
    %c0_i32 = arith.constant 0 : i32
    %c0_i32_0 = arith.constant 0 : i32
    %c0_i32_1 = arith.constant 0 : i32
    return %c0_i32, %c0_i32_0 : i32, i32
  }
  func.func @transform_7(%arg0: i32, %arg1: i32) -> (i32, i32) {
    %c1_i32 = arith.constant 1 : i32
    %0 = arith.muli %arg0, %c1_i32 : i32
    %1 = arith.addi %0, %arg1 : i32
    %c0_i32 = arith.constant 0 : i32
    %c0_i32_0 = arith.constant 0 : i32
    return %1, %c0_i32 : i32, i32
  }
  func.func @transform_8(%arg0: i32, %arg1: i32) -> (i32, i32) {
    %c1_i32 = arith.constant 1 : i32
    %0 = arith.muli %arg0, %c1_i32 : i32
    %1 = arith.addi %0, %arg1 : i32
    %c0_i32 = arith.constant 0 : i32
    %c0_i32_0 = arith.constant 0 : i32
    return %1, %c0_i32 : i32, i32
  }
}

module attributes {stable_mosaic.version = 11 : i64} {
  func.func @_sigmoid_branch_merge_kernel(%arg0: i32, %arg1: memref<512x16xf32, #tpu.memory_space<vmem>>, %arg2: memref<1x16xf32, #tpu.memory_space<vmem>>, %arg3: memref<1x16xf32, #tpu.memory_space<vmem>>, %arg4: memref<16x16xbf16, #tpu.memory_space<vmem>>, %arg5: memref<1x16xf32, #tpu.memory_space<vmem>>, %arg6: memref<1x16xf32, #tpu.memory_space<vmem>>, %arg7: memref<1x16xf32, #tpu.memory_space<vmem>>, %arg8: memref<16x16xbf16, #tpu.memory_space<vmem>>, %arg9: memref<1x16xf32, #tpu.memory_space<vmem>>, %arg10: memref<512x16xf32, #tpu.memory_space<vmem>>, %arg11: memref<512x16xf32, #tpu.memory_space<vmem>>) attributes {dimension_semantics = [#tpu.dimension_semantics<parallel>], iteration_bounds = array<i64: 1>, scalar_prefetch = 0 : i64, scratch_operands = 0 : i64, tpu.core_type = #tpu.core_type<tc>, window_params = [{transform_indices = @transform_0, window_bounds = array<i64: 512, 16>}, {pipeline_mode = #tpu.pipeline_mode<synchronous>, transform_indices = @transform_1, window_bounds = array<i64: 1, 16>}, {pipeline_mode = #tpu.pipeline_mode<synchronous>, transform_indices = @transform_2, window_bounds = array<i64: 1, 16>}, {pipeline_mode = #tpu.pipeline_mode<synchronous>, transform_indices = @transform_3, window_bounds = array<i64: 16, 16>}, {pipeline_mode = #tpu.pipeline_mode<synchronous>, transform_indices = @transform_4, window_bounds = array<i64: 1, 16>}, {pipeline_mode = #tpu.pipeline_mode<synchronous>, transform_indices = @transform_5, window_bounds = array<i64: 1, 16>}, {pipeline_mode = #tpu.pipeline_mode<synchronous>, transform_indices = @transform_6, window_bounds = array<i64: 1, 16>}, {pipeline_mode = #tpu.pipeline_mode<synchronous>, transform_indices = @transform_7, window_bounds = array<i64: 16, 16>}, {pipeline_mode = #tpu.pipeline_mode<synchronous>, transform_indices = @transform_8, window_bounds = array<i64: 1, 16>}, {transform_indices = @transform_9, window_bounds = array<i64: 512, 16>}, {transform_indices = @transform_10, window_bounds = array<i64: 512, 16>}]} {
    %c0 = arith.constant 0 : index
    %c0_0 = arith.constant 0 : index
    %0 = vector.load %arg1[%c0, %c0_0] : memref<512x16xf32, #tpu.memory_space<vmem>>, vector<512x16xf32>
    %c0_1 = arith.constant 0 : index
    %c0_2 = arith.constant 0 : index
    %1 = vector.load %arg2[%c0_1, %c0_2] : memref<1x16xf32, #tpu.memory_space<vmem>>, vector<1x16xf32>
    %2 = vector.broadcast %1 : vector<1x16xf32> to vector<512x16xf32>
    %3 = arith.mulf %0, %2 : vector<512x16xf32>
    %c0_3 = arith.constant 0 : index
    %c0_4 = arith.constant 0 : index
    %4 = vector.load %arg3[%c0_3, %c0_4] : memref<1x16xf32, #tpu.memory_space<vmem>>, vector<1x16xf32>
    %5 = vector.broadcast %4 : vector<1x16xf32> to vector<512x16xf32>
    %6 = arith.addf %3, %5 : vector<512x16xf32>
    %cst = arith.constant 0.000000e+00 : f32
    %7 = vector.broadcast %cst : f32 to vector<512x16xf32>
    %8 = arith.maximumf %6, %7 : vector<512x16xf32>
    %9 = arith.truncf %8 : vector<512x16xf32> to vector<512x16xbf16>
    %c0_5 = arith.constant 0 : index
    %c0_6 = arith.constant 0 : index
    %10 = vector.load %arg4[%c0_5, %c0_6] : memref<16x16xbf16, #tpu.memory_space<vmem>>, vector<16x16xbf16>
    %cst_7 = arith.constant dense<0.000000e+00> : vector<512x16xf32>
    %11 = tpu.matmul %9, %10, %cst_7 {dimension_numbers = #tpu.dot_dimension_numbers<[1], [0], [0], [1], [0, 0, 1, 1], [], []>} : vector<512x16xbf16>, vector<16x16xbf16>, vector<512x16xf32> -> vector<512x16xf32>
    %c0_8 = arith.constant 0 : index
    %c0_9 = arith.constant 0 : index
    %12 = vector.load %arg5[%c0_8, %c0_9] : memref<1x16xf32, #tpu.memory_space<vmem>>, vector<1x16xf32>
    %13 = vector.broadcast %12 : vector<1x16xf32> to vector<512x16xf32>
    %14 = arith.addf %11, %13 : vector<512x16xf32>
    %c0_10 = arith.constant 0 : index
    %c0_11 = arith.constant 0 : index
    %15 = vector.load %arg6[%c0_10, %c0_11] : memref<1x16xf32, #tpu.memory_space<vmem>>, vector<1x16xf32>
    %16 = vector.broadcast %15 : vector<1x16xf32> to vector<512x16xf32>
    %17 = arith.mulf %14, %16 : vector<512x16xf32>
    %c0_12 = arith.constant 0 : index
    %c0_13 = arith.constant 0 : index
    %18 = vector.load %arg7[%c0_12, %c0_13] : memref<1x16xf32, #tpu.memory_space<vmem>>, vector<1x16xf32>
    %19 = vector.broadcast %18 : vector<1x16xf32> to vector<512x16xf32>
    %20 = arith.addf %17, %19 : vector<512x16xf32>
    %cst_14 = arith.constant 0.000000e+00 : f32
    %21 = vector.broadcast %cst_14 : f32 to vector<512x16xf32>
    %22 = arith.maximumf %20, %21 : vector<512x16xf32>
    %23 = arith.truncf %22 : vector<512x16xf32> to vector<512x16xbf16>
    %c0_15 = arith.constant 0 : index
    %c0_16 = arith.constant 0 : index
    %24 = vector.load %arg8[%c0_15, %c0_16] : memref<16x16xbf16, #tpu.memory_space<vmem>>, vector<16x16xbf16>
    %cst_17 = arith.constant dense<0.000000e+00> : vector<512x16xf32>
    %25 = tpu.matmul %23, %24, %cst_17 {dimension_numbers = #tpu.dot_dimension_numbers<[1], [0], [0], [1], [0, 0, 1, 1], [], []>} : vector<512x16xbf16>, vector<16x16xbf16>, vector<512x16xf32> -> vector<512x16xf32>
    %c0_18 = arith.constant 0 : index
    %c0_19 = arith.constant 0 : index
    %26 = vector.load %arg9[%c0_18, %c0_19] : memref<1x16xf32, #tpu.memory_space<vmem>>, vector<1x16xf32>
    %27 = vector.broadcast %26 : vector<1x16xf32> to vector<512x16xf32>
    %28 = arith.addf %25, %27 : vector<512x16xf32>
    %cst_20 = arith.constant 0.000000e+00 : f32
    %29 = vector.broadcast %cst_20 : f32 to vector<512x16xf32>
    %30 = arith.subf %29, %28 : vector<512x16xf32>
    %31 = math.exp %30 : vector<512x16xf32>
    %cst_21 = arith.constant 1.000000e+00 : f32
    %32 = vector.broadcast %cst_21 : f32 to vector<512x16xf32>
    %33 = arith.addf %32, %31 : vector<512x16xf32>
    %cst_22 = arith.constant 1.000000e+00 : f32
    %34 = vector.broadcast %cst_22 : f32 to vector<512x16xf32>
    %35 = arith.divf %34, %33 : vector<512x16xf32>
    %cst_23 = arith.constant 1.000000e+00 : f32
    %36 = vector.broadcast %cst_23 : f32 to vector<512x16xf32>
    %37 = arith.addf %36, %35 : vector<512x16xf32>
    %c0_24 = arith.constant 0 : index
    %c0_25 = arith.constant 0 : index
    %38 = vector.load %arg10[%c0_24, %c0_25] : memref<512x16xf32, #tpu.memory_space<vmem>>, vector<512x16xf32>
    %39 = arith.mulf %37, %38 : vector<512x16xf32>
    %c0_26 = arith.constant 0 : index
    %c0_27 = arith.constant 0 : index
    %40 = vector.load %arg11[%c0_26, %c0_27] : memref<512x16xf32, #tpu.memory_space<vmem>>, vector<512x16xf32>
    tpu.vector_store %arg11[%c0_26, %c0_27], %39 {strides = array<i32>} : memref<512x16xf32, #tpu.memory_space<vmem>>, vector<512x16xf32>,
    return
  }
  func.func @transform_0(%arg0: i32) -> (i32, i32) {
    %c0_i32 = arith.constant 0 : i32
    %c0_i32_0 = arith.constant 0 : i32
    return %arg0, %c0_i32 : i32, i32
  }
  func.func @transform_1(%arg0: i32) -> (i32, i32) {
    %c0_i32 = arith.constant 0 : i32
    %c0_i32_0 = arith.constant 0 : i32
    %c0_i32_1 = arith.constant 0 : i32
    return %c0_i32, %c0_i32_0 : i32, i32
  }
  func.func @transform_2(%arg0: i32) -> (i32, i32) {
    %c0_i32 = arith.constant 0 : i32
    %c0_i32_0 = arith.constant 0 : i32
    %c0_i32_1 = arith.constant 0 : i32
    return %c0_i32, %c0_i32_0 : i32, i32
  }
  func.func @transform_3(%arg0: i32) -> (i32, i32) {
    %c0_i32 = arith.constant 0 : i32
    %c0_i32_0 = arith.constant 0 : i32
    %c0_i32_1 = arith.constant 0 : i32
    return %c0_i32, %c0_i32_0 : i32, i32
  }
  func.func @transform_4(%arg0: i32) -> (i32, i32) {
    %c0_i32 = arith.constant 0 : i32
    %c0_i32_0 = arith.constant 0 : i32
    %c0_i32_1 = arith.constant 0 : i32
    return %c0_i32, %c0_i32_0 : i32, i32
  }
  func.func @transform_5(%arg0: i32) -> (i32, i32) {
    %c0_i32 = arith.constant 0 : i32
    %c0_i32_0 = arith.constant 0 : i32
    %c0_i32_1 = arith.constant 0 : i32
    return %c0_i32, %c0_i32_0 : i32, i32
  }
  func.func @transform_6(%arg0: i32) -> (i32, i32) {
    %c0_i32 = arith.constant 0 : i32
    %c0_i32_0 = arith.constant 0 : i32
    %c0_i32_1 = arith.constant 0 : i32
    return %c0_i32, %c0_i32_0 : i32, i32
  }
  func.func @transform_7(%arg0: i32) -> (i32, i32) {
    %c0_i32 = arith.constant 0 : i32
    %c0_i32_0 = arith.constant 0 : i32
    %c0_i32_1 = arith.constant 0 : i32
    return %c0_i32, %c0_i32_0 : i32, i32
  }
  func.func @transform_8(%arg0: i32) -> (i32, i32) {
    %c0_i32 = arith.constant 0 : i32
    %c0_i32_0 = arith.constant 0 : i32
    %c0_i32_1 = arith.constant 0 : i32
    return %c0_i32, %c0_i32_0 : i32, i32
  }
  func.func @transform_9(%arg0: i32) -> (i32, i32) {
    %c0_i32 = arith.constant 0 : i32
    %c0_i32_0 = arith.constant 0 : i32
    return %arg0, %c0_i32 : i32, i32
  }
  func.func @transform_10(%arg0: i32) -> (i32, i32) {
    %c0_i32 = arith.constant 0 : i32
    %c0_i32_0 = arith.constant 0 : i32
    return %arg0, %c0_i32 : i32, i32
  }
}

</mosaic_0001>

<bundles_post_ra>
// kernel: forward_nchw.33
= control target key start
LH: loop header
LB: loop body
LE: loop exit
PB: predicated region body
PF: predicated region fallthrough
CT: control target
= control target key end

     0   :  { %vm119_vm0 = vcmask 130048   ;;  %vm249_vm1 = vcmask 31744   ;;  %s559_s3 = inlined_call_operand.vmem [shape: bf16[16,4], index: 3, kind: input, shape index: {}]   ;;  %s560_s0 = inlined_call_operand.vmem [shape: f32[128,16], index: 0, kind: input, shape index: {}]   ;;  %s561_s1 = inlined_call_operand.vmem [shape: f32[1,16], index: 1, kind: input, shape index: {}]   ;;  %s562_s2 = inlined_call_operand.vmem [shape: f32[1,16], index: 2, kind: input, shape index: {}]   ;;  %s563_s4 = inlined_call_operand.vmem [shape: f32[1,4], index: 4, kind: input, shape index: {}]   ;;  %s564_s5 = inlined_call_operand.vmem [shape: f32[1,4], index: 5, kind: input, shape index: {}]   ;;  %s565_s6 = inlined_call_operand.vmem [shape: f32[1,4], index: 6, kind: input, shape index: {}]   ;;  %s566_s7 = inlined_call_operand.vmem [shape: f32[128,4], index: 7, kind: output, shape index: {}]  }
   0x1   :  { %v282_v0 = vld [vmem:[%s559_s3] sm:$0xff]  ;;  %v28_v2 = vld [vmem:[%s560_s0 + $0x8] sm:$0xff]  ;;  %v29_v26 = vld [vmem:[%s560_s0 + $0x10] sm:$0xff] }
   0x2   :  { %v27_v1 = vld [vmem:[%s560_s0] sm:$0xff]  ;;  %151 = vmatpush.bf16.msra.mxu0 %v282_v0  ;;  %283 = vmatpush.bf16.msra.mxu1 %v282_v0  ;;  %v32_v6 = vld [vmem:[%s560_s0 + $0x28] sm:$0xff]  ;;  %v30_v27 = vld [vmem:[%s560_s0 + $0x18] sm:$0xff] }
   0x3   :  { %v343_v3 = vld [vmem:[%s561_s1] ss:$0 sm:$0xff]  ;;  %284 = vmatpush.bf16.msra.mxu2 %v282_v0  ;;  %285 = vmatpush.bf16.msra.mxu3 %v282_v0  ;;  %v36_v11 = vld [vmem:[%s560_s0 + $0x48] sm:$0xff]  ;;  %v33_v32 = vld [vmem:[%s560_s0 + $0x30] sm:$0xff] }
   0x4   :  { %v348_v4 = vld [vmem:[%s562_s2] ss:$0 sm:$0xff]  ;;  %v47_v7 = vmul.f32 %v343_v3, %v27_v1  ;;  %v48_v8 = vmul.f32 %v343_v3, %v28_v2  ;;  %v52_v13 = vmul.f32 %v343_v3, %v32_v6  ;;  %v56_v15 = vmul.f32 %v343_v3, %v36_v11  ;;  %v40_v16 = vld [vmem:[%s560_s0 + $0x68] sm:$0xff]  ;;  %v34_v37 = vld [vmem:[%s560_s0 + $0x38] sm:$0xff] }
   0x5   :  { %v31_v5 = vld [vmem:[%s560_s0 + $0x20] sm:$0xff]  ;;  %v60_v21 = vmul.f32 %v343_v3, %v40_v16  ;;  %v37_v38 = vld [vmem:[%s560_s0 + $0x50] sm:$0xff]  ;;  %v38_v41 = vld [vmem:[%s560_s0 + $0x58] sm:$0xff]  ;;  %v49_v46 = vmul.f32 %v343_v3, %v29_v26  ;;  %v50_v47 = vmul.f32 %v343_v3, %v30_v27  ;;  %v53_v48 = vmul.f32 %v343_v3, %v33_v32 }
   0x6   :  { %v51_v9 = vmul.f32 %v343_v3, %v31_v5  ;;  %v35_v10 = vld [vmem:[%s560_s0 + $0x40] sm:$0xff]  ;;  %v67_v18 = vadd.f32 %v348_v4, %v47_v7  ;;  %v68_v19 = vadd.f32 %v348_v4, %v48_v8  ;;  %v72_v22 = vadd.f32 %v348_v4, %v52_v13  ;;  %v41_v44 = vld [vmem:[%s560_s0 + $0x70] sm:$0xff]  ;;  %v42_v49 = vld [vmem:[%s560_s0 + $0x78] sm:$0xff] }
   0x7   :  { %v39_v12 = vld [vmem:[%s560_s0 + $0x60] sm:$0xff]  ;;  %v55_v14 = vmul.f32 %v343_v3, %v35_v10  ;;  %v76_v24 = vadd.f32 %v348_v4, %v56_v15  ;;  %v80_v31 = vadd.f32 %v348_v4, %v60_v21  ;;  %v54_v50 = vmul.f32 %v343_v3, %v34_v37 }
   0x8   :  { %v59_v17 = vmul.f32 %v343_v3, %v39_v12  ;;  %v71_v20 = vadd.f32 %v348_v4, %v51_v9  ;;  %v83_v28 = vmax.f32 %v67_v18, 0.0  ;;  %v84_v29 = vmax.f32 %v68_v19, 0.0  ;;  %v440_v12 = vld [vmem:[%s564_s5] ss:$0 sm:$0xff] }
   0x9   :  { %v75_v23 = vadd.f32 %v348_v4, %v55_v14  ;;  %v88_v33 = vmax.f32 %v72_v22, 0.0  ;;  %v92_v35 = vmax.f32 %v76_v24, 0.0  ;;  %v96_v40 = vmax.f32 %v80_v31, 0.0  ;;  %v446_v15 = vld [vmem:[%s565_s6] ss:$0 sm:$0xff] }
   0xa   :  { %v79_v25 = vadd.f32 %v348_v4, %v59_v17  ;;  %v87_v30 = vmax.f32 %v71_v20, 0.0  ;;  %v99_v39 = vpack.c.bf16 %v84_v29, %v83_v28  ;;  %v57_v51 = vmul.f32 %v343_v3, %v37_v38 }
   0xb   :  { %v91_v34 = vmax.f32 %v75_v23, 0.0  ;;  %v58_v52 = vmul.f32 %v343_v3, %v38_v41  ;;  %v61_v53 = vmul.f32 %v343_v3, %v41_v44  ;;  %v62_v54 = vmul.f32 %v343_v3, %v42_v49 }
   0xc   :  { %v95_v36 = vmax.f32 %v79_v25, 0.0  ;;  %v101_v42 = vpack.c.bf16 %v88_v33, %v87_v30  ;;  %274 = vmatmul.msk.bf16.vlgmr.msra.gmra.mxu0 %vm119_vm0, %v99_v39  ;;  %v69_v55 = vadd.f32 %v348_v4, %v49_v46  ;;  %v70_v56 = vadd.f32 %v348_v4, %v50_v47 }
   0xd   :  { %v103_v43 = vpack.c.bf16 %v92_v35, %v91_v34  ;;  %v73_v57 = vadd.f32 %v348_v4, %v53_v48  ;;  %v74_v58 = vadd.f32 %v348_v4, %v54_v50  ;;  %v77_v59 = vadd.f32 %v348_v4, %v57_v51 }
   0xe   :  { %v105_v45 = vpack.c.bf16 %v96_v40, %v95_v36  ;;  %276 = vmatmul.msk.bf16.vlgmr.msra.gmra.mxu1 %vm119_vm0, %v101_v42  ;;  %v78_v60 = vadd.f32 %v348_v4, %v58_v52  ;;  %v81_v61 = vadd.f32 %v348_v4, %v61_v53  ;;  %v82_v62 = vadd.f32 %v348_v4, %v62_v54  ;;  %v435_v4 = vld [vmem:[%s563_s4] ss:$0 sm:$0xff] }
   0xf   :  { %278 = vmatmul.msk.bf16.vlgmr.msra.gmra.mxu2 %vm119_vm0, %v103_v43  ;;  %v85_v63 = vmax.f32 %v69_v55, 0.0  ;;  %v86_v0 = vmax.f32 %v70_v56, 0.0  ;;  %v89_v1 = vmax.f32 %v73_v57, 0.0  ;;  %v90_v2 = vmax.f32 %v74_v58, 0.0 }
  0x10   :  { %280 = vmatmul.msk.bf16.vlgmr.msra.gmra.mxu3 %vm119_vm0, %v105_v45  ;;  %v93_v3 = vmax.f32 %v77_v59, 0.0  ;;  %v94_v5 = vmax.f32 %v78_v60, 0.0  ;;  %v97_v6 = vmax.f32 %v81_v61, 0.0  ;;  %v98_v7 = vmax.f32 %v82_v62, 0.0 }
  0x11   :  { %v100_v8 = vpack.c.bf16 %v86_v0, %v85_v63  ;;  %v102_v9 = vpack.c.bf16 %v90_v2, %v89_v1 }
  0x12   :  { %v104_v10 = vpack.c.bf16 %v94_v5, %v93_v3  ;;  %v106_v11 = vpack.c.bf16 %v98_v7, %v97_v6 }
  0x1c   :  { %275 = vmatmul.msk.bf16.gmra.mxu0 %vm119_vm0, %v100_v8 }
  0x1e   :  { %277 = vmatmul.msk.bf16.gmra.mxu1 %vm119_vm0, %v102_v9 }
  0x1f   :  { %279 = vmatmul.msk.bf16.gmra.mxu2 %vm119_vm0, %v104_v10 }
  0x20   :  { %281 = vmatmul.msk.bf16.gmra.mxu3 %vm119_vm0, %v106_v11 }
  0x89   :  { %v153_v13 = vpop.f32.mrf.mxu0 }
  0x8a   :  { %v154_v14 = vadd.f32 %v435_v4, %v153_v13 }
  0x8b   :  { %v163_v16 = vpop.f32.mrf.mxu1 }
  0x8c   :  { %v164_v17 = vadd.f32 %v435_v4, %v163_v16  ;;  %v197_v18 = vmul.f32 %v440_v12, %v154_v14 }
  0x8e   :  { %v201_v19 = vmul.f32 %v440_v12, %v164_v17  ;;  %v217_v20 = vadd.f32 %v446_v15, %v197_v18 }
  0x90   :  { %v221_v21 = vadd.f32 %v446_v15, %v201_v19  ;;  %v233_v22 = vmax.f32 %v217_v20, 0.0 }
  0x91   :  { %v155_v27 = vpop.f32.mrf.mxu0 }
  0x92   :  { %v173_v23 = vpop.f32.mrf.mxu2  ;;  %v237_v24 = vmax.f32 %v221_v21, 0.0  ;;  %250 = vst.msk [vmem:[%s566_s7] sm:$0xff] %vm249_vm1, %v233_v22  ;;  %v156_v29 = vadd.f32 %v435_v4, %v155_v27 }
  0x93   :  { %v174_v25 = vadd.f32 %v435_v4, %v173_v23  ;;  %v183_v26 = vpop.f32.mrf.mxu3  ;;  %v165_v30 = vpop.f32.mrf.mxu1 }
  0x94   :  { %v184_v28 = vadd.f32 %v435_v4, %v183_v26  ;;  %254 = vst.msk [vmem:[%s566_s7 + $0x20] sm:$0xff] %vm249_vm1, %v237_v24  ;;  %v166_v32 = vadd.f32 %v435_v4, %v165_v30  ;;  %v198_v34 = vmul.f32 %v440_v12, %v156_v29 }
  0x95   :  { %v205_v31 = vmul.f32 %v440_v12, %v174_v25 }
  0x96   :  { %v209_v33 = vmul.f32 %v440_v12, %v184_v28  ;;  %v202_v36 = vmul.f32 %v440_v12, %v166_v32  ;;  %v218_v38 = vadd.f32 %v446_v15, %v198_v34 }
  0x97   :  { %v225_v35 = vadd.f32 %v446_v15, %v205_v31 }
  0x98   :  { %v229_v37 = vadd.f32 %v446_v15, %v209_v33  ;;  %v222_v40 = vadd.f32 %v446_v15, %v202_v36  ;;  %v234_v42 = vmax.f32 %v218_v38, 0.0 }
  0x99   :  { %v241_v39 = vmax.f32 %v225_v35, 0.0  ;;  %v158_v47 = vpop.f32.mrf.mxu0 }
  0x9a   :  { %v245_v41 = vmax.f32 %v229_v37, 0.0  ;;  %v175_v43 = vpop.f32.mrf.mxu2  ;;  %v238_v44 = vmax.f32 %v222_v40, 0.0  ;;  %v159_v49 = vadd.f32 %v435_v4, %v158_v47  ;;  %251 = vst.msk [vmem:[%s566_s7 + $0x8] sm:$0xff] %vm249_vm1, %v234_v42 }
  0x9b   :  { %258 = vst.msk [vmem:[%s566_s7 + $0x40] sm:$0xff] %vm249_vm1, %v241_v39  ;;  %v176_v45 = vadd.f32 %v435_v4, %v175_v43  ;;  %v185_v46 = vpop.f32.mrf.mxu3  ;;  %v168_v50 = vpop.f32.mrf.mxu1 }
  0x9c   :  { %262 = vst.msk [vmem:[%s566_s7 + $0x60] sm:$0xff] %vm249_vm1, %v245_v41  ;;  %v186_v48 = vadd.f32 %v435_v4, %v185_v46  ;;  %v169_v52 = vadd.f32 %v435_v4, %v168_v50  ;;  %v199_v54 = vmul.f32 %v440_v12, %v159_v49 }
  0x9d   :  { %v206_v51 = vmul.f32 %v440_v12, %v176_v45  ;;  %255 = vst.msk [vmem:[%s566_s7 + $0x28] sm:$0xff] %vm249_vm1, %v238_v44 }
  0x9e   :  { %v210_v53 = vmul.f32 %v440_v12, %v186_v48  ;;  %v203_v56 = vmul.f32 %v440_v12, %v169_v52  ;;  %v219_v58 = vadd.f32 %v446_v15, %v199_v54 }
  0x9f   :  { %v226_v55 = vadd.f32 %v446_v15, %v206_v51 }
  0xa0   :  { %v230_v57 = vadd.f32 %v446_v15, %v210_v53  ;;  %v223_v60 = vadd.f32 %v446_v15, %v203_v56  ;;  %v235_v62 = vmax.f32 %v219_v58, 0.0 }
  0xa1   :  { %v242_v59 = vmax.f32 %v226_v55, 0.0  ;;  %v160_v3 = vpop.f32.mrf.mxu0 }
  0xa2   :  { %v246_v61 = vmax.f32 %v230_v57, 0.0  ;;  %v178_v63 = vpop.f32.mrf.mxu2  ;;  %v239_v0 = vmax.f32 %v223_v60, 0.0  ;;  %v161_v6 = vadd.f32 %v435_v4, %v160_v3  ;;  %252 = vst.msk [vmem:[%s566_s7 + $0x10] sm:$0xff] %vm249_vm1, %v235_v62 }
  0xa3   :  { %259 = vst.msk [vmem:[%s566_s7 + $0x48] sm:$0xff] %vm249_vm1, %v242_v59  ;;  %v179_v1 = vadd.f32 %v435_v4, %v178_v63  ;;  %v188_v2 = vpop.f32.mrf.mxu3  ;;  %v170_v7 = vpop.f32.mrf.mxu1 }
  0xa4   :  { %263 = vst.msk [vmem:[%s566_s7 + $0x68] sm:$0xff] %vm249_vm1, %v246_v61  ;;  %v189_v5 = vadd.f32 %v435_v4, %v188_v2  ;;  %v171_v9 = vadd.f32 %v435_v4, %v170_v7  ;;  %v200_v11 = vmul.f32 %v440_v12, %v161_v6 }
  0xa5   :  { %v207_v8 = vmul.f32 %v440_v12, %v179_v1  ;;  %256 = vst.msk [vmem:[%s566_s7 + $0x30] sm:$0xff] %vm249_vm1, %v239_v0 }
  0xa6   :  { %v211_v10 = vmul.f32 %v440_v12, %v189_v5  ;;  %v204_v14 = vmul.f32 %v440_v12, %v171_v9  ;;  %v220_v17 = vadd.f32 %v446_v15, %v200_v11 }
  0xa7   :  { %v227_v13 = vadd.f32 %v446_v15, %v207_v8 }
  0xa8   :  { %v231_v16 = vadd.f32 %v446_v15, %v211_v10  ;;  %v224_v19 = vadd.f32 %v446_v15, %v204_v14  ;;  %v236_v21 = vmax.f32 %v220_v17, 0.0 }
  0xa9   :  { %v243_v18 = vmax.f32 %v227_v13, 0.0 }
  0xaa   :  { %v247_v20 = vmax.f32 %v231_v16, 0.0  ;;  %v180_v22 = vpop.f32.mrf.mxu2  ;;  %v240_v23 = vmax.f32 %v224_v19, 0.0  ;;  %253 = vst.msk [vmem:[%s566_s7 + $0x18] sm:$0xff] %vm249_vm1, %v236_v21 }
  0xab   :  { %260 = vst.msk [vmem:[%s566_s7 + $0x50] sm:$0xff] %vm249_vm1, %v243_v18  ;;  %v181_v24 = vadd.f32 %v435_v4, %v180_v22  ;;  %v190_v25 = vpop.f32.mrf.mxu3 }
  0xac   :  { %264 = vst.msk [vmem:[%s566_s7 + $0x70] sm:$0xff] %vm249_vm1, %v247_v20  ;;  %v191_v26 = vadd.f32 %v435_v4, %v190_v25 }
  0xad   :  { %v208_v27 = vmul.f32 %v440_v12, %v181_v24  ;;  %257 = vst.msk [vmem:[%s566_s7 + $0x38] sm:$0xff] %vm249_vm1, %v240_v23 }
  0xae   :  { %v212_v28 = vmul.f32 %v440_v12, %v191_v26 }
  0xaf   :  { %v228_v29 = vadd.f32 %v446_v15, %v208_v27 }
  0xb0   :  { %v232_v30 = vadd.f32 %v446_v15, %v212_v28 }
  0xb1   :  { %v244_v31 = vmax.f32 %v228_v29, 0.0 }
  0xb2   :  { %v248_v4 = vmax.f32 %v232_v30, 0.0 }
  0xb3   :  { %261 = vst.msk [vmem:[%s566_s7 + $0x58] sm:$0xff] %vm249_vm1, %v244_v31 }
  0xb4   :  { %265 = vst.msk [vmem:[%s566_s7 + $0x78] sm:$0xff] %vm249_vm1, %v248_v4 }

// kernel: forward_nchw.23
= control target key start
LH: loop header
LB: loop body
LE: loop exit
PB: predicated region body
PF: predicated region fallthrough
CT: control target
= control target key end

     0   :  { %vm335_vm0 = vcmask 130048   ;;  %vm801_vm1 = vcmask 31744   ;;  %s1783_s3 = inlined_call_operand.vmem [shape: bf16[16,4], index: 3, kind: input, shape index: {}]   ;;  %s1784_s0 = inlined_call_operand.vmem [shape: f32[512,16], index: 0, kind: input, shape index: {}]   ;;  %s1785_s1 = inlined_call_operand.vmem [shape: f32[1,16], index: 1, kind: input, shape index: {}]   ;;  %s1786_s2 = inlined_call_operand.vmem [shape: f32[1,16], index: 2, kind: input, shape index: {}]   ;;  %s1787_s4 = inlined_call_operand.vmem [shape: f32[1,4], index: 4, kind: input, shape index: {}]   ;;  %s1788_s5 = inlined_call_operand.vmem [shape: f32[1,4], index: 5, kind: input, shape index: {}]   ;;  %s1789_s6 = inlined_call_operand.vmem [shape: f32[1,4], index: 6, kind: input, shape index: {}]   ;;  %s1790_s7 = inlined_call_operand.vmem [shape: f32[512,4], index: 7, kind: output, shape index: {}]  }
   0x1   :  { %v906_v0 = vld [vmem:[%s1783_s3] sm:$0xff]  ;;  %v28_v2 = vld [vmem:[%s1784_s0 + $0x8] sm:$0xff]  ;;  %v29_v30 = vld [vmem:[%s1784_s0 + $0x10] sm:$0xff] }
   0x2   :  { %v27_v1 = vld [vmem:[%s1784_s0] sm:$0xff]  ;;  %439 = vmatpush.bf16.msra.mxu0 %v906_v0  ;;  %907 = vmatpush.bf16.msra.mxu1 %v906_v0  ;;  %v44_v6 = vld [vmem:[%s1784_s0 + $0x88] sm:$0xff]  ;;  %v30_v31 = vld [vmem:[%s1784_s0 + $0x18] sm:$0xff] }
   0x3   :  { %v967_v3 = vld [vmem:[%s1785_s1] ss:$0 sm:$0xff]  ;;  %908 = vmatpush.bf16.msra.mxu2 %v906_v0  ;;  %909 = vmatpush.bf16.msra.mxu3 %v906_v0  ;;  %v60_v11 = vld [vmem:[%s1784_s0 + $0x108] sm:$0xff]  ;;  %v45_v36 = vld [vmem:[%s1784_s0 + $0x90] sm:$0xff] }
   0x4   :  { %v972_v4 = vld [vmem:[%s1786_s2] ss:$0 sm:$0xff]  ;;  %v95_v7 = vmul.f32 %v967_v3, %v27_v1  ;;  %v96_v8 = vmul.f32 %v967_v3, %v28_v2  ;;  %v112_v13 = vmul.f32 %v967_v3, %v44_v6  ;;  %v128_v15 = vmul.f32 %v967_v3, %v60_v11  ;;  %v76_v16 = vld [vmem:[%s1784_s0 + $0x188] sm:$0xff]  ;;  %v46_v37 = vld [vmem:[%s1784_s0 + $0x98] sm:$0xff] }
   0x5   :  { %v43_v5 = vld [vmem:[%s1784_s0 + $0x80] sm:$0xff]  ;;  %v144_v21 = vmul.f32 %v967_v3, %v76_v16  ;;  %v61_v40 = vld [vmem:[%s1784_s0 + $0x110] sm:$0xff]  ;;  %v62_v41 = vld [vmem:[%s1784_s0 + $0x118] sm:$0xff]  ;;  %v97_v46 = vmul.f32 %v967_v3, %v29_v30  ;;  %v98_v47 = vmul.f32 %v967_v3, %v30_v31  ;;  %v113_v48 = vmul.f32 %v967_v3, %v45_v36 }
   0x6   :  { %v111_v9 = vmul.f32 %v967_v3, %v43_v5  ;;  %v59_v10 = vld [vmem:[%s1784_s0 + $0x100] sm:$0xff]  ;;  %v163_v18 = vadd.f32 %v972_v4, %v95_v7  ;;  %v164_v19 = vadd.f32 %v972_v4, %v96_v8  ;;  %v180_v22 = vadd.f32 %v972_v4, %v112_v13  ;;  %v77_v42 = vld [vmem:[%s1784_s0 + $0x190] sm:$0xff]  ;;  %v78_v49 = vld [vmem:[%s1784_s0 + $0x198] sm:$0xff] }
   0x7   :  { %v75_v12 = vld [vmem:[%s1784_s0 + $0x180] sm:$0xff]  ;;  %v127_v14 = vmul.f32 %v967_v3, %v59_v10  ;;  %v196_v24 = vadd.f32 %v972_v4, %v128_v15  ;;  %v212_v29 = vadd.f32 %v972_v4, %v144_v21  ;;  %v114_v50 = vmul.f32 %v967_v3, %v46_v37  ;;  %v32_v13 = vld [vmem:[%s1784_s0 + $0x28] sm:$0xff] }
   0x8   :  { %v143_v17 = vmul.f32 %v967_v3, %v75_v12  ;;  %v179_v20 = vadd.f32 %v972_v4, %v111_v9  ;;  %v227_v26 = vmax.f32 %v163_v18, 0.0  ;;  %v228_v27 = vmax.f32 %v164_v19, 0.0  ;;  %v31_v12 = vld [vmem:[%s1784_s0 + $0x20] sm:$0xff]  ;;  %v48_v16 = vld [vmem:[%s1784_s0 + $0xa8] sm:$0xff] }
   0x9   :  { %v195_v23 = vadd.f32 %v972_v4, %v127_v14  ;;  %v244_v32 = vmax.f32 %v180_v22, 0.0  ;;  %v260_v34 = vmax.f32 %v196_v24, 0.0  ;;  %v276_v39 = vmax.f32 %v212_v29, 0.0  ;;  %v47_v14 = vld [vmem:[%s1784_s0 + $0xa0] sm:$0xff]  ;;  %v64_v18 = vld [vmem:[%s1784_s0 + $0x128] sm:$0xff] }
   0xa   :  { %v211_v25 = vadd.f32 %v972_v4, %v143_v17  ;;  %v243_v28 = vmax.f32 %v179_v20, 0.0  ;;  %v291_v38 = vpack.c.bf16 %v228_v27, %v227_v26  ;;  %v129_v51 = vmul.f32 %v967_v3, %v61_v40  ;;  %v63_v17 = vld [vmem:[%s1784_s0 + $0x120] sm:$0xff]  ;;  %v80_v20 = vld [vmem:[%s1784_s0 + $0x1a8] sm:$0xff] }
   0xb   :  { %v259_v33 = vmax.f32 %v195_v23, 0.0  ;;  %v130_v52 = vmul.f32 %v967_v3, %v62_v41  ;;  %v145_v53 = vmul.f32 %v967_v3, %v77_v42  ;;  %v146_v54 = vmul.f32 %v967_v3, %v78_v49  ;;  %v79_v19 = vld [vmem:[%s1784_s0 + $0x1a0] sm:$0xff]  ;;  %v34_v49 = vld [vmem:[%s1784_s0 + $0x38] sm:$0xff] }
   0xc   :  { %v275_v35 = vmax.f32 %v211_v25, 0.0  ;;  %v299_v43 = vpack.c.bf16 %v244_v32, %v243_v28  ;;  %874 = vmatmul.msk.bf16.vlgmr.msra.gmra.mxu0 %vm335_vm0, %v291_v38  ;;  %v165_v55 = vadd.f32 %v972_v4, %v97_v46  ;;  %v166_v56 = vadd.f32 %v972_v4, %v98_v47 }
   0xd   :  { %v307_v44 = vpack.c.bf16 %v260_v34, %v259_v33  ;;  %v181_v57 = vadd.f32 %v972_v4, %v113_v48  ;;  %v182_v58 = vadd.f32 %v972_v4, %v114_v50  ;;  %v197_v59 = vadd.f32 %v972_v4, %v129_v51  ;;  %v33_v48 = vld [vmem:[%s1784_s0 + $0x30] sm:$0xff] }
   0xe   :  { %v315_v45 = vpack.c.bf16 %v276_v39, %v275_v35  ;;  %882 = vmatmul.msk.bf16.vlgmr.msra.gmra.mxu1 %vm335_vm0, %v299_v43  ;;  %v198_v60 = vadd.f32 %v972_v4, %v130_v52  ;;  %v213_v61 = vadd.f32 %v972_v4, %v145_v53  ;;  %v214_v62 = vadd.f32 %v972_v4, %v146_v54  ;;  %v49_v50 = vld [vmem:[%s1784_s0 + $0xb0] sm:$0xff]  ;;  %v50_v52 = vld [vmem:[%s1784_s0 + $0xb8] sm:$0xff] }
   0xf   :  { %890 = vmatmul.msk.bf16.vlgmr.msra.gmra.mxu2 %vm335_vm0, %v307_v44  ;;  %v229_v63 = vmax.f32 %v165_v55, 0.0  ;;  %v230_v0 = vmax.f32 %v166_v56, 0.0  ;;  %v245_v1 = vmax.f32 %v181_v57, 0.0  ;;  %v246_v2 = vmax.f32 %v182_v58, 0.0  ;;  %v65_v53 = vld [vmem:[%s1784_s0 + $0x130] sm:$0xff]  ;;  %v66_v54 = vld [vmem:[%s1784_s0 + $0x138] sm:$0xff] }
  0x10   :  { %898 = vmatmul.msk.bf16.vlgmr.msra.gmra.mxu3 %vm335_vm0, %v315_v45  ;;  %v261_v5 = vmax.f32 %v197_v59, 0.0  ;;  %v262_v6 = vmax.f32 %v198_v60, 0.0  ;;  %v277_v7 = vmax.f32 %v213_v61, 0.0  ;;  %v278_v8 = vmax.f32 %v214_v62, 0.0  ;;  %v81_v55 = vld [vmem:[%s1784_s0 + $0x1b0] sm:$0xff]  ;;  %v82_v56 = vld [vmem:[%s1784_s0 + $0x1b8] sm:$0xff] }
  0x11   :  { %v292_v9 = vpack.c.bf16 %v230_v0, %v229_v63  ;;  %v300_v10 = vpack.c.bf16 %v246_v2, %v245_v1  ;;  %v99_v21 = vmul.f32 %v967_v3, %v31_v12  ;;  %v100_v22 = vmul.f32 %v967_v3, %v32_v13 }
  0x12   :  { %v308_v11 = vpack.c.bf16 %v262_v6, %v261_v5  ;;  %v316_v15 = vpack.c.bf16 %v278_v8, %v277_v7  ;;  %v115_v23 = vmul.f32 %v967_v3, %v47_v14  ;;  %v116_v24 = vmul.f32 %v967_v3, %v48_v16 }
  0x13   :  { %v131_v25 = vmul.f32 %v967_v3, %v63_v17  ;;  %v132_v26 = vmul.f32 %v967_v3, %v64_v18  ;;  %v147_v27 = vmul.f32 %v967_v3, %v79_v19  ;;  %v148_v28 = vmul.f32 %v967_v3, %v80_v20 }
  0x14   :  { %v167_v29 = vadd.f32 %v972_v4, %v99_v21  ;;  %v168_v30 = vadd.f32 %v972_v4, %v100_v22  ;;  %v183_v31 = vadd.f32 %v972_v4, %v115_v23  ;;  %v184_v32 = vadd.f32 %v972_v4, %v116_v24  ;;  %v35_v22 = vld [vmem:[%s1784_s0 + $0x40] sm:$0xff]  ;;  %v36_v23 = vld [vmem:[%s1784_s0 + $0x48] sm:$0xff] }
  0x15   :  { %v199_v33 = vadd.f32 %v972_v4, %v131_v25  ;;  %v200_v34 = vadd.f32 %v972_v4, %v132_v26  ;;  %v215_v35 = vadd.f32 %v972_v4, %v147_v27  ;;  %v216_v36 = vadd.f32 %v972_v4, %v148_v28  ;;  %v51_v24 = vld [vmem:[%s1784_s0 + $0xc0] sm:$0xff]  ;;  %v52_v26 = vld [vmem:[%s1784_s0 + $0xc8] sm:$0xff] }
  0x16   :  { %v231_v37 = vmax.f32 %v167_v29, 0.0  ;;  %v232_v38 = vmax.f32 %v168_v30, 0.0  ;;  %v247_v39 = vmax.f32 %v183_v31, 0.0  ;;  %v248_v40 = vmax.f32 %v184_v32, 0.0  ;;  %v67_v27 = vld [vmem:[%s1784_s0 + $0x140] sm:$0xff]  ;;  %v68_v28 = vld [vmem:[%s1784_s0 + $0x148] sm:$0xff] }
  0x17   :  { %v263_v41 = vmax.f32 %v199_v33, 0.0  ;;  %v264_v42 = vmax.f32 %v200_v34, 0.0  ;;  %v279_v43 = vmax.f32 %v215_v35, 0.0  ;;  %v280_v44 = vmax.f32 %v216_v36, 0.0  ;;  %v83_v29 = vld [vmem:[%s1784_s0 + $0x1c0] sm:$0xff]  ;;  %v84_v30 = vld [vmem:[%s1784_s0 + $0x1c8] sm:$0xff] }
  0x18   :  { %v293_v45 = vpack.c.bf16 %v232_v38, %v231_v37  ;;  %v301_v46 = vpack.c.bf16 %v248_v40, %v247_v39  ;;  %v101_v57 = vmul.f32 %v967_v3, %v33_v48  ;;  %v102_v58 = vmul.f32 %v967_v3, %v34_v49 }
  0x19   :  { %v309_v47 = vpack.c.bf16 %v264_v42, %v263_v41  ;;  %v317_v51 = vpack.c.bf16 %v280_v44, %v279_v43  ;;  %v117_v59 = vmul.f32 %v967_v3, %v49_v50  ;;  %v118_v60 = vmul.f32 %v967_v3, %v50_v52 }
  0x1a   :  { %v133_v61 = vmul.f32 %v967_v3, %v65_v53  ;;  %v134_v62 = vmul.f32 %v967_v3, %v66_v54  ;;  %v149_v63 = vmul.f32 %v967_v3, %v81_v55  ;;  %v150_v0 = vmul.f32 %v967_v3, %v82_v56 }
  0x1b   :  { %v169_v1 = vadd.f32 %v972_v4, %v101_v57  ;;  %v170_v2 = vadd.f32 %v972_v4, %v102_v58  ;;  %v185_v5 = vadd.f32 %v972_v4, %v117_v59  ;;  %v186_v6 = vadd.f32 %v972_v4, %v118_v60  ;;  %v37_v58 = vld [vmem:[%s1784_s0 + $0x50] sm:$0xff]  ;;  %v38_v59 = vld [vmem:[%s1784_s0 + $0x58] sm:$0xff] }
  0x1c   :  { %875 = vmatmul.msk.bf16.gmra.mxu0 %vm335_vm0, %v292_v9  ;;  %v201_v7 = vadd.f32 %v972_v4, %v133_v61  ;;  %v202_v8 = vadd.f32 %v972_v4, %v134_v62  ;;  %v217_v9 = vadd.f32 %v972_v4, %v149_v63  ;;  %v103_v31 = vmul.f32 %v967_v3, %v35_v22  ;;  %v53_v60 = vld [vmem:[%s1784_s0 + $0xd0] sm:$0xff]  ;;  %v54_v62 = vld [vmem:[%s1784_s0 + $0xd8] sm:$0xff] }
  0x1d   :  { %v234_v12 = vmax.f32 %v170_v2, 0.0  ;;  %v249_v13 = vmax.f32 %v185_v5, 0.0  ;;  %v250_v14 = vmax.f32 %v186_v6, 0.0  ;;  %v104_v32 = vmul.f32 %v967_v3, %v36_v23  ;;  %v69_v63 = vld [vmem:[%s1784_s0 + $0x150] sm:$0xff]  ;;  %v86_v2 = vld [vmem:[%s1784_s0 + $0x1d8] sm:$0xff] }
  0x1e   :  { %883 = vmatmul.msk.bf16.gmra.mxu1 %vm335_vm0, %v300_v10  ;;  %v218_v10 = vadd.f32 %v972_v4, %v150_v0  ;;  %v266_v16 = vmax.f32 %v202_v8, 0.0  ;;  %v281_v17 = vmax.f32 %v217_v9, 0.0  ;;  %v119_v33 = vmul.f32 %v967_v3, %v51_v24  ;;  %v70_v0 = vld [vmem:[%s1784_s0 + $0x158] sm:$0xff] }
  0x1f   :  { %891 = vmatmul.msk.bf16.gmra.mxu2 %vm335_vm0, %v308_v11  ;;  %v233_v11 = vmax.f32 %v169_v1, 0.0  ;;  %v302_v20 = vpack.c.bf16 %v250_v14, %v249_v13  ;;  %v120_v34 = vmul.f32 %v967_v3, %v52_v26  ;;  %v135_v35 = vmul.f32 %v967_v3, %v67_v27  ;;  %v85_v1 = vld [vmem:[%s1784_s0 + $0x1d0] sm:$0xff] }
  0x20   :  { %899 = vmatmul.msk.bf16.gmra.mxu3 %vm335_vm0, %v316_v15  ;;  %v265_v15 = vmax.f32 %v201_v7, 0.0  ;;  %v282_v18 = vmax.f32 %v218_v10, 0.0  ;;  %v136_v36 = vmul.f32 %v967_v3, %v68_v28  ;;  %v151_v37 = vmul.f32 %v967_v3, %v83_v29 }
  0x21   :  { %v294_v19 = vpack.c.bf16 %v234_v12, %v233_v11  ;;  %v152_v38 = vmul.f32 %v967_v3, %v84_v30  ;;  %v171_v39 = vadd.f32 %v972_v4, %v103_v31  ;;  %v172_v40 = vadd.f32 %v972_v4, %v104_v32  ;;  %v39_v32 = vld [vmem:[%s1784_s0 + $0x60] sm:$0xff] }
  0x22   :  { %v310_v21 = vpack.c.bf16 %v266_v16, %v265_v15  ;;  %v318_v25 = vpack.c.bf16 %v282_v18, %v281_v17  ;;  %v187_v41 = vadd.f32 %v972_v4, %v119_v33  ;;  %v188_v42 = vadd.f32 %v972_v4, %v120_v34  ;;  %v40_v33 = vld [vmem:[%s1784_s0 + $0x68] sm:$0xff]  ;;  %v55_v34 = vld [vmem:[%s1784_s0 + $0xe0] sm:$0xff] }
  0x23   :  { %v203_v43 = vadd.f32 %v972_v4, %v135_v35  ;;  %v204_v44 = vadd.f32 %v972_v4, %v136_v36  ;;  %v236_v48 = vmax.f32 %v172_v40, 0.0  ;;  %v105_v5 = vmul.f32 %v967_v3, %v37_v58  ;;  %v56_v36 = vld [vmem:[%s1784_s0 + $0xe8] sm:$0xff] }
  0x24   :  { %v251_v49 = vmax.f32 %v187_v41, 0.0  ;;  %v252_v50 = vmax.f32 %v188_v42, 0.0  ;;  %v106_v6 = vmul.f32 %v967_v3, %v38_v59  ;;  %v121_v7 = vmul.f32 %v967_v3, %v53_v60  ;;  %v88_v40 = vld [vmem:[%s1784_s0 + $0x1e8] sm:$0xff] }
  0x25   :  { %v268_v52 = vmax.f32 %v204_v44, 0.0  ;;  %v122_v8 = vmul.f32 %v967_v3, %v54_v62  ;;  %v137_v9 = vmul.f32 %v967_v3, %v69_v63  ;;  %v138_v10 = vmul.f32 %v967_v3, %v70_v0 }
  0x26   :  { %v303_v56 = vpack.c.bf16 %v252_v50, %v251_v49  ;;  %v153_v11 = vmul.f32 %v967_v3, %v85_v1  ;;  %v154_v12 = vmul.f32 %v967_v3, %v86_v2  ;;  %v173_v13 = vadd.f32 %v972_v4, %v105_v5 }
  0x27   :  { %v174_v14 = vadd.f32 %v972_v4, %v106_v6  ;;  %v189_v15 = vadd.f32 %v972_v4, %v121_v7  ;;  %v190_v16 = vadd.f32 %v972_v4, %v122_v8  ;;  %v205_v17 = vadd.f32 %v972_v4, %v137_v9  ;;  %v41_v6 = vld [vmem:[%s1784_s0 + $0x70] sm:$0xff]  ;;  %v42_v7 = vld [vmem:[%s1784_s0 + $0x78] sm:$0xff] }
  0x28   :  { %v206_v18 = vadd.f32 %v972_v4, %v138_v10  ;;  %v107_v41 = vmul.f32 %v967_v3, %v39_v32  ;;  %v108_v42 = vmul.f32 %v967_v3, %v40_v33  ;;  %v124_v44 = vmul.f32 %v967_v3, %v56_v36  ;;  %v57_v8 = vld [vmem:[%s1784_s0 + $0xf0] sm:$0xff]  ;;  %v58_v10 = vld [vmem:[%s1784_s0 + $0xf8] sm:$0xff] }
  0x29   :  { %v238_v22 = vmax.f32 %v174_v14, 0.0  ;;  %v253_v23 = vmax.f32 %v189_v15, 0.0  ;;  %v254_v24 = vmax.f32 %v190_v16, 0.0  ;;  %v90_v14 = vld [vmem:[%s1784_s0 + $0x1f8] sm:$0xff]  ;;  %v109_v15 = vmul.f32 %v967_v3, %v41_v6 }
  0x2a   :  { %v270_v26 = vmax.f32 %v206_v18, 0.0  ;;  %v175_v49 = vadd.f32 %v972_v4, %v107_v41  ;;  %v176_v50 = vadd.f32 %v972_v4, %v108_v42  ;;  %v110_v16 = vmul.f32 %v967_v3, %v42_v7  ;;  %v1328_v42 = vld [vmem:[%s1788_s5] ss:$0 sm:$0xff] }
  0x2b   :  { %v304_v30 = vpack.c.bf16 %v254_v24, %v253_v23  ;;  %v126_v18 = vmul.f32 %v967_v3, %v58_v10  ;;  %v177_v23 = vadd.f32 %v972_v4, %v109_v15 }
  0x2c   :  { %876 = vmatmul.msk.bf16.gmra.mxu0 %vm335_vm0, %v293_v45  ;;  %v219_v45 = vadd.f32 %v972_v4, %v151_v37  ;;  %v71_v37 = vld [vmem:[%s1784_s0 + $0x160] sm:$0xff]  ;;  %v240_v58 = vmax.f32 %v176_v50, 0.0  ;;  %v178_v24 = vadd.f32 %v972_v4, %v110_v16 }
  0x2e   :  { %884 = vmatmul.msk.bf16.gmra.mxu1 %vm335_vm0, %v301_v46  ;;  %v220_v46 = vadd.f32 %v972_v4, %v152_v38  ;;  %v283_v53 = vmax.f32 %v219_v45, 0.0  ;;  %v72_v38 = vld [vmem:[%s1784_s0 + $0x168] sm:$0xff]  ;;  %v139_v45 = vmul.f32 %v967_v3, %v71_v37  ;;  %v242_v32 = vmax.f32 %v178_v24, 0.0 }
  0x2f   :  { %892 = vmatmul.msk.bf16.gmra.mxu2 %vm335_vm0, %v309_v47  ;;  %v235_v47 = vmax.f32 %v171_v39, 0.0  ;;  %v87_v39 = vld [vmem:[%s1784_s0 + $0x1e0] sm:$0xff] }
  0x30   :  { %900 = vmatmul.msk.bf16.gmra.mxu3 %vm335_vm0, %v317_v51  ;;  %v267_v51 = vmax.f32 %v203_v43, 0.0  ;;  %v284_v54 = vmax.f32 %v220_v46, 0.0  ;;  %v123_v43 = vmul.f32 %v967_v3, %v55_v34  ;;  %v140_v46 = vmul.f32 %v967_v3, %v72_v38 }
  0x31   :  { %v295_v55 = vpack.c.bf16 %v236_v48, %v235_v47  ;;  %v155_v47 = vmul.f32 %v967_v3, %v87_v39  ;;  %v156_v48 = vmul.f32 %v967_v3, %v88_v40 }
  0x32   :  { %v311_v57 = vpack.c.bf16 %v268_v52, %v267_v51  ;;  %v319_v61 = vpack.c.bf16 %v284_v54, %v283_v53  ;;  %v191_v51 = vadd.f32 %v972_v4, %v123_v43  ;;  %v192_v52 = vadd.f32 %v972_v4, %v124_v44 }
  0x33   :  { %v207_v53 = vadd.f32 %v972_v4, %v139_v45  ;;  %v208_v54 = vadd.f32 %v972_v4, %v140_v46  ;;  %v1334_v45 = vld [vmem:[%s1789_s6] ss:$0 sm:$0xff] }
  0x34   :  { %v255_v59 = vmax.f32 %v191_v51, 0.0  ;;  %v256_v60 = vmax.f32 %v192_v52, 0.0 }
  0x35   :  { %v272_v62 = vmax.f32 %v208_v54, 0.0 }
  0x36   :  { %v305_v2 = vpack.c.bf16 %v256_v60, %v255_v59 }
  0x3c   :  { %877 = vmatmul.msk.bf16.gmra.mxu0 %vm335_vm0, %v294_v19  ;;  %v221_v19 = vadd.f32 %v972_v4, %v153_v11  ;;  %v73_v11 = vld [vmem:[%s1784_s0 + $0x170] sm:$0xff] }
  0x3e   :  { %885 = vmatmul.msk.bf16.gmra.mxu1 %vm335_vm0, %v302_v20  ;;  %v222_v20 = vadd.f32 %v972_v4, %v154_v12  ;;  %v285_v27 = vmax.f32 %v221_v19, 0.0  ;;  %v74_v12 = vld [vmem:[%s1784_s0 + $0x178] sm:$0xff]  ;;  %v141_v19 = vmul.f32 %v967_v3, %v73_v11 }
  0x3f   :  { %893 = vmatmul.msk.bf16.gmra.mxu2 %vm335_vm0, %v310_v21  ;;  %v237_v21 = vmax.f32 %v173_v13, 0.0  ;;  %v89_v13 = vld [vmem:[%s1784_s0 + $0x1f0] sm:$0xff] }
  0x40   :  { %901 = vmatmul.msk.bf16.gmra.mxu3 %vm335_vm0, %v318_v25  ;;  %v269_v25 = vmax.f32 %v205_v17, 0.0  ;;  %v286_v28 = vmax.f32 %v222_v20, 0.0  ;;  %v125_v17 = vmul.f32 %v967_v3, %v57_v8  ;;  %v142_v20 = vmul.f32 %v967_v3, %v74_v12 }
  0x41   :  { %v296_v29 = vpack.c.bf16 %v238_v22, %v237_v21  ;;  %v157_v21 = vmul.f32 %v967_v3, %v89_v13  ;;  %v158_v22 = vmul.f32 %v967_v3, %v90_v14 }
  0x42   :  { %v312_v31 = vpack.c.bf16 %v270_v26, %v269_v25  ;;  %v320_v35 = vpack.c.bf16 %v286_v28, %v285_v27  ;;  %v193_v25 = vadd.f32 %v972_v4, %v125_v17  ;;  %v194_v26 = vadd.f32 %v972_v4, %v126_v18 }
  0x43   :  { %v209_v27 = vadd.f32 %v972_v4, %v141_v19  ;;  %v210_v28 = vadd.f32 %v972_v4, %v142_v20 }
  0x44   :  { %v257_v33 = vmax.f32 %v193_v25, 0.0  ;;  %v258_v3 = vmax.f32 %v194_v26, 0.0 }
  0x45   :  { %v273_v34 = vmax.f32 %v209_v27, 0.0 }
  0x46   :  { %v306_v39 = vpack.c.bf16 %v258_v3, %v257_v33 }
  0x4c   :  { %878 = vmatmul.msk.bf16.gmra.mxu0 %vm335_vm0, %v295_v55  ;;  %v223_v55 = vadd.f32 %v972_v4, %v155_v47 }
  0x4e   :  { %886 = vmatmul.msk.bf16.gmra.mxu1 %vm335_vm0, %v303_v56  ;;  %v224_v56 = vadd.f32 %v972_v4, %v156_v48  ;;  %v287_v63 = vmax.f32 %v223_v55, 0.0 }
  0x4f   :  { %894 = vmatmul.msk.bf16.gmra.mxu2 %vm335_vm0, %v311_v57  ;;  %v239_v57 = vmax.f32 %v175_v49, 0.0 }
  0x50   :  { %902 = vmatmul.msk.bf16.gmra.mxu3 %vm335_vm0, %v319_v61  ;;  %v271_v61 = vmax.f32 %v207_v53, 0.0  ;;  %v288_v0 = vmax.f32 %v224_v56, 0.0 }
  0x51   :  { %v297_v1 = vpack.c.bf16 %v240_v58, %v239_v57 }
  0x52   :  { %v313_v5 = vpack.c.bf16 %v272_v62, %v271_v61  ;;  %v321_v9 = vpack.c.bf16 %v288_v0, %v287_v63 }
  0x5c   :  { %879 = vmatmul.msk.bf16.gmra.mxu0 %vm335_vm0, %v296_v29  ;;  %v225_v29 = vadd.f32 %v972_v4, %v157_v21 }
  0x5e   :  { %887 = vmatmul.msk.bf16.gmra.mxu1 %vm335_vm0, %v304_v30  ;;  %v226_v30 = vadd.f32 %v972_v4, %v158_v22  ;;  %v289_v36 = vmax.f32 %v225_v29, 0.0  ;;  %v1323_v4 = vld [vmem:[%s1787_s4] ss:$0 sm:$0xff] }
  0x5f   :  { %895 = vmatmul.msk.bf16.gmra.mxu2 %vm335_vm0, %v312_v31  ;;  %v241_v31 = vmax.f32 %v177_v23, 0.0 }
  0x60   :  { %903 = vmatmul.msk.bf16.gmra.mxu3 %vm335_vm0, %v320_v35  ;;  %v274_v35 = vmax.f32 %v210_v28, 0.0  ;;  %v290_v37 = vmax.f32 %v226_v30, 0.0 }
  0x61   :  { %v298_v38 = vpack.c.bf16 %v242_v32, %v241_v31 }
  0x62   :  { %v314_v40 = vpack.c.bf16 %v274_v35, %v273_v34  ;;  %v322_v41 = vpack.c.bf16 %v290_v37, %v289_v36 }
  0x6c   :  { %880 = vmatmul.msk.bf16.gmra.mxu0 %vm335_vm0, %v297_v1 }
  0x6e   :  { %888 = vmatmul.msk.bf16.gmra.mxu1 %vm335_vm0, %v305_v2 }
  0x6f   :  { %896 = vmatmul.msk.bf16.gmra.mxu2 %vm335_vm0, %v313_v5 }
  0x70   :  { %904 = vmatmul.msk.bf16.gmra.mxu3 %vm335_vm0, %v321_v9 }
  0x7c   :  { %881 = vmatmul.msk.bf16.gmra.mxu0 %vm335_vm0, %v298_v38 }
  0x7e   :  { %889 = vmatmul.msk.bf16.gmra.mxu1 %vm335_vm0, %v306_v39 }
  0x7f   :  { %897 = vmatmul.msk.bf16.gmra.mxu2 %vm335_vm0, %v314_v40 }
  0x80   :  { %905 = vmatmul.msk.bf16.gmra.mxu3 %vm335_vm0, %v322_v41 }
  0x89   :  { %v441_v43 = vpop.f32.mrf.mxu0 }
  0x8a   :  { %v442_v44 = vadd.f32 %v1323_v4, %v441_v43 }
  0x8b   :  { %v481_v46 = vpop.f32.mrf.mxu1 }
  0x8c   :  { %v482_v47 = vadd.f32 %v1323_v4, %v481_v46  ;;  %v605_v48 = vmul.f32 %v1328_v42, %v442_v44 }
  0x8e   :  { %v621_v49 = vmul.f32 %v1328_v42, %v482_v47  ;;  %v673_v50 = vadd.f32 %v1334_v45, %v605_v48 }
  0x90   :  { %v689_v51 = vadd.f32 %v1334_v45, %v621_v49  ;;  %v737_v52 = vmax.f32 %v673_v50, 0.0 }
  0x91   :  { %v443_v57 = vpop.f32.mrf.mxu0 }
  0x92   :  { %v521_v53 = vpop.f32.mrf.mxu2  ;;  %v753_v54 = vmax.f32 %v689_v51, 0.0  ;;  %802 = vst.msk [vmem:[%s1790_s7] sm:$0xff] %vm801_vm1, %v737_v52  ;;  %v444_v59 = vadd.f32 %v1323_v4, %v443_v57 }
  0x93   :  { %v522_v55 = vadd.f32 %v1323_v4, %v521_v53  ;;  %v561_v56 = vpop.f32.mrf.mxu3  ;;  %v483_v60 = vpop.f32.mrf.mxu1 }
  0x94   :  { %v562_v58 = vadd.f32 %v1323_v4, %v561_v56  ;;  %818 = vst.msk [vmem:[%s1790_s7 + $0x80] sm:$0xff] %vm801_vm1, %v753_v54  ;;  %v484_v62 = vadd.f32 %v1323_v4, %v483_v60  ;;  %v606_v0 = vmul.f32 %v1328_v42, %v444_v59 }
  0x95   :  { %v637_v61 = vmul.f32 %v1328_v42, %v522_v55 }
  0x96   :  { %v653_v63 = vmul.f32 %v1328_v42, %v562_v58  ;;  %v622_v2 = vmul.f32 %v1328_v42, %v484_v62  ;;  %v674_v6 = vadd.f32 %v1334_v45, %v606_v0 }
  0x97   :  { %v705_v1 = vadd.f32 %v1334_v45, %v637_v61 }
  0x98   :  { %v721_v5 = vadd.f32 %v1334_v45, %v653_v63  ;;  %v690_v8 = vadd.f32 %v1334_v45, %v622_v2  ;;  %v738_v10 = vmax.f32 %v674_v6, 0.0 }
  0x99   :  { %v769_v7 = vmax.f32 %v705_v1, 0.0  ;;  %v446_v15 = vpop.f32.mrf.mxu0 }
  0x9a   :  { %v785_v9 = vmax.f32 %v721_v5, 0.0  ;;  %v523_v11 = vpop.f32.mrf.mxu2  ;;  %v754_v12 = vmax.f32 %v690_v8, 0.0  ;;  %v447_v17 = vadd.f32 %v1323_v4, %v446_v15  ;;  %803 = vst.msk [vmem:[%s1790_s7 + $0x8] sm:$0xff] %vm801_vm1, %v738_v10 }
  0x9b   :  { %834 = vst.msk [vmem:[%s1790_s7 + $0x100] sm:$0xff] %vm801_vm1, %v769_v7  ;;  %v524_v13 = vadd.f32 %v1323_v4, %v523_v11  ;;  %v563_v14 = vpop.f32.mrf.mxu3  ;;  %v486_v18 = vpop.f32.mrf.mxu1 }
  0x9c   :  { %850 = vst.msk [vmem:[%s1790_s7 + $0x180] sm:$0xff] %vm801_vm1, %v785_v9  ;;  %v564_v16 = vadd.f32 %v1323_v4, %v563_v14  ;;  %v487_v20 = vadd.f32 %v1323_v4, %v486_v18  ;;  %v607_v22 = vmul.f32 %v1328_v42, %v447_v17 }
  0x9d   :  { %v638_v19 = vmul.f32 %v1328_v42, %v524_v13  ;;  %819 = vst.msk [vmem:[%s1790_s7 + $0x88] sm:$0xff] %vm801_vm1, %v754_v12 }
  0x9e   :  { %v654_v21 = vmul.f32 %v1328_v42, %v564_v16  ;;  %v623_v24 = vmul.f32 %v1328_v42, %v487_v20  ;;  %v675_v26 = vadd.f32 %v1334_v45, %v607_v22 }
  0x9f   :  { %v706_v23 = vadd.f32 %v1334_v45, %v638_v19 }
  0xa0   :  { %v722_v25 = vadd.f32 %v1334_v45, %v654_v21  ;;  %v691_v28 = vadd.f32 %v1334_v45, %v623_v24  ;;  %v739_v30 = vmax.f32 %v675_v26, 0.0 }
  0xa1   :  { %v770_v27 = vmax.f32 %v706_v23, 0.0  ;;  %v448_v34 = vpop.f32.mrf.mxu0 }
  0xa2   :  { %v786_v29 = vmax.f32 %v722_v25, 0.0  ;;  %v526_v31 = vpop.f32.mrf.mxu2  ;;  %v755_v32 = vmax.f32 %v691_v28, 0.0  ;;  %v449_v36 = vadd.f32 %v1323_v4, %v448_v34  ;;  %804 = vst.msk [vmem:[%s1790_s7 + $0x10] sm:$0xff] %vm801_vm1, %v739_v30 }
  0xa3   :  { %835 = vst.msk [vmem:[%s1790_s7 + $0x108] sm:$0xff] %vm801_vm1, %v770_v27  ;;  %v527_v33 = vadd.f32 %v1323_v4, %v526_v31  ;;  %v566_v3 = vpop.f32.mrf.mxu3  ;;  %v488_v37 = vpop.f32.mrf.mxu1 }
  0xa4   :  { %851 = vst.msk [vmem:[%s1790_s7 + $0x188] sm:$0xff] %vm801_vm1, %v786_v29  ;;  %v567_v35 = vadd.f32 %v1323_v4, %v566_v3  ;;  %v489_v39 = vadd.f32 %v1323_v4, %v488_v37  ;;  %v608_v41 = vmul.f32 %v1328_v42, %v449_v36 }
  0xa5   :  { %v639_v38 = vmul.f32 %v1328_v42, %v527_v33  ;;  %820 = vst.msk [vmem:[%s1790_s7 + $0x90] sm:$0xff] %vm801_vm1, %v755_v32 }
  0xa6   :  { %v655_v40 = vmul.f32 %v1328_v42, %v567_v35  ;;  %v624_v44 = vmul.f32 %v1328_v42, %v489_v39  ;;  %v676_v47 = vadd.f32 %v1334_v45, %v608_v41 }
  0xa7   :  { %v707_v43 = vadd.f32 %v1334_v45, %v639_v38 }
  0xa8   :  { %v723_v46 = vadd.f32 %v1334_v45, %v655_v40  ;;  %v692_v49 = vadd.f32 %v1334_v45, %v624_v44  ;;  %v740_v51 = vmax.f32 %v676_v47, 0.0 }
  0xa9   :  { %v771_v48 = vmax.f32 %v707_v43, 0.0  ;;  %v451_v56 = vpop.f32.mrf.mxu0 }
  0xaa   :  { %v787_v50 = vmax.f32 %v723_v46, 0.0  ;;  %v528_v52 = vpop.f32.mrf.mxu2  ;;  %v756_v53 = vmax.f32 %v692_v49, 0.0  ;;  %v452_v58 = vadd.f32 %v1323_v4, %v451_v56  ;;  %805 = vst.msk [vmem:[%s1790_s7 + $0x18] sm:$0xff] %vm801_vm1, %v740_v51 }
  0xab   :  { %836 = vst.msk [vmem:[%s1790_s7 + $0x110] sm:$0xff] %vm801_vm1, %v771_v48  ;;  %v529_v54 = vadd.f32 %v1323_v4, %v528_v52  ;;  %v568_v55 = vpop.f32.mrf.mxu3  ;;  %v491_v59 = vpop.f32.mrf.mxu1 }
  0xac   :  { %852 = vst.msk [vmem:[%s1790_s7 + $0x190] sm:$0xff] %vm801_vm1, %v787_v50  ;;  %v569_v57 = vadd.f32 %v1323_v4, %v568_v55  ;;  %v492_v61 = vadd.f32 %v1323_v4, %v491_v59  ;;  %v609_v63 = vmul.f32 %v1328_v42, %v452_v58 }
  0xad   :  { %v640_v60 = vmul.f32 %v1328_v42, %v529_v54  ;;  %821 = vst.msk [vmem:[%s1790_s7 + $0x98] sm:$0xff] %vm801_vm1, %v756_v53 }
  0xae   :  { %v656_v62 = vmul.f32 %v1328_v42, %v569_v57  ;;  %v625_v1 = vmul.f32 %v1328_v42, %v492_v61  ;;  %v677_v5 = vadd.f32 %v1334_v45, %v609_v63 }
  0xaf   :  { %v708_v0 = vadd.f32 %v1334_v45, %v640_v60 }
  0xb0   :  { %v724_v2 = vadd.f32 %v1334_v45, %v656_v62  ;;  %v693_v7 = vadd.f32 %v1334_v45, %v625_v1  ;;  %v741_v9 = vmax.f32 %v677_v5, 0.0 }
  0xb1   :  { %v772_v6 = vmax.f32 %v708_v0, 0.0  ;;  %v453_v14 = vpop.f32.mrf.mxu0 }
  0xb2   :  { %v788_v8 = vmax.f32 %v724_v2, 0.0  ;;  %v531_v10 = vpop.f32.mrf.mxu2  ;;  %v757_v11 = vmax.f32 %v693_v7, 0.0  ;;  %v454_v16 = vadd.f32 %v1323_v4, %v453_v14  ;;  %806 = vst.msk [vmem:[%s1790_s7 + $0x20] sm:$0xff] %vm801_vm1, %v741_v9 }
  0xb3   :  { %837 = vst.msk [vmem:[%s1790_s7 + $0x118] sm:$0xff] %vm801_vm1, %v772_v6  ;;  %v532_v12 = vadd.f32 %v1323_v4, %v531_v10  ;;  %v571_v13 = vpop.f32.mrf.mxu3  ;;  %v493_v17 = vpop.f32.mrf.mxu1 }
  0xb4   :  { %853 = vst.msk [vmem:[%s1790_s7 + $0x198] sm:$0xff] %vm801_vm1, %v788_v8  ;;  %v572_v15 = vadd.f32 %v1323_v4, %v571_v13  ;;  %v494_v19 = vadd.f32 %v1323_v4, %v493_v17  ;;  %v610_v21 = vmul.f32 %v1328_v42, %v454_v16 }
  0xb5   :  { %v641_v18 = vmul.f32 %v1328_v42, %v532_v12  ;;  %822 = vst.msk [vmem:[%s1790_s7 + $0xa0] sm:$0xff] %vm801_vm1, %v757_v11 }
  0xb6   :  { %v657_v20 = vmul.f32 %v1328_v42, %v572_v15  ;;  %v626_v23 = vmul.f32 %v1328_v42, %v494_v19  ;;  %v678_v25 = vadd.f32 %v1334_v45, %v610_v21 }
  0xb7   :  { %v709_v22 = vadd.f32 %v1334_v45, %v641_v18 }
  0xb8   :  { %v725_v24 = vadd.f32 %v1334_v45, %v657_v20  ;;  %v694_v27 = vadd.f32 %v1334_v45, %v626_v23  ;;  %v742_v29 = vmax.f32 %v678_v25, 0.0 }
  0xb9   :  { %v773_v26 = vmax.f32 %v709_v22, 0.0  ;;  %v456_v3 = vpop.f32.mrf.mxu0 }
  0xba   :  { %v789_v28 = vmax.f32 %v725_v24, 0.0  ;;  %v533_v30 = vpop.f32.mrf.mxu2  ;;  %v758_v31 = vmax.f32 %v694_v27, 0.0  ;;  %v457_v35 = vadd.f32 %v1323_v4, %v456_v3  ;;  %807 = vst.msk [vmem:[%s1790_s7 + $0x28] sm:$0xff] %vm801_vm1, %v742_v29 }
  0xbb   :  { %838 = vst.msk [vmem:[%s1790_s7 + $0x120] sm:$0xff] %vm801_vm1, %v773_v26  ;;  %v534_v32 = vadd.f32 %v1323_v4, %v533_v30  ;;  %v573_v33 = vpop.f32.mrf.mxu3  ;;  %v496_v36 = vpop.f32.mrf.mxu1 }
  0xbc   :  { %854 = vst.msk [vmem:[%s1790_s7 + $0x1a0] sm:$0xff] %vm801_vm1, %v789_v28  ;;  %v574_v34 = vadd.f32 %v1323_v4, %v573_v33  ;;  %v497_v38 = vadd.f32 %v1323_v4, %v496_v36  ;;  %v611_v40 = vmul.f32 %v1328_v42, %v457_v35 }
  0xbd   :  { %v642_v37 = vmul.f32 %v1328_v42, %v534_v32  ;;  %823 = vst.msk [vmem:[%s1790_s7 + $0xa8] sm:$0xff] %vm801_vm1, %v758_v31 }
  0xbe   :  { %v658_v39 = vmul.f32 %v1328_v42, %v574_v34  ;;  %v627_v43 = vmul.f32 %v1328_v42, %v497_v38  ;;  %v679_v46 = vadd.f32 %v1334_v45, %v611_v40 }
  0xbf   :  { %v710_v41 = vadd.f32 %v1334_v45, %v642_v37 }
  0xc0   :  { %v726_v44 = vadd.f32 %v1334_v45, %v658_v39  ;;  %v695_v48 = vadd.f32 %v1334_v45, %v627_v43  ;;  %v743_v50 = vmax.f32 %v679_v46, 0.0 }
  0xc1   :  { %v774_v47 = vmax.f32 %v710_v41, 0.0  ;;  %v458_v55 = vpop.f32.mrf.mxu0 }
  0xc2   :  { %v790_v49 = vmax.f32 %v726_v44, 0.0  ;;  %v536_v51 = vpop.f32.mrf.mxu2  ;;  %v759_v52 = vmax.f32 %v695_v48, 0.0  ;;  %v459_v57 = vadd.f32 %v1323_v4, %v458_v55  ;;  %808 = vst.msk [vmem:[%s1790_s7 + $0x30] sm:$0xff] %vm801_vm1, %v743_v50 }
  0xc3   :  { %839 = vst.msk [vmem:[%s1790_s7 + $0x128] sm:$0xff] %vm801_vm1, %v774_v47  ;;  %v537_v53 = vadd.f32 %v1323_v4, %v536_v51  ;;  %v576_v54 = vpop.f32.mrf.mxu3  ;;  %v498_v58 = vpop.f32.mrf.mxu1 }
  0xc4   :  { %855 = vst.msk [vmem:[%s1790_s7 + $0x1a8] sm:$0xff] %vm801_vm1, %v790_v49  ;;  %v577_v56 = vadd.f32 %v1323_v4, %v576_v54  ;;  %v499_v60 = vadd.f32 %v1323_v4, %v498_v58  ;;  %v612_v62 = vmul.f32 %v1328_v42, %v459_v57 }
  0xc5   :  { %v643_v59 = vmul.f32 %v1328_v42, %v537_v53  ;;  %824 = vst.msk [vmem:[%s1790_s7 + $0xb0] sm:$0xff] %vm801_vm1, %v759_v52 }
  0xc6   :  { %v659_v61 = vmul.f32 %v1328_v42, %v577_v56  ;;  %v628_v0 = vmul.f32 %v1328_v42, %v499_v60  ;;  %v680_v2 = vadd.f32 %v1334_v45, %v612_v62 }
  0xc7   :  { %v711_v63 = vadd.f32 %v1334_v45, %v643_v59 }
  0xc8   :  { %v727_v1 = vadd.f32 %v1334_v45, %v659_v61  ;;  %v696_v6 = vadd.f32 %v1334_v45, %v628_v0  ;;  %v744_v8 = vmax.f32 %v680_v2, 0.0 }
  0xc9   :  { %v775_v5 = vmax.f32 %v711_v63, 0.0  ;;  %v461_v13 = vpop.f32.mrf.mxu0 }
  0xca   :  { %v791_v7 = vmax.f32 %v727_v1, 0.0  ;;  %v538_v9 = vpop.f32.mrf.mxu2  ;;  %v760_v10 = vmax.f32 %v696_v6, 0.0  ;;  %v462_v15 = vadd.f32 %v1323_v4, %v461_v13  ;;  %809 = vst.msk [vmem:[%s1790_s7 + $0x38] sm:$0xff] %vm801_vm1, %v744_v8 }
  0xcb   :  { %840 = vst.msk [vmem:[%s1790_s7 + $0x130] sm:$0xff] %vm801_vm1, %v775_v5  ;;  %v539_v11 = vadd.f32 %v1323_v4, %v538_v9  ;;  %v578_v12 = vpop.f32.mrf.mxu3  ;;  %v501_v16 = vpop.f32.mrf.mxu1 }
  0xcc   :  { %856 = vst.msk [vmem:[%s1790_s7 + $0x1b0] sm:$0xff] %vm801_vm1, %v791_v7  ;;  %v579_v14 = vadd.f32 %v1323_v4, %v578_v12  ;;  %v502_v18 = vadd.f32 %v1323_v4, %v501_v16  ;;  %v613_v20 = vmul.f32 %v1328_v42, %v462_v15 }
  0xcd   :  { %v644_v17 = vmul.f32 %v1328_v42, %v539_v11  ;;  %825 = vst.msk [vmem:[%s1790_s7 + $0xb8] sm:$0xff] %vm801_vm1, %v760_v10 }
  0xce   :  { %v660_v19 = vmul.f32 %v1328_v42, %v579_v14  ;;  %v629_v22 = vmul.f32 %v1328_v42, %v502_v18  ;;  %v681_v24 = vadd.f32 %v1334_v45, %v613_v20 }
  0xcf   :  { %v712_v21 = vadd.f32 %v1334_v45, %v644_v17 }
  0xd0   :  { %v728_v23 = vadd.f32 %v1334_v45, %v660_v19  ;;  %v697_v26 = vadd.f32 %v1334_v45, %v629_v22  ;;  %v745_v28 = vmax.f32 %v681_v24, 0.0 }
  0xd1   :  { %v776_v25 = vmax.f32 %v712_v21, 0.0  ;;  %v463_v33 = vpop.f32.mrf.mxu0 }
  0xd2   :  { %v792_v27 = vmax.f32 %v728_v23, 0.0  ;;  %v541_v29 = vpop.f32.mrf.mxu2  ;;  %v761_v30 = vmax.f32 %v697_v26, 0.0  ;;  %v464_v34 = vadd.f32 %v1323_v4, %v463_v33  ;;  %810 = vst.msk [vmem:[%s1790_s7 + $0x40] sm:$0xff] %vm801_vm1, %v745_v28 }
  0xd3   :  { %841 = vst.msk [vmem:[%s1790_s7 + $0x138] sm:$0xff] %vm801_vm1, %v776_v25  ;;  %v542_v31 = vadd.f32 %v1323_v4, %v541_v29  ;;  %v581_v32 = vpop.f32.mrf.mxu3  ;;  %v503_v35 = vpop.f32.mrf.mxu1 }
  0xd4   :  { %857 = vst.msk [vmem:[%s1790_s7 + $0x1b8] sm:$0xff] %vm801_vm1, %v792_v27  ;;  %v582_v3 = vadd.f32 %v1323_v4, %v581_v32  ;;  %v504_v37 = vadd.f32 %v1323_v4, %v503_v35  ;;  %v614_v39 = vmul.f32 %v1328_v42, %v464_v34 }
  0xd5   :  { %v645_v36 = vmul.f32 %v1328_v42, %v542_v31  ;;  %826 = vst.msk [vmem:[%s1790_s7 + $0xc0] sm:$0xff] %vm801_vm1, %v761_v30 }
  0xd6   :  { %v661_v38 = vmul.f32 %v1328_v42, %v582_v3  ;;  %v630_v41 = vmul.f32 %v1328_v42, %v504_v37  ;;  %v682_v44 = vadd.f32 %v1334_v45, %v614_v39 }
  0xd7   :  { %v713_v40 = vadd.f32 %v1334_v45, %v645_v36 }
  0xd8   :  { %v729_v43 = vadd.f32 %v1334_v45, %v661_v38  ;;  %v698_v47 = vadd.f32 %v1334_v45, %v630_v41  ;;  %v746_v49 = vmax.f32 %v682_v44, 0.0 }
  0xd9   :  { %v777_v46 = vmax.f32 %v713_v40, 0.0  ;;  %v466_v54 = vpop.f32.mrf.mxu0 }
  0xda   :  { %v793_v48 = vmax.f32 %v729_v43, 0.0  ;;  %v543_v50 = vpop.f32.mrf.mxu2  ;;  %v762_v51 = vmax.f32 %v698_v47, 0.0  ;;  %v467_v56 = vadd.f32 %v1323_v4, %v466_v54  ;;  %811 = vst.msk [vmem:[%s1790_s7 + $0x48] sm:$0xff] %vm801_vm1, %v746_v49 }
  0xdb   :  { %842 = vst.msk [vmem:[%s1790_s7 + $0x140] sm:$0xff] %vm801_vm1, %v777_v46  ;;  %v544_v52 = vadd.f32 %v1323_v4, %v543_v50  ;;  %v583_v53 = vpop.f32.mrf.mxu3  ;;  %v506_v57 = vpop.f32.mrf.mxu1 }
  0xdc   :  { %858 = vst.msk [vmem:[%s1790_s7 + $0x1c0] sm:$0xff] %vm801_vm1, %v793_v48  ;;  %v584_v55 = vadd.f32 %v1323_v4, %v583_v53  ;;  %v507_v59 = vadd.f32 %v1323_v4, %v506_v57  ;;  %v615_v61 = vmul.f32 %v1328_v42, %v467_v56 }
  0xdd   :  { %v646_v58 = vmul.f32 %v1328_v42, %v544_v52  ;;  %827 = vst.msk [vmem:[%s1790_s7 + $0xc8] sm:$0xff] %vm801_vm1, %v762_v51 }
  0xde   :  { %v662_v60 = vmul.f32 %v1328_v42, %v584_v55  ;;  %v631_v63 = vmul.f32 %v1328_v42, %v507_v59  ;;  %v683_v1 = vadd.f32 %v1334_v45, %v615_v61 }
  0xdf   :  { %v714_v62 = vadd.f32 %v1334_v45, %v646_v58 }
  0xe0   :  { %v730_v0 = vadd.f32 %v1334_v45, %v662_v60  ;;  %v699_v5 = vadd.f32 %v1334_v45, %v631_v63  ;;  %v747_v7 = vmax.f32 %v683_v1, 0.0 }
  0xe1   :  { %v778_v2 = vmax.f32 %v714_v62, 0.0  ;;  %v468_v12 = vpop.f32.mrf.mxu0 }
  0xe2   :  { %v794_v6 = vmax.f32 %v730_v0, 0.0  ;;  %v546_v8 = vpop.f32.mrf.mxu2  ;;  %v763_v9 = vmax.f32 %v699_v5, 0.0  ;;  %v469_v14 = vadd.f32 %v1323_v4, %v468_v12  ;;  %812 = vst.msk [vmem:[%s1790_s7 + $0x50] sm:$0xff] %vm801_vm1, %v747_v7 }
  0xe3   :  { %843 = vst.msk [vmem:[%s1790_s7 + $0x148] sm:$0xff] %vm801_vm1, %v778_v2  ;;  %v547_v10 = vadd.f32 %v1323_v4, %v546_v8  ;;  %v586_v11 = vpop.f32.mrf.mxu3  ;;  %v508_v15 = vpop.f32.mrf.mxu1 }
  0xe4   :  { %859 = vst.msk [vmem:[%s1790_s7 + $0x1c8] sm:$0xff] %vm801_vm1, %v794_v6  ;;  %v587_v13 = vadd.f32 %v1323_v4, %v586_v11  ;;  %v509_v17 = vadd.f32 %v1323_v4, %v508_v15  ;;  %v616_v19 = vmul.f32 %v1328_v42, %v469_v14 }
  0xe5   :  { %v647_v16 = vmul.f32 %v1328_v42, %v547_v10  ;;  %828 = vst.msk [vmem:[%s1790_s7 + $0xd0] sm:$0xff] %vm801_vm1, %v763_v9 }
  0xe6   :  { %v663_v18 = vmul.f32 %v1328_v42, %v587_v13  ;;  %v632_v21 = vmul.f32 %v1328_v42, %v509_v17  ;;  %v684_v23 = vadd.f32 %v1334_v45, %v616_v19 }
  0xe7   :  { %v715_v20 = vadd.f32 %v1334_v45, %v647_v16 }
  0xe8   :  { %v731_v22 = vadd.f32 %v1334_v45, %v663_v18  ;;  %v700_v25 = vadd.f32 %v1334_v45, %v632_v21  ;;  %v748_v27 = vmax.f32 %v684_v23, 0.0 }
  0xe9   :  { %v779_v24 = vmax.f32 %v715_v20, 0.0  ;;  %v471_v32 = vpop.f32.mrf.mxu0 }
  0xea   :  { %v795_v26 = vmax.f32 %v731_v22, 0.0  ;;  %v548_v28 = vpop.f32.mrf.mxu2  ;;  %v764_v29 = vmax.f32 %v700_v25, 0.0  ;;  %v472_v3 = vadd.f32 %v1323_v4, %v471_v32  ;;  %813 = vst.msk [vmem:[%s1790_s7 + $0x58] sm:$0xff] %vm801_vm1, %v748_v27 }
  0xeb   :  { %844 = vst.msk [vmem:[%s1790_s7 + $0x150] sm:$0xff] %vm801_vm1, %v779_v24  ;;  %v549_v30 = vadd.f32 %v1323_v4, %v548_v28  ;;  %v588_v31 = vpop.f32.mrf.mxu3  ;;  %v511_v34 = vpop.f32.mrf.mxu1 }
  0xec   :  { %860 = vst.msk [vmem:[%s1790_s7 + $0x1d0] sm:$0xff] %vm801_vm1, %v795_v26  ;;  %v589_v33 = vadd.f32 %v1323_v4, %v588_v31  ;;  %v512_v36 = vadd.f32 %v1323_v4, %v511_v34  ;;  %v617_v38 = vmul.f32 %v1328_v42, %v472_v3 }
  0xed   :  { %v648_v35 = vmul.f32 %v1328_v42, %v549_v30  ;;  %829 = vst.msk [vmem:[%s1790_s7 + $0xd8] sm:$0xff] %vm801_vm1, %v764_v29 }
  0xee   :  { %v664_v37 = vmul.f32 %v1328_v42, %v589_v33  ;;  %v633_v40 = vmul.f32 %v1328_v42, %v512_v36  ;;  %v685_v43 = vadd.f32 %v1334_v45, %v617_v38 }
  0xef   :  { %v716_v39 = vadd.f32 %v1334_v45, %v648_v35 }
  0xf0   :  { %v732_v41 = vadd.f32 %v1334_v45, %v664_v37  ;;  %v701_v46 = vadd.f32 %v1334_v45, %v633_v40  ;;  %v749_v48 = vmax.f32 %v685_v43, 0.0 }
  0xf1   :  { %v780_v44 = vmax.f32 %v716_v39, 0.0  ;;  %v473_v53 = vpop.f32.mrf.mxu0 }
  0xf2   :  { %v796_v47 = vmax.f32 %v732_v41, 0.0  ;;  %v551_v49 = vpop.f32.mrf.mxu2  ;;  %v765_v50 = vmax.f32 %v701_v46, 0.0  ;;  %v474_v55 = vadd.f32 %v1323_v4, %v473_v53  ;;  %814 = vst.msk [vmem:[%s1790_s7 + $0x60] sm:$0xff] %vm801_vm1, %v749_v48 }
  0xf3   :  { %845 = vst.msk [vmem:[%s1790_s7 + $0x158] sm:$0xff] %vm801_vm1, %v780_v44  ;;  %v552_v51 = vadd.f32 %v1323_v4, %v551_v49  ;;  %v591_v52 = vpop.f32.mrf.mxu3  ;;  %v513_v56 = vpop.f32.mrf.mxu1 }
  0xf4   :  { %861 = vst.msk [vmem:[%s1790_s7 + $0x1d8] sm:$0xff] %vm801_vm1, %v796_v47  ;;  %v592_v54 = vadd.f32 %v1323_v4, %v591_v52  ;;  %v514_v58 = vadd.f32 %v1323_v4, %v513_v56  ;;  %v618_v60 = vmul.f32 %v1328_v42, %v474_v55 }
  0xf5   :  { %v649_v57 = vmul.f32 %v1328_v42, %v552_v51  ;;  %830 = vst.msk [vmem:[%s1790_s7 + $0xe0] sm:$0xff] %vm801_vm1, %v765_v50 }
  0xf6   :  { %v665_v59 = vmul.f32 %v1328_v42, %v592_v54  ;;  %v634_v62 = vmul.f32 %v1328_v42, %v514_v58  ;;  %v686_v0 = vadd.f32 %v1334_v45, %v618_v60 }
  0xf7   :  { %v717_v61 = vadd.f32 %v1334_v45, %v649_v57 }
  0xf8   :  { %v733_v63 = vadd.f32 %v1334_v45, %v665_v59  ;;  %v702_v2 = vadd.f32 %v1334_v45, %v634_v62  ;;  %v750_v6 = vmax.f32 %v686_v0, 0.0 }
  0xf9   :  { %v781_v1 = vmax.f32 %v717_v61, 0.0  ;;  %v476_v11 = vpop.f32.mrf.mxu0 }
  0xfa   :  { %v797_v5 = vmax.f32 %v733_v63, 0.0  ;;  %v553_v7 = vpop.f32.mrf.mxu2  ;;  %v766_v8 = vmax.f32 %v702_v2, 0.0  ;;  %v477_v13 = vadd.f32 %v1323_v4, %v476_v11  ;;  %815 = vst.msk [vmem:[%s1790_s7 + $0x68] sm:$0xff] %vm801_vm1, %v750_v6 }
  0xfb   :  { %846 = vst.msk [vmem:[%s1790_s7 + $0x160] sm:$0xff] %vm801_vm1, %v781_v1  ;;  %v554_v9 = vadd.f32 %v1323_v4, %v553_v7  ;;  %v593_v10 = vpop.f32.mrf.mxu3  ;;  %v516_v14 = vpop.f32.mrf.mxu1 }
  0xfc   :  { %862 = vst.msk [vmem:[%s1790_s7 + $0x1e0] sm:$0xff] %vm801_vm1, %v797_v5  ;;  %v594_v12 = vadd.f32 %v1323_v4, %v593_v10  ;;  %v517_v16 = vadd.f32 %v1323_v4, %v516_v14  ;;  %v619_v18 = vmul.f32 %v1328_v42, %v477_v13 }
  0xfd   :  { %v650_v15 = vmul.f32 %v1328_v42, %v554_v9  ;;  %831 = vst.msk [vmem:[%s1790_s7 + $0xe8] sm:$0xff] %vm801_vm1, %v766_v8 }
  0xfe   :  { %v666_v17 = vmul.f32 %v1328_v42, %v594_v12  ;;  %v635_v20 = vmul.f32 %v1328_v42, %v517_v16  ;;  %v687_v22 = vadd.f32 %v1334_v45, %v619_v18 }
  0xff   :  { %v718_v19 = vadd.f32 %v1334_v45, %v650_v15 }
 0x100   :  { %v734_v21 = vadd.f32 %v1334_v45, %v666_v17  ;;  %v703_v24 = vadd.f32 %v1334_v45, %v635_v20  ;;  %v751_v26 = vmax.f32 %v687_v22, 0.0 }
 0x101   :  { %v782_v23 = vmax.f32 %v718_v19, 0.0  ;;  %v478_v31 = vpop.f32.mrf.mxu0 }
 0x102   :  { %v798_v25 = vmax.f32 %v734_v21, 0.0  ;;  %v556_v27 = vpop.f32.mrf.mxu2  ;;  %v767_v28 = vmax.f32 %v703_v24, 0.0  ;;  %v479_v33 = vadd.f32 %v1323_v4, %v478_v31  ;;  %816 = vst.msk [vmem:[%s1790_s7 + $0x70] sm:$0xff] %vm801_vm1, %v751_v26 }
 0x103   :  { %847 = vst.msk [vmem:[%s1790_s7 + $0x168] sm:$0xff] %vm801_vm1, %v782_v23  ;;  %v557_v29 = vadd.f32 %v1323_v4, %v556_v27  ;;  %v596_v30 = vpop.f32.mrf.mxu3  ;;  %v518_v3 = vpop.f32.mrf.mxu1 }
 0x104   :  { %863 = vst.msk [vmem:[%s1790_s7 + $0x1e8] sm:$0xff] %vm801_vm1, %v798_v25  ;;  %v597_v32 = vadd.f32 %v1323_v4, %v596_v30  ;;  %v519_v35 = vadd.f32 %v1323_v4, %v518_v3  ;;  %v620_v37 = vmul.f32 %v1328_v42, %v479_v33 }
 0x105   :  { %v651_v34 = vmul.f32 %v1328_v42, %v557_v29  ;;  %832 = vst.msk [vmem:[%s1790_s7 + $0xf0] sm:$0xff] %vm801_vm1, %v767_v28 }
 0x106   :  { %v667_v36 = vmul.f32 %v1328_v42, %v597_v32  ;;  %v636_v39 = vmul.f32 %v1328_v42, %v519_v35  ;;  %v688_v41 = vadd.f32 %v1334_v45, %v620_v37 }
 0x107   :  { %v719_v38 = vadd.f32 %v1334_v45, %v651_v34 }
 0x108   :  { %v735_v40 = vadd.f32 %v1334_v45, %v667_v36  ;;  %v704_v44 = vadd.f32 %v1334_v45, %v636_v39  ;;  %v752_v47 = vmax.f32 %v688_v41, 0.0 }
 0x109   :  { %v783_v43 = vmax.f32 %v719_v38, 0.0 }
 0x10a   :  { %v799_v46 = vmax.f32 %v735_v40, 0.0  ;;  %v558_v48 = vpop.f32.mrf.mxu2  ;;  %v768_v49 = vmax.f32 %v704_v44, 0.0  ;;  %817 = vst.msk [vmem:[%s1790_s7 + $0x78] sm:$0xff] %vm801_vm1, %v752_v47 }
 0x10b   :  { %848 = vst.msk [vmem:[%s1790_s7 + $0x170] sm:$0xff] %vm801_vm1, %v783_v43  ;;  %v559_v50 = vadd.f32 %v1323_v4, %v558_v48  ;;  %v598_v51 = vpop.f32.mrf.mxu3 }
 0x10c   :  { %864 = vst.msk [vmem:[%s1790_s7 + $0x1f0] sm:$0xff] %vm801_vm1, %v799_v46  ;;  %v599_v52 = vadd.f32 %v1323_v4, %v598_v51 }
 0x10d   :  { %v652_v53 = vmul.f32 %v1328_v42, %v559_v50  ;;  %833 = vst.msk [vmem:[%s1790_s7 + $0xf8] sm:$0xff] %vm801_vm1, %v768_v49 }
 0x10e   :  { %v668_v54 = vmul.f32 %v1328_v42, %v599_v52 }
 0x10f   :  { %v720_v55 = vadd.f32 %v1334_v45, %v652_v53 }
 0x110   :  { %v736_v56 = vadd.f32 %v1334_v45, %v668_v54 }
 0x111   :  { %v784_v57 = vmax.f32 %v720_v55, 0.0 }
 0x112   :  { %v800_v4 = vmax.f32 %v736_v56, 0.0 }
 0x113   :  { %849 = vst.msk [vmem:[%s1790_s7 + $0x178] sm:$0xff] %vm801_vm1, %v784_v57 }
 0x114   :  { %865 = vst.msk [vmem:[%s1790_s7 + $0x1f8] sm:$0xff] %vm801_vm1, %v800_v4 }

// kernel: forward_nchw.24
= control target key start
LH: loop header
LB: loop body
LE: loop exit
PB: predicated region body
PF: predicated region fallthrough
CT: control target
= control target key end

     0   :  { %s3258_s27 = smov 0   ;;  %s3260_s28 = smov 0   ;;  %s4343_s0 = inlined_call_operand.vmem [shape: f32[2,18,18,4], index: 0, kind: input, shape index: {}]   ;;  %s4344_s1 = inlined_call_operand.vmem [shape: bf16[9,4,4], index: 1, kind: input, shape index: {}]   ;;  %s4345_s2 = inlined_call_operand.vmem [shape: f32[1,4], index: 2, kind: input, shape index: {}]   ;;  %s4346_s3 = inlined_call_operand.vmem [shape: f32[1,4], index: 3, kind: input, shape index: {}]   ;;  %s4347_s4 = inlined_call_operand.vmem [shape: f32[1,4], index: 4, kind: input, shape index: {}]   ;;  %s4348_s5 = inlined_call_operand.vmem [shape: bf16[4,16], index: 5, kind: input, shape index: {}]   ;;  %s4349_s6 = inlined_call_operand.vmem [shape: f32[1,16], index: 6, kind: input, shape index: {}]   ;;  %s4350_s7 = inlined_call_operand.vmem [shape: f32[512,16], index: 7, kind: input, shape index: {}]   ;;  %s4351_s8 = inlined_call_operand.vmem [shape: f32[512,16], index: 8, kind: output, shape index: {}]  }
   0x1   :  { %s3262_s29 = smov 0  }
   0x2 LB: > { %s30_s30 = sadd.s32 1, %s3207_s28  ;;  %p2790_p0 = scmp.ge.s32.totalorder %s3211_s29, 1  ;;  %s3211_s29 = sphi %s3262_s29, %s18_s29   ;;  %s3207_s28 = sphi %s3260_s28, %s4384_s28   ;;  %s3203_s27 = sphi %s3258_s27, %s4383_s27  }
   0x3   : > { %p32_p1 = scmp.ge.s32.totalorder %s30_s30, 2  ;;  %p291_p2 = scmp.lt.s32.totalorder %s3211_s29, 3 }
   0x5   : > { %s4386_s30 = smov (%p32_p1, %s30_s30), 0  ;;  %p292_p3 = pnand %p2790_p0, %p291_p2 }
   0x7   : > { %295 = sbr.rel (%p292_p3) target bundleno = 941 (0x3ad), region = 52 }
   0xc   : > { %v2796_v0 = vld [vmem:[%s4344_s1 + $0x2] sm:$0x3]  ;;  %vm505_vm0 = vcmask 1041408   ;;  %v405_v1 = vld [vmem:[%s4344_s1] sm:$0x3]  ;;  %p332_p4 = scmp.lt.s32.totalorder %s3203_s27, 1 }
   0xd   : > { %v507_v2 = vsel %vm505_vm0, %v2796_v0, 0  ;;  %v647_v3 = vsel %vm505_vm0, %v405_v1, 0  ;;  %v2829_v4 = vld [vmem:[%s4344_s1 + $0x4] sm:$0x3]  ;;  %v2878_v6 = vld [vmem:[%s4344_s1 + $0x6] sm:$0x3] }
   0xe   : > { %3158 = vmatpush.bf16.msra.mxu2 %v507_v2  ;;  %3159 = vmatpush.bf16.msra.mxu3 %v647_v3  ;;  %s333_s15 = scalar_select %p332_p4, %s3203_s27, 1  ;;  %v837_v5 = vsel %vm505_vm0, %v2829_v4, 0  ;;  %v2927_v7 = vld [vmem:[%s4344_s1 + $0x8] sm:$0x3]  ;;  %v1062_v8 = vsel %vm505_vm0, %v2878_v6, 0  ;;  %vm456_vm1 = vcmask 31744  }
   0xf   : > { %516 = vmatpush.bf16.msra.mxu0 %v507_v2  ;;  %656 = vmatpush.bf16.msra.mxu1 %v647_v3  ;;  %v1284_v9 = vsel %vm505_vm0, %v2927_v7, 0  ;;  %s2792_s22 = sshll.u32 %s3203_s27, 5  ;;  %vm2663_vm2 = vcmask 130048  }
  0x10   : > { %s3160_s20 = smul.u32 432, %s333_s15  ;;  %p339_p5 = scmp.lt.s32.totalorder %s2792_s22, 63 }
  0x12   : > { %846 = vmatpush.bf16.msrb.mxu2 %v837_v5  ;;  %1071 = vmatpush.bf16.msrb.mxu3 %v1062_v8  ;;  %s3303_s23 = scalar_lea.vmem %s4343_s0, %s3160_s20  ;;  %s4388_s22 = smov (!%p339_p5, %s2792_s22), 63 }
  0x13   : > { %1293 = vmatpush.bf16.msrb.mxu0 %v1284_v9  ;;  %v422_v10 = vld [vmem:[%s3303_s23 + $0xc1] sm:$0xff]  ;;  %v423_v11 = vld [vmem:[%s3303_s23 + $0xc9] sm:$0xff]  ;;  %v424_v22 = vld [vmem:[%s3303_s23 + $0xd9] sm:$0xff]  ;;  %s2793_s27 = sshll.u32 %s4388_s22, 3 }
  0x14   : > { %v373_v12 = vld [vmem:[%s3303_s23 + $0xc0] sm:$0xff]  ;;  %v3308_v13 = vpack.c.bf16 %v423_v11, %v422_v10  ;;  %v374_v14 = vld [vmem:[%s3303_s23 + $0xc8] sm:$0xff]  ;;  %v375_v24 = vld [vmem:[%s3303_s23 + $0xd8] sm:$0xff]  ;;  %s4124_s25 = scalar_lea.vmem %s4350_s7, %s2793_s27  ;;  %s4138_s12 = scalar_lea.vmem %s4351_s8, %s2793_s27 }
  0x15   : > { %v406_v15 = vld [vmem:[%s3303_s23 + $0x1] sm:$0xff]  ;;  %v407_v16 = vld [vmem:[%s3303_s23 + $0x9] sm:$0xff]  ;;  %v3313_v17 = vpack.c.bf16 %v374_v14, %v373_v12  ;;  %v408_v26 = vld [vmem:[%s3303_s23 + $0x19] sm:$0xff] }
  0x16   : > { %v438_v18 = vpack.c.bf16 %v407_v16, %v406_v15  ;;  %v357_v19 = vld [vmem:[%s3303_s23] sm:$0xff]  ;;  %v358_v20 = vld [vmem:[%s3303_s23 + $0x8] sm:$0xff]  ;;  %2805 = vmatmul.msk.bf16.vlgmr.msra.gmra.mxu2 %vm456_vm1, %v3308_v13  ;;  %v359_v28 = vld [vmem:[%s3303_s23 + $0x18] sm:$0xff] }
  0x17   : > { %v389_v21 = vpack.c.bf16 %v358_v20, %v357_v19  ;;  %2821 = vmatmul.msk.bf16.vlgmr.msra.gmra.mxu3 %vm456_vm1, %v3313_v17  ;;  %v425_v23 = vld [vmem:[%s3303_s23 + $0xe1] sm:$0xff]  ;;  %v426_v34 = vld [vmem:[%s3303_s23 + $0xf1] sm:$0xff]  ;;  %v427_v35 = vld [vmem:[%s3303_s23 + $0xf9] sm:$0xff] }
  0x18   : > { %2797 = vmatmul.msk.bf16.vlgmr.msra.gmra.mxu0 %vm456_vm1, %v438_v18  ;;  %v376_v25 = vld [vmem:[%s3303_s23 + $0xe0] sm:$0xff]  ;;  %v3331_v30 = vpack.c.bf16 %v425_v23, %v424_v22  ;;  %v377_v36 = vld [vmem:[%s3303_s23 + $0xf0] sm:$0xff]  ;;  %v378_v37 = vld [vmem:[%s3303_s23 + $0xf8] sm:$0xff]  ;;  %v3355_v42 = vpack.c.bf16 %v427_v35, %v426_v34 }
  0x19   : > { %2813 = vmatmul.msk.bf16.vlgmr.msra.gmra.mxu1 %vm456_vm1, %v389_v21  ;;  %v409_v27 = vld [vmem:[%s3303_s23 + $0x21] sm:$0xff]  ;;  %v3333_v31 = vpack.c.bf16 %v376_v25, %v375_v24  ;;  %v410_v38 = vld [vmem:[%s3303_s23 + $0x31] sm:$0xff]  ;;  %v411_v39 = vld [vmem:[%s3303_s23 + $0x39] sm:$0xff]  ;;  %v3357_v43 = vpack.c.bf16 %v378_v37, %v377_v36 }
  0x1a   : > { %v360_v29 = vld [vmem:[%s3303_s23 + $0x20] sm:$0xff]  ;;  %v3335_v32 = vpack.c.bf16 %v409_v27, %v408_v26  ;;  %v361_v40 = vld [vmem:[%s3303_s23 + $0x30] sm:$0xff]  ;;  %v362_v41 = vld [vmem:[%s3303_s23 + $0x38] sm:$0xff]  ;;  %v3359_v44 = vpack.c.bf16 %v411_v39, %v410_v38 }
  0x1b   : > { %v3337_v33 = vpack.c.bf16 %v360_v29, %v359_v28  ;;  %v3361_v45 = vpack.c.bf16 %v362_v41, %v361_v40  ;;  %v428_v46 = vld [vmem:[%s3303_s23 + $0x109] sm:$0xff]  ;;  %v429_v47 = vld [vmem:[%s3303_s23 + $0x111] sm:$0xff]  ;;  %v430_v58 = vld [vmem:[%s3303_s23 + $0x121] sm:$0xff] }
  0x1c   : > { %v379_v48 = vld [vmem:[%s3303_s23 + $0x108] sm:$0xff]  ;;  %v380_v49 = vld [vmem:[%s3303_s23 + $0x110] sm:$0xff]  ;;  %v3379_v54 = vpack.c.bf16 %v429_v47, %v428_v46  ;;  %v381_v60 = vld [vmem:[%s3303_s23 + $0x120] sm:$0xff] }
  0x1d   : > { %v412_v50 = vld [vmem:[%s3303_s23 + $0x49] sm:$0xff]  ;;  %v413_v51 = vld [vmem:[%s3303_s23 + $0x51] sm:$0xff]  ;;  %v3381_v55 = vpack.c.bf16 %v380_v49, %v379_v48  ;;  %v414_v62 = vld [vmem:[%s3303_s23 + $0x61] sm:$0xff] }
  0x1e   : > { %v363_v52 = vld [vmem:[%s3303_s23 + $0x48] sm:$0xff]  ;;  %v364_v53 = vld [vmem:[%s3303_s23 + $0x50] sm:$0xff]  ;;  %v3383_v56 = vpack.c.bf16 %v413_v51, %v412_v50  ;;  %v365_v0 = vld [vmem:[%s3303_s23 + $0x60] sm:$0xff] }
  0x1f   : > { %v3385_v57 = vpack.c.bf16 %v364_v53, %v363_v52  ;;  %v431_v59 = vld [vmem:[%s3303_s23 + $0x129] sm:$0xff]  ;;  %v432_v6 = vld [vmem:[%s3303_s23 + $0x139] sm:$0xff]  ;;  %v433_v7 = vld [vmem:[%s3303_s23 + $0x141] sm:$0xff] }
  0x20   : > { %v382_v61 = vld [vmem:[%s3303_s23 + $0x128] sm:$0xff]  ;;  %v3403_v2 = vpack.c.bf16 %v431_v59, %v430_v58  ;;  %v383_v8 = vld [vmem:[%s3303_s23 + $0x138] sm:$0xff]  ;;  %v384_v9 = vld [vmem:[%s3303_s23 + $0x140] sm:$0xff]  ;;  %v3427_v15 = vpack.c.bf16 %v433_v7, %v432_v6 }
  0x21   : > { %v415_v63 = vld [vmem:[%s3303_s23 + $0x69] sm:$0xff]  ;;  %v3405_v3 = vpack.c.bf16 %v382_v61, %v381_v60  ;;  %v416_v10 = vld [vmem:[%s3303_s23 + $0x79] sm:$0xff]  ;;  %v417_v11 = vld [vmem:[%s3303_s23 + $0x81] sm:$0xff]  ;;  %v3429_v16 = vpack.c.bf16 %v384_v9, %v383_v8 }
  0x22   : > { %v366_v1 = vld [vmem:[%s3303_s23 + $0x68] sm:$0xff]  ;;  %v3407_v4 = vpack.c.bf16 %v415_v63, %v414_v62  ;;  %v367_v12 = vld [vmem:[%s3303_s23 + $0x78] sm:$0xff]  ;;  %v368_v14 = vld [vmem:[%s3303_s23 + $0x80] sm:$0xff]  ;;  %v3431_v18 = vpack.c.bf16 %v417_v11, %v416_v10 }
  0x23   : > { %v3409_v5 = vpack.c.bf16 %v366_v1, %v365_v0  ;;  %v3433_v19 = vpack.c.bf16 %v368_v14, %v367_v12  ;;  %v434_v20 = vld [vmem:[%s3303_s23 + $0x151] sm:$0xff]  ;;  %v435_v21 = vld [vmem:[%s3303_s23 + $0x159] sm:$0xff]  ;;  %v3025_v36 = vld [vmem:[%s4344_s1 + $0xc] sm:$0x3] }
  0x24   : > { %v385_v22 = vld [vmem:[%s3303_s23 + $0x150] sm:$0xff]  ;;  %v386_v23 = vld [vmem:[%s3303_s23 + $0x158] sm:$0xff]  ;;  %v3451_v28 = vpack.c.bf16 %v435_v21, %v434_v20  ;;  %v3074_v37 = vld [vmem:[%s4344_s1 + $0xe] sm:$0x3]  ;;  %v1731_v38 = vsel %vm505_vm0, %v3025_v36, 0 }
  0x25   : > { %v418_v24 = vld [vmem:[%s3303_s23 + $0x91] sm:$0xff]  ;;  %v419_v25 = vld [vmem:[%s3303_s23 + $0x99] sm:$0xff]  ;;  %v3453_v29 = vpack.c.bf16 %v386_v23, %v385_v22  ;;  %v1953_v39 = vsel %vm505_vm0, %v3074_v37, 0  ;;  %1740 = vmatpush.bf16.msra.mxu2 %v1731_v38  ;;  %v2976_v40 = vld [vmem:[%s4344_s1 + $0xa] sm:$0x3] }
  0x26   : > { %2806 = vmatmul.msk.bf16.gmra.mxu2 %vm456_vm1, %v3331_v30  ;;  %v369_v26 = vld [vmem:[%s3303_s23 + $0x90] sm:$0xff]  ;;  %v370_v27 = vld [vmem:[%s3303_s23 + $0x98] sm:$0xff]  ;;  %v3455_v34 = vpack.c.bf16 %v419_v25, %v418_v24  ;;  %1962 = vmatpush.bf16.msra.mxu3 %v1953_v39  ;;  %v387_v48 = vld [vmem:[%s3303_s23 + $0x168] sm:$0xff]  ;;  %v1506_v49 = vsel %vm505_vm0, %v2976_v40, 0 }
  0x27   : > { %2822 = vmatmul.msk.bf16.gmra.mxu3 %vm456_vm1, %v3333_v31  ;;  %v3457_v35 = vpack.c.bf16 %v370_v27, %v369_v26  ;;  %v3123_v41 = vld [vmem:[%s4344_s1 + $0x10] sm:$0x3]  ;;  %1515 = vmatpush.bf16.msrb.mxu1 %v1506_v49  ;;  %v371_v58 = vld [vmem:[%s3303_s23 + $0xa8] sm:$0xff]  ;;  %v2944_v6 = vld [vmem:[%s3303_s23 + $0x1a] sm:$0xff] }
  0x28   : > { %2798 = vmatmul.msk.bf16.gmra.mxu0 %vm456_vm1, %v3335_v32  ;;  %v436_v46 = vld [vmem:[%s3303_s23 + $0x169] sm:$0xff]  ;;  %v437_v47 = vld [vmem:[%s3303_s23 + $0x171] sm:$0xff]  ;;  %v2175_v50 = vsel %vm505_vm0, %v3123_v41, 0  ;;  %v2947_v27 = vld [vmem:[%s3303_s23 + $0x3a] sm:$0xff] }
  0x29   : > { %2814 = vmatmul.msk.bf16.gmra.mxu1 %vm456_vm1, %v3337_v33  ;;  %v388_v51 = vld [vmem:[%s3303_s23 + $0x170] sm:$0xff]  ;;  %2184 = vmatpush.bf16.msra.mxu0 %v2175_v50  ;;  %v3491_v60 = vpack.c.bf16 %v437_v47, %v436_v46  ;;  %v738_v0 = vld [vmem:[%s3303_s23 + $0x2] sm:$0xff] }
  0x2a   : > { %v420_v52 = vld [vmem:[%s3303_s23 + $0xa9] sm:$0xff]  ;;  %v421_v53 = vld [vmem:[%s3303_s23 + $0xb1] sm:$0xff]  ;;  %v3493_v61 = vpack.c.bf16 %v388_v51, %v387_v48 }
  0x2b   : > { %v372_v59 = vld [vmem:[%s3303_s23 + $0xb0] sm:$0xff]  ;;  %v3495_v62 = vpack.c.bf16 %v421_v53, %v420_v52  ;;  %v2945_v7 = vld [vmem:[%s3303_s23 + $0x22] sm:$0xff] }
  0x2c   : > { %v3497_v63 = vpack.c.bf16 %v372_v59, %v371_v58  ;;  %v739_v1 = vld [vmem:[%s3303_s23 + $0xa] sm:$0xff]  ;;  %v1439_v10 = vpack.c.bf16 %v2945_v7, %v2944_v6  ;;  %v2946_v26 = vld [vmem:[%s3303_s23 + $0x32] sm:$0xff] }
  0x2d   : > { %v770_v8 = vpack.c.bf16 %v739_v1, %v738_v0  ;;  %v2948_v51 = vld [vmem:[%s3303_s23 + $0x4a] sm:$0xff]  ;;  %v2949_v52 = vld [vmem:[%s3303_s23 + $0x52] sm:$0xff] }
  0x36   : > { %2807 = vmatmul.msk.bf16.gmra.mxu2 %vm456_vm1, %v3355_v42 }
  0x37   : > { %2823 = vmatmul.msk.bf16.gmra.mxu3 %vm456_vm1, %v3357_v43 }
  0x38   : > { %2799 = vmatmul.msk.bf16.gmra.mxu0 %vm456_vm1, %v3359_v44 }
  0x39   : > { %2815 = vmatmul.msk.bf16.gmra.mxu1 %vm456_vm1, %v3361_v45 }
  0x46   : > { %2808 = vmatmul.msk.bf16.gmra.mxu2 %vm456_vm1, %v3379_v54 }
  0x47   : > { %2824 = vmatmul.msk.bf16.gmra.mxu3 %vm456_vm1, %v3381_v55 }
  0x48   : > { %2800 = vmatmul.msk.bf16.gmra.mxu0 %vm456_vm1, %v3383_v56 }
  0x49   : > { %2816 = vmatmul.msk.bf16.gmra.mxu1 %vm456_vm1, %v3385_v57 }
  0x56   : > { %2809 = vmatmul.msk.bf16.gmra.mxu2 %vm456_vm1, %v3403_v2 }
  0x57   : > { %2825 = vmatmul.msk.bf16.gmra.mxu3 %vm456_vm1, %v3405_v3 }
  0x58   : > { %2801 = vmatmul.msk.bf16.gmra.mxu0 %vm456_vm1, %v3407_v4 }
  0x59   : > { %2817 = vmatmul.msk.bf16.gmra.mxu1 %vm456_vm1, %v3409_v5 }
  0x66   : > { %2810 = vmatmul.msk.bf16.gmra.mxu2 %vm456_vm1, %v3427_v15 }
  0x67   : > { %2826 = vmatmul.msk.bf16.gmra.mxu3 %vm456_vm1, %v3429_v16 }
  0x68   : > { %2802 = vmatmul.msk.bf16.gmra.mxu0 %vm456_vm1, %v3431_v18 }
  0x69   : > { %2818 = vmatmul.msk.bf16.gmra.mxu1 %vm456_vm1, %v3433_v19 }
  0x76   : > { %2811 = vmatmul.msk.bf16.gmra.mxu2 %vm456_vm1, %v3451_v28 }
  0x77   : > { %2827 = vmatmul.msk.bf16.gmra.mxu3 %vm456_vm1, %v3453_v29 }
  0x78   : > { %2803 = vmatmul.msk.bf16.gmra.mxu0 %vm456_vm1, %v3455_v34 }
  0x79   : > { %2819 = vmatmul.msk.bf16.gmra.mxu1 %vm456_vm1, %v3457_v35 }
  0x86   : > { %2812 = vmatmul.msk.bf16.gmra.mxu2 %vm456_vm1, %v3491_v60 }
  0x87   : > { %2828 = vmatmul.msk.bf16.gmra.mxu3 %vm456_vm1, %v3493_v61 }
  0x88   : > { %2804 = vmatmul.msk.bf16.gmra.mxu0 %vm456_vm1, %v3495_v62 }
  0x89   : > { %2820 = vmatmul.msk.bf16.gmra.mxu1 %vm456_vm1, %v3497_v63 }
  0x95   : > { %v518_v9 = vpop.f32.mrf.mxu0 }
  0x96   : > { %v658_v11 = vpop.f32.mrf.mxu1  ;;  %2830 = vmatmul.msk.bf16.vlgmr.msrb.gmra.mxu2 %vm456_vm1, %v770_v8 }
  0x97   : > { %v3511_v12 = vadd.f32 %v658_v11, %v518_v9  ;;  %2879 = vmatmul.msk.bf16.vlgmr.msrb.gmra.mxu3 %vm456_vm1, %v3337_v33 }
  0x98   : > { %2928 = vmatmul.msk.bf16.vlgmr.msrb.gmra.mxu0 %vm456_vm1, %v3335_v32  ;;  %v3527_v32 = vpack.c.bf16 %v2947_v27, %v2946_v26 }
  0x99   : > { %2977 = vmatmul.msk.bf16.vlgmr.msrb.gmra.mxu1 %vm456_vm1, %v1439_v10  ;;  %v558_v14 = vpop.f32.mrf.mxu2 }
  0x9a   : > { %v698_v20 = vpop.f32.mrf.mxu3 }
  0x9b   : > { %v3519_v21 = vadd.f32 %v698_v20, %v558_v14  ;;  %v2950_v14 = vld [vmem:[%s3303_s23 + $0x62] sm:$0xff]  ;;  %v2951_v20 = vld [vmem:[%s3303_s23 + $0x6a] sm:$0xff] }
  0x9d   : > { %v520_v22 = vpop.f32.mrf.mxu0 }
  0x9e   : > { %v660_v23 = vpop.f32.mrf.mxu1 }
  0x9f   : > { %v3521_v24 = vadd.f32 %v660_v23, %v520_v22 }
  0xa1   : > { %v560_v25 = vpop.f32.mrf.mxu2 }
  0xa2   : > { %v700_v36 = vpop.f32.mrf.mxu3 }
  0xa3   : > { %v3525_v37 = vadd.f32 %v700_v36, %v560_v25 }
  0xa5   : > { %v523_v33 = vpop.f32.mrf.mxu0 }
  0xa6   : > { %v663_v38 = vpop.f32.mrf.mxu1  ;;  %2831 = vmatmul.msk.bf16.gmra.mxu2 %vm456_vm1, %v1439_v10 }
  0xa7   : > { %v3529_v39 = vadd.f32 %v663_v38, %v523_v33  ;;  %2880 = vmatmul.msk.bf16.gmra.mxu3 %vm456_vm1, %v3361_v45 }
  0xa8   : > { %2929 = vmatmul.msk.bf16.gmra.mxu0 %vm456_vm1, %v3359_v44  ;;  %v3546_v44 = vpack.c.bf16 %v2949_v52, %v2948_v51 }
  0xa9   : > { %2978 = vmatmul.msk.bf16.gmra.mxu1 %vm456_vm1, %v3527_v32  ;;  %v563_v40 = vpop.f32.mrf.mxu2 }
  0xaa   : > { %v703_v41 = vpop.f32.mrf.mxu3 }
  0xab   : > { %v3538_v46 = vadd.f32 %v703_v41, %v563_v40 }
  0xad   : > { %v525_v47 = vpop.f32.mrf.mxu0 }
  0xae   : > { %v665_v48 = vpop.f32.mrf.mxu1 }
  0xaf   : > { %v3540_v49 = vadd.f32 %v665_v48, %v525_v47  ;;  %v2952_v48 = vld [vmem:[%s3303_s23 + $0x7a] sm:$0xff] }
  0xb1   : > { %v565_v50 = vpop.f32.mrf.mxu2 }
  0xb2   : > { %v705_v53 = vpop.f32.mrf.mxu3 }
  0xb3   : > { %v3544_v58 = vadd.f32 %v705_v53, %v565_v50  ;;  %v2953_v50 = vld [vmem:[%s3303_s23 + $0x82] sm:$0xff] }
  0xb5   : > { %v528_v45 = vpop.f32.mrf.mxu0 }
  0xb6   : > { %v668_v59 = vpop.f32.mrf.mxu1  ;;  %2832 = vmatmul.msk.bf16.gmra.mxu2 %vm456_vm1, %v3527_v32 }
  0xb7   : > { %v3548_v0 = vadd.f32 %v668_v59, %v528_v45  ;;  %2881 = vmatmul.msk.bf16.gmra.mxu3 %vm456_vm1, %v3385_v57 }
  0xb8   : > { %2930 = vmatmul.msk.bf16.gmra.mxu0 %vm456_vm1, %v3383_v56  ;;  %v3566_v56 = vpack.c.bf16 %v2951_v20, %v2950_v14  ;;  %v2954_v20 = vld [vmem:[%s3303_s23 + $0x92] sm:$0xff] }
  0xb9   : > { %2979 = vmatmul.msk.bf16.gmra.mxu1 %vm456_vm1, %v3546_v44  ;;  %v568_v1 = vpop.f32.mrf.mxu2 }
  0xba   : > { %v708_v6 = vpop.f32.mrf.mxu3 }
  0xbb   : > { %v3558_v7 = vadd.f32 %v708_v6, %v568_v1 }
  0xbd   : > { %v530_v8 = vpop.f32.mrf.mxu0 }
  0xbe   : > { %v670_v9 = vpop.f32.mrf.mxu1 }
  0xbf   : > { %v3560_v10 = vadd.f32 %v670_v9, %v530_v8 }
  0xc1   : > { %v570_v11 = vpop.f32.mrf.mxu2 }
  0xc2   : > { %v710_v22 = vpop.f32.mrf.mxu3 }
  0xc3   : > { %v3564_v23 = vadd.f32 %v710_v22, %v570_v11  ;;  %v2955_v22 = vld [vmem:[%s3303_s23 + $0x9a] sm:$0xff] }
  0xc5   : > { %v533_v57 = vpop.f32.mrf.mxu0 }
  0xc6   : > { %v673_v25 = vpop.f32.mrf.mxu1  ;;  %2833 = vmatmul.msk.bf16.gmra.mxu2 %vm456_vm1, %v3546_v44 }
  0xc7   : > { %v3568_v26 = vadd.f32 %v673_v25, %v533_v57  ;;  %2882 = vmatmul.msk.bf16.gmra.mxu3 %vm456_vm1, %v3409_v5 }
  0xc8   : > { %2931 = vmatmul.msk.bf16.gmra.mxu0 %vm456_vm1, %v3407_v4  ;;  %v3586_v4 = vpack.c.bf16 %v2953_v50, %v2952_v48 }
  0xc9   : > { %2980 = vmatmul.msk.bf16.gmra.mxu1 %vm456_vm1, %v3566_v56  ;;  %v573_v27 = vpop.f32.mrf.mxu2 }
  0xca   : > { %v713_v36 = vpop.f32.mrf.mxu3 }
  0xcb   : > { %v3578_v33 = vadd.f32 %v713_v36, %v573_v27 }
  0xcd   : > { %v535_v38 = vpop.f32.mrf.mxu0 }
  0xce   : > { %v675_v40 = vpop.f32.mrf.mxu1 }
  0xcf   : > { %v3580_v41 = vadd.f32 %v675_v40, %v535_v38 }
  0xd1   : > { %v575_v47 = vpop.f32.mrf.mxu2 }
  0xd2   : > { %v715_v51 = vpop.f32.mrf.mxu3 }
  0xd3   : > { %v3584_v52 = vadd.f32 %v715_v51, %v575_v47 }
  0xd5   : > { %v538_v5 = vpop.f32.mrf.mxu0 }
  0xd6   : > { %v678_v53 = vpop.f32.mrf.mxu1  ;;  %2834 = vmatmul.msk.bf16.gmra.mxu2 %vm456_vm1, %v3566_v56 }
  0xd7   : > { %v3588_v45 = vadd.f32 %v678_v53, %v538_v5  ;;  %2883 = vmatmul.msk.bf16.gmra.mxu3 %vm456_vm1, %v3433_v19  ;;  %v2956_v53 = vld [vmem:[%s3303_s23 + $0xaa] sm:$0xff] }
  0xd8   : > { %2932 = vmatmul.msk.bf16.gmra.mxu0 %vm456_vm1, %v3431_v18  ;;  %v3606_v18 = vpack.c.bf16 %v2955_v22, %v2954_v20 }
  0xd9   : > { %2981 = vmatmul.msk.bf16.gmra.mxu1 %vm456_vm1, %v3586_v4  ;;  %v578_v59 = vpop.f32.mrf.mxu2 }
  0xda   : > { %v718_v1 = vpop.f32.mrf.mxu3 }
  0xdb   : > { %v3598_v6 = vadd.f32 %v718_v1, %v578_v59  ;;  %v2957_v59 = vld [vmem:[%s3303_s23 + $0xb2] sm:$0xff] }
  0xdd   : > { %v540_v8 = vpop.f32.mrf.mxu0 }
  0xde   : > { %v680_v9 = vpop.f32.mrf.mxu1 }
  0xdf   : > { %v3600_v11 = vadd.f32 %v680_v9, %v540_v8 }
  0xe1   : > { %v580_v14 = vpop.f32.mrf.mxu2 }
  0xe2   : > { %v720_v57 = vpop.f32.mrf.mxu3 }
  0xe3   : > { %v3604_v25 = vadd.f32 %v720_v57, %v580_v14 }
  0xe5   : > { %v543_v19 = vpop.f32.mrf.mxu0 }
  0xe6   : > { %v683_v27 = vpop.f32.mrf.mxu1  ;;  %2835 = vmatmul.msk.bf16.gmra.mxu2 %vm456_vm1, %v3586_v4 }
  0xe7   : > { %v3608_v36 = vadd.f32 %v683_v27, %v543_v19  ;;  %2884 = vmatmul.msk.bf16.gmra.mxu3 %vm456_vm1, %v3457_v35 }
  0xe8   : > { %2933 = vmatmul.msk.bf16.gmra.mxu0 %vm456_vm1, %v3455_v34  ;;  %v3626_v34 = vpack.c.bf16 %v2957_v59, %v2956_v53 }
  0xe9   : > { %2982 = vmatmul.msk.bf16.gmra.mxu1 %vm456_vm1, %v3606_v18  ;;  %v583_v38 = vpop.f32.mrf.mxu2 }
  0xea   : > { %v723_v40 = vpop.f32.mrf.mxu3 }
  0xeb   : > { %v3618_v47 = vadd.f32 %v723_v40, %v583_v38 }
  0xed   : > { %4353 = vst [vmem:[#allocation2_spill] sm:$0xff] %v3618_v47  ;;  %v545_v48 = vpop.f32.mrf.mxu0 }
  0xee   : > { %v685_v50 = vpop.f32.mrf.mxu1 }
  0xef   : > { %v3620_v51 = vadd.f32 %v685_v50, %v545_v48  ;;  %v2958_v48 = vld [vmem:[%s3303_s23 + $0xc2] sm:$0xff]  ;;  %v2959_v50 = vld [vmem:[%s3303_s23 + $0xca] sm:$0xff] }
  0xf1   : > { %v585_v5 = vpop.f32.mrf.mxu2 }
  0xf2   : > { %v725_v1 = vpop.f32.mrf.mxu3 }
  0xf3   : > { %v3624_v8 = vadd.f32 %v725_v1, %v585_v5 }
  0xf5   : > { %4354 = vst [vmem:[#allocation3_spill] sm:$0xff] %v3624_v8  ;;  %v548_v35 = vpop.f32.mrf.mxu0 }
  0xf6   : > { %v688_v9 = vpop.f32.mrf.mxu1  ;;  %2836 = vmatmul.msk.bf16.gmra.mxu2 %vm456_vm1, %v3606_v18 }
  0xf7   : > { %v3628_v14 = vadd.f32 %v688_v9, %v548_v35  ;;  %2885 = vmatmul.msk.bf16.gmra.mxu3 %vm456_vm1, %v3497_v63 }
  0xf8   : > { %2934 = vmatmul.msk.bf16.gmra.mxu0 %vm456_vm1, %v3495_v62  ;;  %v3646_v62 = vpack.c.bf16 %v2959_v50, %v2958_v48  ;;  %v2960_v48 = vld [vmem:[%s3303_s23 + $0xda] sm:$0xff]  ;;  %v2961_v50 = vld [vmem:[%s3303_s23 + $0xe2] sm:$0xff] }
  0xf9   : > { %2983 = vmatmul.msk.bf16.gmra.mxu1 %vm456_vm1, %v3626_v34  ;;  %v588_v20 = vpop.f32.mrf.mxu2 }
  0xfa   : > { %v728_v22 = vpop.f32.mrf.mxu3  ;;  %4357 = vst [vmem:[#allocation6_spill] sm:$0xff] %v3646_v62 }
  0xfb   : > { %v3638_v57 = vadd.f32 %v728_v22, %v588_v20 }
  0xfd   : > { %4355 = vst [vmem:[#allocation4_spill] sm:$0xff] %v3638_v57  ;;  %v550_v19 = vpop.f32.mrf.mxu0 }
  0xfe   : > { %v690_v27 = vpop.f32.mrf.mxu1 }
  0xff   : > { %v3640_v38 = vadd.f32 %v690_v27, %v550_v19 }
 0x101   : > { %v590_v40 = vpop.f32.mrf.mxu2 }
 0x102   : > { %v730_v5 = vpop.f32.mrf.mxu3 }
 0x103   : > { %v3644_v53 = vadd.f32 %v730_v5, %v590_v40 }
 0x105   : > { %4356 = vst [vmem:[#allocation5_spill] sm:$0xff] %v3644_v53  ;;  %v553_v63 = vpop.f32.mrf.mxu0 }
 0x106   : > { %v693_v59 = vpop.f32.mrf.mxu1  ;;  %2837 = vmatmul.msk.bf16.gmra.mxu2 %vm456_vm1, %v3626_v34 }
 0x107   : > { %v3648_v1 = vadd.f32 %v693_v59, %v553_v63  ;;  %2886 = vmatmul.msk.bf16.gmra.mxu3 %vm456_vm1, %v3313_v17  ;;  %v3666_v59 = vpack.c.bf16 %v2961_v50, %v2960_v48 }
 0x108   : > { %2935 = vmatmul.msk.bf16.gmra.mxu0 %vm456_vm1, %v3308_v13  ;;  %v2454_v13 = vld [vmem:[%s4348_s5] sm:$0x3] }
 0x109   : > { %2984 = vmatmul.msk.bf16.gmra.mxu1 %vm456_vm1, %v3646_v62  ;;  %v593_v35 = vpop.f32.mrf.mxu2 }
 0x10a   : > { %v733_v9 = vpop.f32.mrf.mxu3 }
 0x10b   : > { %v3658_v20 = vadd.f32 %v733_v9, %v593_v35  ;;  %v2508_v35 = vsel %vm505_vm0, %v2454_v13, 0 }
 0x10c   : > { %2517 = vmatpush.bf16.msra.mxu1 %v2508_v35 }
 0x10d   : > { %4358 = vst [vmem:[#allocation7_spill] sm:$0xff] %v3658_v20  ;;  %v555_v22 = vpop.f32.mrf.mxu0  ;;  %v2963_v20 = vld [vmem:[%s3303_s23 + $0xfa] sm:$0xff] }
 0x10e   : > { %v695_v19 = vpop.f32.mrf.mxu1 }
 0x10f   : > { %v3660_v27 = vadd.f32 %v695_v19, %v555_v22 }
 0x111   : > { %v595_v40 = vpop.f32.mrf.mxu2 }
 0x112   : > { %v735_v5 = vpop.f32.mrf.mxu3 }
 0x113   : > { %v3664_v63 = vadd.f32 %v735_v5, %v595_v40 }
 0x115   : > { %4359 = vst [vmem:[#allocation8_spill] sm:$0xff] %v3664_v63  ;;  %v1295_v17 = vpop.f32.mrf.mxu0  ;;  %v2962_v63 = vld [vmem:[%s3303_s23 + $0xf2] sm:$0xff] }
 0x116   : > { %v1517_v53 = vpop.f32.mrf.mxu1  ;;  %2838 = vmatmul.msk.bf16.gmra.mxu2 %vm456_vm1, %v3646_v62  ;;  %v3686_v8 = vpack.c.bf16 %v2963_v20, %v2962_v63 }
 0x117   : > { %2887 = vmatmul.msk.bf16.gmra.mxu3 %vm456_vm1, %v3333_v31 }
 0x118   : > { %2936 = vmatmul.msk.bf16.gmra.mxu0 %vm456_vm1, %v3331_v30 }
 0x119   : > { %2985 = vmatmul.msk.bf16.gmra.mxu1 %vm456_vm1, %v3666_v59  ;;  %v848_v9 = vpop.f32.mrf.mxu2 }
 0x11a   : > { %v928_v22 = vadd.f32 %v848_v9, %v3511_v12  ;;  %v1073_v19 = vpop.f32.mrf.mxu3 }
 0x11c   : > { %v1153_v40 = vadd.f32 %v1073_v19, %v928_v22 }
 0x11d   : > { %v1297_v48 = vpop.f32.mrf.mxu0 }
 0x11e   : > { %v1519_v50 = vpop.f32.mrf.mxu1  ;;  %v1375_v5 = vadd.f32 %v1295_v17, %v1153_v40 }
 0x120   : > { %v3681_v13 = vadd.f32 %v1517_v53, %v1375_v5 }
 0x121   : > { %v850_v35 = vpop.f32.mrf.mxu2 }
 0x122   : > { %v929_v31 = vadd.f32 %v850_v35, %v3521_v24  ;;  %v1075_v57 = vpop.f32.mrf.mxu3 }
 0x124   : > { %v1154_v30 = vadd.f32 %v1075_v57, %v929_v31 }
 0x125   : > { %v1300_v62 = vpop.f32.mrf.mxu0 }
 0x126   : > { %v1522_v47 = vpop.f32.mrf.mxu1  ;;  %2839 = vmatmul.msk.bf16.gmra.mxu2 %vm456_vm1, %v3666_v59  ;;  %v1376_v12 = vadd.f32 %v1297_v48, %v1154_v30  ;;  %v2965_v48 = vld [vmem:[%s3303_s23 + $0x112] sm:$0xff] }
 0x127   : > { %2888 = vmatmul.msk.bf16.gmra.mxu3 %vm456_vm1, %v3357_v43  ;;  %v2964_v43 = vld [vmem:[%s3303_s23 + $0x10a] sm:$0xff] }
 0x128   : > { %2937 = vmatmul.msk.bf16.gmra.mxu0 %vm456_vm1, %v3355_v42  ;;  %v3694_v53 = vadd.f32 %v1519_v50, %v1376_v12  ;;  %v3704_v31 = vpack.c.bf16 %v2965_v48, %v2964_v43 }
 0x129   : > { %2986 = vmatmul.msk.bf16.gmra.mxu1 %vm456_vm1, %v3686_v8  ;;  %v853_v24 = vpop.f32.mrf.mxu2 }
 0x12a   : > { %v930_v57 = vadd.f32 %v853_v24, %v3529_v39  ;;  %v1078_v20 = vpop.f32.mrf.mxu3 }
 0x12c   : > { %v1155_v63 = vadd.f32 %v1078_v20, %v930_v57 }
 0x12d   : > { %v1302_v17 = vpop.f32.mrf.mxu0 }
 0x12e   : > { %v1524_v9 = vpop.f32.mrf.mxu1  ;;  %v1377_v22 = vadd.f32 %v1300_v62, %v1155_v63 }
 0x130   : > { %v3699_v19 = vadd.f32 %v1522_v47, %v1377_v22 }
 0x131   : > { %v855_v40 = vpop.f32.mrf.mxu2 }
 0x132   : > { %v931_v42 = vadd.f32 %v855_v40, %v3540_v49  ;;  %v1080_v50 = vpop.f32.mrf.mxu3  ;;  %v2967_v40 = vld [vmem:[%s3303_s23 + $0x12a] sm:$0xff] }
 0x134   : > { %v1156_v5 = vadd.f32 %v1080_v50, %v931_v42 }
 0x135   : > { %v1305_v35 = vpop.f32.mrf.mxu0 }
 0x136   : > { %v1527_v30 = vpop.f32.mrf.mxu1  ;;  %2840 = vmatmul.msk.bf16.gmra.mxu2 %vm456_vm1, %v3686_v8  ;;  %v1378_v39 = vadd.f32 %v1302_v17, %v1156_v5 }
 0x137   : > { %2889 = vmatmul.msk.bf16.gmra.mxu3 %vm456_vm1, %v3381_v55  ;;  %v2966_v55 = vld [vmem:[%s3303_s23 + $0x122] sm:$0xff] }
 0x138   : > { %2938 = vmatmul.msk.bf16.gmra.mxu0 %vm456_vm1, %v3379_v54  ;;  %v3712_v47 = vadd.f32 %v1524_v9, %v1378_v39  ;;  %v3722_v42 = vpack.c.bf16 %v2967_v40, %v2966_v55 }
 0x139   : > { %2987 = vmatmul.msk.bf16.gmra.mxu1 %vm456_vm1, %v3704_v31  ;;  %v858_v49 = vpop.f32.mrf.mxu2 }
 0x13a   : > { %v932_v62 = vadd.f32 %v858_v49, %v3548_v0  ;;  %v1083_v12 = vpop.f32.mrf.mxu3 }
 0x13c   : > { %v1157_v24 = vadd.f32 %v1083_v12, %v932_v62 }
 0x13d   : > { %v1307_v57 = vpop.f32.mrf.mxu0 }
 0x13e   : > { %v1529_v20 = vpop.f32.mrf.mxu1  ;;  %v1379_v63 = vadd.f32 %v1305_v35, %v1157_v24 }
 0x140   : > { %v3717_v17 = vadd.f32 %v1527_v30, %v1379_v63  ;;  %v2969_v63 = vld [vmem:[%s3303_s23 + $0x142] sm:$0xff] }
 0x141   : > { %v860_v22 = vpop.f32.mrf.mxu2 }
 0x142   : > { %v933_v54 = vadd.f32 %v860_v22, %v3560_v10  ;;  %v1085_v9 = vpop.f32.mrf.mxu3 }
 0x144   : > { %v1158_v43 = vadd.f32 %v1085_v9, %v933_v54 }
 0x145   : > { %v1310_v48 = vpop.f32.mrf.mxu0 }
 0x146   : > { %v1532_v50 = vpop.f32.mrf.mxu1  ;;  %2841 = vmatmul.msk.bf16.gmra.mxu2 %vm456_vm1, %v3704_v31  ;;  %v1380_v0 = vadd.f32 %v1307_v57, %v1158_v43 }
 0x147   : > { %2890 = vmatmul.msk.bf16.gmra.mxu3 %vm456_vm1, %v3405_v3  ;;  %v2968_v3 = vld [vmem:[%s3303_s23 + $0x13a] sm:$0xff] }
 0x148   : > { %2939 = vmatmul.msk.bf16.gmra.mxu0 %vm456_vm1, %v3403_v2  ;;  %v3730_v5 = vadd.f32 %v1529_v20, %v1380_v0  ;;  %v3740_v40 = vpack.c.bf16 %v2969_v63, %v2968_v3 }
 0x149   : > { %2988 = vmatmul.msk.bf16.gmra.mxu1 %vm456_vm1, %v3722_v42  ;;  %v863_v10 = vpop.f32.mrf.mxu2 }
 0x14a   : > { %v934_v35 = vadd.f32 %v863_v10, %v3568_v26  ;;  %v1088_v30 = vpop.f32.mrf.mxu3 }
 0x14c   : > { %v1159_v39 = vadd.f32 %v1088_v30, %v934_v35 }
 0x14d   : > { %v1312_v49 = vpop.f32.mrf.mxu0 }
 0x14e   : > { %v1534_v62 = vpop.f32.mrf.mxu1  ;;  %v1381_v12 = vadd.f32 %v1310_v48, %v1159_v39  ;;  %v2970_v39 = vld [vmem:[%s3303_s23 + $0x152] sm:$0xff] }
 0x150   : > { %v3735_v24 = vadd.f32 %v1532_v50, %v1381_v12 }
 0x151   : > { %v865_v57 = vpop.f32.mrf.mxu2 }
 0x152   : > { %v935_v2 = vadd.f32 %v865_v57, %v3580_v41  ;;  %v1090_v20 = vpop.f32.mrf.mxu3 }
 0x154   : > { %v1160_v22 = vadd.f32 %v1090_v20, %v935_v2 }
 0x155   : > { %v1315_v55 = vpop.f32.mrf.mxu0 }
 0x156   : > { %v1537_v54 = vpop.f32.mrf.mxu1  ;;  %2842 = vmatmul.msk.bf16.gmra.mxu2 %vm456_vm1, %v3722_v42  ;;  %v1382_v26 = vadd.f32 %v1312_v49, %v1160_v22  ;;  %v2971_v49 = vld [vmem:[%s3303_s23 + $0x15a] sm:$0xff] }
 0x157   : > { %2891 = vmatmul.msk.bf16.gmra.mxu3 %vm456_vm1, %v3429_v16  ;;  %v3760_v3 = vpack.c.bf16 %v2971_v49, %v2970_v39 }
 0x158   : > { %2940 = vmatmul.msk.bf16.gmra.mxu0 %vm456_vm1, %v3427_v15  ;;  %v3748_v9 = vadd.f32 %v1534_v62, %v1382_v26 }
 0x159   : > { %2989 = vmatmul.msk.bf16.gmra.mxu1 %vm456_vm1, %v3740_v40  ;;  %v868_v41 = vpop.f32.mrf.mxu2 }
 0x15a   : > { %v936_v43 = vadd.f32 %v868_v41, %v3588_v45  ;;  %v1093_v48 = vpop.f32.mrf.mxu3 }
 0x15c   : > { %v1161_v50 = vadd.f32 %v1093_v48, %v936_v43  ;;  %v2972_v48 = vld [vmem:[%s3303_s23 + $0x16a] sm:$0xff] }
 0x15d   : > { %v1317_v0 = vpop.f32.mrf.mxu0 }
 0x15e   : > { %v3753_v10 = vpop.f32.mrf.mxu1  ;;  %v1383_v35 = vadd.f32 %v1315_v55, %v1161_v50 }
 0x160   : > { %v3755_v30 = vadd.f32 %v1537_v54, %v1383_v35 }
 0x161   : > { %v870_v16 = vpop.f32.mrf.mxu2 }
 0x162   : > { %v937_v15 = vadd.f32 %v870_v16, %v3600_v11  ;;  %v1095_v62 = vpop.f32.mrf.mxu3 }
 0x164   : > { %v1162_v12 = vadd.f32 %v1095_v62, %v937_v15 }
 0x165   : > { %v1320_v57 = vpop.f32.mrf.mxu0 }
 0x166   : > { %v1542_v45 = vpop.f32.mrf.mxu1  ;;  %2843 = vmatmul.msk.bf16.gmra.mxu2 %vm456_vm1, %v3740_v40  ;;  %v3764_v63 = vadd.f32 %v1317_v0, %v1162_v12 }
 0x167   : > { %2892 = vmatmul.msk.bf16.gmra.mxu3 %vm456_vm1, %v3453_v29  ;;  %v2973_v29 = vld [vmem:[%s3303_s23 + $0x172] sm:$0xff] }
 0x168   : > { %2941 = vmatmul.msk.bf16.gmra.mxu0 %vm456_vm1, %v3451_v28  ;;  %v3780_v16 = vpack.c.bf16 %v2973_v29, %v2972_v48 }
 0x169   : > { %2990 = vmatmul.msk.bf16.gmra.mxu1 %vm456_vm1, %v3760_v3  ;;  %v873_v11 = vpop.f32.mrf.mxu2 }
 0x16a   : > { %v938_v2 = vadd.f32 %v873_v11, %v3608_v36  ;;  %v1098_v20 = vpop.f32.mrf.mxu3  ;;  %v2876_v11 = vld [vmem:[%s3303_s23 + $0x180] sm:$0xff] }
 0x16c   : > { %v1163_v22 = vadd.f32 %v1098_v20, %v938_v2  ;;  %v2925_v20 = vld [vmem:[%s3303_s23 + $0x181] sm:$0xff] }
 0x16d   : > { %v1322_v55 = vpop.f32.mrf.mxu0 }
 0x16e   : > { %v3773_v54 = vpop.f32.mrf.mxu1  ;;  %v1385_v26 = vadd.f32 %v1320_v57, %v1163_v22  ;;  %v2926_v22 = vld [vmem:[%s3303_s23 + $0x189] sm:$0xff] }
 0x170   : > { %v3775_v41 = vadd.f32 %v1542_v45, %v1385_v26  ;;  %v2975_v26 = vld [vmem:[%s3303_s23 + $0x18a] sm:$0xff] }
 0x171   : > { %v875_v43 = vpop.f32.mrf.mxu2 }
 0x172   : > { %v939_v50 = vadd.f32 %v875_v43, %v3620_v51  ;;  %v1100_v28 = vpop.f32.mrf.mxu3 }
 0x174   : > { %v1164_v0 = vadd.f32 %v1100_v28, %v939_v50 }
 0x175   : > { %v1325_v35 = vpop.f32.mrf.mxu0 }
 0x176   : > { %v1547_v36 = vpop.f32.mrf.mxu1  ;;  %2844 = vmatmul.msk.bf16.gmra.mxu2 %vm456_vm1, %v3760_v3  ;;  %v3784_v39 = vadd.f32 %v1322_v55, %v1164_v0  ;;  %v2974_v55 = vld [vmem:[%s3303_s23 + $0x182] sm:$0xff] }
 0x177   : > { %2893 = vmatmul.msk.bf16.gmra.mxu3 %vm456_vm1, %v3493_v61  ;;  %v2877_v61 = vld [vmem:[%s3303_s23 + $0x188] sm:$0xff]  ;;  %v3808_v0 = vpack.c.bf16 %v2975_v26, %v2974_v55 }
 0x178   : > { %2942 = vmatmul.msk.bf16.gmra.mxu0 %vm456_vm1, %v3491_v60  ;;  %v3804_v29 = vpack.c.bf16 %v2877_v61, %v2876_v11  ;;  %v2994_v61 = vld [vmem:[%s3303_s23 + $0x38] sm:$0xff] }
 0x179   : > { %2991 = vmatmul.msk.bf16.gmra.mxu1 %vm456_vm1, %v3780_v16  ;;  %v878_v51 = vpop.f32.mrf.mxu2 }
 0x17a   : > { %v940_v49 = vadd.f32 %v878_v51, %v3628_v14  ;;  %v1103_v15 = vpop.f32.mrf.mxu3  ;;  %v3806_v14 = vpack.c.bf16 %v2926_v22, %v2925_v20  ;;  %v3042_v22 = vld [vmem:[%s3303_s23 + $0x31] sm:$0xff] }
 0x17c   : > { %v1165_v62 = vadd.f32 %v1103_v15, %v940_v49 }
 0x17d   : > { %v1327_v12 = vpop.f32.mrf.mxu0 }
 0x17e   : > { %v3793_v57 = vpop.f32.mrf.mxu1  ;;  %v1387_v45 = vadd.f32 %v1325_v35, %v1165_v62 }
 0x180   : > { %v3796_v2 = vadd.f32 %v1547_v36, %v1387_v45 }
 0x181   : > { %v880_v60 = vpop.f32.mrf.mxu2 }
 0x182   : > { %v941_v43 = vadd.f32 %v880_v60, %v3640_v38  ;;  %v1105_v48 = vpop.f32.mrf.mxu3  ;;  %v3043_v60 = vld [vmem:[%s3303_s23 + $0x39] sm:$0xff] }
 0x184   : > { %v1166_v50 = vadd.f32 %v1105_v48, %v941_v43 }
 0x185   : > { %v1330_v28 = vpop.f32.mrf.mxu0 }
 0x186   : > { %v1552_v35 = vpop.f32.mrf.mxu1  ;;  %2845 = vmatmul.msk.bf16.gmra.mxu2 %vm456_vm1, %v3780_v16  ;;  %v3812_v36 = vadd.f32 %v1327_v12, %v1166_v50  ;;  %v2993_v12 = vld [vmem:[%s3303_s23 + $0x30] sm:$0xff]  ;;  %v1886_v50 = vpack.c.bf16 %v3043_v60, %v3042_v22  ;;  %v2995_v22 = vld [vmem:[%s3303_s23 + $0x48] sm:$0xff] }
 0x187   : > { %2894 = vmatmul.msk.bf16.gmra.mxu3 %vm456_vm1, %v3804_v29  ;;  %v1664_v48 = vpack.c.bf16 %v2994_v61, %v2993_v12  ;;  %v2996_v60 = vld [vmem:[%s3303_s23 + $0x50] sm:$0xff] }
 0x188   : > { %2943 = vmatmul.msk.bf16.gmra.mxu0 %vm456_vm1, %v3806_v14 }
 0x189   : > { %2992 = vmatmul.msk.bf16.gmra.mxu1 %vm456_vm1, %v3808_v0  ;;  %v883_v38 = vpop.f32.mrf.mxu2 }
 0x18a   : > { %v942_v51 = vadd.f32 %v883_v38, %v3648_v1  ;;  %v1108_v49 = vpop.f32.mrf.mxu3 }
 0x18c   : > { %v1167_v15 = vadd.f32 %v1108_v49, %v942_v51 }
 0x18d   : > { %v1332_v62 = vpop.f32.mrf.mxu0 }
 0x18e   : > { %v3821_v45 = vpop.f32.mrf.mxu1  ;;  %v1389_v11 = vadd.f32 %v1330_v28, %v1167_v15 }
 0x190   : > { %v3825_v20 = vadd.f32 %v1552_v35, %v1389_v11 }
 0x191   : > { %v885_v55 = vpop.f32.mrf.mxu2 }
 0x192   : > { %v943_v26 = vadd.f32 %v885_v55, %v3660_v27  ;;  %v1110_v43 = vpop.f32.mrf.mxu3 }
 0x194   : > { %v1168_v1 = vadd.f32 %v1110_v43, %v943_v26  ;;  %v3045_v26 = vld [vmem:[%s3303_s23 + $0x51] sm:$0xff] }
 0x195   : > { %v1335_v38 = vpop.f32.mrf.mxu0 }
 0x196   : > { %v1557_v51 = vpop.f32.mrf.mxu1  ;;  %3026 = vmatmul.msk.bf16.vlgmr.msra.gmra.mxu2 %vm456_vm1, %v1664_v48  ;;  %v3831_v28 = vadd.f32 %v1332_v62, %v1168_v1  ;;  %v3044_v62 = vld [vmem:[%s3303_s23 + $0x49] sm:$0xff] }
 0x197   : > { %3075 = vmatmul.msk.bf16.vlgmr.msra.gmra.mxu3 %vm456_vm1, %v1886_v50  ;;  %v1887_v1 = vpack.c.bf16 %v3045_v26, %v3044_v62  ;;  %v2997_v62 = vld [vmem:[%s3303_s23 + $0x60] sm:$0xff]  ;;  %v2998_v26 = vld [vmem:[%s3303_s23 + $0x68] sm:$0xff] }
 0x198   : > { %3124 = vmatmul.msk.bf16.vlgmr.msra.gmra.mxu0 %vm456_vm1, %v3527_v32  ;;  %v1665_v32 = vpack.c.bf16 %v2996_v60, %v2995_v22 }
 0x199   : > { %v888_v27 = vpop.f32.mrf.mxu2 }
 0x19a   : > { %v944_v35 = vadd.f32 %v888_v27, %v3519_v21  ;;  %v1113_v49 = vpop.f32.mrf.mxu3 }
 0x19c   : > { %v1169_v15 = vadd.f32 %v1113_v49, %v944_v35 }
 0x19d   : > { %v1337_v11 = vpop.f32.mrf.mxu0 }
 0x19e   : > { %v3837_v12 = vpop.f32.mrf.mxu1  ;;  %v1391_v61 = vadd.f32 %v1335_v38, %v1169_v15 }
 0x1a0   : > { %v3841_v55 = vadd.f32 %v1557_v51, %v1391_v61 }
 0x1a1   : > { %v890_v43 = vpop.f32.mrf.mxu2 }
 0x1a2   : > { %v945_v48 = vadd.f32 %v890_v43, %v3525_v37  ;;  %v1115_v50 = vpop.f32.mrf.mxu3 }
 0x1a4   : > { %v1170_v21 = vadd.f32 %v1115_v50, %v945_v48  ;;  %v3047_v48 = vld [vmem:[%s3303_s23 + $0x69] sm:$0xff] }
 0x1a5   : > { %v1340_v27 = vpop.f32.mrf.mxu0 }
 0x1a6   : > { %v1562_v35 = vpop.f32.mrf.mxu1  ;;  %3027 = vmatmul.msk.bf16.gmra.mxu2 %vm456_vm1, %v1665_v32  ;;  %v3847_v38 = vadd.f32 %v1337_v11, %v1170_v21  ;;  %v3046_v11 = vld [vmem:[%s3303_s23 + $0x61] sm:$0xff] }
 0x1a7   : > { %3076 = vmatmul.msk.bf16.gmra.mxu3 %vm456_vm1, %v1887_v1  ;;  %v1888_v21 = vpack.c.bf16 %v3047_v48, %v3046_v11  ;;  %v2999_v11 = vld [vmem:[%s3303_s23 + $0x78] sm:$0xff]  ;;  %v3000_v48 = vld [vmem:[%s3303_s23 + $0x80] sm:$0xff] }
 0x1a8   : > { %3125 = vmatmul.msk.bf16.gmra.mxu0 %vm456_vm1, %v3546_v44  ;;  %v1666_v44 = vpack.c.bf16 %v2998_v26, %v2997_v62 }
 0x1a9   : > { %v893_v37 = vpop.f32.mrf.mxu2 }
 0x1aa   : > { %v946_v51 = vadd.f32 %v893_v37, %v3538_v46  ;;  %v1118_v49 = vpop.f32.mrf.mxu3 }
 0x1ac   : > { %v1171_v15 = vadd.f32 %v1118_v49, %v946_v51 }
 0x1ad   : > { %v1342_v61 = vpop.f32.mrf.mxu0 }
 0x1ae   : > { %v3853_v22 = vpop.f32.mrf.mxu1  ;;  %v1393_v60 = vadd.f32 %v1340_v27, %v1171_v15 }
 0x1b0   : > { %v3857_v43 = vadd.f32 %v1562_v35, %v1393_v60 }
 0x1b1   : > { %v895_v50 = vpop.f32.mrf.mxu2 }
 0x1b2   : > { %v947_v32 = vadd.f32 %v895_v50, %v3544_v58  ;;  %v1120_v1 = vpop.f32.mrf.mxu3 }
 0x1b4   : > { %v1172_v46 = vadd.f32 %v1120_v1, %v947_v32  ;;  %v3049_v32 = vld [vmem:[%s3303_s23 + $0x81] sm:$0xff] }
 0x1b5   : > { %v1345_v37 = vpop.f32.mrf.mxu0 }
 0x1b6   : > { %v1567_v51 = vpop.f32.mrf.mxu1  ;;  %3028 = vmatmul.msk.bf16.gmra.mxu2 %vm456_vm1, %v1666_v44  ;;  %v3863_v27 = vadd.f32 %v1342_v61, %v1172_v46  ;;  %v3048_v61 = vld [vmem:[%s3303_s23 + $0x79] sm:$0xff] }
 0x1b7   : > { %3077 = vmatmul.msk.bf16.gmra.mxu3 %vm456_vm1, %v1888_v21  ;;  %v1889_v46 = vpack.c.bf16 %v3049_v32, %v3048_v61  ;;  %v3001_v61 = vld [vmem:[%s3303_s23 + $0x90] sm:$0xff]  ;;  %v3002_v32 = vld [vmem:[%s3303_s23 + $0x98] sm:$0xff] }
 0x1b8   : > { %3126 = vmatmul.msk.bf16.gmra.mxu0 %vm456_vm1, %v3566_v56  ;;  %v1667_v56 = vpack.c.bf16 %v3000_v48, %v2999_v11 }
 0x1b9   : > { %v898_v58 = vpop.f32.mrf.mxu2 }
 0x1ba   : > { %v948_v35 = vadd.f32 %v898_v58, %v3558_v7  ;;  %v1123_v49 = vpop.f32.mrf.mxu3 }
 0x1bc   : > { %v1173_v15 = vadd.f32 %v1123_v49, %v948_v35 }
 0x1bd   : > { %v1347_v60 = vpop.f32.mrf.mxu0 }
 0x1be   : > { %v3869_v62 = vpop.f32.mrf.mxu1  ;;  %v1395_v26 = vadd.f32 %v1345_v37, %v1173_v15 }
 0x1c0   : > { %v3873_v50 = vadd.f32 %v1567_v51, %v1395_v26 }
 0x1c1   : > { %v900_v1 = vpop.f32.mrf.mxu2 }
 0x1c2   : > { %v949_v44 = vadd.f32 %v900_v1, %v3564_v23  ;;  %v1125_v21 = vpop.f32.mrf.mxu3 }
 0x1c4   : > { %v1174_v7 = vadd.f32 %v1125_v21, %v949_v44  ;;  %v3051_v44 = vld [vmem:[%s3303_s23 + $0x99] sm:$0xff] }
 0x1c5   : > { %v1350_v58 = vpop.f32.mrf.mxu0 }
 0x1c6   : > { %v1572_v35 = vpop.f32.mrf.mxu1  ;;  %3029 = vmatmul.msk.bf16.gmra.mxu2 %vm456_vm1, %v1667_v56  ;;  %v3879_v37 = vadd.f32 %v1347_v60, %v1174_v7  ;;  %v3050_v60 = vld [vmem:[%s3303_s23 + $0x91] sm:$0xff] }
 0x1c7   : > { %3078 = vmatmul.msk.bf16.gmra.mxu3 %vm456_vm1, %v1889_v46  ;;  %v1890_v7 = vpack.c.bf16 %v3051_v44, %v3050_v60  ;;  %v3003_v60 = vld [vmem:[%s3303_s23 + $0xa8] sm:$0xff]  ;;  %v3004_v44 = vld [vmem:[%s3303_s23 + $0xb0] sm:$0xff] }
 0x1c8   : > { %3127 = vmatmul.msk.bf16.gmra.mxu0 %vm456_vm1, %v3586_v4  ;;  %v1668_v4 = vpack.c.bf16 %v3002_v32, %v3001_v61 }
 0x1c9   : > { %v903_v23 = vpop.f32.mrf.mxu2 }
 0x1ca   : > { %v950_v51 = vadd.f32 %v903_v23, %v3578_v33  ;;  %v1128_v49 = vpop.f32.mrf.mxu3 }
 0x1cc   : > { %v1175_v15 = vadd.f32 %v1128_v49, %v950_v51 }
 0x1cd   : > { %v1352_v26 = vpop.f32.mrf.mxu0 }
 0x1ce   : > { %v3885_v11 = vpop.f32.mrf.mxu1  ;;  %v1397_v48 = vadd.f32 %v1350_v58, %v1175_v15 }
 0x1d0   : > { %v3889_v1 = vadd.f32 %v1572_v35, %v1397_v48 }
 0x1d1   : > { %v905_v21 = vpop.f32.mrf.mxu2 }
 0x1d2   : > { %v951_v56 = vadd.f32 %v905_v21, %v3584_v52  ;;  %v1130_v46 = vpop.f32.mrf.mxu3 }
 0x1d4   : > { %v1176_v33 = vadd.f32 %v1130_v46, %v951_v56  ;;  %v3053_v56 = vld [vmem:[%s3303_s23 + $0xb1] sm:$0xff] }
 0x1d5   : > { %v1355_v23 = vpop.f32.mrf.mxu0 }
 0x1d6   : > { %v1577_v51 = vpop.f32.mrf.mxu1  ;;  %3030 = vmatmul.msk.bf16.gmra.mxu2 %vm456_vm1, %v1668_v4  ;;  %v3895_v58 = vadd.f32 %v1352_v26, %v1176_v33  ;;  %v3052_v26 = vld [vmem:[%s3303_s23 + $0xa9] sm:$0xff] }
 0x1d7   : > { %3079 = vmatmul.msk.bf16.gmra.mxu3 %vm456_vm1, %v1890_v7 }
 0x1d8   : > { %3128 = vmatmul.msk.bf16.gmra.mxu0 %vm456_vm1, %v3606_v18  ;;  %v1669_v18 = vpack.c.bf16 %v3004_v44, %v3003_v60 }
 0x1d9   : > { %v908_v52 = vpop.f32.mrf.mxu2 }
 0x1da   : > { %v952_v35 = vadd.f32 %v908_v52, %v3598_v6  ;;  %v1133_v49 = vpop.f32.mrf.mxu3  ;;  %v1891_v6 = vpack.c.bf16 %v3053_v56, %v3052_v26  ;;  %v3005_v26 = vld [vmem:[%s3303_s23 + $0xc0] sm:$0xff]  ;;  %v3006_v56 = vld [vmem:[%s3303_s23 + $0xc8] sm:$0xff] }
 0x1dc   : > { %v1177_v15 = vadd.f32 %v1133_v49, %v952_v35 }
 0x1dd   : > { %v1357_v48 = vpop.f32.mrf.mxu0 }
 0x1de   : > { %v3901_v61 = vpop.f32.mrf.mxu1  ;;  %v1399_v32 = vadd.f32 %v1355_v23, %v1177_v15 }
 0x1df   : > { %4360 = vst [vmem:[#allocation9_spill] sm:$0xff] %v3901_v61 }
 0x1e0   : > { %v3905_v21 = vadd.f32 %v1577_v51, %v1399_v32  ;;  %v4362_v51 = vld [vmem:[#allocation2_spill] sm:$0xff] }
 0x1e1   : > { %v910_v46 = vpop.f32.mrf.mxu2 }
 0x1e2   : > { %v953_v4 = vadd.f32 %v910_v46, %v3604_v25  ;;  %v1135_v7 = vpop.f32.mrf.mxu3 }
 0x1e4   : > { %v1178_v33 = vadd.f32 %v1135_v7, %v953_v4  ;;  %v3055_v7 = vld [vmem:[%s3303_s23 + $0xc9] sm:$0xff] }
 0x1e5   : > { %v1360_v52 = vpop.f32.mrf.mxu0 }
 0x1e6   : > { %v1582_v35 = vpop.f32.mrf.mxu1  ;;  %3031 = vmatmul.msk.bf16.gmra.mxu2 %vm456_vm1, %v1669_v18  ;;  %v3911_v23 = vadd.f32 %v1357_v48, %v1178_v33  ;;  %v3054_v48 = vld [vmem:[%s3303_s23 + $0xc1] sm:$0xff] }
 0x1e7   : > { %3080 = vmatmul.msk.bf16.gmra.mxu3 %vm456_vm1, %v1891_v6  ;;  %v4365_v6 = vld [vmem:[#allocation3_spill] sm:$0xff] }
 0x1e8   : > { %4361 = vst [vmem:[#allocation10_spill] sm:$0xff] %v3911_v23  ;;  %3129 = vmatmul.msk.bf16.gmra.mxu0 %vm456_vm1, %v3626_v34  ;;  %v1670_v34 = vpack.c.bf16 %v3006_v56, %v3005_v26 }
 0x1e9   : > { %v913_v25 = vpop.f32.mrf.mxu2 }
 0x1ea   : > { %v954_v49 = vadd.f32 %v913_v25, %v4362_v51  ;;  %v1138_v15 = vpop.f32.mrf.mxu3  ;;  %v1892_v25 = vpack.c.bf16 %v3055_v7, %v3054_v48  ;;  %v3007_v7 = vld [vmem:[%s3303_s23 + $0xd8] sm:$0xff] }
 0x1ec   : > { %v1179_v32 = vadd.f32 %v1138_v15, %v954_v49 }
 0x1ed   : > { %v1362_v60 = vpop.f32.mrf.mxu0 }
 0x1ee   : > { %v1401_v44 = vadd.f32 %v1360_v52, %v1179_v32  ;;  %v3919_v46 = vpop.f32.mrf.mxu1 }
 0x1ef   : > { %4363 = vst [vmem:[#allocation2_spill] sm:$0xff] %v3919_v46  ;;  %v4369_v46 = vld [vmem:[#allocation5_spill] sm:$0xff] }
 0x1f0   : > { %v3921_v4 = vadd.f32 %v1582_v35, %v1401_v44  ;;  %v4367_v35 = vld [vmem:[#allocation6_spill] sm:$0xff]  ;;  %v4368_v44 = vld [vmem:[#allocation4_spill] sm:$0xff] }
 0x1f1   : > { %v915_v18 = vpop.f32.mrf.mxu2 }
 0x1f2   : > { %4364 = vst [vmem:[#allocation11_spill] sm:$0xff] %v3921_v4  ;;  %v955_v33 = vadd.f32 %v915_v18, %v4365_v6  ;;  %v1140_v61 = vpop.f32.mrf.mxu3  ;;  %v3008_v6 = vld [vmem:[%s3303_s23 + $0xe0] sm:$0xff] }
 0x1f3   : > { %v1671_v4 = vpack.c.bf16 %v3008_v6, %v3007_v7  ;;  %v3009_v6 = vld [vmem:[%s3303_s23 + $0xf0] sm:$0xff] }
 0x1f4   : > { %v1180_v51 = vadd.f32 %v1140_v61, %v955_v33 }
 0x1f5   : > { %v1365_v49 = vpop.f32.mrf.mxu0 }
 0x1f6   : > { %3032 = vmatmul.msk.bf16.gmra.mxu2 %vm456_vm1, %v1670_v34  ;;  %v3927_v52 = vadd.f32 %v1362_v60, %v1180_v51  ;;  %v1587_v32 = vpop.f32.mrf.mxu1  ;;  %v3056_v34 = vld [vmem:[%s3303_s23 + $0xd9] sm:$0xff]  ;;  %v3057_v60 = vld [vmem:[%s3303_s23 + $0xe1] sm:$0xff] }
 0x1f7   : > { %3081 = vmatmul.msk.bf16.gmra.mxu3 %vm456_vm1, %v1892_v25 }
 0x1f8   : > { %4366 = vst [vmem:[#allocation3_spill] sm:$0xff] %v3927_v52  ;;  %3130 = vmatmul.msk.bf16.gmra.mxu0 %vm456_vm1, %v4367_v35  ;;  %v1893_v35 = vpack.c.bf16 %v3057_v60, %v3056_v34  ;;  %v3010_v34 = vld [vmem:[%s3303_s23 + $0xf8] sm:$0xff] }
 0x1f9   : > { %v918_v15 = vpop.f32.mrf.mxu2 }
 0x1fa   : > { %v956_v18 = vadd.f32 %v918_v15, %v4368_v44  ;;  %v1143_v26 = vpop.f32.mrf.mxu3 }
 0x1fc   : > { %v1181_v56 = vadd.f32 %v1143_v26, %v956_v18 }
 0x1fd   : > { %v1367_v48 = vpop.f32.mrf.mxu0 }
 0x1fe   : > { %v1403_v61 = vadd.f32 %v1365_v49, %v1181_v56  ;;  %v3940_v23 = vpop.f32.mrf.mxu1 }
 0x1ff   : > { %4370 = vst [vmem:[#allocation6_spill] sm:$0xff] %v3940_v23 }
 0x200   : > { %v3935_v33 = vadd.f32 %v1587_v32, %v1403_v61  ;;  %v4371_v32 = vld [vmem:[#allocation7_spill] sm:$0xff] }
 0x201   : > { %v920_v51 = vpop.f32.mrf.mxu2 }
 0x202   : > { %v957_v25 = vadd.f32 %v920_v51, %v4369_v46  ;;  %v1145_v52 = vpop.f32.mrf.mxu3 }
 0x204   : > { %v1182_v15 = vadd.f32 %v1145_v52, %v957_v25  ;;  %v4373_v25 = vld [vmem:[#allocation8_spill] sm:$0xff] }
 0x205   : > { %v1370_v44 = vpop.f32.mrf.mxu0 }
 0x206   : > { %3033 = vmatmul.msk.bf16.gmra.mxu2 %vm456_vm1, %v1671_v4  ;;  %v3943_v49 = vadd.f32 %v1367_v48, %v1182_v15  ;;  %v1592_v7 = vpop.f32.mrf.mxu1  ;;  %v3058_v4 = vld [vmem:[%s3303_s23 + $0xf1] sm:$0xff]  ;;  %v3059_v48 = vld [vmem:[%s3303_s23 + $0xf9] sm:$0xff] }
 0x207   : > { %3082 = vmatmul.msk.bf16.gmra.mxu3 %vm456_vm1, %v1893_v35  ;;  %v1894_v23 = vpack.c.bf16 %v3059_v48, %v3058_v4  ;;  %v3011_v4 = vld [vmem:[%s3303_s23 + $0x108] sm:$0xff] }
 0x208   : > { %3131 = vmatmul.msk.bf16.gmra.mxu0 %vm456_vm1, %v3666_v59  ;;  %v1672_v59 = vpack.c.bf16 %v3010_v34, %v3009_v6  ;;  %v3966_v34 = vld [vmem:[%s4345_s2] ss:$0 sm:$0xff]  ;;  %v3060_v48 = vld [vmem:[%s3303_s23 + $0x109] sm:$0xff] }
 0x209   : > { %v923_v46 = vpop.f32.mrf.mxu2 }
 0x20a   : > { %v958_v18 = vadd.f32 %v923_v46, %v4371_v32  ;;  %v1148_v26 = vpop.f32.mrf.mxu3 }
 0x20c   : > { %v1183_v56 = vadd.f32 %v1148_v26, %v958_v18 }
 0x20d   : > { %v1372_v61 = vpop.f32.mrf.mxu0 }
 0x20e   : > { %v1405_v52 = vadd.f32 %v1370_v44, %v1183_v56 }
 0x210   : > { %v3951_v60 = vadd.f32 %v1592_v7, %v1405_v52 }
 0x211   : > { %v925_v51 = vpop.f32.mrf.mxu2 }
 0x212   : > { %4372 = vst [vmem:[#allocation4_spill] sm:$0xff] %v3951_v60  ;;  %v959_v35 = vadd.f32 %v925_v51, %v4373_v25  ;;  %v1150_v15 = vpop.f32.mrf.mxu3  ;;  %v3061_v51 = vld [vmem:[%s3303_s23 + $0x111] sm:$0xff] }
 0x214   : > { %v1184_v46 = vadd.f32 %v1150_v15, %v959_v35 }
 0x215   : > { %v2186_v32 = vpop.f32.mrf.mxu0 }
 0x216   : > { %3034 = vmatmul.msk.bf16.gmra.mxu2 %vm456_vm1, %v1672_v59  ;;  %v3957_v44 = vadd.f32 %v1372_v61, %v1184_v46  ;;  %v3012_v61 = vld [vmem:[%s3303_s23 + $0x110] sm:$0xff]  ;;  %v1895_v59 = vpack.c.bf16 %v3061_v51, %v3060_v48 }
 0x217   : > { %3083 = vmatmul.msk.bf16.gmra.mxu3 %vm456_vm1, %v1894_v23  ;;  %v1673_v15 = vpack.c.bf16 %v3012_v61, %v3011_v4 }
 0x218   : > { %4374 = vst [vmem:[#allocation5_spill] sm:$0xff] %v3957_v44  ;;  %3132 = vmatmul.msk.bf16.gmra.mxu0 %vm456_vm1, %v3686_v8  ;;  %v3976_v8 = vld [vmem:[%s4346_s3] ss:$0 sm:$0xff] }
 0x219   : > { %v1742_v18 = vpop.f32.mrf.mxu2 }
 0x21a   : > { %v1822_v26 = vadd.f32 %v1742_v18, %v3681_v13  ;;  %v1964_v56 = vpop.f32.mrf.mxu3 }
 0x21c   : > { %v2044_v7 = vadd.f32 %v1964_v56, %v1822_v26  ;;  %v3983_v26 = vld [vmem:[%s4347_s4] ss:$0 sm:$0xff] }
 0x21d   : > { %v2188_v52 = vpop.f32.mrf.mxu0 }
 0x21e   : > { %v2266_v6 = vadd.f32 %v2186_v32, %v2044_v7 }
 0x220   : > { %v2302_v25 = vadd.f32 %v3966_v34, %v2266_v6 }
 0x221   : > { %v1744_v23 = vpop.f32.mrf.mxu2 }
 0x222   : > { %v1823_v13 = vadd.f32 %v1744_v23, %v3694_v53  ;;  %v1966_v35 = vpop.f32.mrf.mxu3  ;;  %v2338_v18 = vmul.f32 %v3976_v8, %v2302_v25 }
 0x224   : > { %v2045_v46 = vadd.f32 %v1966_v35, %v1823_v13  ;;  %v2374_v6 = vadd.f32 %v3983_v26, %v2338_v18 }
 0x225   : > { %v2191_v32 = vpop.f32.mrf.mxu0 }
 0x226   : > { %v2267_v56 = vadd.f32 %v2188_v52, %v2045_v46  ;;  %3035 = vmatmul.msk.bf16.gmra.mxu2 %vm456_vm1, %v1673_v15  ;;  %v2406_v25 = vmax.f32 %v2374_v6, 0.0  ;;  %v3014_v15 = vld [vmem:[%s3303_s23 + $0x128] sm:$0xff] }
 0x227   : > { %3084 = vmatmul.msk.bf16.gmra.mxu3 %vm456_vm1, %v1895_v59  ;;  %v3062_v46 = vld [vmem:[%s3303_s23 + $0x121] sm:$0xff] }
 0x228   : > { %3133 = vmatmul.msk.bf16.gmra.mxu0 %vm456_vm1, %v3704_v31  ;;  %v2303_v53 = vadd.f32 %v3966_v34, %v2267_v56  ;;  %v3013_v31 = vld [vmem:[%s3303_s23 + $0x120] sm:$0xff]  ;;  %v3063_v56 = vld [vmem:[%s3303_s23 + $0x129] sm:$0xff] }
 0x229   : > { %v1747_v7 = vpop.f32.mrf.mxu2 }
 0x22a   : > { %v2339_v4 = vmul.f32 %v3976_v8, %v2303_v53  ;;  %v1824_v52 = vadd.f32 %v1747_v7, %v3699_v19  ;;  %v1969_v61 = vpop.f32.mrf.mxu3  ;;  %v1674_v19 = vpack.c.bf16 %v3014_v15, %v3013_v31  ;;  %v1896_v7 = vpack.c.bf16 %v3063_v56, %v3062_v46  ;;  %v3064_v56 = vld [vmem:[%s3303_s23 + $0x139] sm:$0xff] }
 0x22c   : > { %v2375_v48 = vadd.f32 %v3983_v26, %v2339_v4  ;;  %v2046_v51 = vadd.f32 %v1969_v61, %v1824_v52 }
 0x22d   : > { %v2193_v23 = vpop.f32.mrf.mxu0 }
 0x22e   : > { %v2407_v13 = vmax.f32 %v2375_v48, 0.0  ;;  %v2268_v35 = vadd.f32 %v2191_v32, %v2046_v51 }
 0x230   : > { %v2438_v59 = vpack.c.bf16 %v2407_v13, %v2406_v25  ;;  %v2304_v18 = vadd.f32 %v3966_v34, %v2268_v35 }
 0x231   : > { %v1749_v44 = vpop.f32.mrf.mxu2 }
 0x232   : > { %v1825_v53 = vadd.f32 %v1749_v44, %v3712_v47  ;;  %v1971_v60 = vpop.f32.mrf.mxu3  ;;  %3140 = vmatmul.msk.bf16.vlgmr.msra.gmra.mxu1 %vm456_vm1, %v2438_v59  ;;  %v2340_v6 = vmul.f32 %v3976_v8, %v2304_v18  ;;  %v3016_v59 = vld [vmem:[%s3303_s23 + $0x140] sm:$0xff] }
 0x233   : > { %v3065_v18 = vld [vmem:[%s3303_s23 + $0x141] sm:$0xff] }
 0x234   : > { %v2047_v4 = vadd.f32 %v1971_v60, %v1825_v53  ;;  %v2376_v60 = vadd.f32 %v3983_v26, %v2340_v6  ;;  %v1897_v6 = vpack.c.bf16 %v3065_v18, %v3064_v56  ;;  %v3066_v56 = vld [vmem:[%s3303_s23 + $0x151] sm:$0xff]  ;;  %v3067_v18 = vld [vmem:[%s3303_s23 + $0x159] sm:$0xff] }
 0x235   : > { %v2196_v52 = vpop.f32.mrf.mxu0 }
 0x236   : > { %v2269_v32 = vadd.f32 %v2193_v23, %v2047_v4  ;;  %3036 = vmatmul.msk.bf16.gmra.mxu2 %vm456_vm1, %v1674_v19  ;;  %v2408_v35 = vmax.f32 %v2376_v60, 0.0 }
 0x237   : > { %3085 = vmatmul.msk.bf16.gmra.mxu3 %vm456_vm1, %v1896_v7 }
 0x238   : > { %3134 = vmatmul.msk.bf16.gmra.mxu0 %vm456_vm1, %v3722_v42  ;;  %v2305_v47 = vadd.f32 %v3966_v34, %v2269_v32  ;;  %v3015_v42 = vld [vmem:[%s3303_s23 + $0x138] sm:$0xff] }
 0x239   : > { %v1752_v44 = vpop.f32.mrf.mxu2 }
 0x23a   : > { %v2341_v61 = vmul.f32 %v3976_v8, %v2305_v47  ;;  %v1826_v48 = vadd.f32 %v1752_v44, %v3717_v17  ;;  %v1974_v51 = vpop.f32.mrf.mxu3  ;;  %v1675_v17 = vpack.c.bf16 %v3016_v59, %v3015_v42  ;;  %v3018_v59 = vld [vmem:[%s3303_s23 + $0x158] sm:$0xff] }
 0x23c   : > { %v2377_v23 = vadd.f32 %v3983_v26, %v2341_v61  ;;  %v2048_v25 = vadd.f32 %v1974_v51, %v1826_v48 }
 0x23d   : > { %v2198_v13 = vpop.f32.mrf.mxu0 }
 0x23e   : > { %v2270_v31 = vadd.f32 %v2196_v52, %v2048_v25  ;;  %v2409_v15 = vmax.f32 %v2377_v23, 0.0 }
 0x240   : > { %v2439_v46 = vpack.c.bf16 %v2409_v15, %v2408_v35  ;;  %v2306_v19 = vadd.f32 %v3966_v34, %v2270_v31 }
 0x241   : > { %v1754_v53 = vpop.f32.mrf.mxu2 }
 0x242   : > { %v1827_v7 = vadd.f32 %v1754_v53, %v3730_v5  ;;  %v1976_v4 = vpop.f32.mrf.mxu3  ;;  %3141 = vmatmul.msk.bf16.gmra.mxu1 %vm456_vm1, %v2439_v46  ;;  %v2342_v52 = vmul.f32 %v3976_v8, %v2306_v19 }
 0x244   : > { %v2049_v32 = vadd.f32 %v1976_v4, %v1827_v7  ;;  %v2378_v61 = vadd.f32 %v3983_v26, %v2342_v52 }
 0x245   : > { %v2201_v47 = vpop.f32.mrf.mxu0 }
 0x246   : > { %v2271_v44 = vadd.f32 %v2198_v13, %v2049_v32  ;;  %3037 = vmatmul.msk.bf16.gmra.mxu2 %vm456_vm1, %v1675_v17  ;;  %v2410_v31 = vmax.f32 %v2378_v61, 0.0  ;;  %v1898_v17 = vpack.c.bf16 %v3067_v18, %v3066_v56 }
 0x247   : > { %3086 = vmatmul.msk.bf16.gmra.mxu3 %vm456_vm1, %v1897_v6 }
 0x248   : > { %3135 = vmatmul.msk.bf16.gmra.mxu0 %vm456_vm1, %v3740_v40  ;;  %v2307_v5 = vadd.f32 %v3966_v34, %v2271_v44  ;;  %v3017_v40 = vld [vmem:[%s3303_s23 + $0x150] sm:$0xff] }
 0x249   : > { %v1757_v60 = vpop.f32.mrf.mxu2 }
 0x24a   : > { %v2343_v48 = vmul.f32 %v3976_v8, %v2307_v5  ;;  %v1828_v51 = vadd.f32 %v1757_v60, %v3735_v24  ;;  %v1979_v23 = vpop.f32.mrf.mxu3  ;;  %v1676_v24 = vpack.c.bf16 %v3018_v59, %v3017_v40  ;;  %v3068_v59 = vld [vmem:[%s3303_s23 + $0x169] sm:$0xff] }
 0x24c   : > { %v2379_v25 = vadd.f32 %v3983_v26, %v2343_v48  ;;  %v2050_v13 = vadd.f32 %v1979_v23, %v1828_v51 }
 0x24d   : > { %v2203_v35 = vpop.f32.mrf.mxu0 }
 0x24e   : > { %v2272_v15 = vadd.f32 %v2201_v47, %v2050_v13  ;;  %v2411_v42 = vmax.f32 %v2379_v25, 0.0 }
 0x250   : > { %v2440_v46 = vpack.c.bf16 %v2411_v42, %v2410_v31  ;;  %v2308_v19 = vadd.f32 %v3966_v34, %v2272_v15  ;;  %v3020_v15 = vld [vmem:[%s3303_s23 + $0x170] sm:$0xff]  ;;  %v1606_v42 = vadd.f32 %v3753_v10, %v3764_v63 }
 0x251   : > { %v1759_v53 = vpop.f32.mrf.mxu2 }
 0x252   : > { %v1829_v7 = vadd.f32 %v1759_v53, %v3748_v9  ;;  %v1981_v4 = vpop.f32.mrf.mxu3  ;;  %3142 = vmatmul.msk.bf16.gmra.mxu1 %vm456_vm1, %v2440_v46  ;;  %v2344_v47 = vmul.f32 %v3976_v8, %v2308_v19  ;;  %v3069_v46 = vld [vmem:[%s3303_s23 + $0x171] sm:$0xff] }
 0x254   : > { %v2051_v6 = vadd.f32 %v1981_v4, %v1829_v7  ;;  %v2380_v5 = vadd.f32 %v3983_v26, %v2344_v47  ;;  %v1899_v7 = vpack.c.bf16 %v3069_v46, %v3068_v59 }
 0x255   : > { %v2206_v32 = vpop.f32.mrf.mxu0 }
 0x256   : > { %v2273_v52 = vadd.f32 %v2203_v35, %v2051_v6  ;;  %3038 = vmatmul.msk.bf16.gmra.mxu2 %vm456_vm1, %v1676_v24  ;;  %v2412_v13 = vmax.f32 %v2380_v5, 0.0 }
 0x257   : > { %3087 = vmatmul.msk.bf16.gmra.mxu3 %vm456_vm1, %v1898_v17 }
 0x258   : > { %3136 = vmatmul.msk.bf16.gmra.mxu0 %vm456_vm1, %v3760_v3  ;;  %v2309_v9 = vadd.f32 %v3966_v34, %v2273_v52  ;;  %v3019_v3 = vld [vmem:[%s3303_s23 + $0x168] sm:$0xff] }
 0x259   : > { %v1762_v44 = vpop.f32.mrf.mxu2  ;;  %v1677_v19 = vpack.c.bf16 %v3020_v15, %v3019_v3 }
 0x25a   : > { %v2345_v60 = vmul.f32 %v3976_v8, %v2309_v9  ;;  %v1830_v61 = vadd.f32 %v1762_v44, %v3755_v30  ;;  %v1984_v48 = vpop.f32.mrf.mxu3 }
 0x25c   : > { %v2381_v51 = vadd.f32 %v3983_v26, %v2345_v60  ;;  %v2052_v23 = vadd.f32 %v1984_v48, %v1830_v61 }
 0x25d   : > { %v2208_v25 = vpop.f32.mrf.mxu0 }
 0x25e   : > { %v2274_v35 = vadd.f32 %v2206_v32, %v2052_v23  ;;  %v2413_v31 = vmax.f32 %v2381_v51, 0.0 }
 0x260   : > { %v2441_v40 = vpack.c.bf16 %v2413_v31, %v2412_v13  ;;  %v2310_v18 = vadd.f32 %v3966_v34, %v2274_v35 }
 0x261   : > { %v1764_v56 = vpop.f32.mrf.mxu2 }
 0x262   : > { %v1831_v30 = vadd.f32 %v1764_v56, %v1606_v42  ;;  %v1986_v53 = vpop.f32.mrf.mxu3  ;;  %3143 = vmatmul.msk.bf16.gmra.mxu1 %vm456_vm1, %v2441_v40  ;;  %v2346_v17 = vmul.f32 %v3976_v8, %v2310_v18 }
 0x264   : > { %v2053_v4 = vadd.f32 %v1986_v53, %v1831_v30  ;;  %v2382_v32 = vadd.f32 %v3983_v26, %v2346_v17 }
 0x265   : > { %v2211_v24 = vpop.f32.mrf.mxu0 }
 0x266   : > { %v2275_v6 = vadd.f32 %v2208_v25, %v2053_v4  ;;  %3039 = vmatmul.msk.bf16.gmra.mxu2 %vm456_vm1, %v1677_v19  ;;  %v2414_v61 = vmax.f32 %v2382_v32, 0.0  ;;  %v3023_v19 = vld [vmem:[%s3303_s23 + $0x198] sm:$0xff] }
 0x267   : > { %3088 = vmatmul.msk.bf16.gmra.mxu3 %vm456_vm1, %v1899_v7  ;;  %v3024_v7 = vld [vmem:[%s3303_s23 + $0x1a0] sm:$0xff] }
 0x268   : > { %3137 = vmatmul.msk.bf16.gmra.mxu0 %vm456_vm1, %v3780_v16  ;;  %v2311_v10 = vadd.f32 %v3966_v34, %v2275_v6  ;;  %v1608_v16 = vadd.f32 %v3773_v54, %v3784_v39  ;;  %v3072_v4 = vld [vmem:[%s3303_s23 + $0x199] sm:$0xff]  ;;  %v3073_v6 = vld [vmem:[%s3303_s23 + $0x1a1] sm:$0xff] }
 0x269   : > { %v1767_v63 = vpop.f32.mrf.mxu2 }
 0x26a   : > { %v2347_v47 = vmul.f32 %v3976_v8, %v2311_v10  ;;  %v1832_v52 = vadd.f32 %v1767_v63, %v3775_v41  ;;  %v1989_v9 = vpop.f32.mrf.mxu3  ;;  %v3121_v10 = vld [vmem:[%s3303_s23 + $0x19a] sm:$0xff]  ;;  %v3122_v63 = vld [vmem:[%s3303_s23 + $0x1a2] sm:$0xff] }
 0x26c   : > { %v2383_v44 = vadd.f32 %v3983_v26, %v2347_v47  ;;  %v2054_v5 = vadd.f32 %v1989_v9, %v1832_v52  ;;  %v1679_v9 = vpack.c.bf16 %v3024_v7, %v3023_v19 }
 0x26d   : > { %v2213_v60 = vpop.f32.mrf.mxu0 }
 0x26e   : > { %v2415_v48 = vmax.f32 %v2383_v44, 0.0  ;;  %v2276_v51 = vadd.f32 %v2211_v24, %v2054_v5  ;;  %v1610_v24 = vadd.f32 %v3793_v57, %v3812_v36  ;;  %v1901_v44 = vpack.c.bf16 %v3073_v6, %v3072_v4 }
 0x26f   : > { %v2123_v5 = vpack.c.bf16 %v3122_v63, %v3121_v10  ;;  %v1614_v63 = vadd.f32 %v3837_v12, %v3847_v38 }
 0x270   : > { %v2442_v23 = vpack.c.bf16 %v2415_v48, %v2414_v61  ;;  %v2312_v13 = vadd.f32 %v3966_v34, %v2276_v51 }
 0x271   : > { %v1769_v25 = vpop.f32.mrf.mxu2 }
 0x272   : > { %v1833_v35 = vadd.f32 %v1769_v25, %v1608_v16  ;;  %v1991_v31 = vpop.f32.mrf.mxu3  ;;  %3144 = vmatmul.msk.bf16.gmra.mxu1 %vm456_vm1, %v2442_v23  ;;  %v2348_v15 = vmul.f32 %v3976_v8, %v2312_v13 }
 0x274   : > { %v2055_v41 = vadd.f32 %v1991_v31, %v1833_v35  ;;  %v2384_v40 = vadd.f32 %v3983_v26, %v2348_v15 }
 0x275   : > { %v2216_v3 = vpop.f32.mrf.mxu0 }
 0x276   : > { %v2277_v42 = vadd.f32 %v2213_v60, %v2055_v41  ;;  %3040 = vmatmul.msk.bf16.gmra.mxu2 %vm456_vm1, %v3804_v29  ;;  %v2416_v30 = vmax.f32 %v2384_v40, 0.0 }
 0x277   : > { %3089 = vmatmul.msk.bf16.gmra.mxu3 %vm456_vm1, %v3806_v14 }
 0x278   : > { %3138 = vmatmul.msk.bf16.gmra.mxu0 %vm456_vm1, %v3808_v0  ;;  %v2313_v54 = vadd.f32 %v3966_v34, %v2277_v42 }
 0x279   : > { %v1772_v39 = vpop.f32.mrf.mxu2 }
 0x27a   : > { %v2349_v59 = vmul.f32 %v3976_v8, %v2313_v54  ;;  %v1834_v29 = vadd.f32 %v1772_v39, %v3796_v2  ;;  %v1994_v46 = vpop.f32.mrf.mxu3  ;;  %v1612_v54 = vadd.f32 %v3821_v45, %v3831_v28 }
 0x27c   : > { %v2385_v56 = vadd.f32 %v3983_v26, %v2349_v59  ;;  %v2056_v14 = vadd.f32 %v1994_v46, %v1834_v29 }
 0x27d   : > { %v2218_v18 = vpop.f32.mrf.mxu0 }
 0x27e   : > { %v2417_v53 = vmax.f32 %v2385_v56, 0.0  ;;  %v2278_v0 = vadd.f32 %v2216_v3, %v2056_v14 }
 0x280   : > { %v2443_v17 = vpack.c.bf16 %v2417_v53, %v2416_v30  ;;  %v2314_v2 = vadd.f32 %v3966_v34, %v2278_v0 }
 0x281   : > { %v1774_v32 = vpop.f32.mrf.mxu2 }
 0x282   : > { %v1835_v47 = vadd.f32 %v1774_v32, %v1610_v24  ;;  %v1996_v52 = vpop.f32.mrf.mxu3  ;;  %3145 = vmatmul.msk.bf16.gmra.mxu1 %vm456_vm1, %v2443_v17  ;;  %v2350_v48 = vmul.f32 %v3976_v8, %v2314_v2 }
 0x284   : > { %v2057_v60 = vadd.f32 %v1996_v52, %v1835_v47  ;;  %v2386_v16 = vadd.f32 %v3983_v26, %v2350_v48 }
 0x285   : > { %v2221_v61 = vpop.f32.mrf.mxu0 }
 0x286   : > { %v2279_v51 = vadd.f32 %v2218_v18, %v2057_v60  ;;  %3041 = vmatmul.msk.bf16.gmra.mxu2 %vm456_vm1, %v1679_v9  ;;  %v2418_v3 = vmax.f32 %v2386_v16, 0.0 }
 0x287   : > { %3090 = vmatmul.msk.bf16.gmra.mxu3 %vm456_vm1, %v1901_v44 }
 0x288   : > { %3139 = vmatmul.msk.bf16.gmra.mxu0 %vm456_vm1, %v2123_v5  ;;  %v2315_v57 = vadd.f32 %v3966_v34, %v2279_v51 }
 0x289   : > { %v1777_v36 = vpop.f32.mrf.mxu2 }
 0x28a   : > { %v2351_v23 = vmul.f32 %v3976_v8, %v2315_v57  ;;  %v1836_v25 = vadd.f32 %v1777_v36, %v3825_v20  ;;  %v1999_v13 = vpop.f32.mrf.mxu3 }
 0x28c   : > { %v2387_v35 = vadd.f32 %v3983_v26, %v2351_v23  ;;  %v2058_v31 = vadd.f32 %v1999_v13, %v1836_v25  ;;  %v4129_v13 = vld [vmem:[%s4349_s6] ss:$0 sm:$0xff] }
 0x28d   : > { %v2223_v41 = vpop.f32.mrf.mxu0 }
 0x28e   : > { %v2419_v15 = vmax.f32 %v2387_v35, 0.0  ;;  %v2280_v42 = vadd.f32 %v2221_v61, %v2058_v31  ;;  %v4114_v61 = vpop.f32.mrf.mxu1 }
 0x290   : > { %v2444_v39 = vpack.c.bf16 %v2419_v15, %v2418_v3  ;;  %v2316_v59 = vadd.f32 %v3966_v34, %v2280_v42  ;;  %v2599_v3 = vld [vmem:[%s4124_s25] sm:$0xff]  ;;  %v1616_v15 = vadd.f32 %v3853_v22, %v3863_v27 }
 0x291   : > { %v1779_v40 = vpop.f32.mrf.mxu2 }
 0x292   : > { %v1837_v29 = vadd.f32 %v1779_v40, %v1612_v54  ;;  %v2001_v46 = vpop.f32.mrf.mxu3  ;;  %3146 = vmatmul.msk.bf16.gmra.mxu1 %vm456_vm1, %v2444_v39  ;;  %v2352_v14 = vmul.f32 %v3976_v8, %v2316_v59 }
 0x294   : > { %v2059_v20 = vadd.f32 %v2001_v46, %v1837_v29  ;;  %v2388_v0 = vadd.f32 %v3983_v26, %v2352_v14 }
 0x295   : > { %v2226_v56 = vpop.f32.mrf.mxu0 }
 0x296   : > { %v2281_v18 = vadd.f32 %v2223_v41, %v2059_v20  ;;  %v2420_v17 = vmax.f32 %v2388_v0, 0.0 }
 0x298   : > { %v2317_v30 = vadd.f32 %v3966_v34, %v2281_v18  ;;  %v2600_v18 = vld [vmem:[%s4124_s25 + $0x8] sm:$0xff] }
 0x299   : > { %v1782_v53 = vpop.f32.mrf.mxu2 }
 0x29a   : > { %v2353_v45 = vmul.f32 %v3976_v8, %v2317_v30  ;;  %v1838_v28 = vadd.f32 %v1782_v53, %v3841_v55  ;;  %v2004_v19 = vpop.f32.mrf.mxu3 }
 0x29c   : > { %v2389_v7 = vadd.f32 %v3983_v26, %v2353_v45  ;;  %v2060_v4 = vadd.f32 %v2004_v19, %v1838_v28 }
 0x29d   : > { %v2228_v24 = vpop.f32.mrf.mxu0 }
 0x29e   : > { %v2421_v6 = vmax.f32 %v2389_v7, 0.0  ;;  %v2282_v10 = vadd.f32 %v2226_v56, %v2060_v4 }
 0x2a0   : > { %v2445_v32 = vpack.c.bf16 %v2421_v6, %v2420_v17  ;;  %v2318_v47 = vadd.f32 %v3966_v34, %v2282_v10 }
 0x2a1   : > { %v1784_v2 = vpop.f32.mrf.mxu2 }
 0x2a2   : > { %v1839_v52 = vadd.f32 %v1784_v2, %v1614_v63  ;;  %v2006_v9 = vpop.f32.mrf.mxu3  ;;  %3147 = vmatmul.msk.bf16.gmra.mxu1 %vm456_vm1, %v2445_v32  ;;  %v2354_v5 = vmul.f32 %v3976_v8, %v2318_v47  ;;  %v2601_v47 = vld [vmem:[%s4124_s25 + $0x10] sm:$0xff] }
 0x2a4   : > { %v2061_v55 = vadd.f32 %v2006_v9, %v1839_v52  ;;  %v2390_v38 = vadd.f32 %v3983_v26, %v2354_v5  ;;  %v1618_v52 = vadd.f32 %v3869_v62, %v3879_v37  ;;  %v2602_v37 = vld [vmem:[%s4124_s25 + $0x18] sm:$0xff] }
 0x2a5   : > { %v2231_v44 = vpop.f32.mrf.mxu0 }
 0x2a6   : > { %v2283_v60 = vadd.f32 %v2228_v24, %v2061_v55  ;;  %v2422_v35 = vmax.f32 %v2390_v38, 0.0 }
 0x2a8   : > { %v2319_v48 = vadd.f32 %v3966_v34, %v2283_v60 }
 0x2a9   : > { %v1787_v12 = vpop.f32.mrf.mxu2 }
 0x2aa   : > { %v2355_v51 = vmul.f32 %v3976_v8, %v2319_v48  ;;  %v1840_v57 = vadd.f32 %v1787_v12, %v3857_v43  ;;  %v2009_v36 = vpop.f32.mrf.mxu3 }
 0x2ac   : > { %v2391_v16 = vadd.f32 %v3983_v26, %v2355_v51  ;;  %v2062_v23 = vadd.f32 %v2009_v36, %v1840_v57 }
 0x2ad   : > { %v2233_v25 = vpop.f32.mrf.mxu0 }
 0x2ae   : > { %v2423_v31 = vmax.f32 %v2391_v16, 0.0  ;;  %v2284_v41 = vadd.f32 %v2231_v44, %v2062_v23 }
 0x2af   : > { %v2519_v43 = vpop.f32.mrf.mxu1 }
 0x2b0   : > { %v2520_v42 = vadd.f32 %v4129_v13, %v2519_v43  ;;  %v2446_v54 = vpack.c.bf16 %v2423_v31, %v2422_v35  ;;  %v2320_v40 = vadd.f32 %v3966_v34, %v2284_v41 }
 0x2b1   : > { %v1789_v39 = vpop.f32.mrf.mxu2 }
 0x2b2   : > { %v2631_v59 = vadd.f32 %v2599_v3, %v2520_v42  ;;  %v1841_v29 = vadd.f32 %v1789_v39, %v1616_v15  ;;  %v2011_v46 = vpop.f32.mrf.mxu3  ;;  %3148 = vmatmul.msk.bf16.gmra.mxu1 %vm456_vm1, %v2446_v54  ;;  %v2356_v20 = vmul.f32 %v3976_v8, %v2320_v40 }
 0x2b4   : > { %2664 = vst.msk [vmem:[%s4138_s12] sm:$0xff] %vm2663_vm2, %v2631_v59  ;;  %v2063_v22 = vadd.f32 %v2011_v46, %v1841_v29  ;;  %v2392_v45 = vadd.f32 %v3983_v26, %v2356_v20  ;;  %v2603_v29 = vld [vmem:[%s4124_s25 + $0x20] sm:$0xff]  ;;  %v1620_v46 = vadd.f32 %v3885_v11, %v3895_v58  ;;  %v2604_v58 = vld [vmem:[%s4124_s25 + $0x28] sm:$0xff] }
 0x2b5   : > { %v2236_v27 = vpop.f32.mrf.mxu0 }
 0x2b6   : > { %v2285_v56 = vadd.f32 %v2233_v25, %v2063_v22  ;;  %v2424_v10 = vmax.f32 %v2392_v45, 0.0 }
 0x2b7   : > { %v2521_v14 = vpop.f32.mrf.mxu1 }
 0x2b8   : > { %v2321_v30 = vadd.f32 %v3966_v34, %v2285_v56  ;;  %v2522_v53 = vadd.f32 %v4129_v13, %v2521_v14 }
 0x2b9   : > { %v1792_v0 = vpop.f32.mrf.mxu2 }
 0x2ba   : > { %v2357_v28 = vmul.f32 %v3976_v8, %v2321_v30  ;;  %v2632_v19 = vadd.f32 %v2600_v18, %v2522_v53  ;;  %v1842_v7 = vadd.f32 %v1792_v0, %v3873_v50  ;;  %v2014_v4 = vpop.f32.mrf.mxu3 }
 0x2bc   : > { %v2393_v24 = vadd.f32 %v3983_v26, %v2357_v28  ;;  %2665 = vst.msk [vmem:[%s4138_s12 + $0x8] sm:$0xff] %vm2663_vm2, %v2632_v19  ;;  %v2064_v17 = vadd.f32 %v2014_v4, %v1842_v7 }
 0x2bd   : > { %v2238_v6 = vpop.f32.mrf.mxu0 }
 0x2be   : > { %v2425_v63 = vmax.f32 %v2393_v24, 0.0  ;;  %v2286_v32 = vadd.f32 %v2236_v27, %v2064_v17 }
 0x2bf   : > { %v2524_v2 = vpop.f32.mrf.mxu1 }
 0x2c0   : > { %v2525_v9 = vadd.f32 %v4129_v13, %v2524_v2  ;;  %v2447_v50 = vpack.c.bf16 %v2425_v63, %v2424_v10  ;;  %v2322_v44 = vadd.f32 %v3966_v34, %v2286_v32 }
 0x2c1   : > { %v1794_v55 = vpop.f32.mrf.mxu2 }
 0x2c2   : > { %v2633_v5 = vadd.f32 %v2601_v47, %v2525_v9  ;;  %v1843_v60 = vadd.f32 %v1794_v55, %v1618_v52  ;;  %v2016_v48 = vpop.f32.mrf.mxu3  ;;  %3149 = vmatmul.msk.bf16.gmra.mxu1 %vm456_vm1, %v2447_v50  ;;  %v2358_v51 = vmul.f32 %v3976_v8, %v2322_v44  ;;  %v2605_v55 = vld [vmem:[%s4124_s25 + $0x30] sm:$0xff]  ;;  %v4375_v44 = vld [vmem:[#allocation10_spill] sm:$0xff] }
 0x2c4   : > { %2666 = vst.msk [vmem:[%s4138_s12 + $0x10] sm:$0xff] %vm2663_vm2, %v2633_v5  ;;  %v2065_v12 = vadd.f32 %v2016_v48, %v1843_v60  ;;  %v2394_v25 = vadd.f32 %v3983_v26, %v2358_v51  ;;  %v4376_v5 = vld [vmem:[#allocation9_spill] sm:$0xff] }
 0x2c5   : > { %v2241_v38 = vpop.f32.mrf.mxu0  ;;  %v1622_v60 = vadd.f32 %v4376_v5, %v4375_v44 }
 0x2c6   : > { %v2287_v57 = vadd.f32 %v2238_v6, %v2065_v12  ;;  %v2426_v54 = vmax.f32 %v2394_v25, 0.0 }
 0x2c7   : > { %v2526_v62 = vpop.f32.mrf.mxu1 }
 0x2c8   : > { %v2323_v36 = vadd.f32 %v3966_v34, %v2287_v57  ;;  %v2527_v16 = vadd.f32 %v4129_v13, %v2526_v62 }
 0x2c9   : > { %v1797_v23 = vpop.f32.mrf.mxu2 }
 0x2ca   : > { %v2359_v35 = vmul.f32 %v3976_v8, %v2323_v36  ;;  %v2634_v31 = vadd.f32 %v2602_v37, %v2527_v16  ;;  %v1844_v41 = vadd.f32 %v1797_v23, %v3889_v1  ;;  %v2019_v43 = vpop.f32.mrf.mxu3 }
 0x2cc   : > { %v2395_v3 = vadd.f32 %v3983_v26, %v2359_v35  ;;  %2667 = vst.msk [vmem:[%s4138_s12 + $0x18] sm:$0xff] %vm2663_vm2, %v2634_v31  ;;  %v2066_v15 = vadd.f32 %v2019_v43, %v1844_v41  ;;  %v2606_v35 = vld [vmem:[%s4124_s25 + $0x38] sm:$0xff] }
 0x2cd   : > { %v2243_v42 = vpop.f32.mrf.mxu0 }
 0x2ce   : > { %v2427_v39 = vmax.f32 %v2395_v3, 0.0  ;;  %v2288_v40 = vadd.f32 %v2241_v38, %v2066_v15 }
 0x2cf   : > { %v2529_v59 = vpop.f32.mrf.mxu1 }
 0x2d0   : > { %v2530_v22 = vadd.f32 %v4129_v13, %v2529_v59  ;;  %v2448_v1 = vpack.c.bf16 %v2427_v39, %v2426_v54  ;;  %v2324_v20 = vadd.f32 %v3966_v34, %v2288_v40  ;;  %v4377_v54 = vld [vmem:[#allocation11_spill] sm:$0xff] }
 0x2d1   : > { %v1799_v27 = vpop.f32.mrf.mxu2 }
 0x2d2   : > { %v2635_v56 = vadd.f32 %v2603_v29, %v2530_v22  ;;  %v1845_v14 = vadd.f32 %v1799_v27, %v1620_v46  ;;  %v2021_v18 = vpop.f32.mrf.mxu3  ;;  %3150 = vmatmul.msk.bf16.gmra.mxu1 %vm456_vm1, %v2448_v1  ;;  %v2360_v0 = vmul.f32 %v3976_v8, %v2324_v20 }
 0x2d4   : > { %2668 = vst.msk [vmem:[%s4138_s12 + $0x20] sm:$0xff] %vm2663_vm2, %v2635_v56  ;;  %v2067_v30 = vadd.f32 %v2021_v18, %v1845_v14  ;;  %v2396_v4 = vadd.f32 %v3983_v26, %v2360_v0  ;;  %v2607_v56 = vld [vmem:[%s4124_s25 + $0x40] sm:$0xff]  ;;  %v4378_v14 = vld [vmem:[#allocation3_spill] sm:$0xff] }
 0x2d5   : > { %v2246_v53 = vpop.f32.mrf.mxu0  ;;  %v4379_v18 = vld [vmem:[#allocation2_spill] sm:$0xff] }
 0x2d6   : > { %v2289_v45 = vadd.f32 %v2243_v42, %v2067_v30  ;;  %v2428_v47 = vmax.f32 %v2396_v4, 0.0  ;;  %v1624_v30 = vadd.f32 %v4379_v18, %v4378_v14 }
 0x2d7   : > { %v2531_v11 = vpop.f32.mrf.mxu1 }
 0x2d8   : > { %v2325_v28 = vadd.f32 %v3966_v34, %v2289_v45  ;;  %v2532_v19 = vadd.f32 %v4129_v13, %v2531_v11 }
 0x2d9   : > { %v1802_v7 = vpop.f32.mrf.mxu2 }
 0x2da   : > { %v2361_v24 = vmul.f32 %v3976_v8, %v2325_v28  ;;  %v2636_v17 = vadd.f32 %v2604_v58, %v2532_v19  ;;  %v1846_v6 = vadd.f32 %v1802_v7, %v3905_v21  ;;  %v2024_v10 = vpop.f32.mrf.mxu3 }
 0x2dc   : > { %v2397_v63 = vadd.f32 %v3983_v26, %v2361_v24  ;;  %2669 = vst.msk [vmem:[%s4138_s12 + $0x28] sm:$0xff] %vm2663_vm2, %v2636_v17  ;;  %v2068_v32 = vadd.f32 %v2024_v10, %v1846_v6  ;;  %v2608_v10 = vld [vmem:[%s4124_s25 + $0x48] sm:$0xff] }
 0x2dd   : > { %v2248_v2 = vpop.f32.mrf.mxu0 }
 0x2de   : > { %v2429_v52 = vmax.f32 %v2397_v63, 0.0  ;;  %v2290_v9 = vadd.f32 %v2246_v53, %v2068_v32 }
 0x2df   : > { %v2534_v50 = vpop.f32.mrf.mxu1 }
 0x2e0   : > { %v2535_v48 = vadd.f32 %v4129_v13, %v2534_v50  ;;  %v2449_v21 = vpack.c.bf16 %v2429_v52, %v2428_v47  ;;  %v2326_v38 = vadd.f32 %v3966_v34, %v2290_v9 }
 0x2e1   : > { %v1804_v12 = vpop.f32.mrf.mxu2 }
 0x2e2   : > { %v2637_v51 = vadd.f32 %v2605_v55, %v2535_v48  ;;  %v1847_v57 = vadd.f32 %v1804_v12, %v1622_v60  ;;  %v2026_v62 = vpop.f32.mrf.mxu3  ;;  %3151 = vmatmul.msk.bf16.gmra.mxu1 %vm456_vm1, %v2449_v21  ;;  %v2362_v16 = vmul.f32 %v3976_v8, %v2326_v38  ;;  %v2609_v38 = vld [vmem:[%s4124_s25 + $0x50] sm:$0xff] }
 0x2e4   : > { %2670 = vst.msk [vmem:[%s4138_s12 + $0x30] sm:$0xff] %vm2663_vm2, %v2637_v51  ;;  %v2069_v37 = vadd.f32 %v2026_v62, %v1847_v57  ;;  %v2398_v3 = vadd.f32 %v3983_v26, %v2362_v16  ;;  %v4380_v51 = vld [vmem:[#allocation6_spill] sm:$0xff] }
 0x2e5   : > { %v2251_v36 = vpop.f32.mrf.mxu0  ;;  %v1626_v57 = vadd.f32 %v4380_v51, %v3943_v49 }
 0x2e6   : > { %v2291_v23 = vadd.f32 %v2248_v2, %v2069_v37  ;;  %v2430_v22 = vmax.f32 %v2398_v3, 0.0  ;;  %v2610_v3 = vld [vmem:[%s4124_s25 + $0x58] sm:$0xff] }
 0x2e7   : > { %v2536_v25 = vpop.f32.mrf.mxu1 }
 0x2e8   : > { %v2327_v31 = vadd.f32 %v3966_v34, %v2291_v23  ;;  %v2537_v41 = vadd.f32 %v4129_v13, %v2536_v25 }
 0x2e9   : > { %v1807_v43 = vpop.f32.mrf.mxu2 }
 0x2ea   : > { %v2363_v15 = vmul.f32 %v3976_v8, %v2327_v31  ;;  %v2638_v42 = vadd.f32 %v2606_v35, %v2537_v41  ;;  %v1848_v39 = vadd.f32 %v1807_v43, %v4377_v54  ;;  %v2029_v40 = vpop.f32.mrf.mxu3 }
 0x2ec   : > { %v2399_v59 = vadd.f32 %v3983_v26, %v2363_v15  ;;  %2671 = vst.msk [vmem:[%s4138_s12 + $0x38] sm:$0xff] %vm2663_vm2, %v2638_v42  ;;  %v2070_v29 = vadd.f32 %v2029_v40, %v1848_v39 }
 0x2ed   : > { %v2253_v46 = vpop.f32.mrf.mxu0 }
 0x2ee   : > { %v2431_v1 = vmax.f32 %v2399_v59, 0.0  ;;  %v2292_v27 = vadd.f32 %v2251_v36, %v2070_v29  ;;  %v4381_v29 = vld [vmem:[#allocation4_spill] sm:$0xff] }
 0x2ef   : > { %v2539_v20 = vpop.f32.mrf.mxu1 }
 0x2f0   : > { %v2540_v53 = vadd.f32 %v4129_v13, %v2539_v20  ;;  %v2450_v0 = vpack.c.bf16 %v2431_v1, %v2430_v22  ;;  %v2328_v11 = vadd.f32 %v3966_v34, %v2292_v27 }
 0x2f1   : > { %v1809_v45 = vpop.f32.mrf.mxu2 }
 0x2f2   : > { %v2639_v58 = vadd.f32 %v2607_v56, %v2540_v53  ;;  %v1849_v28 = vadd.f32 %v1809_v45, %v1624_v30  ;;  %v2031_v19 = vpop.f32.mrf.mxu3  ;;  %3152 = vmatmul.msk.bf16.gmra.mxu1 %vm456_vm1, %v2450_v0  ;;  %v2364_v4 = vmul.f32 %v3976_v8, %v2328_v11  ;;  %v2611_v53 = vld [vmem:[%s4124_s25 + $0x60] sm:$0xff]  ;;  %v4382_v0 = vld [vmem:[#allocation5_spill] sm:$0xff] }
 0x2f3   : > { %v1628_v45 = vadd.f32 %v4114_v61, %v4382_v0 }
 0x2f4   : > { %2672 = vst.msk [vmem:[%s4138_s12 + $0x40] sm:$0xff] %vm2663_vm2, %v2639_v58  ;;  %v2071_v7 = vadd.f32 %v2031_v19, %v1849_v28  ;;  %v2400_v47 = vadd.f32 %v3983_v26, %v2364_v4 }
 0x2f5   : > { %v2256_v17 = vpop.f32.mrf.mxu0 }
 0x2f6   : > { %v2293_v24 = vadd.f32 %v2253_v46, %v2071_v7  ;;  %v2432_v60 = vmax.f32 %v2400_v47, 0.0 }
 0x2f7   : > { %v2541_v6 = vpop.f32.mrf.mxu1 }
 0x2f8   : > { %v2329_v63 = vadd.f32 %v3966_v34, %v2293_v24  ;;  %v2542_v32 = vadd.f32 %v4129_v13, %v2541_v6 }
 0x2f9   : > { %v1812_v2 = vpop.f32.mrf.mxu2 }
 0x2fa   : > { %v2365_v52 = vmul.f32 %v3976_v8, %v2329_v63  ;;  %v2640_v9 = vadd.f32 %v2608_v10, %v2542_v32  ;;  %v1850_v50 = vadd.f32 %v1812_v2, %v3935_v33  ;;  %v2034_v55 = vpop.f32.mrf.mxu3  ;;  %v2612_v32 = vld [vmem:[%s4124_s25 + $0x68] sm:$0xff] }
 0x2fc   : > { %v2401_v44 = vadd.f32 %v3983_v26, %v2365_v52  ;;  %2673 = vst.msk [vmem:[%s4138_s12 + $0x48] sm:$0xff] %vm2663_vm2, %v2640_v9  ;;  %v2072_v5 = vadd.f32 %v2034_v55, %v1850_v50 }
 0x2fd   : > { %v2258_v33 = vpop.f32.mrf.mxu0 }
 0x2fe   : > { %v2433_v48 = vmax.f32 %v2401_v44, 0.0  ;;  %v2294_v21 = vadd.f32 %v2256_v17, %v2072_v5 }
 0x2ff   : > { %v2544_v12 = vpop.f32.mrf.mxu1 }
 0x300   : > { %v2545_v62 = vadd.f32 %v4129_v13, %v2544_v12  ;;  %v2451_v37 = vpack.c.bf16 %v2433_v48, %v2432_v60  ;;  %v2330_v16 = vadd.f32 %v3966_v34, %v2294_v21  ;;  %v2613_v48 = vld [vmem:[%s4124_s25 + $0x70] sm:$0xff] }
 0x301   : > { %v1814_v36 = vpop.f32.mrf.mxu2 }
 0x302   : > { %v2641_v23 = vadd.f32 %v2609_v38, %v2545_v62  ;;  %v1851_v25 = vadd.f32 %v1814_v36, %v1626_v57  ;;  %v2036_v35 = vpop.f32.mrf.mxu3  ;;  %3153 = vmatmul.msk.bf16.gmra.mxu1 %vm456_vm1, %v2451_v37  ;;  %v2366_v41 = vmul.f32 %v3976_v8, %v2330_v16  ;;  %v2615_v62 = vld [vmem:[%s4124_s25 + $0x80] sm:$0xff]  ;;  %v2616_v16 = vld [vmem:[%s4124_s25 + $0x88] sm:$0xff] }
 0x304   : > { %2674 = vst.msk [vmem:[%s4138_s12 + $0x50] sm:$0xff] %vm2663_vm2, %v2641_v23  ;;  %v2073_v31 = vadd.f32 %v2036_v35, %v1851_v25  ;;  %v2402_v39 = vadd.f32 %v3983_v26, %v2366_v41 }
 0x305   : > { %v2261_v1 = vpop.f32.mrf.mxu0 }
 0x306   : > { %v2295_v43 = vadd.f32 %v2258_v33, %v2073_v31  ;;  %v2434_v56 = vmax.f32 %v2402_v39, 0.0  ;;  %v2617_v31 = vld [vmem:[%s4124_s25 + $0x90] sm:$0xff]  ;;  %v2619_v39 = vld [vmem:[%s4124_s25 + $0xa0] sm:$0xff] }
 0x307   : > { %v2546_v49 = vpop.f32.mrf.mxu1 }
 0x308   : > { %v2331_v15 = vadd.f32 %v3966_v34, %v2295_v43  ;;  %v2547_v42 = vadd.f32 %v4129_v13, %v2546_v49 }
 0x309   : > { %v1817_v54 = vpop.f32.mrf.mxu2 }
 0x30a   : > { %v2367_v40 = vmul.f32 %v3976_v8, %v2331_v15  ;;  %v2642_v59 = vadd.f32 %v2610_v3, %v2547_v42  ;;  %v1852_v46 = vadd.f32 %v1817_v54, %v4381_v29  ;;  %v2039_v22 = vpop.f32.mrf.mxu3  ;;  %v2618_v3 = vld [vmem:[%s4124_s25 + $0x98] sm:$0xff] }
 0x30c   : > { %v2403_v27 = vadd.f32 %v3983_v26, %v2367_v40  ;;  %2675 = vst.msk [vmem:[%s4138_s12 + $0x58] sm:$0xff] %vm2663_vm2, %v2642_v59  ;;  %v2074_v20 = vadd.f32 %v2039_v22, %v1852_v46  ;;  %v2620_v46 = vld [vmem:[%s4124_s25 + $0xa8] sm:$0xff] }
 0x30d   : > { %v2263_v6 = vpop.f32.mrf.mxu0 }
 0x30e   : > { %v2435_v14 = vmax.f32 %v2403_v27, 0.0  ;;  %v2296_v18 = vadd.f32 %v2261_v1, %v2074_v20  ;;  %v2621_v20 = vld [vmem:[%s4124_s25 + $0xb0] sm:$0xff] }
 0x30f   : > { %v2549_v30 = vpop.f32.mrf.mxu1 }
 0x310   : > { %v2550_v11 = vadd.f32 %v4129_v13, %v2549_v30  ;;  %v2452_v58 = vpack.c.bf16 %v2435_v14, %v2434_v56  ;;  %v2332_v19 = vadd.f32 %v3966_v34, %v2296_v18  ;;  %v2622_v30 = vld [vmem:[%s4124_s25 + $0xb8] sm:$0xff] }
 0x311   : > { %v1819_v28 = vpop.f32.mrf.mxu2 }
 0x312   : > { %v2643_v7 = vadd.f32 %v2611_v53, %v2550_v11  ;;  %v1853_v4 = vadd.f32 %v1819_v28, %v1628_v45  ;;  %3154 = vmatmul.msk.bf16.gmra.mxu1 %vm456_vm1, %v2452_v58  ;;  %v2041_v24 = vpop.f32.mrf.mxu3  ;;  %v2368_v10 = vmul.f32 %v3976_v8, %v2332_v19  ;;  %v2623_v11 = vld [vmem:[%s4124_s25 + $0xc0] sm:$0xff] }
 0x314   : > { %2676 = vst.msk [vmem:[%s4138_s12 + $0x60] sm:$0xff] %vm2663_vm2, %v2643_v7  ;;  %v2075_v17 = vadd.f32 %v2041_v24, %v1853_v4  ;;  %v2404_v52 = vadd.f32 %v3983_v26, %v2368_v10  ;;  %v2624_v7 = vld [vmem:[%s4124_s25 + $0xc8] sm:$0xff] }
 0x316   : > { %v2297_v61 = vadd.f32 %v2263_v6, %v2075_v17  ;;  %v2436_v44 = vmax.f32 %v2404_v52, 0.0  ;;  %v2625_v6 = vld [vmem:[%s4124_s25 + $0xd0] sm:$0xff] }
 0x317   : > { %v2551_v63 = vpop.f32.mrf.mxu1 }
 0x318   : > { %v2333_v2 = vadd.f32 %v3966_v34, %v2297_v61  ;;  %v2552_v47 = vadd.f32 %v4129_v13, %v2551_v63 }
 0x31a   : > { %v2369_v9 = vmul.f32 %v3976_v8, %v2333_v2  ;;  %v2644_v50 = vadd.f32 %v2612_v32, %v2552_v47  ;;  %v2626_v32 = vld [vmem:[%s4124_s25 + $0xd8] sm:$0xff] }
 0x31c   : > { %v2405_v55 = vadd.f32 %v3983_v26, %v2369_v9  ;;  %2677 = vst.msk [vmem:[%s4138_s12 + $0x68] sm:$0xff] %vm2663_vm2, %v2644_v50  ;;  %v2614_v26 = vld [vmem:[%s4124_s25 + $0x78] sm:$0xff]  ;;  %v2627_v9 = vld [vmem:[%s4124_s25 + $0xe0] sm:$0xff] }
 0x31e   : > { %v2437_v5 = vmax.f32 %v2405_v55, 0.0 }
 0x31f   : > { %v2554_v60 = vpop.f32.mrf.mxu1 }
 0x320   : > { %v2555_v34 = vadd.f32 %v4129_v13, %v2554_v60  ;;  %v2453_v21 = vpack.c.bf16 %v2437_v5, %v2436_v44  ;;  %v2628_v5 = vld [vmem:[%s4124_s25 + $0xe8] sm:$0xff] }
 0x322   : > { %v2645_v12 = vadd.f32 %v2613_v48, %v2555_v34  ;;  %3155 = vmatmul.msk.bf16.gmra.mxu1 %vm456_vm1, %v2453_v21  ;;  %v2629_v21 = vld [vmem:[%s4124_s25 + $0xf0] sm:$0xff] }
 0x324   : > { %2678 = vst.msk [vmem:[%s4138_s12 + $0x70] sm:$0xff] %vm2663_vm2, %v2645_v12 }
 0x327   : > { %v2556_v8 = vpop.f32.mrf.mxu1 }
 0x328   : > { %v2557_v38 = vadd.f32 %v4129_v13, %v2556_v8 }
 0x32a   : > { %v2646_v51 = vadd.f32 %v2614_v26, %v2557_v38  ;;  %v2630_v38 = vld [vmem:[%s4124_s25 + $0xf8] sm:$0xff] }
 0x32c   : > { %2679 = vst.msk [vmem:[%s4138_s12 + $0x78] sm:$0xff] %vm2663_vm2, %v2646_v51 }
 0x32f   : > { %v2559_v57 = vpop.f32.mrf.mxu1 }
 0x330   : > { %v2560_v37 = vadd.f32 %v4129_v13, %v2559_v57 }
 0x332   : > { %v2647_v33 = vadd.f32 %v2615_v62, %v2560_v37 }
 0x334   : > { %2680 = vst.msk [vmem:[%s4138_s12 + $0x80] sm:$0xff] %vm2663_vm2, %v2647_v33 }
 0x337   : > { %v2561_v36 = vpop.f32.mrf.mxu1 }
 0x338   : > { %v2562_v23 = vadd.f32 %v4129_v13, %v2561_v36 }
 0x33a   : > { %v2648_v25 = vadd.f32 %v2616_v16, %v2562_v23 }
 0x33c   : > { %2681 = vst.msk [vmem:[%s4138_s12 + $0x88] sm:$0xff] %vm2663_vm2, %v2648_v25 }
 0x33f   : > { %v2564_v35 = vpop.f32.mrf.mxu1 }
 0x340   : > { %v2565_v41 = vadd.f32 %v4129_v13, %v2564_v35 }
 0x342   : > { %v2649_v43 = vadd.f32 %v2617_v31, %v2565_v41 }
 0x344   : > { %2682 = vst.msk [vmem:[%s4138_s12 + $0x90] sm:$0xff] %vm2663_vm2, %v2649_v43 }
 0x347   : > { %v2566_v49 = vpop.f32.mrf.mxu1 }
 0x348   : > { %v2567_v15 = vadd.f32 %v4129_v13, %v2566_v49 }
 0x34a   : > { %v2650_v42 = vadd.f32 %v2618_v3, %v2567_v15 }
 0x34c   : > { %2683 = vst.msk [vmem:[%s4138_s12 + $0x98] sm:$0xff] %vm2663_vm2, %v2650_v42 }
 0x34f   : > { %v2569_v54 = vpop.f32.mrf.mxu1 }
 0x350   : > { %v2570_v40 = vadd.f32 %v4129_v13, %v2569_v54 }
 0x352   : > { %v2651_v59 = vadd.f32 %v2619_v39, %v2570_v40 }
 0x354   : > { %2684 = vst.msk [vmem:[%s4138_s12 + $0xa0] sm:$0xff] %vm2663_vm2, %v2651_v59 }
 0x357   : > { %v2571_v29 = vpop.f32.mrf.mxu1 }
 0x358   : > { %v2572_v22 = vadd.f32 %v4129_v13, %v2571_v29 }
 0x35a   : > { %v2652_v1 = vadd.f32 %v2620_v46, %v2572_v22 }
 0x35c   : > { %2685 = vst.msk [vmem:[%s4138_s12 + $0xa8] sm:$0xff] %vm2663_vm2, %v2652_v1 }
 0x35f   : > { %v2574_v27 = vpop.f32.mrf.mxu1 }
 0x360   : > { %v2575_v56 = vadd.f32 %v4129_v13, %v2574_v27 }
 0x362   : > { %v2653_v14 = vadd.f32 %v2621_v20, %v2575_v56 }
 0x364   : > { %2686 = vst.msk [vmem:[%s4138_s12 + $0xb0] sm:$0xff] %vm2663_vm2, %v2653_v14 }
 0x367   : > { %v2576_v18 = vpop.f32.mrf.mxu1 }
 0x368   : > { %v2577_v53 = vadd.f32 %v4129_v13, %v2576_v18 }
 0x36a   : > { %v2654_v0 = vadd.f32 %v2622_v30, %v2577_v53 }
 0x36c   : > { %2687 = vst.msk [vmem:[%s4138_s12 + $0xb8] sm:$0xff] %vm2663_vm2, %v2654_v0 }
 0x36f   : > { %v2579_v45 = vpop.f32.mrf.mxu1 }
 0x370   : > { %v2580_v58 = vadd.f32 %v4129_v13, %v2579_v45 }
 0x372   : > { %v2655_v28 = vadd.f32 %v2623_v11, %v2580_v58 }
 0x374   : > { %2688 = vst.msk [vmem:[%s4138_s12 + $0xc0] sm:$0xff] %vm2663_vm2, %v2655_v28 }
 0x377   : > { %v2581_v19 = vpop.f32.mrf.mxu1 }
 0x378   : > { %v2582_v4 = vadd.f32 %v4129_v13, %v2581_v19 }
 0x37a   : > { %v2656_v24 = vadd.f32 %v2624_v7, %v2582_v4 }
 0x37c   : > { %2689 = vst.msk [vmem:[%s4138_s12 + $0xc8] sm:$0xff] %vm2663_vm2, %v2656_v24 }
 0x37f   : > { %v2584_v17 = vpop.f32.mrf.mxu1 }
 0x380   : > { %v2585_v10 = vadd.f32 %v4129_v13, %v2584_v17 }
 0x382   : > { %v2657_v61 = vadd.f32 %v2625_v6, %v2585_v10 }
 0x384   : > { %2690 = vst.msk [vmem:[%s4138_s12 + $0xd0] sm:$0xff] %vm2663_vm2, %v2657_v61 }
 0x387   : > { %v2586_v63 = vpop.f32.mrf.mxu1 }
 0x388   : > { %v2587_v2 = vadd.f32 %v4129_v13, %v2586_v63 }
 0x38a   : > { %v2658_v47 = vadd.f32 %v2626_v32, %v2587_v2 }
 0x38c   : > { %2691 = vst.msk [vmem:[%s4138_s12 + $0xd8] sm:$0xff] %vm2663_vm2, %v2658_v47 }
 0x38f   : > { %v2589_v52 = vpop.f32.mrf.mxu1 }
 0x390   : > { %v2590_v50 = vadd.f32 %v4129_v13, %v2589_v52 }
 0x392   : > { %v2659_v55 = vadd.f32 %v2627_v9, %v2590_v50 }
 0x394   : > { %2692 = vst.msk [vmem:[%s4138_s12 + $0xe0] sm:$0xff] %vm2663_vm2, %v2659_v55 }
 0x397   : > { %v2591_v44 = vpop.f32.mrf.mxu1 }
 0x398   : > { %v2592_v60 = vadd.f32 %v4129_v13, %v2591_v44 }
 0x39a   : > { %v2660_v48 = vadd.f32 %v2628_v5, %v2592_v60 }
 0x39c   : > { %2693 = vst.msk [vmem:[%s4138_s12 + $0xe8] sm:$0xff] %vm2663_vm2, %v2660_v48 }
 0x39f   : > { %v2594_v34 = vpop.f32.mrf.mxu1 }
 0x3a0   : > { %v2595_v12 = vadd.f32 %v4129_v13, %v2594_v34 }
 0x3a2   : > { %v2661_v8 = vadd.f32 %v2629_v21, %v2595_v12 }
 0x3a4   : > { %2694 = vst.msk [vmem:[%s4138_s12 + $0xf0] sm:$0xff] %vm2663_vm2, %v2661_v8 }
 0x3a7   : > { %v2596_v26 = vpop.f32.mrf.mxu1 }
 0x3a8   : > { %v2597_v51 = vadd.f32 %v4129_v13, %v2596_v26 }
 0x3aa   : > { %v2662_v57 = vadd.f32 %v2630_v38, %v2597_v51 }
 0x3ac   : > { %2695 = vst.msk [vmem:[%s4138_s12 + $0xf8] sm:$0xff] %vm2663_vm2, %v2662_v57 }
 0x3ad PF: > { %s18_s29 = sadd.s32 1, %s3211_s29   ;;  %s4383_s27 = smov %s3207_s28 }
 0x3ae   : > { %p15_p6 = scmp.ge.s32.totalorder %s18_s29, 4   ;;  %s4384_s28 = smov %s4386_s30 }
 0x3b0   :  { %17 = sbr.rel (!%p15_p6) target bundleno = 2 (0x2), region = 96 }

// kernel: forward_nchw.34
= control target key start
LH: loop header
LB: loop body
LE: loop exit
PB: predicated region body
PF: predicated region fallthrough
CT: control target
= control target key end

     0   :  { %s1362_s27 = smov 0   ;;  %s1364_s28 = smov 0   ;;  %s1641_s0 = inlined_call_operand.vmem [shape: f32[2,10,10,4], index: 0, kind: input, shape index: {}]   ;;  %s1642_s1 = inlined_call_operand.vmem [shape: bf16[9,4,4], index: 1, kind: input, shape index: {}]   ;;  %s1643_s2 = inlined_call_operand.vmem [shape: f32[1,4], index: 2, kind: input, shape index: {}]   ;;  %s1644_s3 = inlined_call_operand.vmem [shape: f32[1,4], index: 3, kind: input, shape index: {}]   ;;  %s1645_s4 = inlined_call_operand.vmem [shape: f32[1,4], index: 4, kind: input, shape index: {}]   ;;  %s1646_s5 = inlined_call_operand.vmem [shape: bf16[4,16], index: 5, kind: input, shape index: {}]   ;;  %s1647_s6 = inlined_call_operand.vmem [shape: f32[1,16], index: 6, kind: input, shape index: {}]   ;;  %s1648_s7 = inlined_call_operand.vmem [shape: f32[128,16], index: 7, kind: input, shape index: {}]   ;;  %s1649_s8 = inlined_call_operand.vmem [shape: f32[128,16], index: 8, kind: output, shape index: {}]  }
   0x1   :  { %s1366_s29 = smov 0  }
   0x2 LB: > { %s30_s30 = sadd.s32 1, %s1311_s28  ;;  %p1158_p0 = scmp.ge.s32.totalorder %s1315_s29, 1  ;;  %s1315_s29 = sphi %s1366_s29, %s18_s29   ;;  %s1311_s28 = sphi %s1364_s28, %s1651_s28   ;;  %s1307_s27 = sphi %s1362_s27, %s1650_s27  }
   0x3   : > { %p32_p1 = scmp.ge.s32.totalorder %s30_s30, 2  ;;  %p291_p2 = scmp.lt.s32.totalorder %s1315_s29, 3 }
   0x5   : > { %s1653_s30 = smov (%p32_p1, %s30_s30), 0  ;;  %p292_p3 = pnand %p1158_p0, %p291_p2 }
   0x6   : > { %p332_p4 = scmp.lt.s32.totalorder (!%p292_p3), %s1307_s27, 1  ;;  %s1160_s22 = sshll.u32 (!%p292_p3), %s1307_s27, 3 }
   0x7   : > { %295 = sbr.rel (%p292_p3) target bundleno = 459 (0x1cb), region = 52  ;;  %p339_p5 = scmp.lt.s32.totalorder (!%p292_p3), %s1160_s22, 15 }
   0xc   : > { %v1164_v0 = vld [vmem:[%s1642_s1 + $0x2] sm:$0x3]  ;;  %vm397_vm0 = vcmask 1041408   ;;  %v369_v1 = vld [vmem:[%s1642_s1] sm:$0x3]  ;;  %s333_s15 = scalar_select %p332_p4, %s1307_s27, 1 }
   0xd   : > { %v399_v2 = vsel %vm397_vm0, %v1164_v0, 0  ;;  %v443_v3 = vsel %vm397_vm0, %v369_v1, 0  ;;  %v1173_v4 = vld [vmem:[%s1642_s1 + $0x4] sm:$0x3]  ;;  %v1186_v6 = vld [vmem:[%s1642_s1 + $0x6] sm:$0x3] }
   0xe   : > { %1262 = vmatpush.bf16.msra.mxu2 %v399_v2  ;;  %1263 = vmatpush.bf16.msra.mxu3 %v443_v3  ;;  %v501_v5 = vsel %vm397_vm0, %v1173_v4, 0  ;;  %v1199_v7 = vld [vmem:[%s1642_s1 + $0x8] sm:$0x3]  ;;  %v570_v8 = vsel %vm397_vm0, %v1186_v6, 0  ;;  %s1264_s20 = smul.u32 160, %s333_s15  ;;  %vm384_vm1 = vcmask 31744  }
   0xf   : > { %408 = vmatpush.bf16.msra.mxu0 %v399_v2  ;;  %452 = vmatpush.bf16.msra.mxu1 %v443_v3  ;;  %v636_v9 = vsel %vm397_vm0, %v1199_v7, 0  ;;  %v1225_v22 = vld [vmem:[%s1642_s1 + $0xc] sm:$0x3]  ;;  %v1238_v23 = vld [vmem:[%s1642_s1 + $0xe] sm:$0x3]  ;;  %s1655_s22 = smov (!%p339_p5, %s1160_s22), 15 }
  0x10   : > { %s1407_s23 = scalar_lea.vmem %s1641_s0, %s1264_s20  ;;  %v1212_v24 = vld [vmem:[%s1642_s1 + $0xa] sm:$0x3]  ;;  %v771_v25 = vsel %vm397_vm0, %v1225_v22, 0  ;;  %v837_v26 = vsel %vm397_vm0, %v1238_v23, 0  ;;  %v1251_v28 = vld [vmem:[%s1642_s1 + $0x10] sm:$0x3] }
  0x11   : > { %v1410_v10 = vld [vmem:[%s1407_s23 + $0x41] sm:$0xff]  ;;  %v1413_v11 = vld [vmem:[%s1407_s23 + $0x51] sm:$0xff]  ;;  %v702_v27 = vsel %vm397_vm0, %v1212_v24, 0  ;;  %v903_v29 = vsel %vm397_vm0, %v1251_v28, 0  ;;  %vm1055_vm2 = vcmask 130048  }
  0x12   : > { %510 = vmatpush.bf16.msrb.mxu2 %v501_v5  ;;  %579 = vmatpush.bf16.msrb.mxu3 %v570_v8  ;;  %v361_v12 = vld [vmem:[%s1407_s23 + $0x40] sm:$0xff]  ;;  %v1418_v13 = vpack.c.bf16 %v1413_v11, %v1410_v10  ;;  %v1421_v14 = vld [vmem:[%s1407_s23 + $0x50] sm:$0xff] }
  0x13   : > { %645 = vmatpush.bf16.msrb.mxu0 %v636_v9  ;;  %v370_v15 = vld [vmem:[%s1407_s23 + $0x1] sm:$0xff]  ;;  %v371_v16 = vld [vmem:[%s1407_s23 + $0x11] sm:$0xff]  ;;  %v1426_v17 = vpack.c.bf16 %v1421_v14, %v361_v12  ;;  %711 = vmatpush.bf16.msrb.mxu1 %v702_v27 }
  0x14   : > { %v378_v18 = vpack.c.bf16 %v371_v16, %v370_v15  ;;  %v357_v19 = vld [vmem:[%s1407_s23] sm:$0xff]  ;;  %v358_v20 = vld [vmem:[%s1407_s23 + $0x10] sm:$0xff]  ;;  %1167 = vmatmul.msk.bf16.vlgmr.msra.gmra.mxu2 %vm384_vm1, %v1418_v13 }
  0x15   : > { %v365_v21 = vpack.c.bf16 %v358_v20, %v357_v19  ;;  %1171 = vmatmul.msk.bf16.vlgmr.msra.gmra.mxu3 %vm384_vm1, %v1426_v17  ;;  %v376_v30 = vld [vmem:[%s1407_s23 + $0x61] sm:$0xff]  ;;  %v377_v31 = vld [vmem:[%s1407_s23 + $0x71] sm:$0xff] }
  0x16   : > { %1165 = vmatmul.msk.bf16.vlgmr.msra.gmra.mxu0 %vm384_vm1, %v378_v18  ;;  %780 = vmatpush.bf16.msra.mxu2 %v771_v25  ;;  %v363_v32 = vld [vmem:[%s1407_s23 + $0x60] sm:$0xff]  ;;  %v364_v33 = vld [vmem:[%s1407_s23 + $0x70] sm:$0xff]  ;;  %v381_v38 = vpack.c.bf16 %v377_v31, %v376_v30  ;;  %v619_v59 = vpack.c.bf16 %v376_v30, %v1413_v11 }
  0x17   : > { %1169 = vmatmul.msk.bf16.vlgmr.msra.gmra.mxu1 %vm384_vm1, %v365_v21  ;;  %846 = vmatpush.bf16.msra.mxu3 %v837_v26  ;;  %v372_v34 = vld [vmem:[%s1407_s23 + $0x21] sm:$0xff]  ;;  %v373_v35 = vld [vmem:[%s1407_s23 + $0x31] sm:$0xff]  ;;  %v368_v39 = vpack.c.bf16 %v364_v33, %v363_v32  ;;  %v553_v58 = vpack.c.bf16 %v363_v32, %v1421_v14 }
  0x18   : > { %912 = vmatpush.bf16.msra.mxu0 %v903_v29  ;;  %v359_v36 = vld [vmem:[%s1407_s23 + $0x20] sm:$0xff]  ;;  %v360_v37 = vld [vmem:[%s1407_s23 + $0x30] sm:$0xff]  ;;  %v379_v40 = vpack.c.bf16 %v373_v35, %v372_v34  ;;  %v617_v47 = vpack.c.bf16 %v372_v34, %v371_v16  ;;  %v618_v53 = vpack.c.bf16 %v1410_v10, %v373_v35 }
  0x19   : > { %v366_v41 = vpack.c.bf16 %v360_v37, %v359_v36  ;;  %v474_v42 = vld [vmem:[%s1407_s23 + $0x2] sm:$0xff]  ;;  %v475_v43 = vld [vmem:[%s1407_s23 + $0x12] sm:$0xff]  ;;  %v551_v46 = vpack.c.bf16 %v359_v36, %v358_v20  ;;  %v552_v52 = vpack.c.bf16 %v361_v12, %v360_v37  ;;  %v990_v29 = vld [vmem:[%s1646_s5] sm:$0x3] }
  0x1a   : > { %v1205_v44 = vld [vmem:[%s1407_s23 + $0x22] sm:$0xff]  ;;  %v482_v45 = vpack.c.bf16 %v475_v43, %v474_v42  ;;  %v477_v49 = vld [vmem:[%s1407_s23 + $0x32] sm:$0xff]  ;;  %v1008_v30 = vsel %vm397_vm0, %v990_v29, 0 }
  0x1b   : > { %v683_v48 = vpack.c.bf16 %v1205_v44, %v475_v43  ;;  %v1207_v50 = vld [vmem:[%s1407_s23 + $0x42] sm:$0xff]  ;;  %v483_v51 = vpack.c.bf16 %v477_v49, %v1205_v44  ;;  %v479_v55 = vld [vmem:[%s1407_s23 + $0x52] sm:$0xff]  ;;  %1017 = vmatpush.bf16.msra.mxu1 %v1008_v30  ;;  %v1550_v30 = vld [vmem:[%s1644_s3] ss:$0 sm:$0xff] }
  0x1c   : > { %v684_v54 = vpack.c.bf16 %v1207_v50, %v477_v49  ;;  %v1209_v56 = vld [vmem:[%s1407_s23 + $0x62] sm:$0xff]  ;;  %v484_v57 = vpack.c.bf16 %v479_v55, %v1207_v50  ;;  %v481_v61 = vld [vmem:[%s1407_s23 + $0x72] sm:$0xff] }
  0x1d   : > { %v685_v60 = vpack.c.bf16 %v1209_v56, %v479_v55  ;;  %v1185_v62 = vld [vmem:[%s1407_s23 + $0x80] sm:$0xff]  ;;  %v485_v1 = vpack.c.bf16 %v481_v61, %v1209_v56  ;;  %v1224_v10 = vld [vmem:[%s1407_s23 + $0x90] sm:$0xff] }
  0x1e   : > { %v1198_v63 = vld [vmem:[%s1407_s23 + $0x81] sm:$0xff]  ;;  %v554_v2 = vpack.c.bf16 %v1185_v62, %v364_v33  ;;  %v1237_v11 = vld [vmem:[%s1407_s23 + $0x91] sm:$0xff] }
  0x1f   : > { %v1211_v0 = vld [vmem:[%s1407_s23 + $0x82] sm:$0xff]  ;;  %v620_v3 = vpack.c.bf16 %v1198_v63, %v377_v31  ;;  %v1250_v12 = vld [vmem:[%s1407_s23 + $0x92] sm:$0xff]  ;;  %s1161_s23 = sshll.u32 %s1655_s22, 3 }
  0x20   : > { %v686_v4 = vpack.c.bf16 %v1211_v0, %v481_v61  ;;  %v887_v18 = vpack.c.bf16 %v1250_v12, %v1211_v0  ;;  %s1598_s26 = scalar_lea.vmem %s1648_s7, %s1161_s23  ;;  %s1607_s12 = scalar_lea.vmem %s1649_s8, %s1161_s23 }
  0x24   : > { %1168 = vmatmul.msk.bf16.gmra.mxu2 %vm384_vm1, %v381_v38 }
  0x25   : > { %1172 = vmatmul.msk.bf16.gmra.mxu3 %vm384_vm1, %v368_v39 }
  0x26   : > { %1166 = vmatmul.msk.bf16.gmra.mxu0 %vm384_vm1, %v379_v40 }
  0x27   : > { %1170 = vmatmul.msk.bf16.gmra.mxu1 %vm384_vm1, %v366_v41 }
  0x34   : > { %1174 = vmatmul.msk.bf16.vlgmr.msrb.gmra.mxu2 %vm384_vm1, %v482_v45 }
  0x35   : > { %1187 = vmatmul.msk.bf16.vlgmr.msrb.gmra.mxu3 %vm384_vm1, %v551_v46 }
  0x36   : > { %1200 = vmatmul.msk.bf16.vlgmr.msrb.gmra.mxu0 %vm384_vm1, %v617_v47 }
  0x37   : > { %1213 = vmatmul.msk.bf16.vlgmr.msrb.gmra.mxu1 %vm384_vm1, %v683_v48 }
  0x44   : > { %1175 = vmatmul.msk.bf16.gmra.mxu2 %vm384_vm1, %v483_v51 }
  0x45   : > { %1188 = vmatmul.msk.bf16.gmra.mxu3 %vm384_vm1, %v552_v52 }
  0x46   : > { %1201 = vmatmul.msk.bf16.gmra.mxu0 %vm384_vm1, %v618_v53 }
  0x47   : > { %1214 = vmatmul.msk.bf16.gmra.mxu1 %vm384_vm1, %v684_v54 }
  0x54   : > { %1176 = vmatmul.msk.bf16.gmra.mxu2 %vm384_vm1, %v484_v57 }
  0x55   : > { %1189 = vmatmul.msk.bf16.gmra.mxu3 %vm384_vm1, %v553_v58 }
  0x56   : > { %1202 = vmatmul.msk.bf16.gmra.mxu0 %vm384_vm1, %v619_v59 }
  0x57   : > { %1215 = vmatmul.msk.bf16.gmra.mxu1 %vm384_vm1, %v685_v60 }
  0x64   : > { %1177 = vmatmul.msk.bf16.gmra.mxu2 %vm384_vm1, %v485_v1 }
  0x65   : > { %1190 = vmatmul.msk.bf16.gmra.mxu3 %vm384_vm1, %v554_v2 }
  0x66   : > { %1203 = vmatmul.msk.bf16.gmra.mxu0 %vm384_vm1, %v620_v3 }
  0x67   : > { %1216 = vmatmul.msk.bf16.gmra.mxu1 %vm384_vm1, %v686_v4 }
  0x74   : > { %1226 = vmatmul.msk.bf16.vlgmr.msra.gmra.mxu2 %vm384_vm1, %v366_v41 }
  0x75   : > { %1239 = vmatmul.msk.bf16.vlgmr.msra.gmra.mxu3 %vm384_vm1, %v379_v40 }
  0x76   : > { %1252 = vmatmul.msk.bf16.vlgmr.msra.gmra.mxu0 %vm384_vm1, %v483_v51 }
  0x84   : > { %1227 = vmatmul.msk.bf16.gmra.mxu2 %vm384_vm1, %v1426_v17  ;;  %v821_v17 = vpack.c.bf16 %v1237_v11, %v1198_v63 }
  0x85   : > { %1240 = vmatmul.msk.bf16.gmra.mxu3 %vm384_vm1, %v1418_v13  ;;  %v755_v13 = vpack.c.bf16 %v1224_v10, %v1185_v62 }
  0x86   : > { %1253 = vmatmul.msk.bf16.gmra.mxu0 %vm384_vm1, %v484_v57 }
  0x93   : > { %v410_v5 = vpop.f32.mrf.mxu0 }
  0x94   : > { %1228 = vmatmul.msk.bf16.gmra.mxu2 %vm384_vm1, %v368_v39  ;;  %v454_v26 = vpop.f32.mrf.mxu1 }
  0x95   : > { %1241 = vmatmul.msk.bf16.gmra.mxu3 %vm384_vm1, %v381_v38  ;;  %v455_v31 = vadd.f32 %v454_v26, %v410_v5 }
  0x96   : > { %1254 = vmatmul.msk.bf16.gmra.mxu0 %vm384_vm1, %v485_v1 }
  0x97   : > { %v420_v6 = vpop.f32.mrf.mxu2 }
  0x98   : > { %v464_v7 = vpop.f32.mrf.mxu3 }
  0x99   : > { %v465_v8 = vadd.f32 %v464_v7, %v420_v6 }
  0x9b   : > { %v1505_v9 = vpop.f32.mrf.mxu0 }
  0x9c   : > { %v456_v37 = vpop.f32.mrf.mxu1 }
  0x9f   : > { %v422_v14 = vpop.f32.mrf.mxu2 }
  0xa0   : > { %v466_v15 = vpop.f32.mrf.mxu3 }
  0xa1   : > { %v1510_v16 = vadd.f32 %v466_v15, %v422_v14 }
  0xa3   : > { %v415_v19 = vpop.f32.mrf.mxu0 }
  0xa4   : > { %1229 = vmatmul.msk.bf16.gmra.mxu2 %vm384_vm1, %v755_v13  ;;  %v459_v42 = vpop.f32.mrf.mxu1 }
  0xa5   : > { %1242 = vmatmul.msk.bf16.gmra.mxu3 %vm384_vm1, %v821_v17  ;;  %v460_v43 = vadd.f32 %v459_v42, %v415_v19 }
  0xa6   : > { %1255 = vmatmul.msk.bf16.gmra.mxu0 %vm384_vm1, %v887_v18 }
  0xa7   : > { %v425_v20 = vpop.f32.mrf.mxu2 }
  0xa8   : > { %v469_v21 = vpop.f32.mrf.mxu3 }
  0xa9   : > { %v470_v22 = vadd.f32 %v469_v21, %v425_v20 }
  0xab   : > { %v1515_v23 = vpop.f32.mrf.mxu0 }
  0xac   : > { %v461_v59 = vpop.f32.mrf.mxu1 }
  0xaf   : > { %v427_v24 = vpop.f32.mrf.mxu2 }
  0xb0   : > { %v471_v25 = vpop.f32.mrf.mxu3 }
  0xb1   : > { %v1517_v27 = vadd.f32 %v471_v25, %v427_v24  ;;  %v1543_v25 = vld [vmem:[%s1643_s2] ss:$0 sm:$0xff] }
  0xb3   : > { %v647_v28 = vpop.f32.mrf.mxu0 }
  0xb4   : > { %v713_v63 = vpop.f32.mrf.mxu1 }
  0xb7   : > { %v512_v32 = vpop.f32.mrf.mxu2 }
  0xb8   : > { %v532_v33 = vadd.f32 %v512_v32, %v455_v31  ;;  %v581_v34 = vpop.f32.mrf.mxu3 }
  0xba   : > { %v601_v35 = vadd.f32 %v581_v34, %v532_v33 }
  0xbb   : > { %v649_v36 = vpop.f32.mrf.mxu0 }
  0xbc   : > { %v667_v38 = vadd.f32 %v647_v28, %v601_v35  ;;  %v715_v6 = vpop.f32.mrf.mxu1  ;;  %v462_v28 = vadd.f32 %v461_v59, %v1515_v23 }
  0xbe   : > { %v733_v14 = vadd.f32 %v713_v63, %v667_v38  ;;  %v1556_v38 = vld [vmem:[%s1645_s4] ss:$0 sm:$0xff] }
  0xbf   : > { %v514_v39 = vpop.f32.mrf.mxu2 }
  0xc0   : > { %v583_v40 = vpop.f32.mrf.mxu3 }
  0xc3   : > { %v652_v41 = vpop.f32.mrf.mxu0 }
  0xc4   : > { %v718_v19 = vpop.f32.mrf.mxu1 }
  0xc7   : > { %v517_v44 = vpop.f32.mrf.mxu2 }
  0xc8   : > { %v534_v45 = vadd.f32 %v517_v44, %v460_v43  ;;  %v586_v46 = vpop.f32.mrf.mxu3 }
  0xca   : > { %v603_v47 = vadd.f32 %v586_v46, %v534_v45 }
  0xcb   : > { %v654_v48 = vpop.f32.mrf.mxu0 }
  0xcc   : > { %v669_v49 = vadd.f32 %v652_v41, %v603_v47 }
  0xcf   : > { %v519_v50 = vpop.f32.mrf.mxu2 }
  0xd0   : > { %v588_v51 = vpop.f32.mrf.mxu3  ;;  %v535_v33 = vadd.f32 %v519_v50, %v462_v28 }
  0xd3   : > { %v657_v52 = vpop.f32.mrf.mxu0 }
  0xd7   : > { %v522_v53 = vpop.f32.mrf.mxu2 }
  0xd8   : > { %v536_v54 = vadd.f32 %v522_v53, %v465_v8  ;;  %v591_v55 = vpop.f32.mrf.mxu3  ;;  %v457_v8 = vadd.f32 %v456_v37, %v1505_v9 }
  0xda   : > { %v605_v56 = vadd.f32 %v591_v55, %v536_v54  ;;  %v533_v11 = vadd.f32 %v514_v39, %v457_v8  ;;  %v735_v39 = vadd.f32 %v718_v19, %v669_v49 }
  0xdb   : > { %v1523_v57 = vpop.f32.mrf.mxu0 }
  0xdc   : > { %v1525_v58 = vadd.f32 %v657_v52, %v605_v56  ;;  %v602_v15 = vadd.f32 %v583_v40, %v533_v11  ;;  %v604_v40 = vadd.f32 %v588_v51, %v535_v33 }
  0xde   : > { %v668_v20 = vadd.f32 %v649_v36, %v602_v15  ;;  %v720_v36 = vpop.f32.mrf.mxu1  ;;  %v670_v47 = vadd.f32 %v654_v48, %v604_v40 }
  0xdf   : > { %v1527_v60 = vpop.f32.mrf.mxu2 }
  0xe0   : > { %v1529_v61 = vpop.f32.mrf.mxu3  ;;  %v734_v9 = vadd.f32 %v715_v6, %v668_v20  ;;  %v736_v49 = vadd.f32 %v720_v36, %v670_v47  ;;  %v537_v48 = vadd.f32 %v1527_v60, %v1510_v16 }
  0xe3   : > { %v662_v62 = vpop.f32.mrf.mxu0 }
  0xe6   : > { %v723_v59 = vpop.f32.mrf.mxu1 }
  0xe7   : > { %v527_v0 = vpop.f32.mrf.mxu2  ;;  %v737_v11 = vadd.f32 %v723_v59, %v1525_v58 }
  0xe8   : > { %v538_v1 = vadd.f32 %v527_v0, %v470_v22  ;;  %v596_v2 = vpop.f32.mrf.mxu3 }
  0xea   : > { %v607_v3 = vadd.f32 %v596_v2, %v538_v1 }
  0xeb   : > { %v1531_v4 = vpop.f32.mrf.mxu0 }
  0xec   : > { %v1533_v5 = vadd.f32 %v662_v62, %v607_v3 }
  0xee   : > { %v725_v15 = vpop.f32.mrf.mxu1 }
  0xef   : > { %v1535_v7 = vpop.f32.mrf.mxu2 }
  0xf0   : > { %v1538_v10 = vpop.f32.mrf.mxu3 }
  0xf3   : > { %v914_v12 = vpop.f32.mrf.mxu0 }
  0xf6   : > { %v728_v33 = vpop.f32.mrf.mxu1 }
  0xf7   : > { %v782_v13 = vpop.f32.mrf.mxu2 }
  0xf8   : > { %v802_v17 = vadd.f32 %v782_v13, %v733_v14  ;;  %v848_v18 = vpop.f32.mrf.mxu3 }
  0xfa   : > { %v868_v21 = vadd.f32 %v848_v18, %v802_v17 }
  0xfb   : > { %v916_v22 = vpop.f32.mrf.mxu0 }
  0xfc   : > { %v934_v24 = vadd.f32 %v914_v12, %v868_v21  ;;  %v606_v12 = vadd.f32 %v1529_v61, %v537_v48 }
  0xfe   : > { %v946_v29 = vadd.f32 %v1543_v25, %v934_v24  ;;  %v672_v16 = vadd.f32 %v1523_v57, %v606_v12  ;;  %v539_v57 = vadd.f32 %v1535_v7, %v1517_v27  ;;  %v730_v47 = vpop.f32.mrf.mxu1 }
  0xff   : > { %v784_v26 = vpop.f32.mrf.mxu2 }
 0x100   : > { %v803_v31 = vadd.f32 %v784_v26, %v734_v9  ;;  %v850_v32 = vpop.f32.mrf.mxu3  ;;  %v958_v37 = vmul.f32 %v1550_v30, %v946_v29  ;;  %v738_v9 = vadd.f32 %v725_v15, %v672_v16 }
 0x102   : > { %v869_v34 = vadd.f32 %v850_v32, %v803_v31  ;;  %v970_v43 = vadd.f32 %v1556_v38, %v958_v37  ;;  %v739_v37 = vadd.f32 %v728_v33, %v1533_v5  ;;  %v1045_v33 = vld [vmem:[%s1598_s26 + $0x30] sm:$0xff] }
 0x103   : > { %v919_v35 = vpop.f32.mrf.mxu0 }
 0x104   : > { %v935_v23 = vadd.f32 %v916_v22, %v869_v34  ;;  %v978_v54 = vmax.f32 %v970_v43, 0.0 }
 0x106   : > { %v947_v41 = vadd.f32 %v1543_v25, %v935_v23  ;;  %v608_v23 = vadd.f32 %v1538_v10, %v539_v57 }
 0x107   : > { %v787_v42 = vpop.f32.mrf.mxu2 }
 0x108   : > { %v959_v44 = vmul.f32 %v1550_v30, %v947_v41  ;;  %v804_v45 = vadd.f32 %v787_v42, %v735_v39  ;;  %v853_v46 = vpop.f32.mrf.mxu3  ;;  %v674_v27 = vadd.f32 %v1531_v4, %v608_v23 }
 0x10a   : > { %v971_v50 = vadd.f32 %v1556_v38, %v959_v44  ;;  %v870_v52 = vadd.f32 %v853_v46, %v804_v45  ;;  %v740_v10 = vadd.f32 %v730_v47, %v674_v27 }
 0x10b   : > { %v921_v53 = vpop.f32.mrf.mxu0 }
 0x10c   : > { %v979_v55 = vmax.f32 %v971_v50, 0.0  ;;  %v936_v56 = vadd.f32 %v919_v35, %v870_v52 }
 0x10e   : > { %v986_v51 = vpack.c.bf16 %v979_v55, %v978_v54  ;;  %v948_v63 = vadd.f32 %v1543_v25, %v936_v56 }
 0x10f   : > { %v789_v62 = vpop.f32.mrf.mxu2 }
 0x110   : > { %v805_v0 = vadd.f32 %v789_v62, %v736_v49  ;;  %v855_v1 = vpop.f32.mrf.mxu3  ;;  %1256 = vmatmul.msk.bf16.vlgmr.msra.gmra.mxu1 %vm384_vm1, %v986_v51  ;;  %v960_v3 = vmul.f32 %v1550_v30, %v948_v63 }
 0x112   : > { %v871_v2 = vadd.f32 %v855_v1, %v805_v0  ;;  %v972_v20 = vadd.f32 %v1556_v38, %v960_v3 }
 0x113   : > { %v924_v8 = vpop.f32.mrf.mxu0 }
 0x114   : > { %v937_v6 = vadd.f32 %v921_v53, %v871_v2  ;;  %v980_v24 = vmax.f32 %v972_v20, 0.0 }
 0x116   : > { %v949_v14 = vadd.f32 %v1543_v25, %v937_v6 }
 0x117   : > { %v792_v13 = vpop.f32.mrf.mxu2 }
 0x118   : > { %v961_v17 = vmul.f32 %v1550_v30, %v949_v14  ;;  %v806_v18 = vadd.f32 %v792_v13, %v737_v11  ;;  %v858_v19 = vpop.f32.mrf.mxu3  ;;  %v1040_v14 = vld [vmem:[%s1598_s26 + $0x8] sm:$0xff] }
 0x11a   : > { %v872_v60 = vadd.f32 %v858_v19, %v806_v18  ;;  %v973_v21 = vadd.f32 %v1556_v38, %v961_v17  ;;  %v1041_v18 = vld [vmem:[%s1598_s26 + $0x10] sm:$0xff] }
 0x11b   : > { %v926_v26 = vpop.f32.mrf.mxu0 }
 0x11c   : > { %v938_v22 = vadd.f32 %v924_v8, %v872_v60  ;;  %v981_v58 = vmax.f32 %v973_v21, 0.0  ;;  %v1042_v60 = vld [vmem:[%s1598_s26 + $0x18] sm:$0xff] }
 0x11e   : > { %v987_v61 = vpack.c.bf16 %v981_v58, %v980_v24  ;;  %v950_v29 = vadd.f32 %v1543_v25, %v938_v22  ;;  %v1043_v58 = vld [vmem:[%s1598_s26 + $0x20] sm:$0xff] }
 0x11f   : > { %v794_v28 = vpop.f32.mrf.mxu2 }
 0x120   : > { %v807_v31 = vadd.f32 %v794_v28, %v738_v9  ;;  %v860_v32 = vpop.f32.mrf.mxu3  ;;  %1257 = vmatmul.msk.bf16.gmra.mxu1 %vm384_vm1, %v987_v61  ;;  %v962_v35 = vmul.f32 %v1550_v30, %v950_v29  ;;  %v1044_v28 = vld [vmem:[%s1598_s26 + $0x28] sm:$0xff] }
 0x122   : > { %v873_v34 = vadd.f32 %v860_v32, %v807_v31  ;;  %v974_v44 = vadd.f32 %v1556_v38, %v962_v35 }
 0x123   : > { %v929_v45 = vpop.f32.mrf.mxu0 }
 0x124   : > { %v939_v36 = vadd.f32 %v926_v26, %v873_v34  ;;  %v982_v5 = vmax.f32 %v974_v44, 0.0 }
 0x126   : > { %v951_v39 = vadd.f32 %v1543_v25, %v939_v36  ;;  %v1046_v36 = vld [vmem:[%s1598_s26 + $0x38] sm:$0xff] }
 0x127   : > { %v797_v40 = vpop.f32.mrf.mxu2 }
 0x128   : > { %v963_v41 = vmul.f32 %v1550_v30, %v951_v39  ;;  %v808_v42 = vadd.f32 %v797_v40, %v739_v37  ;;  %v863_v43 = vpop.f32.mrf.mxu3 }
 0x12a   : > { %v874_v7 = vadd.f32 %v863_v43, %v808_v42  ;;  %v975_v46 = vadd.f32 %v1556_v38, %v963_v41 }
 0x12b   : > { %v931_v51 = vpop.f32.mrf.mxu0 }
 0x12c   : > { %v940_v50 = vadd.f32 %v929_v45, %v874_v7  ;;  %v983_v52 = vmax.f32 %v975_v46, 0.0 }
 0x12e   : > { %v988_v53 = vpack.c.bf16 %v983_v52, %v982_v5  ;;  %v952_v55 = vadd.f32 %v1543_v25, %v940_v50 }
 0x12f   : > { %v799_v54 = vpop.f32.mrf.mxu2 }
 0x130   : > { %v809_v56 = vadd.f32 %v799_v54, %v740_v10  ;;  %1258 = vmatmul.msk.bf16.gmra.mxu1 %vm384_vm1, %v988_v53  ;;  %v865_v59 = vpop.f32.mrf.mxu3  ;;  %v964_v4 = vmul.f32 %v1550_v30, %v952_v55 }
 0x132   : > { %v875_v49 = vadd.f32 %v865_v59, %v809_v56  ;;  %v976_v1 = vadd.f32 %v1556_v38, %v964_v4 }
 0x134   : > { %v941_v62 = vadd.f32 %v931_v51, %v875_v49  ;;  %v984_v2 = vmax.f32 %v976_v1, 0.0 }
 0x136   : > { %v953_v63 = vadd.f32 %v1543_v25, %v941_v62  ;;  %v1292_v25 = vld [vmem:[%s1647_s6] ss:$0 sm:$0xff] }
 0x138   : > { %v965_v0 = vmul.f32 %v1550_v30, %v953_v63 }
 0x13a   : > { %v977_v48 = vadd.f32 %v1556_v38, %v965_v0  ;;  %v1039_v38 = vld [vmem:[%s1598_s26] sm:$0xff] }
 0x13c   : > { %v985_v3 = vmax.f32 %v977_v48, 0.0 }
 0x13e   : > { %v989_v6 = vpack.c.bf16 %v985_v3, %v984_v2 }
 0x140   : > { %1259 = vmatmul.msk.bf16.gmra.mxu1 %vm384_vm1, %v989_v6 }
 0x18d   : > { %v1019_v30 = vpop.f32.mrf.mxu1 }
 0x18e   : > { %v1020_v8 = vadd.f32 %v1292_v25, %v1019_v30 }
 0x190   : > { %v1047_v11 = vadd.f32 %v1039_v38, %v1020_v8 }
 0x192   : > { %1056 = vst.msk [vmem:[%s1607_s12] sm:$0xff] %vm1055_vm2, %v1047_v11 }
 0x195   : > { %v1021_v12 = vpop.f32.mrf.mxu1 }
 0x196   : > { %v1022_v15 = vadd.f32 %v1292_v25, %v1021_v12 }
 0x198   : > { %v1048_v13 = vadd.f32 %v1040_v14, %v1022_v15 }
 0x19a   : > { %1057 = vst.msk [vmem:[%s1607_s12 + $0x8] sm:$0xff] %vm1055_vm2, %v1048_v13 }
 0x19d   : > { %v1024_v17 = vpop.f32.mrf.mxu1 }
 0x19e   : > { %v1025_v19 = vadd.f32 %v1292_v25, %v1024_v17 }
 0x1a0   : > { %v1049_v20 = vadd.f32 %v1041_v18, %v1025_v19 }
 0x1a2   : > { %1058 = vst.msk [vmem:[%s1607_s12 + $0x10] sm:$0xff] %vm1055_vm2, %v1049_v20 }
 0x1a5   : > { %v1026_v16 = vpop.f32.mrf.mxu1 }
 0x1a6   : > { %v1027_v21 = vadd.f32 %v1292_v25, %v1026_v16 }
 0x1a8   : > { %v1050_v22 = vadd.f32 %v1042_v60, %v1027_v21 }
 0x1aa   : > { %1059 = vst.msk [vmem:[%s1607_s12 + $0x18] sm:$0xff] %vm1055_vm2, %v1050_v22 }
 0x1ad   : > { %v1029_v24 = vpop.f32.mrf.mxu1 }
 0x1ae   : > { %v1030_v9 = vadd.f32 %v1292_v25, %v1029_v24 }
 0x1b0   : > { %v1051_v61 = vadd.f32 %v1043_v58, %v1030_v9 }
 0x1b2   : > { %1060 = vst.msk [vmem:[%s1607_s12 + $0x20] sm:$0xff] %vm1055_vm2, %v1051_v61 }
 0x1b5   : > { %v1031_v26 = vpop.f32.mrf.mxu1 }
 0x1b6   : > { %v1032_v29 = vadd.f32 %v1292_v25, %v1031_v26 }
 0x1b8   : > { %v1052_v31 = vadd.f32 %v1044_v28, %v1032_v29 }
 0x1ba   : > { %1061 = vst.msk [vmem:[%s1607_s12 + $0x28] sm:$0xff] %vm1055_vm2, %v1052_v31 }
 0x1bd   : > { %v1034_v32 = vpop.f32.mrf.mxu1 }
 0x1be   : > { %v1035_v57 = vadd.f32 %v1292_v25, %v1034_v32 }
 0x1c0   : > { %v1053_v34 = vadd.f32 %v1045_v33, %v1035_v57 }
 0x1c2   : > { %1062 = vst.msk [vmem:[%s1607_s12 + $0x30] sm:$0xff] %vm1055_vm2, %v1053_v34 }
 0x1c5   : > { %v1036_v35 = vpop.f32.mrf.mxu1 }
 0x1c6   : > { %v1037_v37 = vadd.f32 %v1292_v25, %v1036_v35 }
 0x1c8   : > { %v1054_v23 = vadd.f32 %v1046_v36, %v1037_v37 }
 0x1ca   : > { %1063 = vst.msk [vmem:[%s1607_s12 + $0x38] sm:$0xff] %vm1055_vm2, %v1054_v23 }
 0x1cb PF: > { %s18_s29 = sadd.s32 1, %s1315_s29   ;;  %s1650_s27 = smov %s1311_s28 }
 0x1cc   : > { %p15_p6 = scmp.ge.s32.totalorder %s18_s29, 4   ;;  %s1651_s28 = smov %s1653_s30 }
 0x1ce   :  { %17 = sbr.rel (!%p15_p6) target bundleno = 2 (0x2), region = 96 }

// kernel: forward_nchw.43
= control target key start
LH: loop header
LB: loop body
LE: loop exit
PB: predicated region body
PF: predicated region fallthrough
CT: control target
= control target key end

     0   :  { %vm344_vm0 = vcmask 130048   ;;  %s5099_s3 = inlined_call_operand.vmem [shape: bf16[16,16], index: 3, kind: input, shape index: {}]   ;;  %s5100_s0 = inlined_call_operand.vmem [shape: f32[512,16], index: 0, kind: input, shape index: {}]   ;;  %s5101_s1 = inlined_call_operand.vmem [shape: f32[1,16], index: 1, kind: input, shape index: {}]   ;;  %s5102_s2 = inlined_call_operand.vmem [shape: f32[1,16], index: 2, kind: input, shape index: {}]   ;;  %s5103_s4 = inlined_call_operand.vmem [shape: f32[1,16], index: 4, kind: input, shape index: {}]   ;;  %s5104_s5 = inlined_call_operand.vmem [shape: f32[1,16], index: 5, kind: input, shape index: {}]   ;;  %s5105_s6 = inlined_call_operand.vmem [shape: f32[1,16], index: 6, kind: input, shape index: {}]   ;;  %s5106_s7 = inlined_call_operand.vmem [shape: bf16[16,16], index: 7, kind: input, shape index: {}]   ;;  %s5107_s8 = inlined_call_operand.vmem [shape: f32[1,16], index: 8, kind: input, shape index: {}]   ;;  %s5108_s9 = inlined_call_operand.vmem [shape: f32[512,16], index: 9, kind: input, shape index: {}]   ;;  %s5109_s10 = inlined_call_operand.vmem [shape: f32[512,16], index: 10, kind: output, shape index: {}]  }
   0x1   :  { %v2667_v0 = vld [vmem:[%s5099_s3] sm:$0xff]  ;;  %v37_v2 = vld [vmem:[%s5100_s0 + $0x8] sm:$0xff]  ;;  %v38_v19 = vld [vmem:[%s5100_s0 + $0x10] sm:$0xff] }
   0x2   :  { %v36_v1 = vld [vmem:[%s5100_s0] sm:$0xff]  ;;  %448 = vmatpush.bf16.msra.mxu0 %v2667_v0  ;;  %2669 = vmatpush.bf16.msra.mxu2 %v2667_v0  ;;  %v69_v6 = vld [vmem:[%s5100_s0 + $0x108] sm:$0xff]  ;;  %v39_v20 = vld [vmem:[%s5100_s0 + $0x18] sm:$0xff] }
   0x3   :  { %v3009_v3 = vld [vmem:[%s5101_s1] ss:$0 sm:$0xff]  ;;  %v70_v21 = vld [vmem:[%s5100_s0 + $0x110] sm:$0xff]  ;;  %v71_v22 = vld [vmem:[%s5100_s0 + $0x118] sm:$0xff] }
   0x4   :  { %v3014_v4 = vld [vmem:[%s5102_s2] ss:$0 sm:$0xff]  ;;  %v104_v7 = vmul.f32 %v3009_v3, %v36_v1  ;;  %v105_v8 = vmul.f32 %v3009_v3, %v37_v2  ;;  %v137_v10 = vmul.f32 %v3009_v3, %v69_v6  ;;  %v106_v25 = vmul.f32 %v3009_v3, %v38_v19  ;;  %v41_v40 = vld [vmem:[%s5100_s0 + $0x28] sm:$0xff]  ;;  %v42_v57 = vld [vmem:[%s5100_s0 + $0x30] sm:$0xff] }
   0x5   :  { %v68_v5 = vld [vmem:[%s5100_s0 + $0x100] sm:$0xff]  ;;  %v107_v26 = vmul.f32 %v3009_v3, %v39_v20  ;;  %v138_v27 = vmul.f32 %v3009_v3, %v70_v21  ;;  %v139_v28 = vmul.f32 %v3009_v3, %v71_v22  ;;  %v73_v42 = vld [vmem:[%s5100_s0 + $0x128] sm:$0xff]  ;;  %v109_v44 = vmul.f32 %v3009_v3, %v41_v40  ;;  %v43_v58 = vld [vmem:[%s5100_s0 + $0x38] sm:$0xff] }
   0x6   :  { %v136_v9 = vmul.f32 %v3009_v3, %v68_v5  ;;  %v172_v11 = vadd.f32 %v3014_v4, %v104_v7  ;;  %v173_v12 = vadd.f32 %v3014_v4, %v105_v8  ;;  %v205_v14 = vadd.f32 %v3014_v4, %v137_v10  ;;  %v40_v39 = vld [vmem:[%s5100_s0 + $0x20] sm:$0xff]  ;;  %v74_v59 = vld [vmem:[%s5100_s0 + $0x130] sm:$0xff]  ;;  %v75_v60 = vld [vmem:[%s5100_s0 + $0x138] sm:$0xff] }
   0x7   :  { %v174_v29 = vadd.f32 %v3014_v4, %v106_v25  ;;  %v175_v30 = vadd.f32 %v3014_v4, %v107_v26  ;;  %v206_v31 = vadd.f32 %v3014_v4, %v138_v27  ;;  %v207_v32 = vadd.f32 %v3014_v4, %v139_v28  ;;  %v72_v41 = vld [vmem:[%s5100_s0 + $0x120] sm:$0xff] }
   0x8   :  { %v204_v13 = vadd.f32 %v3014_v4, %v136_v9  ;;  %v236_v15 = vmax.f32 %v172_v11, 0.0  ;;  %v237_v16 = vmax.f32 %v173_v12, 0.0  ;;  %v269_v18 = vmax.f32 %v205_v14, 0.0  ;;  %v45_v14 = vld [vmem:[%s5100_s0 + $0x48] sm:$0xff] }
   0x9   :  { %v238_v33 = vmax.f32 %v174_v29, 0.0  ;;  %v239_v34 = vmax.f32 %v175_v30, 0.0  ;;  %v270_v35 = vmax.f32 %v206_v31, 0.0  ;;  %v271_v36 = vmax.f32 %v207_v32, 0.0  ;;  %v46_v31 = vld [vmem:[%s5100_s0 + $0x50] sm:$0xff]  ;;  %v47_v32 = vld [vmem:[%s5100_s0 + $0x58] sm:$0xff] }
   0xa   :  { %v268_v17 = vmax.f32 %v204_v13, 0.0  ;;  %v300_v23 = vpack.c.bf16 %v237_v16, %v236_v15  ;;  %v108_v43 = vmul.f32 %v3009_v3, %v40_v39  ;;  %v140_v45 = vmul.f32 %v3009_v3, %v72_v41  ;;  %v44_v13 = vld [vmem:[%s5100_s0 + $0x40] sm:$0xff]  ;;  %v77_v16 = vld [vmem:[%s5100_s0 + $0x148] sm:$0xff] }
   0xb   :  { %v301_v37 = vpack.c.bf16 %v239_v34, %v238_v33  ;;  %v317_v38 = vpack.c.bf16 %v271_v36, %v270_v35  ;;  %v141_v46 = vmul.f32 %v3009_v3, %v73_v42  ;;  %v177_v48 = vadd.f32 %v3014_v4, %v109_v44  ;;  %v76_v15 = vld [vmem:[%s5100_s0 + $0x140] sm:$0xff]  ;;  %v78_v33 = vld [vmem:[%s5100_s0 + $0x150] sm:$0xff]  ;;  %v79_v34 = vld [vmem:[%s5100_s0 + $0x158] sm:$0xff] }
   0xc   :  { %v316_v24 = vpack.c.bf16 %v269_v18, %v268_v17  ;;  %2599 = vmatmul.msk.bf16.vlgmr.msra.gmra.mxu0 %vm344_vm0, %v300_v23  ;;  %v176_v47 = vadd.f32 %v3014_v4, %v108_v43  ;;  %v208_v49 = vadd.f32 %v3014_v4, %v140_v45  ;;  %v110_v61 = vmul.f32 %v3009_v3, %v42_v57 }
   0xd   :  { %v209_v50 = vadd.f32 %v3014_v4, %v141_v46  ;;  %v241_v52 = vmax.f32 %v177_v48, 0.0  ;;  %v111_v62 = vmul.f32 %v3009_v3, %v43_v58  ;;  %v142_v63 = vmul.f32 %v3009_v3, %v74_v59 }
   0xe   :  { %2615 = vmatmul.msk.bf16.vlgmr.msra.gmra.mxu2 %vm344_vm0, %v316_v24  ;;  %v240_v51 = vmax.f32 %v176_v47, 0.0  ;;  %v272_v53 = vmax.f32 %v208_v49, 0.0  ;;  %v143_v0 = vmul.f32 %v3009_v3, %v75_v60  ;;  %v178_v1 = vadd.f32 %v3014_v4, %v110_v61  ;;  %v48_v49 = vld [vmem:[%s5100_s0 + $0x60] sm:$0xff] }
   0xf   :  { %v273_v54 = vmax.f32 %v209_v50, 0.0  ;;  %v179_v2 = vadd.f32 %v3014_v4, %v111_v62  ;;  %v210_v5 = vadd.f32 %v3014_v4, %v142_v63  ;;  %v112_v17 = vmul.f32 %v3009_v3, %v44_v13  ;;  %v49_v50 = vld [vmem:[%s5100_s0 + $0x68] sm:$0xff] }
  0x10   :  { %v302_v55 = vpack.c.bf16 %v241_v52, %v240_v51  ;;  %v211_v6 = vadd.f32 %v3014_v4, %v143_v0  ;;  %v242_v7 = vmax.f32 %v178_v1, 0.0  ;;  %v113_v18 = vmul.f32 %v3009_v3, %v45_v14  ;;  %v80_v51 = vld [vmem:[%s5100_s0 + $0x160] sm:$0xff]  ;;  %v81_v52 = vld [vmem:[%s5100_s0 + $0x168] sm:$0xff] }
  0x11   :  { %v318_v56 = vpack.c.bf16 %v273_v54, %v272_v53  ;;  %v243_v8 = vmax.f32 %v179_v2, 0.0  ;;  %v274_v9 = vmax.f32 %v210_v5, 0.0  ;;  %v144_v19 = vmul.f32 %v3009_v3, %v76_v15  ;;  %v50_v5 = vld [vmem:[%s5100_s0 + $0x70] sm:$0xff] }
  0x12   :  { %v275_v10 = vmax.f32 %v211_v6, 0.0  ;;  %v145_v20 = vmul.f32 %v3009_v3, %v77_v16  ;;  %v180_v21 = vadd.f32 %v3014_v4, %v112_v17  ;;  %v181_v22 = vadd.f32 %v3014_v4, %v113_v18  ;;  %v51_v6 = vld [vmem:[%s5100_s0 + $0x78] sm:$0xff] }
  0x13   :  { %v303_v11 = vpack.c.bf16 %v243_v8, %v242_v7  ;;  %v212_v23 = vadd.f32 %v3014_v4, %v144_v19  ;;  %v114_v35 = vmul.f32 %v3009_v3, %v46_v31  ;;  %v115_v36 = vmul.f32 %v3009_v3, %v47_v32  ;;  %v82_v7 = vld [vmem:[%s5100_s0 + $0x170] sm:$0xff]  ;;  %v83_v8 = vld [vmem:[%s5100_s0 + $0x178] sm:$0xff] }
  0x14   :  { %v319_v12 = vpack.c.bf16 %v275_v10, %v274_v9  ;;  %v213_v24 = vadd.f32 %v3014_v4, %v145_v20  ;;  %v244_v25 = vmax.f32 %v180_v21, 0.0  ;;  %v245_v26 = vmax.f32 %v181_v22, 0.0  ;;  %v2668_v21 = vld [vmem:[%s5106_s7] sm:$0xff] }
  0x15   :  { %v276_v27 = vmax.f32 %v212_v23, 0.0  ;;  %v182_v39 = vadd.f32 %v3014_v4, %v114_v35  ;;  %v183_v40 = vadd.f32 %v3014_v4, %v115_v36  ;;  %v116_v53 = vmul.f32 %v3009_v3, %v48_v49  ;;  %957 = vmatpush.bf16.msra.mxu1 %v2668_v21  ;;  %2670 = vmatpush.bf16.msra.mxu3 %v2668_v21 }
  0x16   :  { %v277_v28 = vmax.f32 %v213_v24, 0.0  ;;  %v304_v29 = vpack.c.bf16 %v245_v26, %v244_v25  ;;  %v117_v54 = vmul.f32 %v3009_v3, %v49_v50  ;;  %v118_v9 = vmul.f32 %v3009_v3, %v50_v5  ;;  %v52_v24 = vld [vmem:[%s5100_s0 + $0x80] sm:$0xff]  ;;  %v53_v25 = vld [vmem:[%s5100_s0 + $0x88] sm:$0xff] }
  0x17   :  { %v246_v43 = vmax.f32 %v182_v39, 0.0  ;;  %v247_v44 = vmax.f32 %v183_v40, 0.0  ;;  %v184_v57 = vadd.f32 %v3014_v4, %v116_v53  ;;  %v119_v10 = vmul.f32 %v3009_v3, %v51_v6  ;;  %v84_v26 = vld [vmem:[%s5100_s0 + $0x180] sm:$0xff] }
  0x18   :  { %v320_v30 = vpack.c.bf16 %v277_v28, %v276_v27  ;;  %v185_v58 = vadd.f32 %v3014_v4, %v117_v54  ;;  %v186_v13 = vadd.f32 %v3014_v4, %v118_v9  ;;  %v85_v27 = vld [vmem:[%s5100_s0 + $0x188] sm:$0xff]  ;;  %v120_v28 = vmul.f32 %v3009_v3, %v52_v24  ;;  %v3212_v40 = vld [vmem:[%s5103_s4] ss:$0 sm:$0xff] }
  0x19   :  { %v305_v47 = vpack.c.bf16 %v247_v44, %v246_v43  ;;  %v248_v61 = vmax.f32 %v184_v57, 0.0  ;;  %v187_v14 = vadd.f32 %v3014_v4, %v119_v10  ;;  %v153_v31 = vmul.f32 %v3009_v3, %v85_v27  ;;  %v54_v43 = vld [vmem:[%s5100_s0 + $0x90] sm:$0xff]  ;;  %v3231_v50 = vld [vmem:[%s5104_s5] ss:$0 sm:$0xff] }
  0x1a   :  { %v249_v62 = vmax.f32 %v185_v58, 0.0  ;;  %v250_v17 = vmax.f32 %v186_v13, 0.0  ;;  %v188_v32 = vadd.f32 %v3014_v4, %v120_v28  ;;  %v122_v49 = vmul.f32 %v3009_v3, %v54_v43  ;;  %v3243_v57 = vld [vmem:[%s5105_s6] ss:$0 sm:$0xff] }
  0x1b   :  { %v251_v18 = vmax.f32 %v187_v14, 0.0  ;;  %v221_v35 = vadd.f32 %v3014_v4, %v153_v31 }
  0x1c   :  { %2600 = vmatmul.msk.bf16.gmra.mxu0 %vm344_vm0, %v301_v37  ;;  %v146_v37 = vmul.f32 %v3009_v3, %v78_v33  ;;  %v306_v1 = vpack.c.bf16 %v249_v62, %v248_v61  ;;  %v252_v36 = vmax.f32 %v188_v32, 0.0 }
  0x1d   :  { %v307_v22 = vpack.c.bf16 %v251_v18, %v250_v17  ;;  %v285_v39 = vmax.f32 %v221_v35, 0.0  ;;  %v57_v17 = vld [vmem:[%s5100_s0 + $0xa8] sm:$0xff] }
  0x1e   :  { %2616 = vmatmul.msk.bf16.gmra.mxu2 %vm344_vm0, %v317_v38  ;;  %v147_v38 = vmul.f32 %v3009_v3, %v79_v34  ;;  %v214_v41 = vadd.f32 %v3014_v4, %v146_v37 }
  0x20   :  { %v215_v42 = vadd.f32 %v3014_v4, %v147_v38  ;;  %v278_v45 = vmax.f32 %v214_v41, 0.0 }
  0x22   :  { %v279_v46 = vmax.f32 %v215_v42, 0.0 }
  0x24   :  { %v321_v48 = vpack.c.bf16 %v279_v46, %v278_v45  ;;  %v55_v45 = vld [vmem:[%s5100_s0 + $0x98] sm:$0xff]  ;;  %v86_v46 = vld [vmem:[%s5100_s0 + $0x190] sm:$0xff] }
  0x2c   :  { %2601 = vmatmul.msk.bf16.gmra.mxu0 %vm344_vm0, %v302_v55  ;;  %v148_v55 = vmul.f32 %v3009_v3, %v80_v51  ;;  %v123_v51 = vmul.f32 %v3009_v3, %v55_v45 }
  0x2e   :  { %2617 = vmatmul.msk.bf16.gmra.mxu2 %vm344_vm0, %v318_v56  ;;  %v149_v56 = vmul.f32 %v3009_v3, %v81_v52  ;;  %v216_v59 = vadd.f32 %v3014_v4, %v148_v55  ;;  %v154_v52 = vmul.f32 %v3009_v3, %v86_v46  ;;  %v191_v58 = vadd.f32 %v3014_v4, %v123_v51 }
  0x30   :  { %v217_v60 = vadd.f32 %v3014_v4, %v149_v56  ;;  %v280_v63 = vmax.f32 %v216_v59, 0.0  ;;  %v190_v56 = vadd.f32 %v3014_v4, %v122_v49  ;;  %v222_v59 = vadd.f32 %v3014_v4, %v154_v52 }
  0x31   :  { %v255_v5 = vmax.f32 %v191_v58, 0.0 }
  0x32   :  { %v281_v0 = vmax.f32 %v217_v60, 0.0  ;;  %v286_v6 = vmax.f32 %v222_v59, 0.0  ;;  %v58_v59 = vld [vmem:[%s5100_s0 + $0xb0] sm:$0xff] }
  0x34   :  { %v322_v2 = vpack.c.bf16 %v281_v0, %v280_v63 }
  0x3c   :  { %2602 = vmatmul.msk.bf16.gmra.mxu0 %vm344_vm0, %v303_v11  ;;  %v150_v11 = vmul.f32 %v3009_v3, %v82_v7 }
  0x3e   :  { %2618 = vmatmul.msk.bf16.gmra.mxu2 %vm344_vm0, %v319_v12  ;;  %v151_v12 = vmul.f32 %v3009_v3, %v83_v8  ;;  %v218_v15 = vadd.f32 %v3014_v4, %v150_v11 }
  0x40   :  { %v219_v16 = vadd.f32 %v3014_v4, %v151_v12  ;;  %v282_v19 = vmax.f32 %v218_v15, 0.0 }
  0x42   :  { %v283_v20 = vmax.f32 %v219_v16, 0.0  ;;  %v56_v16 = vld [vmem:[%s5100_s0 + $0xa0] sm:$0xff] }
  0x44   :  { %v323_v23 = vpack.c.bf16 %v283_v20, %v282_v19  ;;  %v88_v19 = vld [vmem:[%s5100_s0 + $0x1a0] sm:$0xff]  ;;  %v89_v20 = vld [vmem:[%s5100_s0 + $0x1a8] sm:$0xff] }
  0x45   :  { %v156_v28 = vmul.f32 %v3009_v3, %v88_v19 }
  0x4c   :  { %2603 = vmatmul.msk.bf16.gmra.mxu0 %vm344_vm0, %v304_v29  ;;  %v121_v29 = vmul.f32 %v3009_v3, %v53_v25  ;;  %v124_v25 = vmul.f32 %v3009_v3, %v56_v16 }
  0x4e   :  { %2619 = vmatmul.msk.bf16.gmra.mxu2 %vm344_vm0, %v320_v30  ;;  %v152_v30 = vmul.f32 %v3009_v3, %v84_v26  ;;  %v189_v33 = vadd.f32 %v3014_v4, %v121_v29  ;;  %v125_v26 = vmul.f32 %v3009_v3, %v57_v17  ;;  %v157_v29 = vmul.f32 %v3009_v3, %v89_v20 }
  0x50   :  { %v220_v34 = vadd.f32 %v3014_v4, %v152_v30  ;;  %v253_v37 = vmax.f32 %v189_v33, 0.0 }
  0x52   :  { %v284_v38 = vmax.f32 %v220_v34, 0.0  ;;  %v308_v41 = vpack.c.bf16 %v253_v37, %v252_v36  ;;  %v192_v34 = vadd.f32 %v3014_v4, %v124_v25  ;;  %v193_v36 = vadd.f32 %v3014_v4, %v125_v26 }
  0x53   :  { %v224_v37 = vadd.f32 %v3014_v4, %v156_v28 }
  0x54   :  { %v324_v42 = vpack.c.bf16 %v285_v39, %v284_v38  ;;  %v225_v38 = vadd.f32 %v3014_v4, %v157_v29  ;;  %v257_v46 = vmax.f32 %v193_v36, 0.0 }
  0x5c   :  { %2604 = vmatmul.msk.bf16.gmra.mxu0 %vm344_vm0, %v305_v47  ;;  %v87_v47 = vld [vmem:[%s5100_s0 + $0x198] sm:$0xff] }
  0x5d   :  { %v155_v53 = vmul.f32 %v3009_v3, %v87_v47  ;;  %v288_v47 = vmax.f32 %v224_v37, 0.0  ;;  %v60_v37 = vld [vmem:[%s5100_s0 + $0xc0] sm:$0xff] }
  0x5e   :  { %2620 = vmatmul.msk.bf16.gmra.mxu2 %vm344_vm0, %v321_v48 }
  0x5f   :  { %v223_v60 = vadd.f32 %v3014_v4, %v155_v53 }
  0x61   :  { %v287_v7 = vmax.f32 %v223_v60, 0.0  ;;  %v59_v60 = vld [vmem:[%s5100_s0 + $0xb8] sm:$0xff] }
  0x63   :  { %v325_v14 = vpack.c.bf16 %v287_v7, %v286_v6  ;;  %v126_v6 = vmul.f32 %v3009_v3, %v58_v59  ;;  %v127_v7 = vmul.f32 %v3009_v3, %v59_v60 }
  0x65   :  { %v195_v17 = vadd.f32 %v3014_v4, %v127_v7 }
  0x67   :  { %v259_v26 = vmax.f32 %v195_v17, 0.0 }
  0x6c   :  { %2605 = vmatmul.msk.bf16.gmra.mxu0 %vm344_vm0, %v306_v1  ;;  %v254_v1 = vmax.f32 %v190_v56, 0.0 }
  0x6e   :  { %2621 = vmatmul.msk.bf16.gmra.mxu2 %vm344_vm0, %v322_v2  ;;  %v309_v13 = vpack.c.bf16 %v255_v5, %v254_v1 }
  0x7c   :  { %2606 = vmatmul.msk.bf16.gmra.mxu0 %vm344_vm0, %v307_v22 }
  0x7e   :  { %2622 = vmatmul.msk.bf16.gmra.mxu2 %vm344_vm0, %v323_v23 }
  0x89   :  { %v450_v44 = vpop.f32.mrf.mxu0 }
  0x8a   :  { %v451_v48 = vadd.f32 %v3212_v40, %v450_v44  ;;  %v256_v44 = vmax.f32 %v192_v34, 0.0 }
  0x8c   :  { %2607 = vmatmul.msk.bf16.gmra.mxu0 %vm344_vm0, %v308_v41  ;;  %v614_v54 = vmul.f32 %v3231_v50, %v451_v48  ;;  %v289_v48 = vmax.f32 %v225_v38, 0.0  ;;  %v61_v38 = vld [vmem:[%s5100_s0 + $0xc8] sm:$0xff] }
  0x8e   :  { %2623 = vmatmul.msk.bf16.gmra.mxu2 %vm344_vm0, %v324_v42  ;;  %v682_v62 = vadd.f32 %v3243_v57, %v614_v54  ;;  %v326_v56 = vpack.c.bf16 %v289_v48, %v288_v47  ;;  %v128_v47 = vmul.f32 %v3009_v3, %v60_v37  ;;  %v129_v48 = vmul.f32 %v3009_v3, %v61_v38 }
  0x90   :  { %v746_v8 = vmax.f32 %v682_v62, 0.0  ;;  %v90_v62 = vld [vmem:[%s5100_s0 + $0x1b0] sm:$0xff]  ;;  %v197_v60 = vadd.f32 %v3014_v4, %v129_v48 }
  0x91   :  { %v530_v55 = vpop.f32.mrf.mxu2  ;;  %v452_v61 = vpop.f32.mrf.mxu0 }
  0x92   :  { %v531_v63 = vadd.f32 %v3212_v40, %v530_v55  ;;  %v453_v0 = vadd.f32 %v3212_v40, %v452_v61  ;;  %v310_v55 = vpack.c.bf16 %v257_v46, %v256_v44  ;;  %v261_v7 = vmax.f32 %v197_v60, 0.0 }
  0x94   :  { %v615_v2 = vmul.f32 %v3231_v50, %v453_v0  ;;  %v646_v9 = vmul.f32 %v3231_v50, %v531_v63  ;;  %v91_v63 = vld [vmem:[%s5100_s0 + $0x1b8] sm:$0xff] }
  0x96   :  { %v683_v10 = vadd.f32 %v3243_v57, %v615_v2  ;;  %v714_v21 = vadd.f32 %v3243_v57, %v646_v9  ;;  %v158_v9 = vmul.f32 %v3009_v3, %v90_v62 }
  0x98   :  { %v747_v15 = vmax.f32 %v683_v10, 0.0  ;;  %v778_v30 = vmax.f32 %v714_v21, 0.0  ;;  %v159_v10 = vmul.f32 %v3009_v3, %v91_v63 }
  0x99   :  { %v532_v11 = vpop.f32.mrf.mxu2  ;;  %v455_v18 = vpop.f32.mrf.mxu0 }
  0x9a   :  { %v533_v12 = vadd.f32 %v3212_v40, %v532_v11  ;;  %v456_v23 = vadd.f32 %v3212_v40, %v455_v18  ;;  %v810_v24 = vpack.c.bf16 %v747_v15, %v746_v8  ;;  %v194_v15 = vadd.f32 %v3014_v4, %v126_v6 }
  0x9b   :  { %v226_v18 = vadd.f32 %v3014_v4, %v158_v9  ;;  %v227_v19 = vadd.f32 %v3014_v4, %v159_v10 }
  0x9c   :  { %v647_v22 = vmul.f32 %v3231_v50, %v533_v12  ;;  %2608 = vmatmul.msk.bf16.gmra.mxu0 %vm344_vm0, %v309_v13  ;;  %2635 = vmatmul.msk.bf16.vlgmr.msra.gmra.mxu1 %vm344_vm0, %v810_v24  ;;  %v616_v31 = vmul.f32 %v3231_v50, %v456_v23  ;;  %v258_v24 = vmax.f32 %v194_v15, 0.0 }
  0x9d   :  { %v291_v28 = vmax.f32 %v227_v19, 0.0  ;;  %v63_v19 = vld [vmem:[%s5100_s0 + $0xd8] sm:$0xff] }
  0x9e   :  { %v715_v27 = vadd.f32 %v3243_v57, %v647_v22  ;;  %2624 = vmatmul.msk.bf16.gmra.mxu2 %vm344_vm0, %v325_v14  ;;  %v684_v41 = vadd.f32 %v3243_v57, %v616_v31  ;;  %v311_v34 = vpack.c.bf16 %v259_v26, %v258_v24 }
  0xa0   :  { %v779_v32 = vmax.f32 %v715_v27, 0.0  ;;  %v748_v49 = vmax.f32 %v684_v41, 0.0  ;;  %v290_v27 = vmax.f32 %v226_v18, 0.0  ;;  %v92_v41 = vld [vmem:[%s5100_s0 + $0x1c0] sm:$0xff]  ;;  %v62_v18 = vld [vmem:[%s5100_s0 + $0xd0] sm:$0xff] }
  0xa1   :  { %v535_v33 = vpop.f32.mrf.mxu2  ;;  %v457_v39 = vpop.f32.mrf.mxu0 }
  0xa2   :  { %v826_v35 = vpack.c.bf16 %v779_v32, %v778_v30  ;;  %v536_v42 = vadd.f32 %v3212_v40, %v535_v33  ;;  %v458_v43 = vadd.f32 %v3212_v40, %v457_v39 }
  0xa4   :  { %2651 = vmatmul.msk.bf16.vlgmr.msra.gmra.mxu3 %vm344_vm0, %v826_v35  ;;  %v617_v45 = vmul.f32 %v3231_v50, %v458_v43  ;;  %v648_v51 = vmul.f32 %v3231_v50, %v536_v42  ;;  %v327_v35 = vpack.c.bf16 %v291_v28, %v290_v27  ;;  %v93_v42 = vld [vmem:[%s5100_s0 + $0x1c8] sm:$0xff]  ;;  %v130_v27 = vmul.f32 %v3009_v3, %v62_v18 }
  0xa5   :  { %v131_v28 = vmul.f32 %v3009_v3, %v63_v19 }
  0xa6   :  { %v685_v52 = vadd.f32 %v3243_v57, %v617_v45  ;;  %v716_v0 = vadd.f32 %v3243_v57, %v648_v51  ;;  %v160_v51 = vmul.f32 %v3009_v3, %v92_v41 }
  0xa7   :  { %v199_v38 = vadd.f32 %v3014_v4, %v131_v28 }
  0xa8   :  { %v749_v58 = vmax.f32 %v685_v52, 0.0  ;;  %v780_v11 = vmax.f32 %v716_v0, 0.0  ;;  %v161_v52 = vmul.f32 %v3009_v3, %v93_v42 }
  0xa9   :  { %v537_v53 = vpop.f32.mrf.mxu2  ;;  %v460_v61 = vpop.f32.mrf.mxu0  ;;  %v263_v48 = vmax.f32 %v199_v38, 0.0 }
  0xaa   :  { %v538_v54 = vadd.f32 %v3212_v40, %v537_v53  ;;  %v461_v2 = vadd.f32 %v3212_v40, %v460_v61  ;;  %v811_v5 = vpack.c.bf16 %v749_v58, %v748_v49  ;;  %v196_v58 = vadd.f32 %v3014_v4, %v128_v47 }
  0xab   :  { %v228_v61 = vadd.f32 %v3014_v4, %v160_v51  ;;  %v229_v62 = vadd.f32 %v3014_v4, %v161_v52 }
  0xac   :  { %v649_v1 = vmul.f32 %v3231_v50, %v538_v54  ;;  %2609 = vmatmul.msk.bf16.gmra.mxu0 %vm344_vm0, %v310_v55  ;;  %2636 = vmatmul.msk.bf16.gmra.mxu1 %vm344_vm0, %v811_v5  ;;  %v618_v12 = vmul.f32 %v3231_v50, %v461_v2  ;;  %v260_v5 = vmax.f32 %v196_v58, 0.0 }
  0xad   :  { %v293_v9 = vmax.f32 %v229_v62, 0.0  ;;  %v65_v62 = vld [vmem:[%s5100_s0 + $0xe8] sm:$0xff] }
  0xae   :  { %v717_v8 = vadd.f32 %v3243_v57, %v649_v1  ;;  %2625 = vmatmul.msk.bf16.gmra.mxu2 %vm344_vm0, %v326_v56  ;;  %v686_v21 = vadd.f32 %v3243_v57, %v618_v12  ;;  %v312_v15 = vpack.c.bf16 %v261_v7, %v260_v5 }
  0xb0   :  { %v781_v13 = vmax.f32 %v717_v8, 0.0  ;;  %v750_v29 = vmax.f32 %v686_v21, 0.0  ;;  %v292_v8 = vmax.f32 %v228_v61, 0.0  ;;  %v94_v21 = vld [vmem:[%s5100_s0 + $0x1d0] sm:$0xff]  ;;  %v64_v61 = vld [vmem:[%s5100_s0 + $0xe0] sm:$0xff] }
  0xb1   :  { %v540_v14 = vpop.f32.mrf.mxu2  ;;  %v462_v20 = vpop.f32.mrf.mxu0 }
  0xb2   :  { %v827_v16 = vpack.c.bf16 %v781_v13, %v780_v11  ;;  %v541_v22 = vadd.f32 %v3212_v40, %v540_v14  ;;  %v463_v23 = vadd.f32 %v3212_v40, %v462_v20 }
  0xb4   :  { %2652 = vmatmul.msk.bf16.gmra.mxu3 %vm344_vm0, %v827_v16  ;;  %v619_v25 = vmul.f32 %v3231_v50, %v463_v23  ;;  %v650_v30 = vmul.f32 %v3231_v50, %v541_v22  ;;  %v328_v16 = vpack.c.bf16 %v293_v9, %v292_v8  ;;  %v95_v22 = vld [vmem:[%s5100_s0 + $0x1d8] sm:$0xff]  ;;  %v132_v8 = vmul.f32 %v3009_v3, %v64_v61 }
  0xb5   :  { %v133_v9 = vmul.f32 %v3009_v3, %v65_v62 }
  0xb6   :  { %v687_v31 = vadd.f32 %v3243_v57, %v619_v25  ;;  %v718_v43 = vadd.f32 %v3243_v57, %v650_v30  ;;  %v162_v30 = vmul.f32 %v3009_v3, %v94_v21 }
  0xb7   :  { %v201_v19 = vadd.f32 %v3014_v4, %v133_v9 }
  0xb8   :  { %v751_v36 = vmax.f32 %v687_v31, 0.0  ;;  %v782_v53 = vmax.f32 %v718_v43, 0.0  ;;  %v163_v31 = vmul.f32 %v3009_v3, %v95_v22 }
  0xb9   :  { %v542_v32 = vpop.f32.mrf.mxu2  ;;  %v465_v39 = vpop.f32.mrf.mxu0  ;;  %v265_v28 = vmax.f32 %v201_v19, 0.0 }
  0xba   :  { %v543_v33 = vadd.f32 %v3212_v40, %v542_v32  ;;  %v466_v45 = vadd.f32 %v3212_v40, %v465_v39  ;;  %v812_v46 = vpack.c.bf16 %v751_v36, %v750_v29  ;;  %v198_v36 = vadd.f32 %v3014_v4, %v130_v27 }
  0xbb   :  { %v230_v39 = vadd.f32 %v3014_v4, %v162_v30  ;;  %v231_v41 = vadd.f32 %v3014_v4, %v163_v31 }
  0xbc   :  { %v651_v44 = vmul.f32 %v3231_v50, %v543_v33  ;;  %2610 = vmatmul.msk.bf16.gmra.mxu0 %vm344_vm0, %v311_v34  ;;  %2637 = vmatmul.msk.bf16.gmra.mxu1 %vm344_vm0, %v812_v46  ;;  %v620_v54 = vmul.f32 %v3231_v50, %v466_v45  ;;  %v262_v46 = vmax.f32 %v198_v36, 0.0 }
  0xbd   :  { %v295_v51 = vmax.f32 %v231_v41, 0.0  ;;  %v67_v41 = vld [vmem:[%s5100_s0 + $0xf8] sm:$0xff] }
  0xbe   :  { %v719_v49 = vadd.f32 %v3243_v57, %v651_v44  ;;  %2626 = vmatmul.msk.bf16.gmra.mxu2 %vm344_vm0, %v327_v35  ;;  %v688_v0 = vadd.f32 %v3243_v57, %v620_v54 }
  0xc0   :  { %v783_v55 = vmax.f32 %v719_v49, 0.0  ;;  %v752_v10 = vmax.f32 %v688_v0, 0.0  ;;  %v294_v49 = vmax.f32 %v230_v39, 0.0  ;;  %v96_v0 = vld [vmem:[%s5100_s0 + $0x1e0] sm:$0xff]  ;;  %v66_v39 = vld [vmem:[%s5100_s0 + $0xf0] sm:$0xff] }
  0xc1   :  { %v545_v56 = vpop.f32.mrf.mxu2  ;;  %v467_v63 = vpop.f32.mrf.mxu0 }
  0xc2   :  { %v828_v59 = vpack.c.bf16 %v783_v55, %v782_v53  ;;  %v546_v1 = vadd.f32 %v3212_v40, %v545_v56  ;;  %v468_v2 = vadd.f32 %v3212_v40, %v467_v63  ;;  %v329_v60 = vpack.c.bf16 %v295_v51, %v294_v49 }
  0xc3   :  { %v134_v49 = vmul.f32 %v3009_v3, %v66_v39  ;;  %v135_v51 = vmul.f32 %v3009_v3, %v67_v41 }
  0xc4   :  { %2653 = vmatmul.msk.bf16.gmra.mxu3 %vm344_vm0, %v828_v59  ;;  %v621_v6 = vmul.f32 %v3231_v50, %v468_v2  ;;  %v652_v11 = vmul.f32 %v3231_v50, %v546_v1  ;;  %v313_v59 = vpack.c.bf16 %v263_v48, %v262_v46  ;;  %v97_v1 = vld [vmem:[%s5100_s0 + $0x1e8] sm:$0xff] }
  0xc5   :  { %v203_v62 = vadd.f32 %v3014_v4, %v135_v51 }
  0xc6   :  { %v689_v12 = vadd.f32 %v3243_v57, %v621_v6  ;;  %v720_v23 = vadd.f32 %v3243_v57, %v652_v11  ;;  %v164_v11 = vmul.f32 %v3009_v3, %v96_v0 }
  0xc8   :  { %v753_v17 = vmax.f32 %v689_v12, 0.0  ;;  %v784_v32 = vmax.f32 %v720_v23, 0.0  ;;  %v165_v12 = vmul.f32 %v3009_v3, %v97_v1 }
  0xc9   :  { %v547_v13 = vpop.f32.mrf.mxu2  ;;  %v470_v20 = vpop.f32.mrf.mxu0 }
  0xca   :  { %v548_v14 = vadd.f32 %v3212_v40, %v547_v13  ;;  %v471_v25 = vadd.f32 %v3212_v40, %v470_v20  ;;  %v813_v26 = vpack.c.bf16 %v753_v17, %v752_v10  ;;  %v200_v17 = vadd.f32 %v3014_v4, %v132_v8 }
  0xcb   :  { %v232_v20 = vadd.f32 %v3014_v4, %v164_v11  ;;  %v233_v21 = vadd.f32 %v3014_v4, %v165_v12  ;;  %v267_v8 = vmax.f32 %v203_v62, 0.0 }
  0xcc   :  { %v653_v24 = vmul.f32 %v3231_v50, %v548_v14  ;;  %2611 = vmatmul.msk.bf16.gmra.mxu0 %vm344_vm0, %v312_v15  ;;  %2638 = vmatmul.msk.bf16.gmra.mxu1 %vm344_vm0, %v813_v26  ;;  %v622_v33 = vmul.f32 %v3231_v50, %v471_v25  ;;  %v264_v26 = vmax.f32 %v200_v17, 0.0 }
  0xcd   :  { %v297_v30 = vmax.f32 %v233_v21, 0.0 }
  0xce   :  { %v721_v29 = vadd.f32 %v3243_v57, %v653_v24  ;;  %2627 = vmatmul.msk.bf16.gmra.mxu2 %vm344_vm0, %v328_v16  ;;  %v690_v43 = vadd.f32 %v3243_v57, %v622_v33 }
  0xd0   :  { %v785_v34 = vmax.f32 %v721_v29, 0.0  ;;  %v754_v52 = vmax.f32 %v690_v43, 0.0  ;;  %v296_v29 = vmax.f32 %v232_v20, 0.0  ;;  %v98_v43 = vld [vmem:[%s5100_s0 + $0x1f0] sm:$0xff] }
  0xd1   :  { %v550_v35 = vpop.f32.mrf.mxu2  ;;  %v472_v42 = vpop.f32.mrf.mxu0 }
  0xd2   :  { %v829_v37 = vpack.c.bf16 %v785_v34, %v784_v32  ;;  %v551_v44 = vadd.f32 %v3212_v40, %v550_v35  ;;  %v473_v45 = vadd.f32 %v3212_v40, %v472_v42  ;;  %v330_v38 = vpack.c.bf16 %v297_v30, %v296_v29 }
  0xd4   :  { %2654 = vmatmul.msk.bf16.gmra.mxu3 %vm344_vm0, %v829_v37  ;;  %v623_v47 = vmul.f32 %v3231_v50, %v473_v45  ;;  %v654_v53 = vmul.f32 %v3231_v50, %v551_v44  ;;  %v314_v37 = vpack.c.bf16 %v265_v28, %v264_v26  ;;  %v99_v44 = vld [vmem:[%s5100_s0 + $0x1f8] sm:$0xff] }
  0xd6   :  { %v691_v54 = vadd.f32 %v3243_v57, %v623_v47  ;;  %v722_v2 = vadd.f32 %v3243_v57, %v654_v53  ;;  %v166_v53 = vmul.f32 %v3009_v3, %v98_v43 }
  0xd8   :  { %v755_v56 = vmax.f32 %v691_v54, 0.0  ;;  %v786_v13 = vmax.f32 %v722_v2, 0.0  ;;  %v167_v54 = vmul.f32 %v3009_v3, %v99_v44 }
  0xd9   :  { %v552_v55 = vpop.f32.mrf.mxu2  ;;  %v475_v63 = vpop.f32.mrf.mxu0 }
  0xda   :  { %v553_v58 = vadd.f32 %v3212_v40, %v552_v55  ;;  %v476_v6 = vadd.f32 %v3212_v40, %v475_v63  ;;  %v814_v7 = vpack.c.bf16 %v755_v56, %v754_v52  ;;  %v234_v63 = vadd.f32 %v3014_v4, %v166_v53 }
  0xdb   :  { %v235_v0 = vadd.f32 %v3014_v4, %v167_v54 }
  0xdc   :  { %v655_v5 = vmul.f32 %v3231_v50, %v553_v58  ;;  %2612 = vmatmul.msk.bf16.gmra.mxu0 %vm344_vm0, %v313_v59  ;;  %2639 = vmatmul.msk.bf16.gmra.mxu1 %vm344_vm0, %v814_v7  ;;  %v624_v15 = vmul.f32 %v3231_v50, %v476_v6  ;;  %v298_v9 = vmax.f32 %v234_v63, 0.0  ;;  %v3503_v63 = vld [vmem:[%s5107_s8] ss:$0 sm:$0xff] }
  0xde   :  { %v723_v10 = vadd.f32 %v3243_v57, %v655_v5  ;;  %2628 = vmatmul.msk.bf16.gmra.mxu2 %vm344_vm0, %v329_v60  ;;  %v692_v23 = vadd.f32 %v3243_v57, %v624_v15  ;;  %v202_v60 = vadd.f32 %v3014_v4, %v134_v49 }
  0xe0   :  { %v787_v14 = vmax.f32 %v723_v10, 0.0  ;;  %v756_v31 = vmax.f32 %v692_v23, 0.0  ;;  %v266_v6 = vmax.f32 %v202_v60, 0.0  ;;  %v299_v10 = vmax.f32 %v235_v0, 0.0 }
  0xe1   :  { %v555_v16 = vpop.f32.mrf.mxu2  ;;  %v477_v22 = vpop.f32.mrf.mxu0 }
  0xe2   :  { %v830_v18 = vpack.c.bf16 %v787_v14, %v786_v13  ;;  %v556_v24 = vadd.f32 %v3212_v40, %v555_v16  ;;  %v478_v25 = vadd.f32 %v3212_v40, %v477_v22  ;;  %v315_v16 = vpack.c.bf16 %v267_v8, %v266_v6 }
  0xe3   :  { %v331_v17 = vpack.c.bf16 %v299_v10, %v298_v9 }
  0xe4   :  { %2655 = vmatmul.msk.bf16.gmra.mxu3 %vm344_vm0, %v830_v18  ;;  %v625_v27 = vmul.f32 %v3231_v50, %v478_v25  ;;  %v656_v32 = vmul.f32 %v3231_v50, %v556_v24 }
  0xe6   :  { %v693_v33 = vadd.f32 %v3243_v57, %v625_v27  ;;  %v724_v45 = vadd.f32 %v3243_v57, %v656_v32 }
  0xe8   :  { %v757_v35 = vmax.f32 %v693_v33, 0.0  ;;  %v788_v55 = vmax.f32 %v724_v45, 0.0 }
  0xe9   :  { %v557_v34 = vpop.f32.mrf.mxu2  ;;  %v480_v42 = vpop.f32.mrf.mxu0 }
  0xea   :  { %v558_v36 = vadd.f32 %v3212_v40, %v557_v34  ;;  %v481_v47 = vadd.f32 %v3212_v40, %v480_v42  ;;  %v815_v48 = vpack.c.bf16 %v757_v35, %v756_v31 }
  0xec   :  { %v657_v46 = vmul.f32 %v3231_v50, %v558_v36  ;;  %2613 = vmatmul.msk.bf16.gmra.mxu0 %vm344_vm0, %v314_v37  ;;  %2640 = vmatmul.msk.bf16.gmra.mxu1 %vm344_vm0, %v815_v48  ;;  %v626_v58 = vmul.f32 %v3231_v50, %v481_v47 }
  0xee   :  { %v725_v52 = vadd.f32 %v3243_v57, %v657_v46  ;;  %2629 = vmatmul.msk.bf16.gmra.mxu2 %vm344_vm0, %v330_v38  ;;  %v694_v2 = vadd.f32 %v3243_v57, %v626_v58 }
  0xf0   :  { %v789_v56 = vmax.f32 %v725_v52, 0.0  ;;  %v758_v11 = vmax.f32 %v694_v2, 0.0 }
  0xf1   :  { %v560_v59 = vpop.f32.mrf.mxu2  ;;  %v482_v1 = vpop.f32.mrf.mxu0 }
  0xf2   :  { %v831_v61 = vpack.c.bf16 %v789_v56, %v788_v55  ;;  %v561_v3 = vadd.f32 %v3212_v40, %v560_v59  ;;  %v483_v5 = vadd.f32 %v3212_v40, %v482_v1 }
  0xf4   :  { %2656 = vmatmul.msk.bf16.gmra.mxu3 %vm344_vm0, %v831_v61  ;;  %v627_v7 = vmul.f32 %v3231_v50, %v483_v5  ;;  %v658_v12 = vmul.f32 %v3231_v50, %v561_v3 }
  0xf6   :  { %v695_v4 = vadd.f32 %v3243_v57, %v627_v7  ;;  %v726_v19 = vadd.f32 %v3243_v57, %v658_v12 }
  0xf8   :  { %v759_v14 = vmax.f32 %v695_v4, 0.0  ;;  %v790_v24 = vmax.f32 %v726_v19, 0.0 }
  0xf9   :  { %v562_v13 = vpop.f32.mrf.mxu2  ;;  %v485_v18 = vpop.f32.mrf.mxu0 }
  0xfa   :  { %v563_v15 = vadd.f32 %v3212_v40, %v562_v13  ;;  %v486_v21 = vadd.f32 %v3212_v40, %v485_v18  ;;  %v816_v22 = vpack.c.bf16 %v759_v14, %v758_v11 }
  0xfc   :  { %v659_v20 = vmul.f32 %v3231_v50, %v563_v15  ;;  %2614 = vmatmul.msk.bf16.gmra.mxu0 %vm344_vm0, %v315_v16  ;;  %2641 = vmatmul.msk.bf16.gmra.mxu1 %vm344_vm0, %v816_v22  ;;  %v628_v26 = vmul.f32 %v3231_v50, %v486_v21 }
  0xfe   :  { %v727_v23 = vadd.f32 %v3243_v57, %v659_v20  ;;  %2630 = vmatmul.msk.bf16.gmra.mxu2 %vm344_vm0, %v331_v17  ;;  %v696_v30 = vadd.f32 %v3243_v57, %v628_v26 }
 0x100   :  { %v791_v25 = vmax.f32 %v727_v23, 0.0  ;;  %v760_v34 = vmax.f32 %v696_v30, 0.0 }
 0x101   :  { %v565_v27 = vpop.f32.mrf.mxu2  ;;  %v487_v29 = vpop.f32.mrf.mxu0 }
 0x102   :  { %v832_v28 = vpack.c.bf16 %v791_v25, %v790_v24  ;;  %v566_v31 = vadd.f32 %v3212_v40, %v565_v27  ;;  %v488_v32 = vadd.f32 %v3212_v40, %v487_v29 }
 0x104   :  { %2657 = vmatmul.msk.bf16.gmra.mxu3 %vm344_vm0, %v832_v28  ;;  %v629_v33 = vmul.f32 %v3231_v50, %v488_v32  ;;  %v660_v35 = vmul.f32 %v3231_v50, %v566_v31 }
 0x106   :  { %v697_v36 = vadd.f32 %v3243_v57, %v629_v33  ;;  %v728_v42 = vadd.f32 %v3243_v57, %v660_v35 }
 0x108   :  { %v761_v38 = vmax.f32 %v697_v36, 0.0  ;;  %v792_v47 = vmax.f32 %v728_v42, 0.0 }
 0x109   :  { %v567_v37 = vpop.f32.mrf.mxu2  ;;  %v490_v41 = vpop.f32.mrf.mxu0 }
 0x10a   :  { %v568_v39 = vadd.f32 %v3212_v40, %v567_v37  ;;  %v491_v44 = vadd.f32 %v3212_v40, %v490_v41  ;;  %v817_v45 = vpack.c.bf16 %v761_v38, %v760_v34 }
 0x10c   :  { %v661_v43 = vmul.f32 %v3231_v50, %v568_v39  ;;  %2642 = vmatmul.msk.bf16.gmra.mxu1 %vm344_vm0, %v817_v45  ;;  %v630_v49 = vmul.f32 %v3231_v50, %v491_v44 }
 0x10e   :  { %v729_v46 = vadd.f32 %v3243_v57, %v661_v43  ;;  %v698_v54 = vadd.f32 %v3243_v57, %v630_v49 }
 0x110   :  { %v793_v48 = vmax.f32 %v729_v46, 0.0  ;;  %v762_v59 = vmax.f32 %v698_v54, 0.0 }
 0x111   :  { %v570_v51 = vpop.f32.mrf.mxu2  ;;  %v492_v53 = vpop.f32.mrf.mxu0 }
 0x112   :  { %v833_v52 = vpack.c.bf16 %v793_v48, %v792_v47  ;;  %v571_v55 = vadd.f32 %v3212_v40, %v570_v51  ;;  %v493_v56 = vadd.f32 %v3212_v40, %v492_v53 }
 0x114   :  { %2658 = vmatmul.msk.bf16.gmra.mxu3 %vm344_vm0, %v833_v52  ;;  %v631_v58 = vmul.f32 %v3231_v50, %v493_v56  ;;  %v662_v60 = vmul.f32 %v3231_v50, %v571_v55 }
 0x116   :  { %v699_v61 = vadd.f32 %v3243_v57, %v631_v58  ;;  %v730_v3 = vadd.f32 %v3243_v57, %v662_v60 }
 0x118   :  { %v763_v0 = vmax.f32 %v699_v61, 0.0  ;;  %v794_v12 = vmax.f32 %v730_v3, 0.0 }
 0x119   :  { %v572_v62 = vpop.f32.mrf.mxu2  ;;  %v495_v2 = vpop.f32.mrf.mxu0 }
 0x11a   :  { %v573_v1 = vadd.f32 %v3212_v40, %v572_v62  ;;  %v959_v6 = vpop.f32.mrf.mxu1  ;;  %v818_v7 = vpack.c.bf16 %v763_v0, %v762_v59  ;;  %v496_v8 = vadd.f32 %v3212_v40, %v495_v2 }
 0x11b   :  { %v960_v9 = vadd.f32 %v3503_v63, %v959_v6 }
 0x11c   :  { %v663_v5 = vmul.f32 %v3231_v50, %v573_v1  ;;  %2643 = vmatmul.msk.bf16.gmra.mxu1 %vm344_vm0, %v818_v7  ;;  %v632_v13 = vmul.f32 %v3231_v50, %v496_v8 }
 0x11d   :  { %v1119_v11 = vsub.f32 0.0, %v960_v9 }
 0x11e   :  { %v731_v10 = vadd.f32 %v3243_v57, %v663_v5  ;;  %v700_v20 = vadd.f32 %v3243_v57, %v632_v13 }
 0x11f   :  { %v1183_v14 = vmul.f32 1.442695, %v1119_v11 }
 0x120   :  { %v795_v4 = vmax.f32 %v731_v10, 0.0  ;;  %v764_v28 = vmax.f32 %v700_v20, 0.0 }
 0x121   :  { %v575_v15 = vpop.f32.mrf.mxu2  ;;  %2677 = vpow2.f32 %v1183_v14  ;;  %v497_v17 = vpop.f32.mrf.mxu0 }
 0x122   :  { %v834_v16 = vpack.c.bf16 %v795_v4, %v794_v12  ;;  %v498_v18 = vadd.f32 %v3212_v40, %v497_v17  ;;  %v961_v19 = vpop.f32.mrf.mxu1  ;;  %v576_v35 = vadd.f32 %v3212_v40, %v575_v15 }
 0x123   :  { %v962_v21 = vadd.f32 %v3503_v63, %v961_v19 }
 0x124   :  { %2659 = vmatmul.msk.bf16.gmra.mxu3 %vm344_vm0, %v834_v16  ;;  %v633_v22 = vmul.f32 %v3231_v50, %v498_v18  ;;  %v664_v44 = vmul.f32 %v3231_v50, %v576_v35 }
 0x125   :  { %v1120_v23 = vsub.f32 0.0, %v962_v21 }
 0x126   :  { %v701_v25 = vadd.f32 %v3243_v57, %v633_v22  ;;  %v732_v59 = vadd.f32 %v3243_v57, %v664_v44 }
 0x127   :  { %v1039_v24 = vpop.f32.mrf.mxu3  ;;  %v2678_v27 = vpop.eup %2677  ;;  %v1185_v29 = vmul.f32 1.442695, %v1120_v23 }
 0x128   :  { %v1040_v26 = vadd.f32 %v3503_v63, %v1039_v24  ;;  %v1311_v31 = vadd.f32 1.0, %v2678_v27  ;;  %v765_v32 = vmax.f32 %v701_v25, 0.0  ;;  %v796_v15 = vmax.f32 %v732_v59, 0.0 }
 0x129   :  { %v577_v30 = vpop.f32.mrf.mxu2  ;;  %2679 = vpow2.f32 %v1185_v29  ;;  %v500_v36 = vpop.f32.mrf.mxu0 }
 0x12a   :  { %v1151_v33 = vsub.f32 0.0, %v1040_v26  ;;  %v578_v34 = vadd.f32 %v3212_v40, %v577_v30  ;;  %2681 = vrcp.f32 %v1311_v31  ;;  %v964_v37 = vpop.f32.mrf.mxu1  ;;  %v501_v41 = vadd.f32 %v3212_v40, %v500_v36 }
 0x12b   :  { %v965_v42 = vadd.f32 %v3503_v63, %v964_v37  ;;  %v819_v43 = vpack.c.bf16 %v765_v32, %v764_v28  ;;  %v1384_v62 = vand.u32 2147483647, %v1311_v31  ;;  %v1386_v0 = vand.u32 2147483648, %v1311_v31 }
 0x12c   :  { %v1247_v38 = vmul.f32 1.442695, %v1151_v33  ;;  %v665_v39 = vmul.f32 %v3231_v50, %v578_v34  ;;  %v634_v51 = vmul.f32 %v3231_v50, %v501_v41  ;;  %vm1380_vm2 = vweird.f32 %v1311_v31 }
 0x12d   :  { %v1121_v45 = vsub.f32 0.0, %v965_v42  ;;  %2644 = vmatmul.msk.bf16.gmra.mxu1 %vm344_vm0, %v819_v43  ;;  %vm3545_vm3 = vcmp.eq.f32.partialorder %v1384_v62, 8.507059e+37  ;;  %v1387_v18 = vor.u32 1.1754944e-38, %v1386_v0 }
 0x12e   :  { %2683 = vpow2.f32 %v1247_v38  ;;  %v733_v47 = vadd.f32 %v3243_v57, %v665_v39  ;;  %v3536_v6 = vadd.f32 %v3243_v57, %v634_v51 }
 0x12f   :  { %v1041_v46 = vpop.f32.mrf.mxu3  ;;  %v2680_v49 = vpop.eup %2679  ;;  %v1187_v52 = vmul.f32 1.442695, %v1121_v45 }
 0x130   :  { %v1042_v48 = vadd.f32 %v3503_v63, %v1041_v46  ;;  %v2682_v54 = vpop.eup %2681  ;;  %v3530_v55 = vadd.f32 1.0, %v2680_v49  ;;  %v797_v1 = vmax.f32 %v733_v47, 0.0  ;;  %v766_v22 = vmax.f32 %v3536_v6, 0.0  ;;  %v3625_v6 = vld [vmem:[%s5104_s5] ss:$0 sm:$0xff] }
 0x131   :  { %v580_v53 = vpop.f32.mrf.mxu2  ;;  %v1376_v58 = vmul.f32 %v2682_v54, %v1311_v31  ;;  %2685 = vpow2.f32 %v1187_v52  ;;  %v502_v61 = vpop.f32.mrf.mxu0  ;;  %vm1381_vm1 = vweird.f32 %v2682_v54  ;;  %v2399_v31 = vld [vmem:[%s5108_s9] sm:$0xff] }
 0x132   :  { %v1152_v56 = vsub.f32 0.0, %v1042_v48  ;;  %v581_v60 = vadd.f32 %v3212_v40, %v580_v53  ;;  %2687 = vrcp.f32 %v3530_v55  ;;  %v966_v2 = vpop.f32.mrf.mxu1  ;;  %v503_v8 = vadd.f32 %v3212_v40, %v502_v61  ;;  %vm1382_vm4 = vmor %vm1380_vm2, %vm1381_vm1 }
 0x133   :  { %v1377_v5 = vsub.f32 1.0, %v1376_v58  ;;  %v1399_v9 = vand.u32 2147483647, %v3530_v55  ;;  %v967_v11 = vadd.f32 %v3503_v63, %v966_v2  ;;  %v1401_v4 = vand.u32 2147483648, %v3530_v55 }
 0x134   :  { %v2684_v3 = vpop.eup %2683  ;;  %v1249_v7 = vmul.f32 1.442695, %v1152_v56  ;;  %v666_v13 = vmul.f32 %v3231_v50, %v581_v60  ;;  %v635_v19 = vmul.f32 %v3231_v50, %v503_v8  ;;  %vm1395_vm5 = vweird.f32 %v3530_v55 }
 0x135   :  { %v3540_v10 = vadd.f32 1.0, %v2684_v3  ;;  %v1378_v12 = vmul.f32 %v2682_v54, %v1377_v5  ;;  %v1122_v20 = vsub.f32 0.0, %v967_v11  ;;  %v835_v24 = vpack.c.bf16 %v797_v1, %v796_v15  ;;  %v2400_v3 = vld [vmem:[%s5108_s9 + $0x8] sm:$0xff] }
 0x136   :  { %2689 = vpow2.f32 %v1249_v7  ;;  %vm3557_vm6 = vcmp.eq.f32.partialorder %v1399_v9, 8.507059e+37  ;;  %v1402_v28 = vor.u32 1.1754944e-38, %v1401_v4  ;;  %v3562_v50 = vadd.f32 %v3243_v57, %v666_v13 }
 0x137   :  { %2691 = vrcp.f32 %v3540_v10  ;;  %v2686_v16 = vpop.eup %2685  ;;  %v1379_v17 = vadd.f32 %v2682_v54, %v1378_v12  ;;  %v1044_v29 = vpop.f32.mrf.mxu3  ;;  %v1864_v32 = vand.u32 2147483647, %v3540_v10  ;;  %v1866_v33 = vand.u32 2147483648, %v3540_v10  ;;  %2660 = vmatmul.msk.bf16.gmra.mxu3 %vm344_vm0, %v835_v24 }
 0x138   :  { %v2688_v21 = vpop.eup %2687  ;;  %v3554_v23 = vadd.f32 1.0, %v2686_v16  ;;  %v703_v37 = vadd.f32 %v3243_v57, %v635_v19  ;;  %v1189_v38 = vmul.f32 1.442695, %v1122_v20  ;;  %v1045_v43 = vadd.f32 %v3503_v63, %v1044_v29 }
 0x139   :  { %v1383_v25 = vsel %vm1382_vm4, %v2682_v54, %v1379_v17  ;;  %v1391_v26 = vmul.f32 %v2688_v21, %v3530_v55  ;;  %vm1396_vm7 = vweird.f32 %v2688_v21  ;;  %v582_v48 = vpop.f32.mrf.mxu2  ;;  %vm1860_vm8 = vweird.f32 %v3540_v10  ;;  %v505_v54 = vpop.f32.mrf.mxu0 }
 0x13a   :  { %v1388_v30 = vsel %vm3545_vm3, %v1387_v18, %v1383_v25  ;;  %2693 = vrcp.f32 %v3554_v23  ;;  %v1414_v41 = vand.u32 2147483647, %v3554_v23  ;;  %v1416_v47 = vand.u32 2147483648, %v3554_v23  ;;  %vm1397_vm10 = vmor %vm1395_vm5, %vm1396_vm7  ;;  %v969_v60 = vpop.f32.mrf.mxu1 }
 0x13b   :  { %v2335_v35 = vadd.f32 1.0, %v1388_v30  ;;  %v1392_v36 = vsub.f32 1.0, %v1391_v26  ;;  %vm3581_vm9 = vcmp.eq.f32.partialorder %v1864_v32, 8.507059e+37  ;;  %v1867_v49 = vor.u32 1.1754944e-38, %v1866_v33 }
 0x13c   :  { %v2690_v34 = vpop.eup %2689  ;;  %v767_v53 = vmax.f32 %v703_v37, 0.0  ;;  %vm1410_vm12 = vweird.f32 %v3554_v23  ;;  %v1153_v58 = vsub.f32 0.0, %v1045_v43  ;;  %v583_v59 = vadd.f32 %v3212_v40, %v582_v48 }
 0x13d   :  { %v2692_v39 = vpop.eup %2691  ;;  %v3575_v42 = vadd.f32 1.0, %v2690_v34  ;;  %v2463_v44 = vmul.f32 %v2399_v31, %v2335_v35  ;;  %v1393_v45 = vmul.f32 %v2688_v21, %v1392_v36  ;;  %vm3596_vm13 = vcmp.eq.f32.partialorder %v1414_v41, 8.507059e+37 }
 0x13e   :  { %v1856_v46 = vmul.f32 %v2692_v39, %v3540_v10  ;;  %vm1861_vm11 = vweird.f32 %v2692_v39  ;;  %v1417_v2 = vor.u32 1.1754944e-38, %v1416_v47  ;;  %v1251_v7 = vmul.f32 1.442695, %v1153_v58  ;;  %v2431_v10 = vld [vmem:[%s5108_s9 + $0x100] sm:$0xff] }
 0x13f   :  { %2695 = vrcp.f32 %v3575_v42  ;;  %2527 = vst.msk [vmem:[%s5109_s10] sm:$0xff] %vm344_vm0, %v2463_v44  ;;  %v1394_v51 = vadd.f32 %v2688_v21, %v1393_v45  ;;  %v1879_v5 = vand.u32 2147483647, %v3575_v42  ;;  %v506_v8 = vadd.f32 %v3212_v40, %v505_v54  ;;  %vm1862_vm14 = vmor %vm1860_vm8, %vm1861_vm11  ;;  %v1046_v20 = vpop.f32.mrf.mxu3 }
 0x140   :  { %v1857_v52 = vsub.f32 1.0, %v1856_v46  ;;  %2697 = vpow2.f32 %v1189_v38  ;;  %v2694_v56 = vpop.eup %2693  ;;  %v1881_v4 = vand.u32 2147483648, %v3575_v42  ;;  %v970_v14 = vadd.f32 %v3503_v63, %v969_v60  ;;  %v2401_v38 = vld [vmem:[%s5108_s9 + $0x10] sm:$0xff]  ;;  %v2432_v60 = vld [vmem:[%s5108_s9 + $0x108] sm:$0xff] }
 0x141   :  { %v1398_v61 = vsel %vm1397_vm10, %v2688_v21, %v1394_v51  ;;  %v1406_v0 = vmul.f32 %v2694_v56, %v3554_v23  ;;  %vm1411_vm15 = vweird.f32 %v2694_v56  ;;  %2699 = vpow2.f32 %v1251_v7  ;;  %v585_v35 = vpop.f32.mrf.mxu2  ;;  %v507_v36 = vpop.f32.mrf.mxu0  ;;  %v3671_v51 = vld [vmem:[%s5103_s4] ss:$0 sm:$0xff] }
 0x142   :  { %v1858_v62 = vmul.f32 %v2692_v39, %v1857_v52  ;;  %v1403_v55 = vsel %vm3557_vm6, %v1402_v28, %v1398_v61  ;;  %v820_v15 = vpack.c.bf16 %v767_v53, %v766_v22  ;;  %v667_v22 = vmul.f32 %v3625_v6, %v583_v59  ;;  %vm1412_vm1 = vmor %vm1410_vm12, %vm1411_vm15  ;;  %v971_v45 = vpop.f32.mrf.mxu1 }
 0x143   :  { %v2336_v9 = vadd.f32 1.0, %v1403_v55  ;;  %v1407_v12 = vsub.f32 1.0, %v1406_v0  ;;  %v636_v25 = vmul.f32 %v3625_v6, %v506_v8  ;;  %v1123_v29 = vsub.f32 0.0, %v970_v14 }
 0x144   :  { %v1859_v11 = vadd.f32 %v2692_v39, %v1858_v62  ;;  %2645 = vmatmul.msk.bf16.gmra.mxu1 %vm344_vm0, %v820_v15  ;;  %vm1875_vm2 = vweird.f32 %v3575_v42  ;;  %vm3638_vm3 = vcmp.eq.f32.partialorder %v1879_v5, 8.507059e+37  ;;  %v1882_v31 = vor.u32 1.1754944e-38, %v1881_v4 }
 0x145   :  { %v2696_v13 = vpop.eup %2695  ;;  %v2464_v17 = vmul.f32 %v2400_v3, %v2336_v9  ;;  %v1408_v18 = vmul.f32 %v2694_v56, %v1407_v12  ;;  %v1191_v44 = vmul.f32 1.442695, %v1123_v29  ;;  %v1047_v57 = vadd.f32 %v3503_v63, %v1046_v20 }
 0x146   :  { %v2698_v16 = vpop.eup %2697  ;;  %v1863_v40 = vsel %vm1862_vm14, %v2692_v39, %v1859_v11  ;;  %v1871_v19 = vmul.f32 %v2696_v13, %v3575_v42  ;;  %vm1876_vm4 = vweird.f32 %v2696_v13  ;;  %v3651_v39 = vld [vmem:[%s5105_s6] ss:$0 sm:$0xff]  ;;  %v586_v52 = vadd.f32 %v3671_v51, %v585_v35 }
 0x147   :  { %v1868_v21 = vsel %vm3581_vm9, %v1867_v49, %v1863_v40  ;;  %v3620_v24 = vadd.f32 1.0, %v2698_v16  ;;  %2528 = vst.msk [vmem:[%s5109_s10 + $0x8] sm:$0xff] %vm344_vm0, %v2464_v17  ;;  %v1409_v27 = vadd.f32 %v2694_v56, %v1408_v18  ;;  %v2700_v37 = vpop.eup %2699  ;;  %v735_v41 = vadd.f32 %v3651_v39, %v667_v22  ;;  %vm1877_vm5 = vmor %vm1875_vm2, %vm1876_vm4  ;;  %v1049_v3 = vpop.f32.mrf.mxu3 }
 0x148   :  { %v2367_v26 = vadd.f32 1.0, %v1868_v21  ;;  %v1872_v28 = vsub.f32 1.0, %v1871_v19  ;;  %v3655_v43 = vadd.f32 %v3651_v39, %v636_v25  ;;  %v3661_v48 = vadd.f32 1.0, %v2700_v37 }
 0x149   :  { %2701 = vrcp.f32 %v3620_v24  ;;  %v1413_v33 = vsel %vm1412_vm1, %v2694_v56, %v1409_v27  ;;  %v1429_v49 = vand.u32 2147483647, %v3620_v24  ;;  %v508_v53 = vadd.f32 %v3671_v51, %v507_v36  ;;  %v587_v25 = vpop.f32.mrf.mxu2  ;;  %v2402_v36 = vld [vmem:[%s5108_s9 + $0x18] sm:$0xff] }
 0x14a   :  { %v2495_v32 = vmul.f32 %v2431_v10, %v2367_v26  ;;  %v1873_v34 = vmul.f32 %v2696_v13, %v1872_v28  ;;  %v1418_v23 = vsel %vm3596_vm13, %v1417_v2, %v1413_v33  ;;  %2703 = vpow2.f32 %v1191_v44 }
 0x14b   :  { %v2337_v46 = vadd.f32 1.0, %v1418_v23  ;;  %2705 = vrcp.f32 %v3661_v48  ;;  %v972_v58 = vadd.f32 %v3503_v63, %v971_v45  ;;  %v798_v61 = vmax.f32 %v3562_v50, 0.0  ;;  %v510_v23 = vpop.f32.mrf.mxu0 }
 0x14c   :  { %2559 = vst.msk [vmem:[%s5109_s10 + $0x100] sm:$0xff] %vm344_vm0, %v2495_v32  ;;  %v1874_v47 = vadd.f32 %v2696_v13, %v1873_v34  ;;  %v799_v62 = vmax.f32 %v735_v41, 0.0  ;;  %v1154_v0 = vsub.f32 0.0, %v1047_v57  ;;  %vm1425_vm6 = vweird.f32 %v3620_v24  ;;  %v974_v57 = vpop.f32.mrf.mxu1 }
 0x14d   :  { %v2465_v54 = vmul.f32 %v2401_v38, %v2337_v46  ;;  %v1431_v55 = vand.u32 2147483648, %v3620_v24  ;;  %vm3690_vm7 = vcmp.eq.f32.partialorder %v1429_v49, 8.507059e+37  ;;  %v768_v50 = vmax.f32 %v3655_v43, 0.0 }
 0x14e   :  { %v1878_v56 = vsel %vm1877_vm5, %v2696_v13, %v1874_v47  ;;  %v1253_v7 = vmul.f32 1.442695, %v1154_v0  ;;  %v637_v8 = vmul.f32 %v3625_v6, %v508_v53  ;;  %v668_v12 = vmul.f32 %v3625_v6, %v586_v52 }
 0x14f   :  { %v2702_v42 = vpop.eup %2701  ;;  %v1883_v59 = vsel %vm3638_vm3, %v1882_v31, %v1878_v56  ;;  %2529 = vst.msk [vmem:[%s5109_s10 + $0x10] sm:$0xff] %vm344_vm0, %v2465_v54  ;;  %v1124_v4 = vsub.f32 0.0, %v972_v58  ;;  %v836_v15 = vpack.c.bf16 %v799_v62, %v798_v61  ;;  %v1050_v16 = vadd.f32 %v3503_v63, %v1049_v3  ;;  %v1051_v56 = vpop.f32.mrf.mxu3  ;;  %v2433_v62 = vld [vmem:[%s5108_s9 + $0x110] sm:$0xff] }
 0x150   :  { %v2368_v1 = vadd.f32 1.0, %v1883_v59  ;;  %v1421_v2 = vmul.f32 %v2702_v42, %v3620_v24  ;;  %v2704_v13 = vpop.eup %2703  ;;  %2707 = vpow2.f32 %v1253_v7  ;;  %v705_v14 = vadd.f32 %v3651_v39, %v637_v8 }
 0x151   :  { %v2706_v17 = vpop.eup %2705  ;;  %vm1426_vm8 = vweird.f32 %v2702_v42  ;;  %v3703_v18 = vadd.f32 1.0, %v2704_v13  ;;  %v1193_v19 = vmul.f32 1.442695, %v1124_v4  ;;  %v1432_v20 = vor.u32 1.1754944e-38, %v1431_v55  ;;  %2661 = vmatmul.msk.bf16.gmra.mxu3 %vm344_vm0, %v836_v15 }
 0x152   :  { %v2496_v9 = vmul.f32 %v2432_v60, %v2368_v1  ;;  %v1422_v11 = vsub.f32 1.0, %v1421_v2  ;;  %v1886_v21 = vmul.f32 %v2706_v17, %v3661_v48  ;;  %v1894_v10 = vand.u32 2147483647, %v3661_v48  ;;  %vm1427_vm9 = vmor %vm1425_vm6, %vm1426_vm8 }
 0x153   :  { %v1155_v22 = vsub.f32 0.0, %v1050_v16  ;;  %v1896_v27 = vand.u32 2147483648, %v3661_v48  ;;  %2709 = vrcp.f32 %v3703_v18  ;;  %v3711_v28 = vadd.f32 %v3651_v39, %v668_v12 }
 0x154   :  { %2560 = vst.msk [vmem:[%s5109_s10 + $0x108] sm:$0xff] %vm344_vm0, %v2496_v9  ;;  %v1423_v40 = vmul.f32 %v2702_v42, %v1422_v11  ;;  %v1887_v29 = vsub.f32 1.0, %v1886_v21  ;;  %v769_v30 = vmax.f32 %v705_v14, 0.0  ;;  %2711 = vpow2.f32 %v1193_v19  ;;  %v590_v21 = vpop.f32.mrf.mxu2 }
 0x155   :  { %v1255_v31 = vmul.f32 1.442695, %v1155_v22  ;;  %vm1890_vm10 = vweird.f32 %v3661_v48  ;;  %vm1891_vm11 = vweird.f32 %v2706_v17  ;;  %v588_v33 = vadd.f32 %v3671_v51, %v587_v25 }
 0x156   :  { %v1424_v26 = vadd.f32 %v2702_v42, %v1423_v40  ;;  %v2708_v34 = vpop.eup %2707  ;;  %v1888_v24 = vmul.f32 %v2706_v17, %v1887_v29  ;;  %v1444_v37 = vand.u32 2147483647, %v3703_v18  ;;  %vm3723_vm12 = vcmp.eq.f32.partialorder %v1894_v10, 8.507059e+37  ;;  %vm1892_vm13 = vmor %vm1890_vm10, %vm1891_vm11 }
 0x157   :  { %2713 = vpow2.f32 %v1255_v31  ;;  %v3727_v43 = vadd.f32 1.0, %v2708_v34  ;;  %v511_v44 = vadd.f32 %v3671_v51, %v510_v23  ;;  %v1897_v46 = vor.u32 1.1754944e-38, %v1896_v27 }
 0x158   :  { %v1428_v32 = vsel %vm1427_vm9, %v2702_v42, %v1424_v26  ;;  %v1889_v45 = vadd.f32 %v2706_v17, %v1888_v24  ;;  %v800_v47 = vmax.f32 %v3711_v28, 0.0  ;;  %v821_v49 = vpack.c.bf16 %v769_v30, %v768_v50 }
 0x159   :  { %v1433_v35 = vsel %vm3690_vm7, %v1432_v20, %v1428_v32  ;;  %v2710_v52 = vpop.eup %2709  ;;  %vm1440_vm14 = vweird.f32 %v3703_v18  ;;  %2715 = vrcp.f32 %v3727_v43  ;;  %v669_v54 = vmul.f32 %v3625_v6, %v588_v33  ;;  %v512_v32 = vpop.f32.mrf.mxu0 }
 0x15a   :  { %v2338_v38 = vadd.f32 1.0, %v1433_v35  ;;  %v2712_v58 = vpop.eup %2711  ;;  %v1893_v42 = vsel %vm1892_vm13, %v2706_v17, %v1889_v45  ;;  %v1436_v59 = vmul.f32 %v2710_v52, %v3703_v18  ;;  %vm3738_vm15 = vcmp.eq.f32.partialorder %v1444_v37, 8.507059e+37  ;;  %2646 = vmatmul.msk.bf16.gmra.mxu1 %vm344_vm0, %v821_v49  ;;  %v976_v33 = vpop.f32.mrf.mxu1  ;;  %v2403_v35 = vld [vmem:[%s5108_s9 + $0x20] sm:$0xff] }
 0x15b   :  { %v1446_v61 = vand.u32 2147483648, %v3703_v18  ;;  %v1898_v48 = vsel %vm3723_vm12, %v1897_v46, %v1893_v42  ;;  %v3753_v0 = vadd.f32 1.0, %v2712_v58  ;;  %v638_v1 = vmul.f32 %v3625_v6, %v511_v44  ;;  %v1054_v58 = vpop.f32.mrf.mxu3 }
 0x15c   :  { %v2466_v53 = vmul.f32 %v2402_v36, %v2338_v38  ;;  %v975_v2 = vadd.f32 %v3503_v63, %v974_v57  ;;  %v2369_v3 = vadd.f32 1.0, %v1898_v48  ;;  %v1437_v5 = vsub.f32 1.0, %v1436_v59 }
 0x15d   :  { %v2714_v55 = vpop.eup %2713  ;;  %v1909_v50 = vand.u32 2147483647, %v3727_v43  ;;  %v1052_v7 = vadd.f32 %v3503_v63, %v1051_v56  ;;  %vm1441_vm1 = vweird.f32 %v2710_v52  ;;  %v1911_v8 = vand.u32 2147483648, %v3727_v43 }
 0x15e   :  { %2530 = vst.msk [vmem:[%s5109_s10 + $0x18] sm:$0xff] %vm344_vm0, %v2466_v53  ;;  %2717 = vrcp.f32 %v3753_v0  ;;  %v737_v9 = vadd.f32 %v3651_v39, %v669_v54  ;;  %v2497_v11 = vmul.f32 %v2433_v62, %v2369_v3  ;;  %v1438_v12 = vmul.f32 %v2710_v52, %v1437_v5  ;;  %vm1442_vm3 = vmor %vm1440_vm14, %vm1441_vm1  ;;  %v2434_v62 = vld [vmem:[%s5108_s9 + $0x118] sm:$0xff] }
 0x15f   :  { %v1461_v4 = vand.u32 2147483648, %v3753_v0  ;;  %v3763_v13 = vadd.f32 1.0, %v2714_v55  ;;  %v2716_v14 = vpop.eup %2715  ;;  %v1447_v15 = vor.u32 1.1754944e-38, %v1446_v61  ;;  %vm1905_vm2 = vweird.f32 %v3727_v43 }
 0x160   :  { %v3767_v16 = vadd.f32 %v3651_v39, %v638_v1  ;;  %v1125_v17 = vsub.f32 0.0, %v975_v2  ;;  %2561 = vst.msk [vmem:[%s5109_s10 + $0x110] sm:$0xff] %vm344_vm0, %v2497_v11  ;;  %v1439_v40 = vadd.f32 %v2710_v52, %v1438_v12  ;;  %v1901_v19 = vmul.f32 %v2716_v14, %v3727_v43 }
 0x161   :  { %v1459_v20 = vand.u32 2147483647, %v3753_v0  ;;  %2719 = vrcp.f32 %v3763_v13  ;;  %vm3779_vm4 = vcmp.eq.f32.partialorder %v1909_v50, 8.507059e+37  ;;  %v1912_v22 = vor.u32 1.1754944e-38, %v1911_v8  ;;  %v592_v8 = vpop.f32.mrf.mxu2 }
 0x162   :  { %v801_v25 = vmax.f32 %v737_v9, 0.0  ;;  %v1195_v26 = vmul.f32 1.442695, %v1125_v17  ;;  %v1443_v27 = vsel %vm1442_vm3, %v2710_v52, %v1439_v40  ;;  %v1902_v29 = vsub.f32 1.0, %v1901_v19 }
 0x163   :  { %vm1455_vm5 = vweird.f32 %v3753_v0  ;;  %v1462_v30 = vor.u32 1.1754944e-38, %v1461_v4  ;;  %v1156_v31 = vsub.f32 0.0, %v1052_v7  ;;  %v1448_v18 = vsel %vm3738_vm15, %v1447_v15, %v1443_v27  ;;  %v515_v15 = vpop.f32.mrf.mxu0 }
 0x164   :  { %v2718_v34 = vpop.eup %2717  ;;  %vm1906_vm6 = vweird.f32 %v2716_v14  ;;  %v770_v36 = vmax.f32 %v3767_v16, 0.0  ;;  %2721 = vpow2.f32 %v1195_v26  ;;  %v2339_v24 = vadd.f32 1.0, %v1448_v18  ;;  %v1056_v16 = vpop.f32.mrf.mxu3 }
 0x165   :  { %v1903_v37 = vmul.f32 %v2716_v14, %v1902_v29  ;;  %v1451_v23 = vmul.f32 %v2718_v34, %v3753_v0  ;;  %vm3791_vm7 = vcmp.eq.f32.partialorder %v1459_v20, 8.507059e+37  ;;  %v1924_v41 = vand.u32 2147483647, %v3763_v13  ;;  %vm1907_vm8 = vmor %vm1905_vm2, %vm1906_vm6  ;;  %v2404_v0 = vld [vmem:[%s5108_s9 + $0x28] sm:$0xff]  ;;  %v979_v29 = vpop.f32.mrf.mxu1 }
 0x166   :  { %v1257_v44 = vmul.f32 1.442695, %v1156_v31  ;;  %v591_v45 = vadd.f32 %v3671_v51, %v590_v21  ;;  %v513_v46 = vadd.f32 %v3671_v51, %v512_v32  ;;  %v977_v57 = vadd.f32 %v3503_v63, %v976_v33  ;;  %v2435_v32 = vld [vmem:[%s5108_s9 + $0x120] sm:$0xff] }
 0x167   :  { %v2720_v49 = vpop.eup %2719  ;;  %v2467_v52 = vmul.f32 %v2403_v35, %v2339_v24  ;;  %v1904_v53 = vadd.f32 %v2716_v14, %v1903_v37  ;;  %v1452_v54 = vsub.f32 1.0, %v1451_v23  ;;  %v837_v56 = vpack.c.bf16 %v801_v25, %v800_v47 }
 0x168   :  { %vm1456_vm9 = vweird.f32 %v2718_v34  ;;  %v1916_v42 = vmul.f32 %v2720_v49, %v3763_v13  ;;  %v1926_v59 = vand.u32 2147483648, %v3763_v13  ;;  %2723 = vpow2.f32 %v1257_v44 }
 0x169   :  { %2531 = vst.msk [vmem:[%s5109_s10 + $0x20] sm:$0xff] %vm344_vm0, %v2467_v52  ;;  %v1908_v60 = vsel %vm1907_vm8, %v2716_v14, %v1904_v53  ;;  %v1453_v61 = vmul.f32 %v2718_v34, %v1452_v54  ;;  %v639_v28 = vmul.f32 %v3625_v6, %v513_v46  ;;  %v1126_v47 = vsub.f32 0.0, %v977_v57  ;;  %2662 = vmatmul.msk.bf16.gmra.mxu3 %vm344_vm0, %v837_v56  ;;  %vm1457_vm10 = vmor %vm1455_vm5, %vm1456_vm9 }
 0x16a   :  { %v2722_v43 = vpop.eup %2721  ;;  %v1913_v48 = vsel %vm3779_vm4, %v1912_v22, %v1908_v60  ;;  %v1917_v1 = vsub.f32 1.0, %v1916_v42  ;;  %v670_v2 = vmul.f32 %v3625_v6, %v591_v45  ;;  %v1055_v55 = vadd.f32 %v3503_v63, %v1054_v58 }
 0x16b   :  { %v2370_v3 = vadd.f32 1.0, %v1913_v48  ;;  %v1454_v5 = vadd.f32 %v2718_v34, %v1453_v61  ;;  %v3819_v50 = vadd.f32 1.0, %v2722_v43  ;;  %v707_v7 = vadd.f32 %v3651_v39, %v639_v28  ;;  %v517_v61 = vpop.f32.mrf.mxu0 }
 0x16c   :  { %v1918_v9 = vmul.f32 %v2720_v49, %v1917_v1  ;;  %vm1921_vm11 = vweird.f32 %v2720_v49  ;;  %v1197_v11 = vmul.f32 1.442695, %v1126_v47  ;;  %v1157_v12 = vsub.f32 0.0, %v1055_v55  ;;  %v595_v55 = vpop.f32.mrf.mxu2 }
 0x16d   :  { %v2498_v4 = vmul.f32 %v2434_v62, %v2370_v3  ;;  %v1458_v14 = vsel %vm1457_vm10, %v2718_v34, %v1454_v5  ;;  %vm1920_vm12 = vweird.f32 %v3763_v13  ;;  %2725 = vrcp.f32 %v3819_v50 }
 0x16e   :  { %v2724_v17 = vpop.eup %2723  ;;  %v1463_v40 = vsel %vm3791_vm7, %v1462_v30, %v1458_v14  ;;  %v1919_v19 = vadd.f32 %v2720_v49, %v1918_v9  ;;  %v1927_v20 = vor.u32 1.1754944e-38, %v1926_v59  ;;  %v593_v21 = vadd.f32 %v3671_v51, %v592_v8  ;;  %vm1922_vm13 = vmor %vm1920_vm12, %vm1921_vm11 }
 0x16f   :  { %2562 = vst.msk [vmem:[%s5109_s10 + $0x118] sm:$0xff] %vm344_vm0, %v2498_v4  ;;  %v2340_v13 = vadd.f32 1.0, %v1463_v40  ;;  %v3838_v10 = vadd.f32 1.0, %v2724_v17  ;;  %v771_v22 = vmax.f32 %v707_v7, 0.0  ;;  %2727 = vpow2.f32 %v1197_v11 }
 0x170   :  { %v1923_v25 = vsel %vm1922_vm13, %v2720_v49, %v1919_v19  ;;  %vm1925_vm14 = vcmp.eq.f32.partialorder %v1924_v41, 8.507059e+37  ;;  %v738_v26 = vadd.f32 %v3651_v39, %v670_v2  ;;  %v1259_v27 = vmul.f32 1.442695, %v1157_v12  ;;  %v981_v19 = vpop.f32.mrf.mxu1 }
 0x171   :  { %v2468_v30 = vmul.f32 %v2404_v0, %v2340_v13  ;;  %v1928_v31 = vsel %vm1925_vm14, %v1927_v20, %v1923_v25  ;;  %2729 = vrcp.f32 %v3838_v10  ;;  %v1474_v34 = vand.u32 2147483647, %v3819_v50 }
 0x172   :  { %v2371_v33 = vadd.f32 1.0, %v1928_v31  ;;  %v1476_v18 = vand.u32 2147483648, %v3819_v50  ;;  %v822_v35 = vpack.c.bf16 %v771_v22, %v770_v36  ;;  %2731 = vpow2.f32 %v1259_v27 }
 0x173   :  { %v2726_v24 = vpop.eup %2725  ;;  %2532 = vst.msk [vmem:[%s5109_s10 + $0x28] sm:$0xff] %vm344_vm0, %v2468_v30  ;;  %v671_v37 = vmul.f32 %v3625_v6, %v593_v21  ;;  %v516_v23 = vadd.f32 %v3671_v51, %v515_v15  ;;  %v980_v38 = vadd.f32 %v3503_v63, %v979_v29  ;;  %v802_v45 = vmax.f32 %v738_v26, 0.0  ;;  %v1059_v26 = vpop.f32.mrf.mxu3 }
 0x174   :  { %v2499_v41 = vmul.f32 %v2435_v32, %v2371_v33  ;;  %v1466_v44 = vmul.f32 %v2726_v24, %v3819_v50  ;;  %2647 = vmatmul.msk.bf16.gmra.mxu1 %vm344_vm0, %v822_v35  ;;  %vm1470_vm15 = vweird.f32 %v3819_v50  ;;  %vm3865_vm1 = vcmp.eq.f32.partialorder %v1474_v34, 8.507059e+37  ;;  %v2405_v50 = vld [vmem:[%s5108_s9 + $0x30] sm:$0xff] }
 0x175   :  { %v2728_v36 = vpop.eup %2727  ;;  %v739_v46 = vadd.f32 %v3651_v39, %v671_v37  ;;  %v640_v57 = vmul.f32 %v3625_v6, %v516_v23  ;;  %v1127_v49 = vsub.f32 0.0, %v980_v38  ;;  %v1477_v54 = vor.u32 1.1754944e-38, %v1476_v18 }
 0x176   :  { %2563 = vst.msk [vmem:[%s5109_s10 + $0x120] sm:$0xff] %vm344_vm0, %v2499_v41  ;;  %v1467_v52 = vsub.f32 1.0, %v1466_v44  ;;  %v3869_v56 = vadd.f32 1.0, %v2728_v36  ;;  %vm1935_vm2 = vweird.f32 %v3838_v10  ;;  %v1057_v60 = vadd.f32 %v3503_v63, %v1056_v16 }
 0x177   :  { %v2730_v58 = vpop.eup %2729  ;;  %v803_v42 = vmax.f32 %v739_v46, 0.0  ;;  %v1199_v59 = vmul.f32 1.442695, %v1127_v49  ;;  %vm1471_vm3 = vweird.f32 %v2726_v24  ;;  %v1939_v48 = vand.u32 2147483647, %v3838_v10  ;;  %v520_v49 = vpop.f32.mrf.mxu0 }
 0x178   :  { %v1468_v28 = vmul.f32 %v2726_v24, %v1467_v52  ;;  %v1931_v47 = vmul.f32 %v2730_v58, %v3838_v10  ;;  %2733 = vrcp.f32 %v3869_v56  ;;  %v2732_v43 = vpop.eup %2731  ;;  %v1941_v62 = vand.u32 2147483648, %v3838_v10  ;;  %vm1472_vm4 = vmor %vm1470_vm15, %vm1471_vm3  ;;  %v2436_v10 = vld [vmem:[%s5108_s9 + $0x128] sm:$0xff] }
 0x179   :  { %v838_v1 = vpack.c.bf16 %v803_v42, %v802_v45  ;;  %v3878_v2 = vadd.f32 %v3651_v39, %v640_v57  ;;  %v3880_v7 = vadd.f32 1.0, %v2732_v43  ;;  %v518_v8 = vadd.f32 %v3671_v51, %v517_v61  ;;  %v597_v57 = vpop.f32.mrf.mxu2 }
 0x17a   :  { %v1469_v3 = vadd.f32 %v2726_v24, %v1468_v28  ;;  %v1932_v5 = vsub.f32 1.0, %v1931_v47  ;;  %vm1936_vm5 = vweird.f32 %v2730_v58  ;;  %v1489_v9 = vand.u32 2147483647, %v3869_v56 }
 0x17b   :  { %2735 = vpow2.f32 %v1199_v59  ;;  %v1158_v11 = vsub.f32 0.0, %v1057_v60  ;;  %2663 = vmatmul.msk.bf16.gmra.mxu3 %vm344_vm0, %v838_v1  ;;  %v1491_v14 = vand.u32 2147483648, %v3869_v56  ;;  %vm3894_vm6 = vcmp.eq.f32.partialorder %v1939_v48, 8.507059e+37  ;;  %vm1937_vm7 = vmor %vm1935_vm2, %vm1936_vm5  ;;  %v984_v1 = vpop.f32.mrf.mxu1 }
 0x17c   :  { %v1473_v12 = vsel %vm1472_vm4, %v2726_v24, %v1469_v3  ;;  %v1933_v4 = vmul.f32 %v2730_v58, %v1932_v5  ;;  %2737 = vrcp.f32 %v3880_v7  ;;  %v596_v0 = vadd.f32 %v3671_v51, %v595_v55 }
 0x17d   :  { %v1478_v15 = vsel %vm3865_vm1, %v1477_v54, %v1473_v12  ;;  %v1261_v40 = vmul.f32 1.442695, %v1158_v11  ;;  %v1942_v22 = vor.u32 1.1754944e-38, %v1941_v62  ;;  %v641_v25 = vmul.f32 %v3625_v6, %v518_v8  ;;  %v1061_v8 = vpop.f32.mrf.mxu3 }
 0x17e   :  { %v2734_v20 = vpop.eup %2733  ;;  %v2341_v21 = vadd.f32 1.0, %v1478_v15  ;;  %v1934_v13 = vadd.f32 %v2730_v58, %v1933_v4  ;;  %vm1485_vm8 = vweird.f32 %v3869_v56  ;;  %vm3905_vm9 = vcmp.eq.f32.partialorder %v1489_v9, 8.507059e+37 }
 0x17f   :  { %v1481_v27 = vmul.f32 %v2734_v20, %v3869_v56  ;;  %v772_v30 = vmax.f32 %v3878_v2, 0.0  ;;  %v1492_v33 = vor.u32 1.1754944e-38, %v1491_v14  ;;  %2739 = vpow2.f32 %v1261_v40  ;;  %v2406_v56 = vld [vmem:[%s5108_s9 + $0x38] sm:$0xff] }
 0x180   :  { %v2469_v31 = vmul.f32 %v2405_v50, %v2341_v21  ;;  %v1938_v32 = vsel %vm1937_vm7, %v2730_v58, %v1934_v13  ;;  %v672_v24 = vmul.f32 %v3625_v6, %v596_v0  ;;  %v709_v37 = vadd.f32 %v3651_v39, %v641_v25 }
 0x181   :  { %v2736_v34 = vpop.eup %2735  ;;  %v1943_v18 = vsel %vm3894_vm6, %v1942_v22, %v1938_v32  ;;  %v1482_v35 = vsub.f32 1.0, %v1481_v27  ;;  %v982_v44 = vadd.f32 %v3503_v63, %v981_v19  ;;  %v1060_v45 = vadd.f32 %v3503_v63, %v1059_v26  ;;  %v522_v26 = vpop.f32.mrf.mxu0 }
 0x182   :  { %v2738_v23 = vpop.eup %2737  ;;  %2533 = vst.msk [vmem:[%s5109_s10 + $0x30] sm:$0xff] %vm344_vm0, %v2469_v31  ;;  %v2372_v38 = vadd.f32 1.0, %v1943_v18  ;;  %v3921_v41 = vadd.f32 1.0, %v2736_v34  ;;  %vm1486_vm10 = vweird.f32 %v2734_v20  ;;  %v773_v46 = vmax.f32 %v709_v37, 0.0 }
 0x183   :  { %v1483_v16 = vmul.f32 %v2734_v20, %v1482_v35  ;;  %v1946_v36 = vmul.f32 %v2738_v23, %v3880_v7  ;;  %vm1950_vm11 = vweird.f32 %v3880_v7  ;;  %v1954_v53 = vand.u32 2147483647, %v3880_v7  ;;  %vm1487_vm12 = vmor %vm1485_vm8, %vm1486_vm10  ;;  %v600_v35 = vpop.f32.mrf.mxu2 }
 0x184   :  { %v2500_v52 = vmul.f32 %v2436_v10, %v2372_v38  ;;  %2741 = vrcp.f32 %v3921_v41  ;;  %v1956_v42 = vand.u32 2147483648, %v3880_v7  ;;  %v823_v59 = vpack.c.bf16 %v773_v46, %v772_v30  ;;  %v3972_v30 = vld [vmem:[%s5107_s8] ss:$0 sm:$0xff] }
 0x185   :  { %v1484_v54 = vadd.f32 %v2734_v20, %v1483_v16  ;;  %v1947_v58 = vsub.f32 1.0, %v1946_v36  ;;  %v2740_v63 = vpop.eup %2739  ;;  %v740_v60 = vadd.f32 %v3651_v39, %v672_v24  ;;  %v1128_v61 = vsub.f32 0.0, %v982_v44 }
 0x186   :  { %2564 = vst.msk [vmem:[%s5109_s10 + $0x128] sm:$0xff] %vm344_vm0, %v2500_v52  ;;  %v1159_v28 = vsub.f32 0.0, %v1060_v45  ;;  %v598_v47 = vadd.f32 %v3671_v51, %v597_v57  ;;  %vm1951_vm13 = vweird.f32 %v2738_v23  ;;  %v3939_v62 = vadd.f32 1.0, %v2740_v63  ;;  %2648 = vmatmul.msk.bf16.gmra.mxu1 %vm344_vm0, %v823_v59  ;;  %v986_v57 = vpop.f32.mrf.mxu1 }
 0x187   :  { %v1488_v43 = vsel %vm1487_vm12, %v2734_v20, %v1484_v54  ;;  %v1948_v48 = vmul.f32 %v2738_v23, %v1947_v58  ;;  %v1201_v55 = vmul.f32 1.442695, %v1128_v61  ;;  %v1957_v12 = vor.u32 1.1754944e-38, %v1956_v42  ;;  %vm1952_vm14 = vmor %vm1950_vm11, %vm1951_vm13  ;;  %v2437_v20 = vld [vmem:[%s5108_s9 + $0x130] sm:$0xff]  ;;  %v1064_v42 = vpop.f32.mrf.mxu3 }
 0x188   :  { %v1493_v2 = vsel %vm3905_vm9, %v1492_v33, %v1488_v43  ;;  %v1263_v3 = vmul.f32 1.442695, %v1159_v28  ;;  %v673_v5 = vmul.f32 %v3625_v6, %v598_v47  ;;  %2743 = vrcp.f32 %v3939_v62 }
 0x189   :  { %v2342_v9 = vadd.f32 1.0, %v1493_v2  ;;  %v1949_v11 = vadd.f32 %v2738_v23, %v1948_v48  ;;  %v1504_v14 = vand.u32 2147483647, %v3921_v41  ;;  %v1506_v15 = vand.u32 2147483648, %v3921_v41 }
 0x18a   :  { %v2742_v4 = vpop.eup %2741  ;;  %2745 = vpow2.f32 %v1201_v55  ;;  %v741_v50 = vadd.f32 %v3651_v39, %v673_v5  ;;  %vm1955_vm15 = vcmp.eq.f32.partialorder %v1954_v53, 8.507059e+37  ;;  %vm1500_vm1 = vweird.f32 %v3921_v41 }
 0x18b   :  { %v2470_v17 = vmul.f32 %v2406_v56, %v2342_v9  ;;  %v1953_v40 = vsel %vm1952_vm14, %v2738_v23, %v1949_v11  ;;  %v1496_v0 = vmul.f32 %v2742_v4, %v3921_v41  ;;  %v804_v7 = vmax.f32 %v740_v60, 0.0  ;;  %v2407_v41 = vld [vmem:[%s5108_s9 + $0x40] sm:$0xff] }
 0x18c   :  { %v1958_v19 = vsel %vm1955_vm15, %v1957_v12, %v1953_v40  ;;  %2747 = vpow2.f32 %v1263_v3  ;;  %v805_v22 = vmax.f32 %v741_v50, 0.0  ;;  %v521_v25 = vadd.f32 %v3671_v51, %v520_v49  ;;  %v602_v50 = vpop.f32.mrf.mxu2 }
 0x18d   :  { %2534 = vst.msk [vmem:[%s5109_s10 + $0x38] sm:$0xff] %vm344_vm0, %v2470_v17  ;;  %v2373_v21 = vadd.f32 1.0, %v1958_v19  ;;  %v1497_v13 = vsub.f32 1.0, %v1496_v0  ;;  %vm3965_vm2 = vcmp.eq.f32.partialorder %v1504_v14, 8.507059e+37  ;;  %v1507_v29 = vor.u32 1.1754944e-38, %v1506_v15 }
 0x18e   :  { %v985_v31 = vadd.f32 %v3972_v30, %v984_v1  ;;  %v1062_v32 = vadd.f32 %v3972_v30, %v1061_v8  ;;  %v2744_v33 = vpop.eup %2743  ;;  %vm1501_vm3 = vweird.f32 %v2742_v4  ;;  %v839_v10 = vpack.c.bf16 %v805_v22, %v804_v7  ;;  %v989_v22 = vpop.f32.mrf.mxu1 }
 0x18f   :  { %v2501_v34 = vmul.f32 %v2437_v20, %v2373_v21  ;;  %v1498_v18 = vmul.f32 %v2742_v4, %v1497_v13  ;;  %v1961_v37 = vmul.f32 %v2744_v33, %v3939_v62  ;;  %v523_v44 = vadd.f32 %v3671_v51, %v522_v26  ;;  %vm1502_vm4 = vmor %vm1500_vm1, %vm1501_vm3 }
 0x190   :  { %v2746_v24 = vpop.eup %2745  ;;  %v1129_v23 = vsub.f32 0.0, %v985_v31  ;;  %v1160_v38 = vsub.f32 0.0, %v1062_v32  ;;  %v1969_v16 = vand.u32 2147483647, %v3939_v62  ;;  %v642_v46 = vmul.f32 %v3625_v6, %v521_v25  ;;  %2664 = vmatmul.msk.bf16.gmra.mxu3 %vm344_vm0, %v839_v10  ;;  %v4028_v32 = vpop.f32.mrf.mxu3 }
 0x191   :  { %2565 = vst.msk [vmem:[%s5109_s10 + $0x130] sm:$0xff] %vm344_vm0, %v2501_v34  ;;  %v1499_v45 = vadd.f32 %v2742_v4, %v1498_v18  ;;  %v3983_v36 = vadd.f32 1.0, %v2746_v24  ;;  %v1962_v52 = vsub.f32 1.0, %v1961_v37  ;;  %v1971_v53 = vand.u32 2147483648, %v3939_v62 }
 0x192   :  { %v2748_v49 = vpop.eup %2747  ;;  %v1203_v54 = vmul.f32 1.442695, %v1129_v23  ;;  %v601_v58 = vadd.f32 %v3671_v51, %v600_v35  ;;  %vm1966_vm5 = vweird.f32 %v2744_v33  ;;  %v1265_v63 = vmul.f32 1.442695, %v1160_v38 }
 0x193   :  { %v1503_v59 = vsel %vm1502_vm4, %v2742_v4, %v1499_v45  ;;  %2749 = vrcp.f32 %v3983_v36  ;;  %v1963_v61 = vmul.f32 %v2744_v33, %v1962_v52  ;;  %v3998_v28 = vadd.f32 1.0, %v2748_v49  ;;  %v2438_v4 = vld [vmem:[%s5108_s9 + $0x138] sm:$0xff] }
 0x194   :  { %v1508_v60 = vsel %vm3965_vm2, %v1507_v29, %v1503_v59  ;;  %v643_v47 = vmul.f32 %v3625_v6, %v523_v44  ;;  %vm1965_vm6 = vweird.f32 %v3939_v62  ;;  %v710_v48 = vadd.f32 %v3651_v39, %v642_v46  ;;  %v2408_v59 = vld [vmem:[%s5108_s9 + $0x48] sm:$0xff] }
 0x195   :  { %v2343_v43 = vadd.f32 1.0, %v1508_v60  ;;  %2751 = vpow2.f32 %v1203_v54  ;;  %v1964_v1 = vadd.f32 %v2744_v33, %v1963_v61  ;;  %v1519_v2 = vand.u32 2147483647, %v3983_v36  ;;  %vm1967_vm7 = vmor %vm1965_vm6, %vm1966_vm5 }
 0x196   :  { %v1521_v56 = vand.u32 2147483648, %v3983_v36  ;;  %2753 = vrcp.f32 %v3998_v28  ;;  %vm1970_vm8 = vcmp.eq.f32.partialorder %v1969_v16, 8.507059e+37  ;;  %v1972_v3 = vor.u32 1.1754944e-38, %v1971_v53  ;;  %v525_v53 = vpop.f32.mrf.mxu0 }
 0x197   :  { %v2471_v55 = vmul.f32 %v2407_v41, %v2343_v43  ;;  %2755 = vpow2.f32 %v1265_v63  ;;  %v1968_v5 = vsel %vm1967_vm7, %v2744_v33, %v1964_v1  ;;  %v674_v8 = vmul.f32 %v3625_v6, %v601_v58  ;;  %v2937_v58 = vld [vmem:[%s5103_s4] ss:$0 sm:$0xff] }
 0x198   :  { %v711_v62 = vadd.f32 %v3651_v39, %v643_v47  ;;  %v987_v9 = vadd.f32 %v3972_v30, %v986_v57  ;;  %v1973_v12 = vsel %vm1970_vm8, %v1972_v3, %v1968_v5  ;;  %vm1515_vm9 = vweird.f32 %v3983_v36  ;;  %v4069_v5 = vpop.f32.mrf.mxu1 }
 0x199   :  { %v2750_v11 = vpop.eup %2749  ;;  %2535 = vst.msk [vmem:[%s5109_s10 + $0x40] sm:$0xff] %vm344_vm0, %v2471_v55  ;;  %v774_v14 = vmax.f32 %v710_v48, 0.0  ;;  %v1065_v15 = vadd.f32 %v3972_v30, %v1064_v42  ;;  %v2374_v17 = vadd.f32 1.0, %v1973_v12  ;;  %vm4020_vm10 = vcmp.eq.f32.partialorder %v1519_v2, 8.507059e+37  ;;  %v4079_v12 = vpop.f32.mrf.mxu3 }
 0x19a   :  { %v1511_v40 = vmul.f32 %v2750_v11, %v3983_v36  ;;  %v1522_v19 = vor.u32 1.1754944e-38, %v1521_v56  ;;  %vm1980_vm11 = vweird.f32 %v3998_v28  ;;  %v775_v7 = vmax.f32 %v711_v62, 0.0  ;;  %v2439_v62 = vld [vmem:[%s5108_s9 + $0x140] sm:$0xff] }
 0x19b   :  { %v2752_v20 = vpop.eup %2751  ;;  %v1130_v21 = vsub.f32 0.0, %v987_v9  ;;  %v1161_v13 = vsub.f32 0.0, %v1065_v15  ;;  %v2502_v26 = vmul.f32 %v2438_v4, %v2374_v17  ;;  %v603_v31 = vadd.f32 %v3671_v51, %v602_v50 }
 0x19c   :  { %v2754_v25 = vpop.eup %2753  ;;  %v1512_v27 = vsub.f32 1.0, %v1511_v40  ;;  %v4025_v29 = vadd.f32 1.0, %v2752_v20  ;;  %v1984_v18 = vand.u32 2147483647, %v3998_v28  ;;  %v824_v10 = vpack.c.bf16 %v775_v7, %v774_v14 }
 0x19d   :  { %v2756_v33 = vpop.eup %2755  ;;  %v1976_v34 = vmul.f32 %v2754_v25, %v3998_v28  ;;  %v1205_v35 = vmul.f32 1.442695, %v1130_v21  ;;  %2566 = vst.msk [vmem:[%s5109_s10 + $0x138] sm:$0xff] %vm344_vm0, %v2502_v26  ;;  %vm1516_vm12 = vweird.f32 %v2750_v11  ;;  %v1986_v37 = vand.u32 2147483648, %v3998_v28 }
 0x19e   :  { %v1513_v24 = vmul.f32 %v2750_v11, %v1512_v27  ;;  %2757 = vrcp.f32 %v4025_v29  ;;  %v4038_v38 = vadd.f32 1.0, %v2756_v33  ;;  %v742_v44 = vadd.f32 %v3651_v39, %v674_v8  ;;  %2649 = vmatmul.msk.bf16.gmra.mxu1 %vm344_vm0, %v824_v10  ;;  %vm1517_vm14 = vmor %vm1515_vm9, %vm1516_vm12 }
 0x19f   :  { %v1977_v23 = vsub.f32 1.0, %v1976_v34  ;;  %2759 = vpow2.f32 %v1205_v35  ;;  %vm1981_vm13 = vweird.f32 %v2754_v25  ;;  %v1267_v16 = vmul.f32 1.442695, %v1161_v13 }
 0x1a0   :  { %v1514_v45 = vadd.f32 %v2750_v11, %v1513_v24  ;;  %v675_v46 = vmul.f32 %v3625_v6, %v603_v31  ;;  %v1534_v49 = vand.u32 2147483647, %v4025_v29  ;;  %v1536_v52 = vand.u32 2147483648, %v4025_v29  ;;  %vm1982_vm1 = vmor %vm1980_vm11, %vm1981_vm13  ;;  %v605_v24 = vpop.f32.mrf.mxu2 }
 0x1a1   :  { %v1978_v57 = vmul.f32 %v2754_v25, %v1977_v23  ;;  %2761 = vrcp.f32 %v4038_v38  ;;  %vm4048_vm15 = vcmp.eq.f32.partialorder %v1984_v18, 8.507059e+37  ;;  %v526_v42 = vadd.f32 %v3671_v51, %v525_v53 }
 0x1a2   :  { %v1518_v54 = vsel %vm1517_vm14, %v2750_v11, %v1514_v45  ;;  %2763 = vpow2.f32 %v1267_v16  ;;  %v1987_v60 = vor.u32 1.1754944e-38, %v1986_v37  ;;  %v743_v41 = vadd.f32 %v3651_v39, %v675_v46  ;;  %v527_v37 = vpop.f32.mrf.mxu0 }
 0x1a3   :  { %v1523_v36 = vsel %vm4020_vm10, %v1522_v19, %v1518_v54  ;;  %v1979_v63 = vadd.f32 %v2754_v25, %v1978_v57  ;;  %vm1530_vm2 = vweird.f32 %v4025_v29  ;;  %v806_v51 = vmax.f32 %v742_v44, 0.0 }
 0x1a4   :  { %v2758_v61 = vpop.eup %2757  ;;  %v2344_v47 = vadd.f32 1.0, %v1523_v36  ;;  %v990_v43 = vadd.f32 %v3972_v30, %v989_v22  ;;  %vm4065_vm3 = vcmp.eq.f32.partialorder %v1534_v49, 8.507059e+37  ;;  %v1537_v55 = vor.u32 1.1754944e-38, %v1536_v52  ;;  %v994_v52 = vpop.f32.mrf.mxu1 }
 0x1a5   :  { %v2760_v48 = vpop.eup %2759  ;;  %v1983_v1 = vsel %vm1982_vm1, %v2754_v25, %v1979_v63  ;;  %v1526_v2 = vmul.f32 %v2758_v61, %v4025_v29  ;;  %v807_v3 = vmax.f32 %v743_v41, 0.0  ;;  %v644_v11 = vmul.f32 %v3625_v6, %v526_v42  ;;  %v2409_v29 = vld [vmem:[%s5108_s9 + $0x50] sm:$0xff] }
 0x1a6   :  { %v2472_v8 = vmul.f32 %v2408_v59, %v2344_v47  ;;  %v1988_v28 = vsel %vm4048_vm15, %v1987_v60, %v1983_v1  ;;  %v4076_v9 = vadd.f32 1.0, %v2760_v48  ;;  %v1131_v17 = vsub.f32 0.0, %v990_v43  ;;  %v1071_v59 = vpop.f32.mrf.mxu3  ;;  %v2440_v60 = vld [vmem:[%s5108_s9 + $0x148] sm:$0xff]  ;;  %v2938_v48 = vld [vmem:[%s5104_s5] ss:$0 sm:$0xff] }
 0x1a7   :  { %v2762_v4 = vpop.eup %2761  ;;  %v2375_v14 = vadd.f32 1.0, %v1988_v28  ;;  %v1527_v15 = vsub.f32 1.0, %v1526_v2  ;;  %v840_v50 = vpack.c.bf16 %v807_v3, %v806_v51  ;;  %vm1995_vm4 = vweird.f32 %v4038_v38 }
 0x1a8   :  { %v2764_v40 = vpop.eup %2763  ;;  %2536 = vst.msk [vmem:[%s5109_s10 + $0x48] sm:$0xff] %vm344_vm0, %v2472_v8  ;;  %v1991_v0 = vmul.f32 %v2762_v4, %v4038_v38  ;;  %v1999_v19 = vand.u32 2147483647, %v4038_v38  ;;  %2765 = vrcp.f32 %v4076_v9  ;;  %vm1531_vm5 = vweird.f32 %v2758_v61 }
 0x1a9   :  { %v2503_v6 = vmul.f32 %v2439_v62, %v2375_v14  ;;  %v1528_v20 = vmul.f32 %v2758_v61, %v1527_v15  ;;  %v2001_v7 = vand.u32 2147483648, %v4038_v38  ;;  %2665 = vmatmul.msk.bf16.gmra.mxu3 %vm344_vm0, %v840_v50  ;;  %v4091_v13 = vadd.f32 1.0, %v2764_v40  ;;  %vm1532_vm6 = vmor %vm1530_vm2, %vm1531_vm5  ;;  %v2939_v62 = vld [vmem:[%s5105_s6] ss:$0 sm:$0xff] }
 0x1aa   :  { %v1992_v21 = vsub.f32 1.0, %v1991_v0  ;;  %v4094_v22 = vadd.f32 %v3651_v39, %v644_v11  ;;  %v1207_v25 = vmul.f32 1.442695, %v1131_v17  ;;  %v1549_v27 = vand.u32 2147483647, %v4076_v9 }
 0x1ab   :  { %2567 = vst.msk [vmem:[%s5109_s10 + $0x140] sm:$0xff] %vm344_vm0, %v2503_v6  ;;  %v1529_v26 = vadd.f32 %v2758_v61, %v1528_v20  ;;  %v1551_v31 = vand.u32 2147483648, %v4076_v9  ;;  %v1067_v33 = vadd.f32 %v3972_v30, %v4028_v32  ;;  %vm1996_vm7 = vweird.f32 %v2762_v4 }
 0x1ac   :  { %v1993_v34 = vmul.f32 %v2762_v4, %v1992_v21  ;;  %vm4106_vm8 = vcmp.eq.f32.partialorder %v1999_v19, 8.507059e+37  ;;  %2767 = vrcp.f32 %v4091_v13  ;;  %v2002_v10 = vor.u32 1.1754944e-38, %v2001_v7  ;;  %vm1997_vm10 = vmor %vm1995_vm4, %vm1996_vm7 }
 0x1ad   :  { %v1533_v18 = vsel %vm1532_vm6, %v2758_v61, %v1529_v26  ;;  %2769 = vpow2.f32 %v1207_v25  ;;  %v1162_v35 = vsub.f32 0.0, %v1067_v33  ;;  %vm1545_vm9 = vweird.f32 %v4076_v9  ;;  %v996_v33 = vpop.f32.mrf.mxu1 }
 0x1ae   :  { %v2766_v23 = vpop.eup %2765  ;;  %v1538_v32 = vsel %vm4065_vm3, %v1537_v55, %v1533_v18  ;;  %v1994_v44 = vadd.f32 %v2762_v4, %v1993_v34  ;;  %v776_v45 = vmax.f32 %v4094_v22, 0.0  ;;  %vm4122_vm11 = vcmp.eq.f32.partialorder %v1549_v27, 8.507059e+37 }
 0x1af   :  { %v2345_v16 = vadd.f32 1.0, %v1538_v32  ;;  %v1541_v46 = vmul.f32 %v2766_v23, %v4076_v9  ;;  %v1552_v49 = vor.u32 1.1754944e-38, %v1551_v31  ;;  %v1269_v54 = vmul.f32 1.442695, %v1162_v35  ;;  %v2410_v9 = vld [vmem:[%s5108_s9 + $0x58] sm:$0xff]  ;;  %v1074_v35 = vpop.f32.mrf.mxu3 }
 0x1b0   :  { %v1998_v53 = vsel %vm1997_vm10, %v2762_v4, %v1994_v44  ;;  %v606_v42 = vadd.f32 %v2937_v58, %v605_v24  ;;  %v528_v36 = vadd.f32 %v2937_v58, %v527_v37  ;;  %v992_v61 = vadd.f32 %v3972_v30, %v4069_v5 }
 0x1b1   :  { %v2473_v63 = vmul.f32 %v2409_v29, %v2345_v16  ;;  %v2003_v38 = vsel %vm4106_vm8, %v2002_v10, %v1998_v53  ;;  %v1542_v41 = vsub.f32 1.0, %v1541_v46  ;;  %v2014_v43 = vand.u32 2147483647, %v4091_v13 }
 0x1b2   :  { %v2768_v47 = vpop.eup %2767  ;;  %v2376_v51 = vadd.f32 1.0, %v2003_v38  ;;  %2771 = vpow2.f32 %v1269_v54  ;;  %v645_v1 = vmul.f32 %v2938_v48, %v528_v36  ;;  %vm1546_vm12 = vweird.f32 %v2766_v23 }
 0x1b3   :  { %v2770_v2 = vpop.eup %2769  ;;  %2537 = vst.msk [vmem:[%s5109_s10 + $0x50] sm:$0xff] %vm344_vm0, %v2473_v63  ;;  %v1543_v56 = vmul.f32 %v2766_v23, %v1542_v41  ;;  %v2006_v55 = vmul.f32 %v2768_v47, %v4091_v13  ;;  %v1132_v3 = vsub.f32 0.0, %v992_v61  ;;  %v676_v28 = vmul.f32 %v2938_v48, %v606_v42  ;;  %vm1547_vm13 = vmor %vm1545_vm9, %vm1546_vm12 }
 0x1b4   :  { %v2504_v5 = vmul.f32 %v2440_v60, %v2376_v51  ;;  %v4145_v8 = vadd.f32 1.0, %v2770_v2  ;;  %v713_v11 = vadd.f32 %v2939_v62, %v645_v1  ;;  %v1070_v50 = vadd.f32 %v3972_v30, %v4079_v12  ;;  %v607_v12 = vpop.f32.mrf.mxu2 }
 0x1b5   :  { %v1544_v4 = vadd.f32 %v2766_v23, %v1543_v56  ;;  %v2007_v14 = vsub.f32 1.0, %v2006_v55  ;;  %v1209_v15 = vmul.f32 1.442695, %v1132_v3  ;;  %vm2010_vm14 = vweird.f32 %v4091_v13 }
 0x1b6   :  { %2568 = vst.msk [vmem:[%s5109_s10 + $0x148] sm:$0xff] %vm344_vm0, %v2504_v5  ;;  %vm2011_vm15 = vweird.f32 %v2768_v47  ;;  %v2016_v17 = vand.u32 2147483648, %v4091_v13  ;;  %2773 = vrcp.f32 %v4145_v8  ;;  %v777_v19 = vmax.f32 %v713_v11, 0.0  ;;  %v2441_v13 = vld [vmem:[%s5108_s9 + $0x150] sm:$0xff]  ;;  %v999_v5 = vpop.f32.mrf.mxu1 }
 0x1b7   :  { %v1548_v40 = vsel %vm1547_vm13, %v2766_v23, %v1544_v4  ;;  %v2008_v0 = vmul.f32 %v2768_v47, %v2007_v14  ;;  %2775 = vpow2.f32 %v1209_v15  ;;  %vm4166_vm1 = vcmp.eq.f32.partialorder %v2014_v43, 8.507059e+37  ;;  %vm2012_vm2 = vmor %vm2010_vm14, %vm2011_vm15  ;;  %v1076_v4 = vpop.f32.mrf.mxu3  ;;  %v2443_v15 = vld [vmem:[%s5108_s9 + $0x160] sm:$0xff] }
 0x1b8   :  { %v2772_v6 = vpop.eup %2771  ;;  %v1553_v20 = vsel %vm4122_vm11, %v1552_v49, %v1548_v40  ;;  %v744_v21 = vadd.f32 %v2939_v62, %v676_v28  ;;  %v1163_v22 = vsub.f32 0.0, %v1070_v50  ;;  %v825_v31 = vpack.c.bf16 %v777_v19, %v776_v45 }
 0x1b9   :  { %v2346_v25 = vadd.f32 1.0, %v1553_v20  ;;  %v2009_v26 = vadd.f32 %v2768_v47, %v2008_v0  ;;  %v4170_v27 = vadd.f32 1.0, %v2772_v6  ;;  %v2017_v34 = vor.u32 1.1754944e-38, %v2016_v17  ;;  %v2411_v17 = vld [vmem:[%s5108_s9 + $0x60] sm:$0xff] }
 0x1ba   :  { %v1271_v39 = vmul.f32 1.442695, %v1163_v22  ;;  %v608_v18 = vadd.f32 %v2937_v58, %v607_v12  ;;  %v995_v10 = vadd.f32 %v3972_v30, %v994_v52  ;;  %2650 = vmatmul.msk.bf16.gmra.mxu1 %vm344_vm0, %v825_v31  ;;  %v1072_v23 = vadd.f32 %v3972_v30, %v1071_v59 }
 0x1bb   :  { %v2474_v24 = vmul.f32 %v2410_v9, %v2346_v25  ;;  %v2013_v37 = vsel %vm2012_vm2, %v2768_v47, %v2009_v26  ;;  %2777 = vrcp.f32 %v4170_v27  ;;  %v808_v46 = vmax.f32 %v744_v21, 0.0 }
 0x1bc   :  { %v2774_v32 = vpop.eup %2773  ;;  %v2018_v29 = vsel %vm4166_vm1, %v2017_v34, %v2013_v37  ;;  %2779 = vpow2.f32 %v1271_v39  ;;  %v677_v57 = vmul.f32 %v2938_v48, %v608_v18  ;;  %v1564_v49 = vand.u32 2147483647, %v4145_v8 }
 0x1bd   :  { %v2776_v44 = vpop.eup %2775  ;;  %2538 = vst.msk [vmem:[%s5109_s10 + $0x58] sm:$0xff] %vm344_vm0, %v2474_v24  ;;  %v2377_v45 = vadd.f32 1.0, %v2018_v29  ;;  %v1556_v16 = vmul.f32 %v2774_v32, %v4145_v8  ;;  %v1566_v52 = vand.u32 2147483648, %v4145_v8  ;;  %v1133_v54 = vsub.f32 0.0, %v995_v10  ;;  %v2442_v24 = vld [vmem:[%s5108_s9 + $0x158] sm:$0xff] }
 0x1be   :  { %v4191_v53 = vadd.f32 1.0, %v2776_v44  ;;  %v745_v36 = vadd.f32 %v2939_v62, %v677_v57  ;;  %v1164_v59 = vsub.f32 0.0, %v1072_v23  ;;  %vm1560_vm3 = vweird.f32 %v4145_v8  ;;  %v1001_v57 = vpop.f32.mrf.mxu1 }
 0x1bf   :  { %v2505_v58 = vmul.f32 %v2441_v13, %v2377_v45  ;;  %v1557_v42 = vsub.f32 1.0, %v1556_v16  ;;  %vm1561_vm4 = vweird.f32 %v2774_v32  ;;  %v2029_v63 = vand.u32 2147483647, %v4170_v27 }
 0x1c0   :  { %2781 = vrcp.f32 %v4191_v53  ;;  %v809_v41 = vmax.f32 %v745_v36, 0.0  ;;  %v1211_v61 = vmul.f32 1.442695, %v1133_v54  ;;  %v1273_v47 = vmul.f32 1.442695, %v1164_v59  ;;  %vm1562_vm6 = vmor %vm1560_vm3, %vm1561_vm4 }
 0x1c1   :  { %v2778_v38 = vpop.eup %2777  ;;  %2569 = vst.msk [vmem:[%s5109_s10 + $0x150] sm:$0xff] %vm344_vm0, %v2505_v58  ;;  %v1558_v60 = vmul.f32 %v2774_v32, %v1557_v42  ;;  %vm4200_vm5 = vcmp.eq.f32.partialorder %v1564_v49, 8.507059e+37  ;;  %v1567_v48 = vor.u32 1.1754944e-38, %v1566_v52  ;;  %v2031_v2 = vand.u32 2147483648, %v4170_v27  ;;  %v1079_v58 = vpop.f32.mrf.mxu3 }
 0x1c2   :  { %v2780_v51 = vpop.eup %2779  ;;  %v2021_v1 = vmul.f32 %v2778_v38, %v4170_v27  ;;  %v841_v3 = vpack.c.bf16 %v809_v41, %v808_v46  ;;  %2783 = vpow2.f32 %v1211_v61  ;;  %v997_v62 = vadd.f32 %v3972_v30, %v996_v33 }
 0x1c3   :  { %v1559_v56 = vadd.f32 %v2774_v32, %v1558_v60  ;;  %v4206_v55 = vadd.f32 1.0, %v2780_v51  ;;  %2785 = vpow2.f32 %v1273_v47  ;;  %v1075_v11 = vadd.f32 %v3972_v30, %v1074_v35 }
 0x1c4   :  { %v2022_v28 = vsub.f32 1.0, %v2021_v1  ;;  %vm2025_vm7 = vweird.f32 %v4170_v27  ;;  %vm4214_vm8 = vcmp.eq.f32.partialorder %v2029_v63, 8.507059e+37  ;;  %2666 = vmatmul.msk.bf16.gmra.mxu3 %vm344_vm0, %v841_v3  ;;  %vm2026_vm9 = vweird.f32 %v2778_v38 }
 0x1c5   :  { %v1563_v14 = vsel %vm1562_vm6, %v2774_v32, %v1559_v56  ;;  %2787 = vrcp.f32 %v4206_v55  ;;  %v1134_v0 = vsub.f32 0.0, %v997_v62  ;;  %v2032_v12 = vor.u32 1.1754944e-38, %v2031_v2  ;;  %vm2027_vm11 = vmor %vm2025_vm7, %vm2026_vm9 }
 0x1c6   :  { %v2782_v8 = vpop.eup %2781  ;;  %v1568_v50 = vsel %vm4200_vm5, %v1567_v48, %v1563_v14  ;;  %v2023_v40 = vmul.f32 %v2778_v38, %v2022_v28  ;;  %vm1575_vm10 = vweird.f32 %v4191_v53  ;;  %v1579_v9 = vand.u32 2147483647, %v4191_v53 }
 0x1c7   :  { %v2347_v19 = vadd.f32 1.0, %v1568_v50  ;;  %v1571_v6 = vmul.f32 %v2782_v8, %v4191_v53  ;;  %v1213_v7 = vmul.f32 1.442695, %v1134_v0  ;;  %v1165_v21 = vsub.f32 0.0, %v1075_v11 }
 0x1c8   :  { %v2024_v20 = vadd.f32 %v2778_v38, %v2023_v40  ;;  %v2784_v22 = vpop.eup %2783  ;;  %v1581_v31 = vand.u32 2147483648, %v4191_v53  ;;  %v2044_v33 = vand.u32 2147483647, %v4206_v55  ;;  %v1000_v10 = vadd.f32 %v3972_v30, %v999_v5 }
 0x1c9   :  { %v2475_v25 = vmul.f32 %v2411_v17, %v2347_v19  ;;  %v1572_v26 = vsub.f32 1.0, %v1571_v6  ;;  %v2786_v34 = vpop.eup %2785  ;;  %v4232_v18 = vadd.f32 1.0, %v2784_v22  ;;  %2789 = vpow2.f32 %v1213_v7  ;;  %v1004_v7 = vpop.f32.mrf.mxu1 }
 0x1ca   :  { %v2028_v39 = vsel %vm2027_vm11, %v2778_v38, %v2024_v20  ;;  %vm1576_vm12 = vweird.f32 %v2782_v8  ;;  %v4244_v23 = vadd.f32 1.0, %v2786_v34  ;;  %v1275_v13 = vmul.f32 1.442695, %v1165_v21  ;;  %v2412_v38 = vld [vmem:[%s5108_s9 + $0x68] sm:$0xff] }
 0x1cb   :  { %v2788_v35 = vpop.eup %2787  ;;  %2539 = vst.msk [vmem:[%s5109_s10 + $0x60] sm:$0xff] %vm344_vm0, %v2475_v25  ;;  %v2033_v27 = vsel %vm4214_vm8, %v2032_v12, %v2028_v39  ;;  %v1573_v37 = vmul.f32 %v2782_v8, %v1572_v26  ;;  %2791 = vrcp.f32 %v4232_v18  ;;  %vm4248_vm13 = vcmp.eq.f32.partialorder %v1579_v9, 8.507059e+37  ;;  %vm1577_vm14 = vmor %vm1575_vm10, %vm1576_vm12 }
 0x1cc   :  { %v2378_v32 = vadd.f32 1.0, %v2033_v27  ;;  %v2036_v29 = vmul.f32 %v2788_v35, %v4206_v55  ;;  %v1582_v16 = vor.u32 1.1754944e-38, %v1581_v31  ;;  %v2046_v46 = vand.u32 2147483648, %v4206_v55  ;;  %v4304_v31 = vpop.f32.mrf.mxu3 }
 0x1cd   :  { %v1574_v44 = vadd.f32 %v2782_v8, %v1573_v37  ;;  %2793 = vrcp.f32 %v4244_v23  ;;  %v1135_v54 = vsub.f32 0.0, %v1000_v10  ;;  %vm2040_vm15 = vweird.f32 %v4206_v55 }
 0x1ce   :  { %v2506_v49 = vmul.f32 %v2442_v24, %v2378_v32  ;;  %v2037_v52 = vsub.f32 1.0, %v2036_v29  ;;  %vm4257_vm1 = vcmp.eq.f32.partialorder %v2044_v33, 8.507059e+37  ;;  %v1077_v59 = vadd.f32 %v3972_v30, %v1076_v4 }
 0x1cf   :  { %v1578_v42 = vsel %vm1577_vm14, %v2782_v8, %v1574_v44  ;;  %v2790_v63 = vpop.eup %2789  ;;  %vm2041_vm2 = vweird.f32 %v2788_v35  ;;  %2795 = vpow2.f32 %v1275_v13  ;;  %v2047_v61 = vor.u32 1.1754944e-38, %v2046_v46 }
 0x1d0   :  { %2570 = vst.msk [vmem:[%s5109_s10 + $0x158] sm:$0xff] %vm344_vm0, %v2506_v49  ;;  %v1583_v53 = vsel %vm4248_vm13, %v1582_v16, %v1578_v42  ;;  %v2038_v60 = vmul.f32 %v2788_v35, %v2037_v52  ;;  %v1594_v47 = vand.u32 2147483647, %v4232_v18  ;;  %v4272_v51 = vadd.f32 1.0, %v2790_v63  ;;  %vm2042_vm4 = vmor %vm2040_vm15, %vm2041_vm2 }
 0x1d1   :  { %v2348_v41 = vadd.f32 1.0, %v1583_v53  ;;  %v2792_v43 = vpop.eup %2791  ;;  %vm1590_vm3 = vweird.f32 %v4232_v18  ;;  %v1596_v1 = vand.u32 2147483648, %v4232_v18  ;;  %v1215_v2 = vmul.f32 1.442695, %v1135_v54  ;;  %v2444_v54 = vld [vmem:[%s5108_s9 + $0x168] sm:$0xff] }
 0x1d2   :  { %v2039_v48 = vadd.f32 %v2788_v35, %v2038_v60  ;;  %v1586_v3 = vmul.f32 %v2792_v43, %v4232_v18  ;;  %vm2055_vm5 = vweird.f32 %v4244_v23  ;;  %2797 = vrcp.f32 %v4272_v51  ;;  %v2413_v18 = vld [vmem:[%s5108_s9 + $0x70] sm:$0xff] }
 0x1d3   :  { %v2476_v56 = vmul.f32 %v2412_v38, %v2348_v41  ;;  %v1166_v5 = vsub.f32 0.0, %v1077_v59  ;;  %v2794_v28 = vpop.eup %2793  ;;  %v2059_v11 = vand.u32 2147483647, %v4244_v23  ;;  %v2061_v4 = vand.u32 2147483648, %v4244_v23 }
 0x1d4   :  { %v2043_v62 = vsel %vm2042_vm4, %v2788_v35, %v2039_v48  ;;  %v1002_v14 = vadd.f32 %v3972_v30, %v1001_v57  ;;  %v1587_v8 = vsub.f32 1.0, %v1586_v3  ;;  %vm4293_vm6 = vcmp.eq.f32.partialorder %v1594_v47, 8.507059e+37  ;;  %v1006_v48 = vpop.f32.mrf.mxu1 }
 0x1d5   :  { %2540 = vst.msk [vmem:[%s5109_s10 + $0x68] sm:$0xff] %vm344_vm0, %v2476_v56  ;;  %v2048_v55 = vsel %vm4257_vm1, %v2047_v61, %v2043_v62  ;;  %v2051_v17 = vmul.f32 %v2794_v28, %v4244_v23  ;;  %v2796_v40 = vpop.eup %2795  ;;  %vm1591_vm7 = vweird.f32 %v2792_v43  ;;  %v1597_v19 = vor.u32 1.1754944e-38, %v1596_v1 }
 0x1d6   :  { %v2379_v0 = vadd.f32 1.0, %v2048_v55  ;;  %2799 = vpow2.f32 %v1215_v2  ;;  %v1588_v12 = vmul.f32 %v2792_v43, %v1587_v8  ;;  %v4298_v20 = vadd.f32 1.0, %v2796_v40  ;;  %vm1592_vm10 = vmor %vm1590_vm3, %vm1591_vm7 }
 0x1d7   :  { %v2052_v6 = vsub.f32 1.0, %v2051_v17  ;;  %v1277_v9 = vmul.f32 1.442695, %v1166_v5  ;;  %vm4300_vm8 = vcmp.eq.f32.partialorder %v2059_v11, 8.507059e+37  ;;  %v2062_v25 = vor.u32 1.1754944e-38, %v2061_v4  ;;  %v4350_v5 = vpop.f32.mrf.mxu3  ;;  %v2414_v11 = vld [vmem:[%s5108_s9 + $0x78] sm:$0xff] }
 0x1d8   :  { %v2507_v21 = vmul.f32 %v2443_v15, %v2379_v0  ;;  %v1136_v26 = vsub.f32 0.0, %v1002_v14  ;;  %v2798_v33 = vpop.eup %2797  ;;  %v1589_v34 = vadd.f32 %v2792_v43, %v1588_v12  ;;  %vm2056_vm9 = vweird.f32 %v2794_v28 }
 0x1d9   :  { %v2053_v39 = vmul.f32 %v2794_v28, %v2052_v6  ;;  %2801 = vrcp.f32 %v4298_v20  ;;  %v1601_v10 = vmul.f32 %v2798_v33, %v4272_v51  ;;  %v1609_v35 = vand.u32 2147483647, %v4272_v51  ;;  %vm2057_vm11 = vmor %vm2055_vm5, %vm2056_vm9 }
 0x1da   :  { %2571 = vst.msk [vmem:[%s5109_s10 + $0x160] sm:$0xff] %vm344_vm0, %v2507_v21  ;;  %v1080_v27 = vadd.f32 %v3972_v30, %v1079_v58  ;;  %v1005_v24 = vadd.f32 %v3972_v30, %v1004_v7  ;;  %v1593_v37 = vsel %vm1592_vm10, %v2792_v43, %v1589_v34  ;;  %2803 = vpow2.f32 %v1277_v9 }
 0x1db   :  { %v2054_v32 = vadd.f32 %v2794_v28, %v2053_v39  ;;  %v1217_v29 = vmul.f32 1.442695, %v1136_v26  ;;  %v1598_v44 = vsel %vm4293_vm6, %v1597_v19, %v1593_v37  ;;  %v1602_v45 = vsub.f32 1.0, %v1601_v10 }
 0x1dc   :  { %v2800_v13 = vpop.eup %2799  ;;  %vm1606_vm12 = vweird.f32 %v2798_v33  ;;  %v1611_v16 = vand.u32 2147483648, %v4272_v51  ;;  %v2349_v46 = vadd.f32 1.0, %v1598_v44  ;;  %v1167_v42 = vsub.f32 0.0, %v1080_v27  ;;  %v1009_v44 = vpop.f32.mrf.mxu1 }
 0x1dd   :  { %v2058_v57 = vsel %vm2057_vm11, %v2794_v28, %v2054_v32  ;;  %v4327_v49 = vadd.f32 1.0, %v2800_v13  ;;  %2805 = vpow2.f32 %v1217_v29  ;;  %v1603_v58 = vmul.f32 %v2798_v33, %v1602_v45 }
 0x1de   :  { %v2063_v52 = vsel %vm4300_vm8, %v2062_v25, %v2058_v57  ;;  %v1137_v23 = vsub.f32 0.0, %v1005_v24  ;;  %v2477_v59 = vmul.f32 %v2413_v18, %v2349_v46  ;;  %vm1605_vm13 = vweird.f32 %v4272_v51 }
 0x1df   :  { %v2802_v36 = vpop.eup %2801  ;;  %v2380_v63 = vadd.f32 1.0, %v2063_v52  ;;  %2807 = vrcp.f32 %v4327_v49  ;;  %v1604_v53 = vadd.f32 %v2798_v33, %v1603_v58  ;;  %vm4336_vm14 = vcmp.eq.f32.partialorder %v1609_v35, 8.507059e+37  ;;  %vm1607_vm15 = vmor %vm1605_vm13, %vm1606_vm12  ;;  %v4400_v57 = vpop.f32.mrf.mxu3 }
 0x1e0   :  { %v1612_v60 = vor.u32 1.1754944e-38, %v1611_v16  ;;  %v2066_v41 = vmul.f32 %v2802_v36, %v4298_v20  ;;  %v2804_v61 = vpop.eup %2803  ;;  %2541 = vst.msk [vmem:[%s5109_s10 + $0x70] sm:$0xff] %vm344_vm0, %v2477_v59  ;;  %vm2070_vm1 = vweird.f32 %v4298_v20  ;;  %v1279_v51 = vmul.f32 1.442695, %v1167_v42 }
 0x1e1   :  { %v2508_v47 = vmul.f32 %v2444_v54, %v2380_v63  ;;  %v1219_v43 = vmul.f32 1.442695, %v1137_v23  ;;  %v1608_v1 = vsel %vm1607_vm15, %v2798_v33, %v1604_v53  ;;  %v2074_v56 = vand.u32 2147483647, %v4298_v20  ;;  %v2415_v53 = vld [vmem:[%s5108_s9 + $0x80] sm:$0xff] }
 0x1e2   :  { %v2067_v2 = vsub.f32 1.0, %v2066_v41  ;;  %v4348_v3 = vadd.f32 1.0, %v2804_v61  ;;  %v1613_v62 = vsel %vm4336_vm14, %v1612_v60, %v1608_v1  ;;  %vm2071_vm2 = vweird.f32 %v2802_v36 }
 0x1e3   :  { %v2806_v28 = vpop.eup %2805  ;;  %2572 = vst.msk [vmem:[%s5109_s10 + $0x168] sm:$0xff] %vm344_vm0, %v2508_v47  ;;  %v2076_v4 = vand.u32 2147483648, %v4298_v20  ;;  %2809 = vpow2.f32 %v1279_v51  ;;  %v2350_v14 = vadd.f32 1.0, %v1613_v62  ;;  %v1624_v15 = vand.u32 2147483647, %v4327_v49  ;;  %vm2072_vm4 = vmor %vm2070_vm1, %vm2071_vm2 }
 0x1e4   :  { %v2068_v55 = vmul.f32 %v2802_v36, %v2067_v2  ;;  %2811 = vrcp.f32 %v4348_v3  ;;  %v1626_v50 = vand.u32 2147483648, %v4327_v49  ;;  %v4365_v17 = vadd.f32 1.0, %v2806_v28  ;;  %v4432_v62 = vld [vmem:[%s5107_s8] ss:$0 sm:$0xff] }
 0x1e5   :  { %v2808_v8 = vpop.eup %2807  ;;  %2813 = vpow2.f32 %v1219_v43  ;;  %v1082_v40 = vadd.f32 %v3972_v30, %v4304_v31  ;;  %v2478_v0 = vmul.f32 %v2414_v11, %v2350_v14  ;;  %vm2075_vm3 = vcmp.eq.f32.partialorder %v2074_v56, 8.507059e+37  ;;  %v2445_v31 = vld [vmem:[%s5108_s9 + $0x170] sm:$0xff] }
 0x1e6   :  { %v2069_v19 = vadd.f32 %v2802_v36, %v2068_v55  ;;  %v1616_v12 = vmul.f32 %v2808_v8, %v4327_v49  ;;  %v2077_v6 = vor.u32 1.1754944e-38, %v2076_v4  ;;  %v2089_v9 = vand.u32 2147483647, %v4348_v3  ;;  %v2446_v4 = vld [vmem:[%s5108_s9 + $0x178] sm:$0xff] }
 0x1e7   :  { %v2091_v7 = vand.u32 2147483648, %v4348_v3  ;;  %2815 = vrcp.f32 %v4365_v17  ;;  %2542 = vst.msk [vmem:[%s5109_s10 + $0x78] sm:$0xff] %vm344_vm0, %v2478_v0  ;;  %vm1620_vm5 = vweird.f32 %v4327_v49  ;;  %vm4381_vm6 = vcmp.eq.f32.partialorder %v1624_v15, 8.507059e+37 }
 0x1e8   :  { %v2073_v21 = vsel %vm2072_vm4, %v2802_v36, %v2069_v19  ;;  %v1617_v22 = vsub.f32 1.0, %v1616_v12  ;;  %v1627_v33 = vor.u32 1.1754944e-38, %v1626_v50  ;;  %vm2085_vm7 = vweird.f32 %v4348_v3  ;;  %v1011_v19 = vpop.f32.mrf.mxu1 }
 0x1e9   :  { %v2810_v20 = vpop.eup %2809  ;;  %v2078_v26 = vsel %vm2075_vm3, %v2077_v6, %v2073_v21  ;;  %v1168_v34 = vsub.f32 0.0, %v1082_v40  ;;  %vm1621_vm8 = vweird.f32 %v2808_v8  ;;  %v1007_v27 = vadd.f32 %v3972_v30, %v1006_v48 }
 0x1ea   :  { %v2812_v39 = vpop.eup %2811  ;;  %v2381_v10 = vadd.f32 1.0, %v2078_v26  ;;  %v1618_v35 = vmul.f32 %v2808_v8, %v1617_v22  ;;  %vm4391_vm9 = vcmp.eq.f32.partialorder %v2089_v9, 8.507059e+37  ;;  %v2092_v29 = vor.u32 1.1754944e-38, %v2091_v7  ;;  %vm1622_vm10 = vmor %vm1620_vm5, %vm1621_vm8  ;;  %v1089_v7 = vpop.f32.mrf.mxu3 }
 0x1eb   :  { %v2814_v24 = vpop.eup %2813  ;;  %v2081_v37 = vmul.f32 %v2812_v39, %v4348_v3  ;;  %v4395_v13 = vadd.f32 1.0, %v2810_v20  ;;  %v1639_v16 = vand.u32 2147483647, %v4365_v17  ;;  %v1641_v58 = vand.u32 2147483648, %v4365_v17 }
 0x1ec   :  { %v2509_v18 = vmul.f32 %v2445_v31, %v2381_v10  ;;  %v1619_v45 = vadd.f32 %v2808_v8, %v1618_v35  ;;  %v4398_v46 = vadd.f32 1.0, %v2814_v24  ;;  %v1281_v42 = vmul.f32 1.442695, %v1168_v34 }
 0x1ed   :  { %v2816_v52 = vpop.eup %2815  ;;  %v2082_v54 = vsub.f32 1.0, %v2081_v37  ;;  %2817 = vrcp.f32 %v4395_v13  ;;  %v1138_v59 = vsub.f32 0.0, %v1007_v27  ;;  %v1085_v63 = vadd.f32 %v3972_v30, %v4350_v5 }
 0x1ee   :  { %2573 = vst.msk [vmem:[%s5109_s10 + $0x170] sm:$0xff] %vm344_vm0, %v2509_v18  ;;  %v1623_v23 = vsel %vm1622_vm10, %v2808_v8, %v1619_v45  ;;  %v1631_v36 = vmul.f32 %v2816_v52, %v4365_v17  ;;  %vm2086_vm11 = vweird.f32 %v2812_v39  ;;  %2819 = vrcp.f32 %v4398_v46 }
 0x1ef   :  { %v1628_v49 = vsel %vm4381_vm6, %v1627_v33, %v1623_v23  ;;  %v2083_v38 = vmul.f32 %v2812_v39, %v2082_v54  ;;  %vm1635_vm12 = vweird.f32 %v4365_v17  ;;  %vm4420_vm13 = vcmp.eq.f32.partialorder %v1639_v16, 8.507059e+37  ;;  %vm2087_vm15 = vmor %vm2085_vm7, %vm2086_vm11  ;;  %v2416_v17 = vld [vmem:[%s5108_s9 + $0x88] sm:$0xff] }
 0x1f0   :  { %v2351_v60 = vadd.f32 1.0, %v1628_v49  ;;  %v1632_v41 = vsub.f32 1.0, %v1631_v36  ;;  %vm1636_vm14 = vweird.f32 %v2816_v52  ;;  %v1642_v47 = vor.u32 1.1754944e-38, %v1641_v58 }
 0x1f1   :  { %v2084_v30 = vadd.f32 %v2812_v39, %v2083_v38  ;;  %2821 = vpow2.f32 %v1281_v42  ;;  %vm2100_vm1 = vweird.f32 %v4395_v13  ;;  %v1221_v48 = vmul.f32 1.442695, %v1138_v59  ;;  %vm1637_vm2 = vmor %vm1635_vm12, %vm1636_vm14 }
 0x1f2   :  { %v2479_v51 = vmul.f32 %v2415_v53, %v2351_v60  ;;  %v1633_v43 = vmul.f32 %v2816_v52, %v1632_v41  ;;  %v1169_v1 = vsub.f32 0.0, %v1085_v63  ;;  %v2104_v5 = vand.u32 2147483647, %v4395_v13  ;;  %v2417_v63 = vld [vmem:[%s5108_s9 + $0x90] sm:$0xff]  ;;  %v1014_v60 = vpop.f32.mrf.mxu1 }
 0x1f3   :  { %v2818_v2 = vpop.eup %2817  ;;  %v2088_v56 = vsel %vm2087_vm15, %v2812_v39, %v2084_v30  ;;  %v2106_v28 = vand.u32 2147483648, %v4395_v13  ;;  %v1010_v11 = vadd.f32 %v4432_v62, %v1009_v44  ;;  %v1654_v15 = vand.u32 2147483647, %v4398_v46 }
 0x1f4   :  { %2543 = vst.msk [vmem:[%s5109_s10 + $0x80] sm:$0xff] %vm344_vm0, %v2479_v51  ;;  %v2093_v3 = vsel %vm4391_vm9, %v2092_v29, %v2088_v56  ;;  %v1634_v14 = vadd.f32 %v2816_v52, %v1633_v43  ;;  %v2096_v55 = vmul.f32 %v2818_v2, %v4395_v13  ;;  %v2820_v8 = vpop.eup %2819  ;;  %2823 = vpow2.f32 %v1221_v48  ;;  %v2447_v13 = vld [vmem:[%s5108_s9 + $0x180] sm:$0xff]  ;;  %v1091_v51 = vpop.f32.mrf.mxu3 }
 0x1f5   :  { %v2382_v50 = vadd.f32 1.0, %v2093_v3  ;;  %v1283_v40 = vmul.f32 1.442695, %v1169_v1  ;;  %v1139_v0 = vsub.f32 0.0, %v1010_v11  ;;  %vm2101_vm3 = vweird.f32 %v2818_v2 }
 0x1f6   :  { %v1638_v12 = vsel %vm1637_vm2, %v2816_v52, %v1634_v14  ;;  %v2097_v6 = vsub.f32 1.0, %v2096_v55  ;;  %v1646_v9 = vmul.f32 %v2820_v8, %v4398_v46  ;;  %vm1651_vm4 = vweird.f32 %v2820_v8  ;;  %vm2102_vm5 = vmor %vm2100_vm1, %vm2101_vm3 }
 0x1f7   :  { %v2822_v21 = vpop.eup %2821  ;;  %v2510_v22 = vmul.f32 %v2446_v4, %v2382_v50  ;;  %v1643_v25 = vsel %vm4420_vm13, %v1642_v47, %v1638_v12  ;;  %2825 = vpow2.f32 %v1283_v40  ;;  %v1223_v20 = vmul.f32 1.442695, %v1139_v0 }
 0x1f8   :  { %v2352_v26 = vadd.f32 1.0, %v1643_v25  ;;  %v2098_v31 = vmul.f32 %v2818_v2, %v2097_v6  ;;  %v1647_v33 = vsub.f32 1.0, %v1646_v9  ;;  %v4455_v34 = vadd.f32 1.0, %v2822_v21 }
 0x1f9   :  { %2574 = vst.msk [vmem:[%s5109_s10 + $0x178] sm:$0xff] %vm344_vm0, %v2510_v22  ;;  %v1656_v39 = vand.u32 2147483648, %v4398_v46  ;;  %2827 = vpow2.f32 %v1223_v20  ;;  %v1087_v10 = vadd.f32 %v4432_v62, %v4400_v57  ;;  %vm2105_vm6 = vcmp.eq.f32.partialorder %v2104_v5, 8.507059e+37 }
 0x1fa   :  { %v2480_v35 = vmul.f32 %v2416_v17, %v2352_v26  ;;  %v2099_v27 = vadd.f32 %v2818_v2, %v2098_v31  ;;  %v1648_v24 = vmul.f32 %v2820_v8, %v1647_v33  ;;  %2829 = vrcp.f32 %v4455_v34  ;;  %v2824_v37 = vpop.eup %2823 }
 0x1fb   :  { %v2107_v32 = vor.u32 1.1754944e-38, %v2106_v28  ;;  %vm1650_vm7 = vweird.f32 %v4398_v46  ;;  %v1170_v29 = vsub.f32 0.0, %v1087_v10  ;;  %vm1655_vm8 = vcmp.eq.f32.partialorder %v1654_v15, 8.507059e+37 }
 0x1fc   :  { %2544 = vst.msk [vmem:[%s5109_s10 + $0x88] sm:$0xff] %vm344_vm0, %v2480_v35  ;;  %v2103_v44 = vsel %vm2102_vm5, %v2818_v2, %v2099_v27  ;;  %v1649_v18 = vadd.f32 %v2820_v8, %v1648_v24  ;;  %v4473_v45 = vadd.f32 1.0, %v2824_v37  ;;  %vm1652_vm9 = vmor %vm1650_vm7, %vm1651_vm4  ;;  %v1657_v46 = vor.u32 1.1754944e-38, %v1656_v39  ;;  %v2448_v35 = vld [vmem:[%s5108_s9 + $0x188] sm:$0xff]  ;;  %v1094_v37 = vpop.f32.mrf.mxu3 }
 0x1fd   :  { %v2826_v16 = vpop.eup %2825  ;;  %v2108_v57 = vsel %vm2105_vm6, %v2107_v32, %v2103_v44  ;;  %v1285_v52 = vmul.f32 1.442695, %v1170_v29  ;;  %v1012_v54 = vadd.f32 %v4432_v62, %v1011_v19  ;;  %v1090_v23 = vadd.f32 %v4432_v62, %v1089_v7 }
 0x1fe   :  { %v2383_v58 = vadd.f32 1.0, %v2108_v57  ;;  %v1653_v42 = vsel %vm1652_vm9, %v2820_v8, %v1649_v18  ;;  %2831 = vrcp.f32 %v4473_v45  ;;  %v2119_v49 = vand.u32 2147483647, %v4455_v34 }
 0x1ff   :  { %v2828_v36 = vpop.eup %2827  ;;  %v1658_v59 = vsel %vm1655_vm8, %v1657_v46, %v1653_v42  ;;  %v2121_v53 = vand.u32 2147483648, %v4455_v34  ;;  %v4487_v38 = vadd.f32 1.0, %v2826_v16  ;;  %2833 = vpow2.f32 %v1285_v52 }
 0x200   :  { %v2830_v41 = vpop.eup %2829  ;;  %v2511_v61 = vmul.f32 %v2447_v13, %v2383_v58  ;;  %v2353_v30 = vadd.f32 1.0, %v1658_v59  ;;  %v4489_v47 = vadd.f32 1.0, %v2828_v36  ;;  %v1140_v48 = vsub.f32 0.0, %v1012_v54 }
 0x201   :  { %v2111_v43 = vmul.f32 %v2830_v41, %v4455_v34  ;;  %v1669_v2 = vand.u32 2147483647, %v4473_v45  ;;  %v1671_v56 = vand.u32 2147483648, %v4473_v45  ;;  %2835 = vrcp.f32 %v4487_v38 }
 0x202   :  { %2575 = vst.msk [vmem:[%s5109_s10 + $0x180] sm:$0xff] %vm344_vm0, %v2511_v61  ;;  %v2481_v1 = vmul.f32 %v2417_v63, %v2353_v30  ;;  %vm2115_vm10 = vweird.f32 %v4455_v34  ;;  %2837 = vrcp.f32 %v4489_v47  ;;  %vm4505_vm11 = vcmp.eq.f32.partialorder %v2119_v49, 8.507059e+37  ;;  %v1016_v34 = vpop.f32.mrf.mxu1 }
 0x203   :  { %v2112_v5 = vsub.f32 1.0, %v2111_v43  ;;  %v2122_v3 = vor.u32 1.1754944e-38, %v2121_v53  ;;  %vm1665_vm12 = vweird.f32 %v4473_v45  ;;  %v1171_v4 = vsub.f32 0.0, %v1090_v23  ;;  %v2418_v23 = vld [vmem:[%s5108_s9 + $0x98] sm:$0xff] }
 0x204   :  { %v2832_v28 = vpop.eup %2831  ;;  %2545 = vst.msk [vmem:[%s5109_s10 + $0x90] sm:$0xff] %vm344_vm0, %v2481_v1  ;;  %vm2116_vm13 = vweird.f32 %v2830_v41  ;;  %v2134_v15 = vand.u32 2147483647, %v4487_v38  ;;  %vm4512_vm14 = vcmp.eq.f32.partialorder %v1669_v2, 8.507059e+37  ;;  %v1672_v40 = vor.u32 1.1754944e-38, %v1671_v56 }
 0x205   :  { %v2113_v14 = vmul.f32 %v2830_v41, %v2112_v5  ;;  %v1661_v55 = vmul.f32 %v2832_v28, %v4473_v45  ;;  %v2834_v8 = vpop.eup %2833  ;;  %v2136_v0 = vand.u32 2147483648, %v4487_v38  ;;  %v1225_v19 = vmul.f32 1.442695, %v1140_v48  ;;  %vm2117_vm1 = vmor %vm2115_vm10, %vm2116_vm13  ;;  %v2449_v5 = vld [vmem:[%s5108_s9 + $0x190] sm:$0xff] }
 0x206   :  { %vm2130_vm15 = vweird.f32 %v4487_v38  ;;  %v1684_v9 = vand.u32 2147483647, %v4489_v47  ;;  %v4519_v7 = vadd.f32 1.0, %v2834_v8  ;;  %vm1666_vm2 = vweird.f32 %v2832_v28 }
 0x207   :  { %v2114_v12 = vadd.f32 %v2830_v41, %v2113_v14  ;;  %v1662_v6 = vsub.f32 1.0, %v1661_v55  ;;  %v2836_v21 = vpop.eup %2835  ;;  %vm1680_vm3 = vweird.f32 %v4489_v47  ;;  %v1686_v22 = vand.u32 2147483648, %v4489_v47  ;;  %vm1667_vm6 = vmor %vm1665_vm12, %vm1666_vm2 }
 0x208   :  { %2839 = vpow2.f32 %v1225_v19  ;;  %v1287_v25 = vmul.f32 1.442695, %v1171_v4  ;;  %v2838_v17 = vpop.eup %2837  ;;  %v2126_v31 = vmul.f32 %v2836_v21, %v4487_v38  ;;  %vm4526_vm4 = vcmp.eq.f32.partialorder %v2134_v15, 8.507059e+37  ;;  %v2419_v4 = vld [vmem:[%s5108_s9 + $0xa0] sm:$0xff] }
 0x209   :  { %v2118_v20 = vsel %vm2117_vm1, %v2830_v41, %v2114_v12  ;;  %v1663_v26 = vmul.f32 %v2832_v28, %v1662_v6  ;;  %v1015_v39 = vadd.f32 %v4432_v62, %v1014_v60  ;;  %v2137_v27 = vor.u32 1.1754944e-38, %v2136_v0  ;;  %v1096_v0 = vpop.f32.mrf.mxu3 }
 0x20a   :  { %v2123_v10 = vsel %vm4505_vm11, %v2122_v3, %v2118_v20  ;;  %v1676_v24 = vmul.f32 %v2838_v17, %v4489_v47  ;;  %2841 = vrcp.f32 %v4519_v7  ;;  %v2127_v44 = vsub.f32 1.0, %v2126_v31  ;;  %v1019_v15 = vpop.f32.mrf.mxu1 }
 0x20b   :  { %v2384_v32 = vadd.f32 1.0, %v2123_v10  ;;  %v1664_v29 = vadd.f32 %v2832_v28, %v1663_v26  ;;  %vm4538_vm5 = vcmp.eq.f32.partialorder %v1684_v9, 8.507059e+37  ;;  %vm2131_vm7 = vweird.f32 %v2836_v21 }
 0x20c   :  { %v1677_v16 = vsub.f32 1.0, %v1676_v24  ;;  %2843 = vpow2.f32 %v1287_v25  ;;  %v1092_v57 = vadd.f32 %v4432_v62, %v1091_v51  ;;  %v2128_v52 = vmul.f32 %v2836_v21, %v2127_v44  ;;  %vm2132_vm9 = vmor %vm2130_vm15, %vm2131_vm7 }
 0x20d   :  { %v2512_v13 = vmul.f32 %v2448_v35, %v2384_v32  ;;  %v1668_v46 = vsel %vm1667_vm6, %v2832_v28, %v1664_v29  ;;  %v1141_v54 = vsub.f32 0.0, %v1015_v39  ;;  %vm1681_vm8 = vweird.f32 %v2838_v17 }
 0x20e   :  { %v2840_v58 = vpop.eup %2839  ;;  %v1673_v42 = vsel %vm4512_vm14, %v1672_v40, %v1668_v46  ;;  %v1678_v36 = vmul.f32 %v2838_v17, %v1677_v16  ;;  %v1687_v45 = vor.u32 1.1754944e-38, %v1686_v22  ;;  %v2129_v63 = vadd.f32 %v2836_v21, %v2128_v52  ;;  %vm1682_vm10 = vmor %vm1680_vm3, %vm1681_vm8 }
 0x20f   :  { %2576 = vst.msk [vmem:[%s5109_s10 + $0x188] sm:$0xff] %vm344_vm0, %v2512_v13  ;;  %v2354_v59 = vadd.f32 1.0, %v1673_v42  ;;  %v4555_v49 = vadd.f32 1.0, %v2840_v58  ;;  %v1017_v53 = vadd.f32 %v4432_v62, %v1016_v34  ;;  %v2149_v61 = vand.u32 2147483647, %v4519_v7 }
 0x210   :  { %v2842_v60 = vpop.eup %2841  ;;  %v1679_v41 = vadd.f32 %v2838_v17, %v1678_v36  ;;  %v1227_v30 = vmul.f32 1.442695, %v1141_v54  ;;  %v1095_v51 = vadd.f32 %v4432_v62, %v1094_v37  ;;  %v2133_v48 = vsel %vm2132_vm9, %v2836_v21, %v2129_v63  ;;  %v2450_v37 = vld [vmem:[%s5108_s9 + $0x198] sm:$0xff] }
 0x211   :  { %v2482_v43 = vmul.f32 %v2418_v23, %v2354_v59  ;;  %v2141_v1 = vmul.f32 %v2842_v60, %v4519_v7  ;;  %v1172_v2 = vsub.f32 0.0, %v1092_v57  ;;  %v2138_v38 = vsel %vm4526_vm4, %v2137_v27, %v2133_v48  ;;  %v1099_v63 = vpop.f32.mrf.mxu3 }
 0x212   :  { %v2844_v56 = vpop.eup %2843  ;;  %v1683_v28 = vsel %vm1682_vm10, %v2838_v17, %v1679_v41  ;;  %v2151_v11 = vand.u32 2147483648, %v4519_v7  ;;  %2845 = vrcp.f32 %v4555_v49  ;;  %v2385_v47 = vadd.f32 1.0, %v2138_v38  ;;  %v1021_v36 = vpop.f32.mrf.mxu1 }
 0x213   :  { %2546 = vst.msk [vmem:[%s5109_s10 + $0x98] sm:$0xff] %vm344_vm0, %v2482_v43  ;;  %v1688_v3 = vsel %vm4538_vm5, %v1687_v45, %v1683_v28  ;;  %v2142_v14 = vsub.f32 1.0, %v2141_v1  ;;  %v1142_v55 = vsub.f32 0.0, %v1017_v53  ;;  %v4583_v50 = vadd.f32 1.0, %v2844_v56 }
 0x214   :  { %v2355_v8 = vadd.f32 1.0, %v1688_v3  ;;  %2847 = vpow2.f32 %v1227_v30  ;;  %v1173_v40 = vsub.f32 0.0, %v1095_v51  ;;  %v2513_v19 = vmul.f32 %v2449_v5, %v2385_v47 }
 0x215   :  { %v2143_v12 = vmul.f32 %v2842_v60, %v2142_v14  ;;  %vm2146_vm11 = vweird.f32 %v2842_v60  ;;  %v1289_v6 = vmul.f32 1.442695, %v1172_v2  ;;  %vm2145_vm12 = vweird.f32 %v4519_v7 }
 0x216   :  { %v2483_v9 = vmul.f32 %v2419_v4, %v2355_v8  ;;  %vm4586_vm13 = vcmp.eq.f32.partialorder %v2149_v61, 8.507059e+37  ;;  %2849 = vrcp.f32 %v4583_v50  ;;  %2577 = vst.msk [vmem:[%s5109_s10 + $0x190] sm:$0xff] %vm344_vm0, %v2513_v19  ;;  %v2152_v25 = vor.u32 1.1754944e-38, %v2151_v11  ;;  %vm2147_vm14 = vmor %vm2145_vm12, %vm2146_vm11 }
 0x217   :  { %v2144_v22 = vadd.f32 %v2842_v60, %v2143_v12  ;;  %v1699_v17 = vand.u32 2147483647, %v4555_v49  ;;  %2851 = vpow2.f32 %v1289_v6  ;;  %v1229_v7 = vmul.f32 1.442695, %v1142_v55  ;;  %v2451_v6 = vld [vmem:[%s5108_s9 + $0x1a0] sm:$0xff] }
 0x218   :  { %v2846_v20 = vpop.eup %2845  ;;  %2547 = vst.msk [vmem:[%s5109_s10 + $0xa0] sm:$0xff] %vm344_vm0, %v2483_v9  ;;  %v1291_v26 = vmul.f32 1.442695, %v1173_v40  ;;  %v1020_v31 = vadd.f32 %v4432_v62, %v1019_v15  ;;  %v1097_v33 = vadd.f32 %v4432_v62, %v1096_v0  ;;  %v1701_v10 = vand.u32 2147483648, %v4555_v49 }
 0x219   :  { %v2148_v39 = vsel %vm2147_vm14, %v2842_v60, %v2144_v22  ;;  %v1691_v34 = vmul.f32 %v2846_v20, %v4555_v49  ;;  %v2164_v35 = vand.u32 2147483647, %v4583_v50  ;;  %v2166_v32 = vand.u32 2147483648, %v4583_v50 }
 0x21a   :  { %v2848_v27 = vpop.eup %2847  ;;  %v2153_v24 = vsel %vm4586_vm13, %v2152_v25, %v2148_v39  ;;  %2853 = vpow2.f32 %v1229_v7  ;;  %v1143_v29 = vsub.f32 0.0, %v1020_v31  ;;  %vm1695_vm15 = vweird.f32 %v4555_v49  ;;  %v2420_v49 = vld [vmem:[%s5108_s9 + $0xa8] sm:$0xff]  ;;  %v4676_v7 = vpop.f32.mrf.mxu1 }
 0x21b   :  { %v2386_v44 = vadd.f32 1.0, %v2153_v24  ;;  %v1692_v18 = vsub.f32 1.0, %v1691_v34  ;;  %v4611_v16 = vadd.f32 1.0, %v2848_v27  ;;  %2855 = vpow2.f32 %v1291_v26  ;;  %v4684_v34 = vpop.f32.mrf.mxu3 }
 0x21c   :  { %v2850_v57 = vpop.eup %2849  ;;  %vm4614_vm1 = vcmp.eq.f32.partialorder %v1699_v17, 8.507059e+37  ;;  %v1231_v46 = vmul.f32 1.442695, %v1143_v29  ;;  %v1174_v52 = vsub.f32 0.0, %v1097_v33  ;;  %vm1696_vm2 = vweird.f32 %v2846_v20 }
 0x21d   :  { %v2852_v54 = vpop.eup %2851  ;;  %v2514_v58 = vmul.f32 %v2450_v37, %v2386_v44  ;;  %v1693_v42 = vmul.f32 %v2846_v20, %v1692_v18  ;;  %v2156_v23 = vmul.f32 %v2850_v57, %v4583_v50  ;;  %v1702_v45 = vor.u32 1.1754944e-38, %v1701_v10  ;;  %vm1697_vm5 = vmor %vm1695_vm15, %vm1696_vm2 }
 0x21e   :  { %vm2160_vm3 = vweird.f32 %v4583_v50  ;;  %vm4620_vm4 = vcmp.eq.f32.partialorder %v2164_v35, 8.507059e+37  ;;  %2857 = vrcp.f32 %v4611_v16  ;;  %v2167_v41 = vor.u32 1.1754944e-38, %v2166_v32 }
 0x21f   :  { %2578 = vst.msk [vmem:[%s5109_s10 + $0x198] sm:$0xff] %vm344_vm0, %v2514_v58  ;;  %v1694_v53 = vadd.f32 %v2846_v20, %v1693_v42  ;;  %v2157_v60 = vsub.f32 1.0, %v2156_v23  ;;  %v4629_v61 = vadd.f32 1.0, %v2852_v54  ;;  %vm2161_vm6 = vweird.f32 %v2850_v57 }
 0x220   :  { %v2854_v30 = vpop.eup %2853  ;;  %2859 = vpow2.f32 %v1231_v46  ;;  %v1293_v51 = vmul.f32 1.442695, %v1174_v52  ;;  %v4634_v43 = vadd.f32 %v4432_v62, %v1021_v36  ;;  %v1714_v56 = vand.u32 2147483647, %v4611_v16  ;;  %vm2162_vm7 = vmor %vm2160_vm3, %vm2161_vm6 }
 0x221   :  { %v2856_v48 = vpop.eup %2855  ;;  %v1698_v1 = vsel %vm1697_vm5, %v2846_v20, %v1694_v53  ;;  %v2158_v2 = vmul.f32 %v2850_v57, %v2157_v60  ;;  %2861 = vrcp.f32 %v4629_v61  ;;  %v1716_v5 = vand.u32 2147483648, %v4611_v16 }
 0x222   :  { %v1703_v38 = vsel %vm4614_vm1, %v1702_v45, %v1698_v1  ;;  %v4644_v28 = vadd.f32 1.0, %v2854_v30  ;;  %v4647_v11 = vadd.f32 %v4432_v62, %v1099_v63  ;;  %v4649_v4 = vadd.f32 1.0, %v2856_v48 }
 0x223   :  { %v2356_v47 = vadd.f32 1.0, %v1703_v38  ;;  %v2159_v3 = vadd.f32 %v2850_v57, %v2158_v2  ;;  %2863 = vpow2.f32 %v1293_v51  ;;  %vm1710_vm8 = vweird.f32 %v4611_v16  ;;  %v2452_v38 = vld [vmem:[%s5108_s9 + $0x1a8] sm:$0xff] }
 0x224   :  { %v2858_v14 = vpop.eup %2857  ;;  %v2179_v55 = vand.u32 2147483647, %v4629_v61  ;;  %v2181_v15 = vand.u32 2147483648, %v4629_v61  ;;  %2865 = vrcp.f32 %v4644_v28  ;;  %vm4659_vm9 = vcmp.eq.f32.partialorder %v1714_v56, 8.507059e+37 }
 0x225   :  { %v2484_v8 = vmul.f32 %v2420_v49, %v2356_v47  ;;  %v2163_v40 = vsel %vm2162_vm7, %v2850_v57, %v2159_v3  ;;  %v1706_v0 = vmul.f32 %v2858_v14, %v4611_v16  ;;  %v1717_v9 = vor.u32 1.1754944e-38, %v1716_v5  ;;  %v2421_v16 = vld [vmem:[%s5108_s9 + $0xb0] sm:$0xff]  ;;  %v1026_v5 = vpop.f32.mrf.mxu1 }
 0x226   :  { %v2860_v12 = vpop.eup %2859  ;;  %v2168_v50 = vsel %vm4620_vm4, %v2167_v41, %v2163_v40  ;;  %2867 = vrcp.f32 %v4649_v4  ;;  %v1144_v21 = vsub.f32 0.0, %v4634_v43  ;;  %vm2175_vm10 = vweird.f32 %v4629_v61 }
 0x227   :  { %v2862_v22 = vpop.eup %2861  ;;  %2548 = vst.msk [vmem:[%s5109_s10 + $0xa8] sm:$0xff] %vm344_vm0, %v2484_v8  ;;  %v2387_v25 = vadd.f32 1.0, %v2168_v50  ;;  %v1707_v17 = vsub.f32 1.0, %v1706_v0  ;;  %v1729_v20 = vand.u32 2147483647, %v4644_v28  ;;  %vm4679_vm11 = vcmp.eq.f32.partialorder %v2179_v55, 8.507059e+37 }
 0x228   :  { %v2171_v26 = vmul.f32 %v2862_v22, %v4629_v61  ;;  %v2182_v33 = vor.u32 1.1754944e-38, %v2181_v15  ;;  %v1731_v39 = vand.u32 2147483648, %v4644_v28  ;;  %vm1711_vm12 = vweird.f32 %v2858_v14  ;;  %v1104_v15 = vpop.f32.mrf.mxu3  ;;  %v2422_v50 = vld [vmem:[%s5108_s9 + $0xb8] sm:$0xff] }
 0x229   :  { %v2864_v10 = vpop.eup %2863  ;;  %v2515_v35 = vmul.f32 %v2451_v6, %v2387_v25  ;;  %v1708_v27 = vmul.f32 %v2858_v14, %v1707_v17  ;;  %v2194_v24 = vand.u32 2147483647, %v4649_v4  ;;  %vm2176_vm13 = vweird.f32 %v2862_v22  ;;  %vm1712_vm2 = vmor %vm1710_vm8, %vm1711_vm12 }
 0x22a   :  { %v2866_v37 = vpop.eup %2865  ;;  %v2172_v32 = vsub.f32 1.0, %v2171_v26  ;;  %vm1725_vm14 = vweird.f32 %v4644_v28  ;;  %v4688_v29 = vadd.f32 1.0, %v2860_v12  ;;  %vm4695_vm15 = vcmp.eq.f32.partialorder %v1729_v20, 8.507059e+37  ;;  %vm2177_vm5 = vmor %vm2175_vm10, %vm2176_vm13 }
 0x22b   :  { %2579 = vst.msk [vmem:[%s5109_s10 + $0x1a0] sm:$0xff] %vm344_vm0, %v2515_v35  ;;  %v1709_v44 = vadd.f32 %v2858_v14, %v1708_v27  ;;  %v1721_v18 = vmul.f32 %v2866_v37, %v4644_v28  ;;  %vm2190_vm1 = vweird.f32 %v4649_v4  ;;  %v4700_v13 = vadd.f32 1.0, %v2864_v10 }
 0x22c   :  { %v2868_v46 = vpop.eup %2867  ;;  %v2173_v52 = vmul.f32 %v2862_v22, %v2172_v32  ;;  %v1732_v54 = vor.u32 1.1754944e-38, %v1731_v39  ;;  %v2196_v58 = vand.u32 2147483648, %v4649_v4  ;;  %2869 = vrcp.f32 %v4688_v29 }
 0x22d   :  { %v1713_v42 = vsel %vm1712_vm2, %v2858_v14, %v1709_v44  ;;  %v1722_v23 = vsub.f32 1.0, %v1721_v18  ;;  %v2186_v36 = vmul.f32 %v2868_v46, %v4649_v4  ;;  %vm4707_vm3 = vcmp.eq.f32.partialorder %v2194_v24, 8.507059e+37  ;;  %v2453_v4 = vld [vmem:[%s5108_s9 + $0x1b0] sm:$0xff] }
 0x22e   :  { %v1233_v59 = vmul.f32 1.442695, %v1144_v21  ;;  %v1718_v63 = vsel %vm4659_vm9, %v1717_v9, %v1713_v42  ;;  %v2174_v53 = vadd.f32 %v2862_v22, %v2173_v52  ;;  %vm1726_vm4 = vweird.f32 %v2866_v37 }
 0x22f   :  { %v1746_v60 = vand.u32 2147483648, %v4688_v29  ;;  %v2357_v41 = vadd.f32 1.0, %v1718_v63  ;;  %v1723_v30 = vmul.f32 %v2866_v37, %v1722_v23  ;;  %v2187_v51 = vsub.f32 1.0, %v2186_v36  ;;  %vm1727_vm8 = vmor %vm1725_vm14, %vm1726_vm4 }
 0x230   :  { %2871 = vrcp.f32 %v4700_v13  ;;  %v2178_v43 = vsel %vm2177_vm5, %v2862_v22, %v2174_v53  ;;  %vm2191_vm6 = vweird.f32 %v2868_v46  ;;  %v2197_v48 = vor.u32 1.1754944e-38, %v2196_v58  ;;  %v1029_v58 = vpop.f32.mrf.mxu1  ;;  %v1106_v36 = vpop.f32.mrf.mxu3 }
 0x231   :  { %v1744_v1 = vand.u32 2147483647, %v4688_v29  ;;  %v2485_v2 = vmul.f32 %v2421_v16, %v2357_v41  ;;  %v2183_v56 = vsel %vm4679_vm11, %v2182_v33, %v2178_v43  ;;  %v1724_v49 = vadd.f32 %v2866_v37, %v1723_v30  ;;  %vm2192_vm9 = vmor %vm2190_vm1, %vm2191_vm6 }
 0x232   :  { %v2188_v61 = vmul.f32 %v2868_v46, %v2187_v51  ;;  %vm1740_vm7 = vweird.f32 %v4688_v29  ;;  %v2870_v47 = vpop.eup %2869  ;;  %v2388_v3 = vadd.f32 1.0, %v2183_v56  ;;  %v1747_v14 = vor.u32 1.1754944e-38, %v1746_v60 }
 0x233   :  { %v2209_v55 = vand.u32 2147483647, %v4700_v13  ;;  %2873 = vpow2.f32 %v1233_v59  ;;  %2549 = vst.msk [vmem:[%s5109_s10 + $0xb0] sm:$0xff] %vm344_vm0, %v2485_v2  ;;  %v1728_v8 = vsel %vm1727_vm8, %v2866_v37, %v1724_v49  ;;  %v1736_v0 = vmul.f32 %v2870_v47, %v4688_v29  ;;  %v2423_v29 = vld [vmem:[%s5108_s9 + $0xc0] sm:$0xff] }
 0x234   :  { %v2189_v40 = vadd.f32 %v2868_v46, %v2188_v61  ;;  %v2211_v19 = vand.u32 2147483648, %v4700_v13  ;;  %v2516_v12 = vmul.f32 %v2452_v38, %v2388_v3  ;;  %v1733_v28 = vsel %vm4695_vm15, %v1732_v54, %v1728_v8 }
 0x235   :  { %vm1741_vm10 = vweird.f32 %v2870_v47  ;;  %v1175_v6 = vsub.f32 0.0, %v4647_v11  ;;  %v2358_v21 = vadd.f32 1.0, %v1733_v28  ;;  %v1737_v25 = vsub.f32 1.0, %v1736_v0 }
 0x236   :  { %v2872_v9 = vpop.eup %2871  ;;  %v2193_v22 = vsel %vm2192_vm9, %v2868_v46, %v2189_v40  ;;  %v1025_v17 = vadd.f32 %v4432_v62, %v4676_v7  ;;  %2580 = vst.msk [vmem:[%s5109_s10 + $0x1a8] sm:$0xff] %vm344_vm0, %v2516_v12  ;;  %v1102_v27 = vadd.f32 %v4432_v62, %v4684_v34  ;;  %v1027_v24 = vadd.f32 %v4432_v62, %v1026_v5  ;;  %vm1742_vm12 = vmor %vm1740_vm7, %vm1741_vm10 }
 0x237   :  { %v2198_v20 = vsel %vm4707_vm3, %v2197_v48, %v2193_v22  ;;  %v2201_v11 = vmul.f32 %v2872_v9, %v4700_v13  ;;  %vm2206_vm11 = vweird.f32 %v2872_v9  ;;  %v1295_v26 = vmul.f32 1.442695, %v1175_v6  ;;  %v2454_v48 = vld [vmem:[%s5108_s9 + $0x1b8] sm:$0xff] }
 0x238   :  { %v2486_v31 = vmul.f32 %v2422_v50, %v2358_v21  ;;  %v2389_v33 = vadd.f32 1.0, %v2198_v20  ;;  %v1738_v39 = vmul.f32 %v2870_v47, %v1737_v25  ;;  %v1145_v7 = vsub.f32 0.0, %v1025_v17  ;;  %v1031_v21 = vpop.f32.mrf.mxu1  ;;  %v1109_v22 = vpop.f32.mrf.mxu3 }
 0x239   :  { %v2874_v10 = vpop.eup %2873  ;;  %v2202_v35 = vsub.f32 1.0, %v2201_v11  ;;  %2875 = vpow2.f32 %v1295_v26  ;;  %v1176_v46 = vsub.f32 0.0, %v1102_v27  ;;  %v1146_v52 = vsub.f32 0.0, %v1027_v24 }
 0x23a   :  { %2550 = vst.msk [vmem:[%s5109_s10 + $0xb8] sm:$0xff] %vm344_vm0, %v2486_v31  ;;  %v2517_v37 = vmul.f32 %v2453_v4, %v2389_v33  ;;  %v1739_v32 = vadd.f32 %v2870_v47, %v1738_v39  ;;  %v4766_v44 = vadd.f32 1.0, %v2874_v10  ;;  %v1235_v18 = vmul.f32 1.442695, %v1145_v7 }
 0x23b   :  { %v2203_v57 = vmul.f32 %v2872_v9, %v2202_v35  ;;  %v1105_v34 = vadd.f32 %v4432_v62, %v1104_v15  ;;  %vm1745_vm13 = vcmp.eq.f32.partialorder %v1744_v1, 8.507059e+37  ;;  %vm2205_vm14 = vweird.f32 %v4700_v13 }
 0x23c   :  { %2581 = vst.msk [vmem:[%s5109_s10 + $0x1b0] sm:$0xff] %vm344_vm0, %v2517_v37  ;;  %v1743_v54 = vsel %vm1742_vm12, %v2870_v47, %v1739_v32  ;;  %2877 = vrcp.f32 %v4766_v44  ;;  %vm2207_vm15 = vmor %vm2205_vm14, %vm2206_vm11  ;;  %v2212_v59 = vor.u32 1.1754944e-38, %v2211_v19  ;;  %v1297_v63 = vmul.f32 1.442695, %v1176_v46 }
 0x23d   :  { %v1748_v42 = vsel %vm1745_vm13, %v1747_v14, %v1743_v54  ;;  %v2204_v23 = vadd.f32 %v2872_v9, %v2203_v57  ;;  %2879 = vpow2.f32 %v1235_v18  ;;  %v1237_v16 = vmul.f32 1.442695, %v1146_v52  ;;  %v2424_v18 = vld [vmem:[%s5108_s9 + $0xc8] sm:$0xff] }
 0x23e   :  { %v2359_v45 = vadd.f32 1.0, %v1748_v42  ;;  %vm2210_vm1 = vcmp.eq.f32.partialorder %v2209_v55, 8.507059e+37  ;;  %v1177_v41 = vsub.f32 0.0, %v1105_v34  ;;  %v1030_v30 = vadd.f32 %v4432_v62, %v1029_v58  ;;  %v4925_v58 = vld [vmem:[%s5107_s8] ss:$0 sm:$0xff] }
 0x23f   :  { %v2876_v53 = vpop.eup %2875  ;;  %v2208_v60 = vsel %vm2207_vm15, %v2872_v9, %v2204_v23  ;;  %2881 = vpow2.f32 %v1297_v63  ;;  %v1759_v13 = vand.u32 2147483647, %v4766_v44  ;;  %v1761_v61 = vand.u32 2147483648, %v4766_v44 }
 0x240   :  { %v2487_v51 = vmul.f32 %v2423_v29, %v2359_v45  ;;  %v2213_v43 = vsel %vm2210_vm1, %v2212_v59, %v2208_v60  ;;  %v4788_v1 = vadd.f32 1.0, %v2876_v53  ;;  %2883 = vpow2.f32 %v1237_v16 }
 0x241   :  { %v2390_v2 = vadd.f32 1.0, %v2213_v43  ;;  %v1299_v56 = vmul.f32 1.442695, %v1177_v41  ;;  %v1147_v38 = vsub.f32 0.0, %v1030_v30  ;;  %vm1755_vm2 = vweird.f32 %v4766_v44 }
 0x242   :  { %v2878_v49 = vpop.eup %2877  ;;  %2551 = vst.msk [vmem:[%s5109_s10 + $0xc0] sm:$0xff] %vm344_vm0, %v2487_v51  ;;  %2885 = vrcp.f32 %v4788_v1  ;;  %v2226_v14 = vand.u32 2147483648, %v4788_v1  ;;  %v2224_v40 = vand.u32 2147483647, %v4788_v1  ;;  %vm4807_vm4 = vcmp.eq.f32.partialorder %v1759_v13, 8.507059e+37 }
 0x243   :  { %v2880_v5 = vpop.eup %2879  ;;  %v2518_v47 = vmul.f32 %v2454_v48, %v2390_v2  ;;  %v1751_v3 = vmul.f32 %v2878_v49, %v4766_v44  ;;  %v1239_v15 = vmul.f32 1.442695, %v1147_v38  ;;  %2887 = vpow2.f32 %v1299_v56  ;;  %v1034_v56 = vpop.f32.mrf.mxu1 }
 0x244   :  { %v4799_v55 = vadd.f32 1.0, %v2880_v5  ;;  %vm1756_vm3 = vweird.f32 %v2878_v49  ;;  %v1762_v12 = vor.u32 1.1754944e-38, %v1761_v61  ;;  %v1107_v9 = vadd.f32 %v4432_v62, %v1106_v36 }
 0x245   :  { %2582 = vst.msk [vmem:[%s5109_s10 + $0x1b8] sm:$0xff] %vm344_vm0, %v2518_v47  ;;  %v1752_v8 = vsub.f32 1.0, %v1751_v3  ;;  %v2882_v0 = vpop.eup %2881  ;;  %vm2220_vm5 = vweird.f32 %v4788_v1  ;;  %v2227_v17 = vor.u32 1.1754944e-38, %v2226_v14  ;;  %vm4820_vm6 = vcmp.eq.f32.partialorder %v2224_v40, 8.507059e+37  ;;  %vm1757_vm7 = vmor %vm1755_vm2, %vm1756_vm3 }
 0x246   :  { %2889 = vrcp.f32 %v4799_v55  ;;  %v2884_v28 = vpop.eup %2883  ;;  %v4812_v6 = vadd.f32 1.0, %v2882_v0  ;;  %v1776_v20 = vand.u32 2147483648, %v4799_v55  ;;  %v1774_v33 = vand.u32 2147483647, %v4799_v55 }
 0x247   :  { %v1753_v50 = vmul.f32 %v2878_v49, %v1752_v8  ;;  %2891 = vpow2.f32 %v1239_v15  ;;  %v4817_v4 = vadd.f32 1.0, %v2884_v28  ;;  %v4832_v7 = vadd.f32 %v4432_v62, %v1031_v21  ;;  %v1111_v15 = vpop.f32.mrf.mxu3 }
 0x248   :  { %v2886_v25 = vpop.eup %2885  ;;  %2893 = vrcp.f32 %v4812_v6  ;;  %v2241_v39 = vand.u32 2147483648, %v4812_v6  ;;  %v4835_v10 = vadd.f32 %v4432_v62, %v1109_v22  ;;  %vm1770_vm8 = vweird.f32 %v4799_v55 }
 0x249   :  { %v1754_v11 = vadd.f32 %v2878_v49, %v1753_v50  ;;  %v2216_v26 = vmul.f32 %v2886_v25, %v4788_v1  ;;  %2895 = vrcp.f32 %v4817_v4  ;;  %v2888_v35 = vpop.eup %2887  ;;  %v1178_v37 = vsub.f32 0.0, %v1107_v9 }
 0x24a   :  { %vm2221_vm9 = vweird.f32 %v2886_v25  ;;  %v1777_v57 = vor.u32 1.1754944e-38, %v1776_v20  ;;  %v2239_v46 = vand.u32 2147483647, %v4812_v6  ;;  %vm4845_vm10 = vcmp.eq.f32.partialorder %v1774_v33, 8.507059e+37 }
 0x24b   :  { %v1758_v27 = vsel %vm1757_vm7, %v2878_v49, %v1754_v11  ;;  %v2217_v24 = vsub.f32 1.0, %v2216_v26  ;;  %v1789_v42 = vand.u32 2147483647, %v4817_v4  ;;  %vm2235_vm11 = vweird.f32 %v4812_v6  ;;  %vm2222_vm13 = vmor %vm2220_vm5, %vm2221_vm9  ;;  %v2455_v49 = vld [vmem:[%s5108_s9 + $0x1c0] sm:$0xff] }
 0x24c   :  { %v2890_v32 = vpop.eup %2889  ;;  %v1763_v44 = vsel %vm4807_vm4, %v1762_v12, %v1758_v27  ;;  %v2242_v29 = vor.u32 1.1754944e-38, %v2241_v39  ;;  %v4851_v23 = vadd.f32 1.0, %v2888_v35  ;;  %v1148_v36 = vsub.f32 0.0, %v4832_v7  ;;  %v2456_v35 = vld [vmem:[%s5108_s9 + $0x1c8] sm:$0xff] }
 0x24d   :  { %v2892_v62 = vpop.eup %2891  ;;  %v2360_v52 = vadd.f32 1.0, %v1763_v44  ;;  %v2218_v34 = vmul.f32 %v2886_v25, %v2217_v24  ;;  %v1766_v54 = vmul.f32 %v2890_v32, %v4799_v55  ;;  %vm1785_vm12 = vweird.f32 %v4817_v4  ;;  %v2425_v55 = vld [vmem:[%s5108_s9 + $0xd0] sm:$0xff] }
 0x24e   :  { %v2894_v45 = vpop.eup %2893  ;;  %v4855_v53 = vadd.f32 1.0, %v2892_v62  ;;  %vm1771_vm14 = vweird.f32 %v2890_v32  ;;  %vm4861_vm15 = vcmp.eq.f32.partialorder %v2239_v46, 8.507059e+37  ;;  %v1791_v51 = vand.u32 2147483648, %v4817_v4  ;;  %v1036_v62 = vpop.f32.mrf.mxu1 }
 0x24f   :  { %v2488_v59 = vmul.f32 %v2424_v18, %v2360_v52  ;;  %v2219_v63 = vadd.f32 %v2886_v25, %v2218_v34  ;;  %v1767_v16 = vsub.f32 1.0, %v1766_v54  ;;  %v2896_v60 = vpop.eup %2895  ;;  %v2231_v41 = vmul.f32 %v2894_v45, %v4812_v6  ;;  %vm1772_vm2 = vmor %vm1770_vm8, %vm1771_vm14 }
 0x250   :  { %2897 = vrcp.f32 %v4851_v23  ;;  %v1781_v1 = vmul.f32 %v2896_v60, %v4817_v4  ;;  %vm4872_vm1 = vcmp.eq.f32.partialorder %v1789_v42, 8.507059e+37  ;;  %v2256_v61 = vand.u32 2147483648, %v4851_v23 }
 0x251   :  { %2552 = vst.msk [vmem:[%s5109_s10 + $0xc8] sm:$0xff] %vm344_vm0, %v2488_v59  ;;  %v2223_v43 = vsel %vm2222_vm13, %v2886_v25, %v2219_v63  ;;  %v1768_v48 = vmul.f32 %v2890_v32, %v1767_v16  ;;  %v2232_v13 = vsub.f32 1.0, %v2231_v41  ;;  %v1301_v5 = vmul.f32 1.442695, %v1178_v37  ;;  %v1114_v16 = vpop.f32.mrf.mxu3 }
 0x252   :  { %v2228_v38 = vsel %vm4820_vm6, %v2227_v17, %v2223_v43  ;;  %v1782_v14 = vsub.f32 1.0, %v1781_v1  ;;  %2899 = vrcp.f32 %v4855_v53  ;;  %vm2236_vm3 = vweird.f32 %v2894_v45 }
 0x253   :  { %v2391_v47 = vadd.f32 1.0, %v2228_v38  ;;  %v1769_v3 = vadd.f32 %v2890_v32, %v1768_v48  ;;  %v2233_v8 = vmul.f32 %v2894_v45, %v2232_v13  ;;  %vm1786_vm4 = vweird.f32 %v2896_v60  ;;  %vm2237_vm6 = vmor %vm2235_vm11, %vm2236_vm3 }
 0x254   :  { %v1792_v40 = vor.u32 1.1754944e-38, %v1791_v51  ;;  %v1783_v12 = vmul.f32 %v2896_v60, %v1782_v14  ;;  %vm2250_vm5 = vweird.f32 %v4851_v23  ;;  %v2254_v28 = vand.u32 2147483647, %v4851_v23  ;;  %vm1787_vm7 = vmor %vm1785_vm12, %vm1786_vm4  ;;  %v2427_v14 = vld [vmem:[%s5108_s9 + $0xe0] sm:$0xff] }
 0x255   :  { %v2519_v0 = vmul.f32 %v2455_v49, %v2391_v47  ;;  %v1773_v19 = vsel %vm1772_vm2, %v2890_v32, %v1769_v3  ;;  %v2234_v21 = vadd.f32 %v2894_v45, %v2233_v8  ;;  %v2257_v22 = vor.u32 1.1754944e-38, %v2256_v61  ;;  %v2426_v32 = vld [vmem:[%s5108_s9 + $0xd8] sm:$0xff] }
 0x256   :  { %v2898_v50 = vpop.eup %2897  ;;  %v1778_v9 = vsel %vm4845_vm10, %v1777_v57, %v1773_v19  ;;  %2901 = vpow2.f32 %v1301_v5  ;;  %v1784_v17 = vadd.f32 %v2896_v60, %v1783_v12  ;;  %v1804_v11 = vand.u32 2147483647, %v4855_v53 }
 0x257   :  { %2583 = vst.msk [vmem:[%s5109_s10 + $0x1c0] sm:$0xff] %vm344_vm0, %v2519_v0  ;;  %v2361_v25 = vadd.f32 1.0, %v1778_v9  ;;  %v2246_v20 = vmul.f32 %v2898_v50, %v4851_v23  ;;  %v2238_v26 = vsel %vm2237_vm6, %v2894_v45, %v2234_v21  ;;  %vm2251_vm8 = vweird.f32 %v2898_v50  ;;  %v2457_v23 = vld [vmem:[%s5108_s9 + $0x1d0] sm:$0xff] }
 0x258   :  { %v1806_v31 = vand.u32 2147483648, %v4855_v53  ;;  %v1241_v33 = vmul.f32 1.442695, %v1148_v36  ;;  %v2900_v39 = vpop.eup %2899  ;;  %v2243_v6 = vsel %vm4861_vm15, %v2242_v29, %v2238_v26  ;;  %v1788_v27 = vsel %vm1787_vm7, %v2896_v60, %v1784_v17  ;;  %vm2252_vm10 = vmor %vm2250_vm5, %vm2251_vm8 }
 0x259   :  { %v2489_v7 = vmul.f32 %v2425_v55, %v2361_v25  ;;  %v2247_v24 = vsub.f32 1.0, %v2246_v20  ;;  %v2392_v37 = vadd.f32 1.0, %v2243_v6  ;;  %v1793_v4 = vsel %vm4872_vm1, %v1792_v40, %v1788_v27 }
 0x25a   :  { %v1796_v44 = vmul.f32 %v2900_v39, %v4855_v53  ;;  %vm1801_vm9 = vweird.f32 %v2900_v39  ;;  %v2362_v18 = vadd.f32 1.0, %v1793_v4  ;;  %2903 = vpow2.f32 %v1241_v33 }
 0x25b   :  { %2553 = vst.msk [vmem:[%s5109_s10 + $0xd0] sm:$0xff] %vm344_vm0, %v2489_v7  ;;  %v2248_v57 = vmul.f32 %v2898_v50, %v2247_v24  ;;  %v1179_v46 = vsub.f32 0.0, %v4835_v10  ;;  %v2520_v34 = vmul.f32 %v2456_v35, %v2392_v37  ;;  %v1035_v42 = vadd.f32 %v4925_v58, %v1034_v56 }
 0x25c   :  { %v2902_v52 = vpop.eup %2901  ;;  %v1797_v54 = vsub.f32 1.0, %v1796_v44  ;;  %v1112_v29 = vadd.f32 %v4925_v58, %v1111_v15  ;;  %v2490_v36 = vmul.f32 %v2426_v32, %v2362_v18  ;;  %v1037_v30 = vadd.f32 %v4925_v58, %v1036_v62 }
 0x25d   :  { %v2249_v45 = vadd.f32 %v2898_v50, %v2248_v57  ;;  %v4929_v59 = vadd.f32 1.0, %v2902_v52  ;;  %v1303_v63 = vmul.f32 1.442695, %v1179_v46  ;;  %2584 = vst.msk [vmem:[%s5109_s10 + $0x1c8] sm:$0xff] %vm344_vm0, %v2520_v34  ;;  %v1149_v60 = vsub.f32 0.0, %v1035_v42 }
 0x25e   :  { %v1798_v10 = vmul.f32 %v2900_v39, %v1797_v54  ;;  %v1180_v41 = vsub.f32 0.0, %v1112_v29  ;;  %2554 = vst.msk [vmem:[%s5109_s10 + $0xd8] sm:$0xff] %vm344_vm0, %v2490_v36  ;;  %vm2255_vm11 = vcmp.eq.f32.partialorder %v2254_v28, 8.507059e+37  ;;  %vm1800_vm12 = vweird.f32 %v4855_v53  ;;  %v2458_v54 = vld [vmem:[%s5108_s9 + $0x1d8] sm:$0xff] }
 0x25f   :  { %v2253_v51 = vsel %vm2252_vm10, %v2898_v50, %v2249_v45  ;;  %2905 = vrcp.f32 %v4929_v59  ;;  %vm1802_vm13 = vmor %vm1800_vm12, %vm1801_vm9  ;;  %v1807_v56 = vor.u32 1.1754944e-38, %v1806_v31  ;;  %v1243_v38 = vmul.f32 1.442695, %v1149_v60  ;;  %v2430_v29 = vld [vmem:[%s5108_s9 + $0xf8] sm:$0xff] }
 0x260   :  { %v2258_v43 = vsel %vm2255_vm11, %v2257_v22, %v2253_v51  ;;  %v1799_v48 = vadd.f32 %v2900_v39, %v1798_v10  ;;  %2907 = vpow2.f32 %v1303_v63  ;;  %v2904_v1 = vpop.eup %2903  ;;  %v1305_v49 = vmul.f32 1.442695, %v1180_v41  ;;  %v1116_v22 = vpop.f32.mrf.mxu3 }
 0x261   :  { %v2393_v2 = vadd.f32 1.0, %v2258_v43  ;;  %vm1805_vm14 = vcmp.eq.f32.partialorder %v1804_v11, 8.507059e+37  ;;  %v4949_v61 = vadd.f32 1.0, %v2904_v1  ;;  %v1150_v5 = vsub.f32 0.0, %v1037_v30 }
 0x262   :  { %v1803_v13 = vsel %vm1802_vm13, %v2900_v39, %v1799_v48  ;;  %2909 = vpow2.f32 %v1243_v38  ;;  %v1115_v53 = vadd.f32 %v4925_v58, %v1114_v16  ;;  %v2269_v50 = vand.u32 2147483647, %v4929_v59 }
 0x263   :  { %v2521_v47 = vmul.f32 %v2457_v23, %v2393_v2  ;;  %v1808_v3 = vsel %vm1805_vm14, %v1807_v56, %v1803_v13  ;;  %2911 = vrcp.f32 %v4949_v61  ;;  %v1245_v40 = vmul.f32 1.442695, %v1150_v5  ;;  %v2428_v56 = vld [vmem:[%s5108_s9 + $0xe8] sm:$0xff] }
 0x264   :  { %v2363_v15 = vadd.f32 1.0, %v1808_v3  ;;  %2913 = vpow2.f32 %v1305_v49  ;;  %v1181_v0 = vsub.f32 0.0, %v1115_v53  ;;  %v2271_v9 = vand.u32 2147483648, %v4929_v59 }
 0x265   :  { %v2906_v8 = vpop.eup %2905  ;;  %2585 = vst.msk [vmem:[%s5109_s10 + $0x1d0] sm:$0xff] %vm344_vm0, %v2521_v47  ;;  %2915 = vpow2.f32 %v1245_v40  ;;  %vm2265_vm15 = vweird.f32 %v4929_v59  ;;  %v1117_v31 = vadd.f32 %v4925_v58, %v1116_v22  ;;  %vm4974_vm2 = vcmp.eq.f32.partialorder %v2269_v50, 8.507059e+37  ;;  %v2459_v50 = vld [vmem:[%s5108_s9 + $0x1e0] sm:$0xff] }
 0x266   :  { %v2908_v19 = vpop.eup %2907  ;;  %v2491_v12 = vmul.f32 %v2427_v14, %v2363_v15  ;;  %v2261_v28 = vmul.f32 %v2906_v8, %v4929_v59  ;;  %v1307_v21 = vmul.f32 1.442695, %v1181_v0  ;;  %vm2266_vm1 = vweird.f32 %v2906_v8 }
 0x267   :  { %v4963_v55 = vadd.f32 1.0, %v2908_v19  ;;  %v2272_v7 = vor.u32 1.1754944e-38, %v2271_v9  ;;  %v1819_v27 = vand.u32 2147483647, %v4949_v61  ;;  %v1821_v24 = vand.u32 2147483648, %v4949_v61  ;;  %vm2267_vm3 = vmor %vm2265_vm15, %vm2266_vm1 }
 0x268   :  { %2555 = vst.msk [vmem:[%s5109_s10 + $0xe0] sm:$0xff] %vm344_vm0, %v2491_v12  ;;  %v2262_v25 = vsub.f32 1.0, %v2261_v28  ;;  %v2910_v17 = vpop.eup %2909  ;;  %vm1815_vm4 = vweird.f32 %v4949_v61  ;;  %v1182_v62 = vsub.f32 0.0, %v1117_v31 }
 0x269   :  { %2917 = vrcp.f32 %v4963_v55  ;;  %v2912_v20 = vpop.eup %2911  ;;  %v4971_v26 = vadd.f32 1.0, %v2910_v17  ;;  %v2284_v32 = vand.u32 2147483647, %v4963_v55  ;;  %v2286_v57 = vand.u32 2147483648, %v4963_v55 }
 0x26a   :  { %v2263_v11 = vmul.f32 %v2906_v8, %v2262_v25  ;;  %v2914_v33 = vpop.eup %2913  ;;  %v1811_v6 = vmul.f32 %v2912_v20, %v4949_v61  ;;  %2919 = vpow2.f32 %v1307_v21  ;;  %vm1816_vm5 = vweird.f32 %v2912_v20 }
 0x26b   :  { %2921 = vrcp.f32 %v4971_v26  ;;  %v2916_v37 = vpop.eup %2915  ;;  %v4986_v44 = vadd.f32 1.0, %v2914_v33  ;;  %vm4997_vm6 = vcmp.eq.f32.partialorder %v1819_v27, 8.507059e+37  ;;  %v1822_v36 = vor.u32 1.1754944e-38, %v1821_v24  ;;  %vm1817_vm8 = vmor %vm1815_vm4, %vm1816_vm5 }
 0x26c   :  { %v2264_v35 = vadd.f32 %v2906_v8, %v2263_v11  ;;  %v1812_v4 = vsub.f32 1.0, %v1811_v6  ;;  %v4989_v46 = vadd.f32 1.0, %v2916_v37  ;;  %vm2280_vm7 = vweird.f32 %v4963_v55  ;;  %v2429_v6 = vld [vmem:[%s5108_s9 + $0xf0] sm:$0xff] }
 0x26d   :  { %2923 = vrcp.f32 %v4986_v44  ;;  %v1834_v16 = vand.u32 2147483647, %v4971_v26  ;;  %v1836_v30 = vand.u32 2147483648, %v4971_v26  ;;  %v1309_v51 = vmul.f32 1.442695, %v1182_v62 }
 0x26e   :  { %v2268_v18 = vsel %vm2267_vm3, %v2906_v8, %v2264_v35  ;;  %v1813_v58 = vmul.f32 %v2912_v20, %v1812_v4  ;;  %2925 = vrcp.f32 %v4989_v46  ;;  %vm5008_vm9 = vcmp.eq.f32.partialorder %v2284_v32, 8.507059e+37 }
 0x26f   :  { %v2918_v52 = vpop.eup %2917  ;;  %v2273_v34 = vsel %vm4974_vm2, %v2272_v7, %v2268_v18  ;;  %v2287_v48 = vor.u32 1.1754944e-38, %v2286_v57  ;;  %vm1830_vm11 = vweird.f32 %v4971_v26  ;;  %vm5023_vm12 = vcmp.eq.f32.partialorder %v1834_v16, 8.507059e+37 }
 0x270   :  { %v2394_v42 = vadd.f32 1.0, %v2273_v34  ;;  %v2276_v45 = vmul.f32 %v2918_v52, %v4963_v55  ;;  %v2920_v59 = vpop.eup %2919  ;;  %v1814_v63 = vadd.f32 %v2912_v20, %v1813_v58  ;;  %vm2281_vm10 = vweird.f32 %v2918_v52 }
 0x271   :  { %v2922_v10 = vpop.eup %2921  ;;  %v5027_v47 = vadd.f32 1.0, %v2920_v59  ;;  %v1837_v14 = vor.u32 1.1754944e-38, %v1836_v30  ;;  %2927 = vpow2.f32 %v1309_v51  ;;  %vm2282_vm13 = vmor %vm2280_vm7, %vm2281_vm10  ;;  %vm2295_vm15 = vweird.f32 %v4986_v44 }
 0x272   :  { %v2522_v60 = vmul.f32 %v2458_v54, %v2394_v42  ;;  %v2277_v41 = vsub.f32 1.0, %v2276_v45  ;;  %v1818_v43 = vsel %vm1817_vm8, %v2912_v20, %v1814_v63  ;;  %v1826_v1 = vmul.f32 %v2922_v10, %v4971_v26 }
 0x273   :  { %v1823_v2 = vsel %vm4997_vm6, %v1822_v36, %v1818_v43  ;;  %v2924_v49 = vpop.eup %2923  ;;  %vm1831_vm14 = vweird.f32 %v2922_v10  ;;  %2929 = vrcp.f32 %v5027_v47  ;;  %v2299_v55 = vand.u32 2147483647, %v4986_v44 }
 0x274   :  { %2586 = vst.msk [vmem:[%s5109_s10 + $0x1d8] sm:$0xff] %vm344_vm0, %v2522_v60  ;;  %v2278_v38 = vmul.f32 %v2918_v52, %v2277_v41  ;;  %v2364_v13 = vadd.f32 1.0, %v1823_v2  ;;  %v1827_v61 = vsub.f32 1.0, %v1826_v1  ;;  %v2291_v53 = vmul.f32 %v2924_v49, %v4986_v44  ;;  %v2926_v15 = vpop.eup %2925  ;;  %vm1832_vm1 = vmor %vm1830_vm11, %vm1831_vm14 }
 0x275   :  { %v1841_v12 = vmul.f32 %v2926_v15, %v4989_v46  ;;  %v2301_v21 = vand.u32 2147483648, %v4986_v44  ;;  %vm2296_vm2 = vweird.f32 %v2924_v49  ;;  %vm1846_vm3 = vweird.f32 %v2926_v15  ;;  %v2460_v44 = vld [vmem:[%s5108_s9 + $0x1e8] sm:$0xff] }
 0x276   :  { %v2279_v3 = vadd.f32 %v2918_v52, %v2278_v38  ;;  %v2492_v8 = vmul.f32 %v2428_v56, %v2364_v13  ;;  %v1828_v40 = vmul.f32 %v2922_v10, %v1827_v61  ;;  %v2292_v19 = vsub.f32 1.0, %v2291_v53  ;;  %vm2297_vm4 = vmor %vm2295_vm15, %vm2296_vm2 }
 0x277   :  { %v1842_v17 = vsub.f32 1.0, %v1841_v12  ;;  %v1849_v11 = vand.u32 2147483647, %v4989_v46  ;;  %v1851_v31 = vand.u32 2147483648, %v4989_v46  ;;  %v2928_v33 = vpop.eup %2927  ;;  %v2302_v37 = vor.u32 1.1754944e-38, %v2301_v21 }
 0x278   :  { %v2283_v0 = vsel %vm2282_vm13, %v2918_v52, %v2279_v3  ;;  %2556 = vst.msk [vmem:[%s5109_s10 + $0xe8] sm:$0xff] %vm344_vm0, %v2492_v8  ;;  %v1829_v9 = vadd.f32 %v2922_v10, %v1828_v40  ;;  %v2293_v25 = vmul.f32 %v2924_v49, %v2292_v19  ;;  %vm1845_vm5 = vweird.f32 %v4989_v46 }
 0x279   :  { %v2288_v28 = vsel %vm5008_vm9, %v2287_v48, %v2283_v0  ;;  %v1843_v35 = vmul.f32 %v2926_v15, %v1842_v17  ;;  %v2930_v27 = vpop.eup %2929  ;;  %v1374_v4 = vadd.f32 1.0, %v2928_v33  ;;  %vm2300_vm6 = vcmp.eq.f32.partialorder %v2299_v55, 8.507059e+37  ;;  %vm1847_vm7 = vmor %vm1845_vm5, %vm1846_vm3  ;;  %v2461_v48 = vld [vmem:[%s5108_s9 + $0x1f0] sm:$0xff] }
 0x27a   :  { %v2395_v22 = vadd.f32 1.0, %v2288_v28  ;;  %v1833_v20 = vsel %vm1832_vm1, %v2922_v10, %v1829_v9  ;;  %v2294_v26 = vadd.f32 %v2924_v49, %v2293_v25  ;;  %v2306_v57 = vmul.f32 %v2930_v27, %v5027_v47 }
 0x27b   :  { %v1838_v7 = vsel %vm5023_vm12, %v1837_v14, %v1833_v20  ;;  %v1844_v18 = vadd.f32 %v2926_v15, %v1843_v35  ;;  %v1852_v46 = vor.u32 1.1754944e-38, %v1851_v31  ;;  %2931 = vrcp.f32 %v1374_v4  ;;  %v2462_v14 = vld [vmem:[%s5108_s9 + $0x1f8] sm:$0xff] }
 0x27c   :  { %v2523_v39 = vmul.f32 %v2459_v50, %v2395_v22  ;;  %v2365_v24 = vadd.f32 1.0, %v1838_v7  ;;  %v2298_v32 = vsel %vm2297_vm4, %v2924_v49, %v2294_v26  ;;  %vm1850_vm8 = vcmp.eq.f32.partialorder %v1849_v11, 8.507059e+37 }
 0x27d   :  { %v2303_v52 = vsel %vm2300_vm6, %v2302_v37, %v2298_v32  ;;  %v1848_v54 = vsel %vm1847_vm7, %v2926_v15, %v1844_v18  ;;  %v2307_v58 = vsub.f32 1.0, %v2306_v57  ;;  %v2314_v36 = vand.u32 2147483647, %v5027_v47 }
 0x27e   :  { %2587 = vst.msk [vmem:[%s5109_s10 + $0x1e0] sm:$0xff] %vm344_vm0, %v2523_v39  ;;  %v2493_v62 = vmul.f32 %v2429_v6, %v2365_v24  ;;  %v2396_v34 = vadd.f32 1.0, %v2303_v52  ;;  %v1853_v42 = vsel %vm1850_vm8, %v1852_v46, %v1848_v54  ;;  %v2316_v45 = vand.u32 2147483648, %v5027_v47 }
 0x27f   :  { %v2366_v63 = vadd.f32 1.0, %v1853_v42  ;;  %v2308_v16 = vmul.f32 %v2930_v27, %v2307_v58  ;;  %vm2311_vm9 = vweird.f32 %v2930_v27  ;;  %vm2310_vm10 = vweird.f32 %v5027_v47 }
 0x280   :  { %2557 = vst.msk [vmem:[%s5109_s10 + $0xf0] sm:$0xff] %vm344_vm0, %v2493_v62  ;;  %v2524_v59 = vmul.f32 %v2460_v44, %v2396_v34  ;;  %vm2312_vm11 = vmor %vm2310_vm10, %vm2311_vm9  ;;  %v2317_v30 = vor.u32 1.1754944e-38, %v2316_v45  ;;  %vm2315_vm12 = vcmp.eq.f32.partialorder %v2314_v36, 8.507059e+37  ;;  %v2331_v56 = vand.u32 2147483648, %v1374_v4 }
 0x281   :  { %v2494_v10 = vmul.f32 %v2430_v29, %v2366_v63  ;;  %v2309_v60 = vadd.f32 %v2930_v27, %v2308_v16  ;;  %v2932_v41 = vpop.eup %2931  ;;  %v2329_v13 = vand.u32 2147483647, %v1374_v4  ;;  %vm2325_vm14 = vweird.f32 %v1374_v4 }
 0x282   :  { %2588 = vst.msk [vmem:[%s5109_s10 + $0x1e8] sm:$0xff] %vm344_vm0, %v2524_v59  ;;  %v2321_v43 = vmul.f32 %v2932_v41, %v1374_v4  ;;  %vm2326_vm13 = vweird.f32 %v2932_v41  ;;  %v2332_v5 = vor.u32 1.1754944e-38, %v2331_v56 }
 0x283   :  { %2558 = vst.msk [vmem:[%s5109_s10 + $0xf8] sm:$0xff] %vm344_vm0, %v2494_v10  ;;  %v2313_v51 = vsel %vm2312_vm11, %v2930_v27, %v2309_v60  ;;  %vm2327_vm15 = vmor %vm2325_vm14, %vm2326_vm13  ;;  %vm2330_vm1 = vcmp.eq.f32.partialorder %v2329_v13, 8.507059e+37 }
 0x284   :  { %v2318_v23 = vsel %vm2315_vm12, %v2317_v30, %v2313_v51  ;;  %v2322_v2 = vsub.f32 1.0, %v2321_v43 }
 0x285   :  { %v2397_v1 = vadd.f32 1.0, %v2318_v23 }
 0x286   :  { %v2323_v49 = vmul.f32 %v2932_v41, %v2322_v2 }
 0x287   :  { %v2525_v38 = vmul.f32 %v2461_v48, %v2397_v1 }
 0x288   :  { %v2324_v61 = vadd.f32 %v2932_v41, %v2323_v49 }
 0x289   :  { %2589 = vst.msk [vmem:[%s5109_s10 + $0x1f0] sm:$0xff] %vm344_vm0, %v2525_v38 }
 0x28a   :  { %v2328_v47 = vsel %vm2327_vm15, %v2932_v41, %v2324_v61 }
 0x28b   :  { %v2333_v3 = vsel %vm2330_vm1, %v2332_v5, %v2328_v47 }
 0x28c   :  { %v2398_v53 = vadd.f32 1.0, %v2333_v3 }
 0x28e   :  { %v2526_v15 = vmul.f32 %v2462_v14, %v2398_v53 }
 0x290   :  { %2590 = vst.msk [vmem:[%s5109_s10 + $0x1f8] sm:$0xff] %vm344_vm0, %v2526_v15 }

</bundles_post_ra>
